<compile_context>
chip_gen: v5e
topology: v5e:2x2
jax: 0.10.0
libtpu: 0.0.40
codegen_flags: <defaults>
</compile_context>

<pallas_src>
import math

import jax
import jax.numpy as jnp
from jax.experimental import pallas as pl
from jax.experimental.pallas import tpu as pltpu

# ---- model hyper-parameters (small, consistent with the module) -------------
BATCH = 4          # axis 0: attention/sequence axis under batch_first=False
SEQ_LEN = 8        # axis 1: broadcast axis for pos-encoding, batch axis for attn
OBS_DIM = 16
ACT_DIM = 8
D_MODEL = 128
NHEAD = 4
HEAD_DIM = D_MODEL // NHEAD
NUM_LAYERS = 2
FF_DIM = 4 * D_MODEL
FF_CHUNKS = FF_DIM // D_MODEL
LN_EPS = 1e-5
ATTN_SCALE = 1.0 / math.sqrt(HEAD_DIM)
NEG_INF = -1e30


# ============================ fused Pallas kernel =============================

def _build_kernel(w_off, f_off):
    """Kernel closure over static slab offsets {name: (row_offset, n_rows)}."""
    f32, bf16 = jnp.float32, jnp.bfloat16

    def kernel(obs_ref, act_ref, w_ref, f_ref, out_ref):
        def wslab(name):                       # bf16 weight / mask block
            o, r = w_off[name]
            return w_ref[o:o + r, :]

        def fslab(name):                       # f32 bias / LN / pos / mask rows
            o, r = f_off[name]
            return f_ref[o:o + r, :]

        def mm(x, w):
            """bf16 MXU matmul with f32 accumulation."""
            return jnp.dot(x.astype(bf16), w, preferred_element_type=f32)

        def layer_norm(x, pre):
            mean = jnp.mean(x, axis=-1, keepdims=True)
            cen = x - mean
            var = jnp.mean(cen * cen, axis=-1, keepdims=True)
            return (cen * jax.lax.rsqrt(var + LN_EPS)
                    * fslab(pre + "g") + fslab(pre + "b"))

        # constants reused by all 6 attention blocks (loaded once)
        blockdiag = wslab("blockdiag")   # (H*N, D) bf16 0/1 head-block-diagonal
        segsum = wslab("segsum")         # (H*N, H*N) bf16 0/1 per-head sum-spread
        attn_bias = fslab("attn_mask")   # (N, H*N) f32: 0 (same batch) / -1e30

        def mha(x_q, x_kv, pre):
            q = (mm(x_q, wslab(pre + "wq")) + fslab(pre + "bq")).astype(bf16)
            k = (mm(x_kv, wslab(pre + "wk")) + fslab(pre + "bk")).astype(bf16)
            v = (mm(x_kv, wslab(pre + "wv")) + fslab(pre + "bv")).astype(bf16)
            # Head-fused attention: tile K/V NHEAD times along the key axis and
            # zero everything off the per-head block diagonal, so a single
            # full-width 128-contraction matmul produces all heads' scores
            # side by side (cols j = h*N + key), and the PV matmul drops each
            # head's output straight into its 32-lane slot.
            k_exp = jnp.concatenate([k] * NHEAD, axis=0) * blockdiag  # (H*N, D)
            v_exp = jnp.concatenate([v] * NHEAD, axis=0) * blockdiag  # (H*N, D)
            s = jax.lax.dot_general(q, k_exp, (((1,), (1,)), ((), ())),
                                    preferred_element_type=f32)
            s = s * ATTN_SCALE + attn_bias                            # (N, H*N)
            # per-row shift (max over all heads) is valid per head: softmax is
            # shift-invariant and the shift only needs to upper-bound each entry
            s = s - jnp.max(s, axis=-1, keepdims=True)
            e = jnp.exp(s)
            # per-head denominators, broadcast back across each head's block
            denom = jnp.dot(e.astype(bf16), segsum, preferred_element_type=f32)
            p = e * pl.reciprocal(denom, approx=True)
            o = jnp.dot(p.astype(bf16), v_exp, preferred_element_type=f32)
            return mm(o, wslab(pre + "wo")) + fslab(pre + "bo")

        def ffn(x, pre):
            # lin1 (128,512) / lin2 (512,128) processed as four 128-wide chunks:
            # relu is elementwise, so FFN(x) = sum_c relu(x@W1_c + b1_c) @ W2_c + b2
            acc = None
            for c in range(FF_CHUNKS):
                h = jnp.maximum(mm(x, wslab(f"{pre}w1_{c}"))
                                + fslab(f"{pre}b1_{c}"), 0.0)
                part = mm(h, wslab(f"{pre}w2_{c}"))
                acc = part if acc is None else acc + part
            return acc + fslab(pre + "b2")

        def enc_layer(x, pre):
            x = layer_norm(x + mha(x, x, pre + "sa_"), pre + "ln1_")
            x = layer_norm(x + ffn(x, pre), pre + "ln2_")
            return x

        def dec_layer(x, mem, pre):
            x = layer_norm(x + mha(x, x, pre + "sa_"), pre + "ln1_")
            x = layer_norm(x + mha(x, mem, pre + "ca_"), pre + "ln2_")
            x = layer_norm(x + ffn(x, pre), pre + "ln3_")
            return x

        pos = fslab("pos")   # (N, 128) f32, pre-tiled host-side (row b*S+s -> pos[s])
        x_obs = mm(obs_ref[...], wslab("emb_obs_w")) + fslab("emb_obs_b") + pos
        x_act = mm(act_ref[...], wslab("emb_act_w")) + fslab("emb_act_b") + pos

        mem = x_obs
        for layer in range(NUM_LAYERS):
            mem = enc_layer(mem, f"enc{layer}_")
        y = x_act
        for layer in range(NUM_LAYERS):
            y = dec_layer(y, mem, f"dec{layer}_")

        # lane-dense (N, 128) output slab; real projection lives in cols [:ACT_DIM]
        out_ref[...] = (mm(y, wslab("out_w")) + fslab("out_b")).astype(out_ref.dtype)

    return kernel


def build_forward(w_off, f_off, B, S):
    kernel = _build_kernel(w_off, f_off)
    n = B * S

    def forward(w_slab, f_slab, obs, act):
        out = pl.pallas_call(
            kernel,
            out_shape=jax.ShapeDtypeStruct((n, D_MODEL), jnp.float32),
            compiler_params=pltpu.CompilerParams(
                vmem_limit_bytes=8 * 1024 * 1024),
        )(obs.reshape(n, OBS_DIM), act.reshape(n, ACT_DIM), w_slab, f_slab)
        return out[:, :ACT_DIM].reshape(B, S, ACT_DIM)

    return jax.jit(forward)


# ============================ deterministic params ============================

def init_params(key):
    """Natural-layout (f32) parameters; weights are in x @ W orientation."""
    keys = iter(jax.random.split(key, 128))

    def rnd(shape, scale=0.05):
        return jax.random.normal(next(keys), shape, jnp.float32) * scale

    def attn():
        return {"wq": rnd((D_MODEL, D_MODEL)), "wk": rnd((D_MODEL, D_MODEL)),
                "wv": rnd((D_MODEL, D_MODEL)), "wo": rnd((D_MODEL, D_MODEL)),
                "bq": rnd((D_MODEL,)), "bk": rnd((D_MODEL,)),
                "bv": rnd((D_MODEL,)), "bo": rnd((D_MODEL,))}

    def ffn():
        return {"w1": rnd((D_MODEL, FF_DIM)), "b1": rnd((FF_DIM,)),
                "w2": rnd((FF_DIM, D_MODEL)), "b2": rnd((D_MODEL,))}

    def ln():
        return {"g": jnp.ones((D_MODEL,), jnp.float32),
                "b": jnp.zeros((D_MODEL,), jnp.float32)}

    return {
        "emb_obs_w": rnd((OBS_DIM, D_MODEL)), "emb_obs_b": rnd((D_MODEL,)),
        "emb_act_w": rnd((ACT_DIM, D_MODEL)), "emb_act_b": rnd((D_MODEL,)),
        "pos": rnd((SEQ_LEN, D_MODEL), 1.0),   # nn.Parameter(torch.randn(S, d))
        "enc": [{"sa": attn(), "ffn": ffn(), "ln1": ln(), "ln2": ln()}
                for _ in range(NUM_LAYERS)],
        "dec": [{"sa": attn(), "ca": attn(), "ffn": ffn(),
                 "ln1": ln(), "ln2": ln(), "ln3": ln()}
                for _ in range(NUM_LAYERS)],
        "out_w": rnd((D_MODEL, ACT_DIM)), "out_b": rnd((ACT_DIM,)),
    }


class _SlabBuilder:
    """Row-stacks (r, 128) blocks into one slab; records static offsets."""

    def __init__(self, dtype):
        self._dtype = dtype
        self._rows, self._off, self._n = [], {}, 0

    def add(self, name, arr):
        assert name not in self._off
        arr = jnp.asarray(arr, jnp.float32)
        assert arr.size % D_MODEL == 0
        arr = arr.reshape(-1, D_MODEL)
        self._off[name] = (self._n, arr.shape[0])
        self._rows.append(arr.astype(self._dtype))
        self._n += arr.shape[0]

    def build(self):
        return jnp.concatenate(self._rows, axis=0), self._off


def pack_params(params, B, S):
    """Pack into one bf16 weight/mask slab + one f32 bias/LN/pos/mask slab."""
    n = B * S
    wb = _SlabBuilder(jnp.bfloat16)
    fb = _SlabBuilder(jnp.float32)

    # ---- f32 slab: multi-row blocks first (sublane-aligned), then (1,128) rows
    fb.add("pos", jnp.tile(params["pos"], (B, 1)))             # row b*S+s -> pos[s]
    row = jnp.arange(n)
    same = (row[:, None] % S) == (row[None, :] % S)            # same axis-1 index
    bias = jnp.where(same, 0.0, NEG_INF).astype(jnp.float32)
    fb.add("attn_mask", jnp.tile(bias, (1, NHEAD)))            # (n, NHEAD*n)
    fb.add("emb_obs_b", params["emb_obs_b"])
    fb.add("emb_act_b", params["emb_act_b"])
    fb.add("out_b", jnp.zeros((D_MODEL,), jnp.float32).at[:ACT_DIM].set(params["out_b"]))

    # ---- bf16 slab: masks + all matmul weights, every block 128 lanes wide
    wb.add("emb_obs_w", params["emb_obs_w"])                   # 16 rows
    j = jnp.arange(NHEAD * n)
    d = jnp.arange(D_MODEL)
    wb.add("blockdiag",
           ((j[:, None] // n) == (d[None, :] // HEAD_DIM)).astype(jnp.float32))
    wb.add("segsum",
           ((j[:, None] // n) == (j[None, :] // n)).astype(jnp.float32))

    def add_attn(pre, a):
        for nm in ("wq", "wk", "wv", "wo"):
            wb.add(pre + nm, a[nm])
        for nm in ("bq", "bk", "bv", "bo"):
            fb.add(pre + nm, a[nm])

    def add_ffn(pre, f):
        for c in range(FF_CHUNKS):
            wb.add(f"{pre}w1_{c}", f["w1"][:, c * D_MODEL:(c + 1) * D_MODEL])
            wb.add(f"{pre}w2_{c}", f["w2"][c * D_MODEL:(c + 1) * D_MODEL, :])
            fb.add(f"{pre}b1_{c}", f["b1"][c * D_MODEL:(c + 1) * D_MODEL])
        fb.add(pre + "b2", f["b2"])

    def add_ln(pre, lnp):
        fb.add(pre + "g", lnp["g"])
        fb.add(pre + "b", lnp["b"])

    for layer in range(NUM_LAYERS):
        lp, pre = params["enc"][layer], f"enc{layer}_"
        add_attn(pre + "sa_", lp["sa"])
        add_ffn(pre, lp["ffn"])
        add_ln(pre + "ln1_", lp["ln1"])
        add_ln(pre + "ln2_", lp["ln2"])
    for layer in range(NUM_LAYERS):
        lp, pre = params["dec"][layer], f"dec{layer}_"
        add_attn(pre + "sa_", lp["sa"])
        add_attn(pre + "ca_", lp["ca"])
        add_ffn(pre, lp["ffn"])
        add_ln(pre + "ln1_", lp["ln1"])
        add_ln(pre + "ln2_", lp["ln2"])
        add_ln(pre + "ln3_", lp["ln3"])

    # final projection zero-padded to (128,128) for a lane-dense output slab
    wb.add("out_w", jnp.zeros((D_MODEL, D_MODEL), jnp.float32)
           .at[:, :ACT_DIM].set(params["out_w"]))
    # 8-row block placed last so every earlier block stays 16-row aligned (bf16 packing)
    wb.add("emb_act_w", params["emb_act_w"])

    w_slab, w_off = wb.build()
    f_slab, f_off = fb.build()
    return w_slab, f_slab, w_off, f_off


# ========================= pure-JAX f32 reference =============================

def reference_forward(params, obs, act):
    B, S, _ = obs.shape
    n = B * S
    pos = jnp.tile(params["pos"], (B, 1))
    x_obs = obs.reshape(n, OBS_DIM) @ params["emb_obs_w"] + params["emb_obs_b"] + pos
    x_act = act.reshape(n, ACT_DIM) @ params["emb_act_w"] + params["emb_act_b"] + pos

    row = jnp.arange(n)
    same = (row[:, None] % S) == (row[None, :] % S)

    def layer_norm(x, lnp):
        mean = jnp.mean(x, axis=-1, keepdims=True)
        var = jnp.mean((x - mean) ** 2, axis=-1, keepdims=True)
        return (x - mean) / jnp.sqrt(var + LN_EPS) * lnp["g"] + lnp["b"]

    def mha(xq, xkv, a):
        q = xq @ a["wq"] + a["bq"]
        k = xkv @ a["wk"] + a["bk"]
        v = xkv @ a["wv"] + a["bv"]
        outs = []
        for h in range(NHEAD):
            sl = slice(h * HEAD_DIM, (h + 1) * HEAD_DIM)
            s = (q[:, sl] @ k[:, sl].T) * ATTN_SCALE
            s = jnp.where(same, s, -jnp.inf)
            p = jax.nn.softmax(s, axis=-1)
            outs.append(p @ v[:, sl])
        return jnp.concatenate(outs, axis=-1) @ a["wo"] + a["bo"]

    def ffn(x, f):
        return jax.nn.relu(x @ f["w1"] + f["b1"]) @ f["w2"] + f["b2"]

    mem = x_obs
    for lp in params["enc"]:
        mem = layer_norm(mem + mha(mem, mem, lp["sa"]), lp["ln1"])
        mem = layer_norm(mem + ffn(mem, lp["ffn"]), lp["ln2"])
    y = x_act
    for lp in params["dec"]:
        y = layer_norm(y + mha(y, y, lp["sa"]), lp["ln1"])
        y = layer_norm(y + mha(y, mem, lp["ca"]), lp["ln2"])
        y = layer_norm(y + ffn(y, lp["ffn"]), lp["ln3"])

    return (y @ params["out_w"] + params["out_b"]).reshape(B, S, ACT_DIM)


# ==================================== main ====================================

if __name__ == "__main__":
    root = jax.random.PRNGKey(0)
    kp, ko, ka = jax.random.split(root, 3)
    params = init_params(kp)
    obs = jax.random.normal(ko, (BATCH, SEQ_LEN, OBS_DIM), jnp.float32)
    act = jax.random.normal(ka, (BATCH, SEQ_LEN, ACT_DIM), jnp.float32)

    w_slab, f_slab, w_off, f_off = pack_params(params, BATCH, SEQ_LEN)
    forward = build_forward(w_off, f_off, BATCH, SEQ_LEN)

    out = jax.block_until_ready(forward(w_slab, f_slab, obs, act))
    assert out.shape == (BATCH, SEQ_LEN, ACT_DIM), out.shape
    assert bool(jnp.all(jnp.isfinite(out)))

    # loose tolerance: kernel uses bf16 matmul operands + approx reciprocal
    ref = reference_forward(params, obs, act)
    err = float(jnp.max(jnp.abs(out - ref)))
    assert err < 1e-1, f"max abs err vs reference too large: {err}"

    print("KERNEL_OK")
</pallas_src>

<mosaic_0001>
module attributes {stable_mosaic.version = 11 : i64} {
  func.func @kernel(%arg0: memref<32x16xf32, #tpu.memory_space<vmem>>, %arg1: memref<32x8xf32, #tpu.memory_space<vmem>>, %arg2: memref<7576x128xbf16, #tpu.memory_space<vmem>>, %arg3: memref<131x128xf32, #tpu.memory_space<vmem>>, %arg4: memref<32x128xf32, #tpu.memory_space<vmem>>) attributes {dimension_semantics = [], scalar_prefetch = 0 : i64, scratch_operands = 0 : i64, tpu.core_type = #tpu.core_type<tc>} {
    %c16 = arith.constant 16 : index
    %c0 = arith.constant 0 : index
    %0 = vector.load %arg2[%c16, %c0] : memref<7576x128xbf16, #tpu.memory_space<vmem>>, vector<128x128xbf16>
    %c144 = arith.constant 144 : index
    %c0_0 = arith.constant 0 : index
    %1 = vector.load %arg2[%c144, %c0_0] : memref<7576x128xbf16, #tpu.memory_space<vmem>>, vector<128x128xbf16>
    %c32 = arith.constant 32 : index
    %c0_1 = arith.constant 0 : index
    %2 = vector.load %arg3[%c32, %c0_1] : memref<131x128xf32, #tpu.memory_space<vmem>>, vector<32x128xf32>
    %c0_2 = arith.constant 0 : index
    %c0_3 = arith.constant 0 : index
    %3 = vector.load %arg3[%c0_2, %c0_3] : memref<131x128xf32, #tpu.memory_space<vmem>>, vector<32x128xf32>
    %c0_4 = arith.constant 0 : index
    %c0_5 = arith.constant 0 : index
    %4 = vector.load %arg0[%c0_4, %c0_5] : memref<32x16xf32, #tpu.memory_space<vmem>>, vector<32x16xf32>
    %c0_6 = arith.constant 0 : index
    %c0_7 = arith.constant 0 : index
    %5 = vector.load %arg2[%c0_6, %c0_7] : memref<7576x128xbf16, #tpu.memory_space<vmem>>, vector<16x128xbf16>
    %6 = arith.truncf %4 : vector<32x16xf32> to vector<32x16xbf16>
    %cst = arith.constant dense<0.000000e+00> : vector<32x128xf32>
    %7 = tpu.matmul %6, %5, %cst {dimension_numbers = #tpu.dot_dimension_numbers<[1], [0], [0], [1], [0, 0, 1, 1], [], []>} : vector<32x16xbf16>, vector<16x128xbf16>, vector<32x128xf32> -> vector<32x128xf32>
    %c64 = arith.constant 64 : index
    %c0_8 = arith.constant 0 : index
    %8 = vector.load %arg3[%c64, %c0_8] : memref<131x128xf32, #tpu.memory_space<vmem>>, vector<1x128xf32>
    %9 = vector.broadcast %8 : vector<1x128xf32> to vector<32x128xf32>
    %10 = arith.addf %7, %9 : vector<32x128xf32>
    %11 = arith.addf %10, %3 : vector<32x128xf32>
    %c0_9 = arith.constant 0 : index
    %c0_10 = arith.constant 0 : index
    %12 = vector.load %arg1[%c0_9, %c0_10] : memref<32x8xf32, #tpu.memory_space<vmem>>, vector<32x8xf32>
    %c7568 = arith.constant 7568 : index
    %c0_11 = arith.constant 0 : index
    %13 = vector.load %arg2[%c7568, %c0_11] : memref<7576x128xbf16, #tpu.memory_space<vmem>>, vector<8x128xbf16>
    %14 = arith.truncf %12 : vector<32x8xf32> to vector<32x8xbf16>
    %cst_12 = arith.constant dense<0.000000e+00> : vector<32x128xf32>
    %15 = tpu.matmul %14, %13, %cst_12 {dimension_numbers = #tpu.dot_dimension_numbers<[1], [0], [0], [1], [0, 0, 1, 1], [], []>} : vector<32x8xbf16>, vector<8x128xbf16>, vector<32x128xf32> -> vector<32x128xf32>
    %c65 = arith.constant 65 : index
    %c0_13 = arith.constant 0 : index
    %16 = vector.load %arg3[%c65, %c0_13] : memref<131x128xf32, #tpu.memory_space<vmem>>, vector<1x128xf32>
    %17 = vector.broadcast %16 : vector<1x128xf32> to vector<32x128xf32>
    %18 = arith.addf %15, %17 : vector<32x128xf32>
    %19 = arith.addf %18, %3 : vector<32x128xf32>
    %c272 = arith.constant 272 : index
    %c0_14 = arith.constant 0 : index
    %20 = vector.load %arg2[%c272, %c0_14] : memref<7576x128xbf16, #tpu.memory_space<vmem>>, vector<128x128xbf16>
    %21 = arith.truncf %11 : vector<32x128xf32> to vector<32x128xbf16>
    %cst_15 = arith.constant dense<0.000000e+00> : vector<32x128xf32>
    %22 = tpu.matmul %21, %20, %cst_15 {dimension_numbers = #tpu.dot_dimension_numbers<[1], [0], [0], [1], [0, 0, 1, 1], [], []>} : vector<32x128xbf16>, vector<128x128xbf16>, vector<32x128xf32> -> vector<32x128xf32>
    %c67 = arith.constant 67 : index
    %c0_16 = arith.constant 0 : index
    %23 = vector.load %arg3[%c67, %c0_16] : memref<131x128xf32, #tpu.memory_space<vmem>>, vector<1x128xf32>
    %24 = vector.broadcast %23 : vector<1x128xf32> to vector<32x128xf32>
    %25 = arith.addf %22, %24 : vector<32x128xf32>
    %26 = arith.truncf %25 : vector<32x128xf32> to vector<32x128xbf16>
    %c400 = arith.constant 400 : index
    %c0_17 = arith.constant 0 : index
    %27 = vector.load %arg2[%c400, %c0_17] : memref<7576x128xbf16, #tpu.memory_space<vmem>>, vector<128x128xbf16>
    %28 = arith.truncf %11 : vector<32x128xf32> to vector<32x128xbf16>
    %cst_18 = arith.constant dense<0.000000e+00> : vector<32x128xf32>
    %29 = tpu.matmul %28, %27, %cst_18 {dimension_numbers = #tpu.dot_dimension_numbers<[1], [0], [0], [1], [0, 0, 1, 1], [], []>} : vector<32x128xbf16>, vector<128x128xbf16>, vector<32x128xf32> -> vector<32x128xf32>
    %c68 = arith.constant 68 : index
    %c0_19 = arith.constant 0 : index
    %30 = vector.load %arg3[%c68, %c0_19] : memref<131x128xf32, #tpu.memory_space<vmem>>, vector<1x128xf32>
    %31 = vector.broadcast %30 : vector<1x128xf32> to vector<32x128xf32>
    %32 = arith.addf %29, %31 : vector<32x128xf32>
    %33 = arith.truncf %32 : vector<32x128xf32> to vector<32x128xbf16>
    %c528 = arith.constant 528 : index
    %c0_20 = arith.constant 0 : index
    %34 = vector.load %arg2[%c528, %c0_20] : memref<7576x128xbf16, #tpu.memory_space<vmem>>, vector<128x128xbf16>
    %35 = arith.truncf %11 : vector<32x128xf32> to vector<32x128xbf16>
    %cst_21 = arith.constant dense<0.000000e+00> : vector<32x128xf32>
    %36 = tpu.matmul %35, %34, %cst_21 {dimension_numbers = #tpu.dot_dimension_numbers<[1], [0], [0], [1], [0, 0, 1, 1], [], []>} : vector<32x128xbf16>, vector<128x128xbf16>, vector<32x128xf32> -> vector<32x128xf32>
    %c69 = arith.constant 69 : index
    %c0_22 = arith.constant 0 : index
    %37 = vector.load %arg3[%c69, %c0_22] : memref<131x128xf32, #tpu.memory_space<vmem>>, vector<1x128xf32>
    %38 = vector.broadcast %37 : vector<1x128xf32> to vector<32x128xf32>
    %39 = arith.addf %36, %38 : vector<32x128xf32>
    %40 = arith.truncf %39 : vector<32x128xf32> to vector<32x128xbf16>
    %41 = tpu.concatenate %33, %33, %33, %33 in 0 : vector<32x128xbf16>, vector<32x128xbf16>, vector<32x128xbf16>, vector<32x128xbf16> -> vector<128x128xbf16>
    %42 = arith.mulf %41, %0 : vector<128x128xbf16>
    %43 = tpu.concatenate %40, %40, %40, %40 in 0 : vector<32x128xbf16>, vector<32x128xbf16>, vector<32x128xbf16>, vector<32x128xbf16> -> vector<128x128xbf16>
    %44 = arith.mulf %43, %0 : vector<128x128xbf16>
    %cst_23 = arith.constant dense<0.000000e+00> : vector<32x128xf32>
    %45 = tpu.matmul %26, %42, %cst_23 {dimension_numbers = #tpu.dot_dimension_numbers<[1], [1], [0], [0], [0, 0, 1, 0], [], []>} : vector<32x128xbf16>, vector<128x128xbf16>, vector<32x128xf32> -> vector<32x128xf32>
    %cst_24 = arith.constant 0.176776692 : f32
    %46 = vector.broadcast %cst_24 : f32 to vector<32x128xf32>
    %47 = arith.mulf %45, %46 : vector<32x128xf32>
    %48 = arith.addf %47, %2 : vector<32x128xf32>
    %cst_25 = arith.constant dense<0xFF800000> : vector<32xf32>
    %49 = vector.multi_reduction <maximumf>, %48, %cst_25 [1] : vector<32x128xf32> to vector<32xf32>
    %50 = vector.shape_cast %49 : vector<32xf32> to vector<32x1xf32>
    %51 = vector.broadcast %50 : vector<32x1xf32> to vector<32x128xf32>
    %52 = arith.subf %48, %51 : vector<32x128xf32>
    %53 = math.exp %52 : vector<32x128xf32>
    %54 = arith.truncf %53 : vector<32x128xf32> to vector<32x128xbf16>
    %cst_26 = arith.constant dense<0.000000e+00> : vector<32x128xf32>
    %55 = tpu.matmul %54, %1, %cst_26 {dimension_numbers = #tpu.dot_dimension_numbers<[1], [0], [0], [1], [0, 0, 1, 1], [], []>} : vector<32x128xbf16>, vector<128x128xbf16>, vector<32x128xf32> -> vector<32x128xf32>
    %56 = tpu.reciprocal %55 {approx = true} : vector<32x128xf32> -> vector<32x128xf32>
    %57 = arith.mulf %53, %56 : vector<32x128xf32>
    %58 = arith.truncf %57 : vector<32x128xf32> to vector<32x128xbf16>
    %cst_27 = arith.constant dense<0.000000e+00> : vector<32x128xf32>
    %59 = tpu.matmul %58, %44, %cst_27 {dimension_numbers = #tpu.dot_dimension_numbers<[1], [0], [0], [1], [0, 0, 1, 1], [], []>} : vector<32x128xbf16>, vector<128x128xbf16>, vector<32x128xf32> -> vector<32x128xf32>
    %c656 = arith.constant 656 : index
    %c0_28 = arith.constant 0 : index
    %60 = vector.load %arg2[%c656, %c0_28] : memref<7576x128xbf16, #tpu.memory_space<vmem>>, vector<128x128xbf16>
    %61 = arith.truncf %59 : vector<32x128xf32> to vector<32x128xbf16>
    %cst_29 = arith.constant dense<0.000000e+00> : vector<32x128xf32>
    %62 = tpu.matmul %61, %60, %cst_29 {dimension_numbers = #tpu.dot_dimension_numbers<[1], [0], [0], [1], [0, 0, 1, 1], [], []>} : vector<32x128xbf16>, vector<128x128xbf16>, vector<32x128xf32> -> vector<32x128xf32>
    %c70 = arith.constant 70 : index
    %c0_30 = arith.constant 0 : index
    %63 = vector.load %arg3[%c70, %c0_30] : memref<131x128xf32, #tpu.memory_space<vmem>>, vector<1x128xf32>
    %64 = vector.broadcast %63 : vector<1x128xf32> to vector<32x128xf32>
    %65 = arith.addf %62, %64 : vector<32x128xf32>
    %66 = arith.addf %11, %65 : vector<32x128xf32>
    %cst_31 = arith.constant dense<0.000000e+00> : vector<32xf32>
    %67 = vector.multi_reduction <add>, %66, %cst_31 [1] : vector<32x128xf32> to vector<32xf32>
    %68 = vector.shape_cast %67 : vector<32xf32> to vector<32x1xf32>
    %cst_32 = arith.constant 1.280000e+02 : f32
    %69 = vector.broadcast %cst_32 : f32 to vector<32x1xf32>
    %70 = arith.divf %68, %69 : vector<32x1xf32>
    %71 = vector.broadcast %70 : vector<32x1xf32> to vector<32x128xf32>
    %72 = arith.subf %66, %71 : vector<32x128xf32>
    %73 = arith.mulf %72, %72 : vector<32x128xf32>
    %cst_33 = arith.constant dense<0.000000e+00> : vector<32xf32>
    %74 = vector.multi_reduction <add>, %73, %cst_33 [1] : vector<32x128xf32> to vector<32xf32>
    %75 = vector.shape_cast %74 : vector<32xf32> to vector<32x1xf32>
    %cst_34 = arith.constant 1.280000e+02 : f32
    %76 = vector.broadcast %cst_34 : f32 to vector<32x1xf32>
    %77 = arith.divf %75, %76 : vector<32x1xf32>
    %cst_35 = arith.constant 9.99999974E-6 : f32
    %78 = vector.broadcast %cst_35 : f32 to vector<32x1xf32>
    %79 = arith.addf %77, %78 : vector<32x1xf32>
    %80 = math.rsqrt %79 : vector<32x1xf32>
    %81 = vector.broadcast %80 : vector<32x1xf32> to vector<32x128xf32>
    %82 = arith.mulf %72, %81 : vector<32x128xf32>
    %c76 = arith.constant 76 : index
    %c0_36 = arith.constant 0 : index
    %83 = vector.load %arg3[%c76, %c0_36] : memref<131x128xf32, #tpu.memory_space<vmem>>, vector<1x128xf32>
    %84 = vector.broadcast %83 : vector<1x128xf32> to vector<32x128xf32>
    %85 = arith.mulf %82, %84 : vector<32x128xf32>
    %c77 = arith.constant 77 : index
    %c0_37 = arith.constant 0 : index
    %86 = vector.load %arg3[%c77, %c0_37] : memref<131x128xf32, #tpu.memory_space<vmem>>, vector<1x128xf32>
    %87 = vector.broadcast %86 : vector<1x128xf32> to vector<32x128xf32>
    %88 = arith.addf %85, %87 : vector<32x128xf32>
    %c784 = arith.constant 784 : index
    %c0_38 = arith.constant 0 : index
    %89 = vector.load %arg2[%c784, %c0_38] : memref<7576x128xbf16, #tpu.memory_space<vmem>>, vector<128x128xbf16>
    %90 = arith.truncf %88 : vector<32x128xf32> to vector<32x128xbf16>
    %cst_39 = arith.constant dense<0.000000e+00> : vector<32x128xf32>
    %91 = tpu.matmul %90, %89, %cst_39 {dimension_numbers = #tpu.dot_dimension_numbers<[1], [0], [0], [1], [0, 0, 1, 1], [], []>} : vector<32x128xbf16>, vector<128x128xbf16>, vector<32x128xf32> -> vector<32x128xf32>
    %c71 = arith.constant 71 : index
    %c0_40 = arith.constant 0 : index
    %92 = vector.load %arg3[%c71, %c0_40] : memref<131x128xf32, #tpu.memory_space<vmem>>, vector<1x128xf32>
    %93 = vector.broadcast %92 : vector<1x128xf32> to vector<32x128xf32>
    %94 = arith.addf %91, %93 : vector<32x128xf32>
    %cst_41 = arith.constant 0.000000e+00 : f32
    %95 = vector.broadcast %cst_41 : f32 to vector<32x128xf32>
    %96 = arith.maximumf %94, %95 : vector<32x128xf32>
    %c912 = arith.constant 912 : index
    %c0_42 = arith.constant 0 : index
    %97 = vector.load %arg2[%c912, %c0_42] : memref<7576x128xbf16, #tpu.memory_space<vmem>>, vector<128x128xbf16>
    %98 = arith.truncf %96 : vector<32x128xf32> to vector<32x128xbf16>
    %cst_43 = arith.constant dense<0.000000e+00> : vector<32x128xf32>
    %99 = tpu.matmul %98, %97, %cst_43 {dimension_numbers = #tpu.dot_dimension_numbers<[1], [0], [0], [1], [0, 0, 1, 1], [], []>} : vector<32x128xbf16>, vector<128x128xbf16>, vector<32x128xf32> -> vector<32x128xf32>
    %c1040 = arith.constant 1040 : index
    %c0_44 = arith.constant 0 : index
    %100 = vector.load %arg2[%c1040, %c0_44] : memref<7576x128xbf16, #tpu.memory_space<vmem>>, vector<128x128xbf16>
    %101 = arith.truncf %88 : vector<32x128xf32> to vector<32x128xbf16>
    %cst_45 = arith.constant dense<0.000000e+00> : vector<32x128xf32>
    %102 = tpu.matmul %101, %100, %cst_45 {dimension_numbers = #tpu.dot_dimension_numbers<[1], [0], [0], [1], [0, 0, 1, 1], [], []>} : vector<32x128xbf16>, vector<128x128xbf16>, vector<32x128xf32> -> vector<32x128xf32>
    %c72 = arith.constant 72 : index
    %c0_46 = arith.constant 0 : index
    %103 = vector.load %arg3[%c72, %c0_46] : memref<131x128xf32, #tpu.memory_space<vmem>>, vector<1x128xf32>
    %104 = vector.broadcast %103 : vector<1x128xf32> to vector<32x128xf32>
    %105 = arith.addf %102, %104 : vector<32x128xf32>
    %cst_47 = arith.constant 0.000000e+00 : f32
    %106 = vector.broadcast %cst_47 : f32 to vector<32x128xf32>
    %107 = arith.maximumf %105, %106 : vector<32x128xf32>
    %c1168 = arith.constant 1168 : index
    %c0_48 = arith.constant 0 : index
    %108 = vector.load %arg2[%c1168, %c0_48] : memref<7576x128xbf16, #tpu.memory_space<vmem>>, vector<128x128xbf16>
    %109 = arith.truncf %107 : vector<32x128xf32> to vector<32x128xbf16>
    %cst_49 = arith.constant dense<0.000000e+00> : vector<32x128xf32>
    %110 = tpu.matmul %109, %108, %cst_49 {dimension_numbers = #tpu.dot_dimension_numbers<[1], [0], [0], [1], [0, 0, 1, 1], [], []>} : vector<32x128xbf16>, vector<128x128xbf16>, vector<32x128xf32> -> vector<32x128xf32>
    %111 = arith.addf %99, %110 : vector<32x128xf32>
    %c1296 = arith.constant 1296 : index
    %c0_50 = arith.constant 0 : index
    %112 = vector.load %arg2[%c1296, %c0_50] : memref<7576x128xbf16, #tpu.memory_space<vmem>>, vector<128x128xbf16>
    %113 = arith.truncf %88 : vector<32x128xf32> to vector<32x128xbf16>
    %cst_51 = arith.constant dense<0.000000e+00> : vector<32x128xf32>
    %114 = tpu.matmul %113, %112, %cst_51 {dimension_numbers = #tpu.dot_dimension_numbers<[1], [0], [0], [1], [0, 0, 1, 1], [], []>} : vector<32x128xbf16>, vector<128x128xbf16>, vector<32x128xf32> -> vector<32x128xf32>
    %c73 = arith.constant 73 : index
    %c0_52 = arith.constant 0 : index
    %115 = vector.load %arg3[%c73, %c0_52] : memref<131x128xf32, #tpu.memory_space<vmem>>, vector<1x128xf32>
    %116 = vector.broadcast %115 : vector<1x128xf32> to vector<32x128xf32>
    %117 = arith.addf %114, %116 : vector<32x128xf32>
    %cst_53 = arith.constant 0.000000e+00 : f32
    %118 = vector.broadcast %cst_53 : f32 to vector<32x128xf32>
    %119 = arith.maximumf %117, %118 : vector<32x128xf32>
    %c1424 = arith.constant 1424 : index
    %c0_54 = arith.constant 0 : index
    %120 = vector.load %arg2[%c1424, %c0_54] : memref<7576x128xbf16, #tpu.memory_space<vmem>>, vector<128x128xbf16>
    %121 = arith.truncf %119 : vector<32x128xf32> to vector<32x128xbf16>
    %cst_55 = arith.constant dense<0.000000e+00> : vector<32x128xf32>
    %122 = tpu.matmul %121, %120, %cst_55 {dimension_numbers = #tpu.dot_dimension_numbers<[1], [0], [0], [1], [0, 0, 1, 1], [], []>} : vector<32x128xbf16>, vector<128x128xbf16>, vector<32x128xf32> -> vector<32x128xf32>
    %123 = arith.addf %111, %122 : vector<32x128xf32>
    %c1552 = arith.constant 1552 : index
    %c0_56 = arith.constant 0 : index
    %124 = vector.load %arg2[%c1552, %c0_56] : memref<7576x128xbf16, #tpu.memory_space<vmem>>, vector<128x128xbf16>
    %125 = arith.truncf %88 : vector<32x128xf32> to vector<32x128xbf16>
    %cst_57 = arith.constant dense<0.000000e+00> : vector<32x128xf32>
    %126 = tpu.matmul %125, %124, %cst_57 {dimension_numbers = #tpu.dot_dimension_numbers<[1], [0], [0], [1], [0, 0, 1, 1], [], []>} : vector<32x128xbf16>, vector<128x128xbf16>, vector<32x128xf32> -> vector<32x128xf32>
    %c74 = arith.constant 74 : index
    %c0_58 = arith.constant 0 : index
    %127 = vector.load %arg3[%c74, %c0_58] : memref<131x128xf32, #tpu.memory_space<vmem>>, vector<1x128xf32>
    %128 = vector.broadcast %127 : vector<1x128xf32> to vector<32x128xf32>
    %129 = arith.addf %126, %128 : vector<32x128xf32>
    %cst_59 = arith.constant 0.000000e+00 : f32
    %130 = vector.broadcast %cst_59 : f32 to vector<32x128xf32>
    %131 = arith.maximumf %129, %130 : vector<32x128xf32>
    %c1680 = arith.constant 1680 : index
    %c0_60 = arith.constant 0 : index
    %132 = vector.load %arg2[%c1680, %c0_60] : memref<7576x128xbf16, #tpu.memory_space<vmem>>, vector<128x128xbf16>
    %133 = arith.truncf %131 : vector<32x128xf32> to vector<32x128xbf16>
    %cst_61 = arith.constant dense<0.000000e+00> : vector<32x128xf32>
    %134 = tpu.matmul %133, %132, %cst_61 {dimension_numbers = #tpu.dot_dimension_numbers<[1], [0], [0], [1], [0, 0, 1, 1], [], []>} : vector<32x128xbf16>, vector<128x128xbf16>, vector<32x128xf32> -> vector<32x128xf32>
    %135 = arith.addf %123, %134 : vector<32x128xf32>
    %c75 = arith.constant 75 : index
    %c0_62 = arith.constant 0 : index
    %136 = vector.load %arg3[%c75, %c0_62] : memref<131x128xf32, #tpu.memory_space<vmem>>, vector<1x128xf32>
    %137 = vector.broadcast %136 : vector<1x128xf32> to vector<32x128xf32>
    %138 = arith.addf %135, %137 : vector<32x128xf32>
    %139 = arith.addf %88, %138 : vector<32x128xf32>
    %cst_63 = arith.constant dense<0.000000e+00> : vector<32xf32>
    %140 = vector.multi_reduction <add>, %139, %cst_63 [1] : vector<32x128xf32> to vector<32xf32>
    %141 = vector.shape_cast %140 : vector<32xf32> to vector<32x1xf32>
    %cst_64 = arith.constant 1.280000e+02 : f32
    %142 = vector.broadcast %cst_64 : f32 to vector<32x1xf32>
    %143 = arith.divf %141, %142 : vector<32x1xf32>
    %144 = vector.broadcast %143 : vector<32x1xf32> to vector<32x128xf32>
    %145 = arith.subf %139, %144 : vector<32x128xf32>
    %146 = arith.mulf %145, %145 : vector<32x128xf32>
    %cst_65 = arith.constant dense<0.000000e+00> : vector<32xf32>
    %147 = vector.multi_reduction <add>, %146, %cst_65 [1] : vector<32x128xf32> to vector<32xf32>
    %148 = vector.shape_cast %147 : vector<32xf32> to vector<32x1xf32>
    %cst_66 = arith.constant 1.280000e+02 : f32
    %149 = vector.broadcast %cst_66 : f32 to vector<32x1xf32>
    %150 = arith.divf %148, %149 : vector<32x1xf32>
    %cst_67 = arith.constant 9.99999974E-6 : f32
    %151 = vector.broadcast %cst_67 : f32 to vector<32x1xf32>
    %152 = arith.addf %150, %151 : vector<32x1xf32>
    %153 = math.rsqrt %152 : vector<32x1xf32>
    %154 = vector.broadcast %153 : vector<32x1xf32> to vector<32x128xf32>
    %155 = arith.mulf %145, %154 : vector<32x128xf32>
    %c78 = arith.constant 78 : index
    %c0_68 = arith.constant 0 : index
    %156 = vector.load %arg3[%c78, %c0_68] : memref<131x128xf32, #tpu.memory_space<vmem>>, vector<1x128xf32>
    %157 = vector.broadcast %156 : vector<1x128xf32> to vector<32x128xf32>
    %158 = arith.mulf %155, %157 : vector<32x128xf32>
    %c79 = arith.constant 79 : index
    %c0_69 = arith.constant 0 : index
    %159 = vector.load %arg3[%c79, %c0_69] : memref<131x128xf32, #tpu.memory_space<vmem>>, vector<1x128xf32>
    %160 = vector.broadcast %159 : vector<1x128xf32> to vector<32x128xf32>
    %161 = arith.addf %158, %160 : vector<32x128xf32>
    %c1808 = arith.constant 1808 : index
    %c0_70 = arith.constant 0 : index
    %162 = vector.load %arg2[%c1808, %c0_70] : memref<7576x128xbf16, #tpu.memory_space<vmem>>, vector<128x128xbf16>
    %163 = arith.truncf %161 : vector<32x128xf32> to vector<32x128xbf16>
    %cst_71 = arith.constant dense<0.000000e+00> : vector<32x128xf32>
    %164 = tpu.matmul %163, %162, %cst_71 {dimension_numbers = #tpu.dot_dimension_numbers<[1], [0], [0], [1], [0, 0, 1, 1], [], []>} : vector<32x128xbf16>, vector<128x128xbf16>, vector<32x128xf32> -> vector<32x128xf32>
    %c80 = arith.constant 80 : index
    %c0_72 = arith.constant 0 : index
    %165 = vector.load %arg3[%c80, %c0_72] : memref<131x128xf32, #tpu.memory_space<vmem>>, vector<1x128xf32>
    %166 = vector.broadcast %165 : vector<1x128xf32> to vector<32x128xf32>
    %167 = arith.addf %164, %166 : vector<32x128xf32>
    %168 = arith.truncf %167 : vector<32x128xf32> to vector<32x128xbf16>
    %c1936 = arith.constant 1936 : index
    %c0_73 = arith.constant 0 : index
    %169 = vector.load %arg2[%c1936, %c0_73] : memref<7576x128xbf16, #tpu.memory_space<vmem>>, vector<128x128xbf16>
    %170 = arith.truncf %161 : vector<32x128xf32> to vector<32x128xbf16>
    %cst_74 = arith.constant dense<0.000000e+00> : vector<32x128xf32>
    %171 = tpu.matmul %170, %169, %cst_74 {dimension_numbers = #tpu.dot_dimension_numbers<[1], [0], [0], [1], [0, 0, 1, 1], [], []>} : vector<32x128xbf16>, vector<128x128xbf16>, vector<32x128xf32> -> vector<32x128xf32>
    %c81 = arith.constant 81 : index
    %c0_75 = arith.constant 0 : index
    %172 = vector.load %arg3[%c81, %c0_75] : memref<131x128xf32, #tpu.memory_space<vmem>>, vector<1x128xf32>
    %173 = vector.broadcast %172 : vector<1x128xf32> to vector<32x128xf32>
    %174 = arith.addf %171, %173 : vector<32x128xf32>
    %175 = arith.truncf %174 : vector<32x128xf32> to vector<32x128xbf16>
    %c2064 = arith.constant 2064 : index
    %c0_76 = arith.constant 0 : index
    %176 = vector.load %arg2[%c2064, %c0_76] : memref<7576x128xbf16, #tpu.memory_space<vmem>>, vector<128x128xbf16>
    %177 = arith.truncf %161 : vector<32x128xf32> to vector<32x128xbf16>
    %cst_77 = arith.constant dense<0.000000e+00> : vector<32x128xf32>
    %178 = tpu.matmul %177, %176, %cst_77 {dimension_numbers = #tpu.dot_dimension_numbers<[1], [0], [0], [1], [0, 0, 1, 1], [], []>} : vector<32x128xbf16>, vector<128x128xbf16>, vector<32x128xf32> -> vector<32x128xf32>
    %c82 = arith.constant 82 : index
    %c0_78 = arith.constant 0 : index
    %179 = vector.load %arg3[%c82, %c0_78] : memref<131x128xf32, #tpu.memory_space<vmem>>, vector<1x128xf32>
    %180 = vector.broadcast %179 : vector<1x128xf32> to vector<32x128xf32>
    %181 = arith.addf %178, %180 : vector<32x128xf32>
    %182 = arith.truncf %181 : vector<32x128xf32> to vector<32x128xbf16>
    %183 = tpu.concatenate %175, %175, %175, %175 in 0 : vector<32x128xbf16>, vector<32x128xbf16>, vector<32x128xbf16>, vector<32x128xbf16> -> vector<128x128xbf16>
    %184 = arith.mulf %183, %0 : vector<128x128xbf16>
    %185 = tpu.concatenate %182, %182, %182, %182 in 0 : vector<32x128xbf16>, vector<32x128xbf16>, vector<32x128xbf16>, vector<32x128xbf16> -> vector<128x128xbf16>
    %186 = arith.mulf %185, %0 : vector<128x128xbf16>
    %cst_79 = arith.constant dense<0.000000e+00> : vector<32x128xf32>
    %187 = tpu.matmul %168, %184, %cst_79 {dimension_numbers = #tpu.dot_dimension_numbers<[1], [1], [0], [0], [0, 0, 1, 0], [], []>} : vector<32x128xbf16>, vector<128x128xbf16>, vector<32x128xf32> -> vector<32x128xf32>
    %cst_80 = arith.constant 0.176776692 : f32
    %188 = vector.broadcast %cst_80 : f32 to vector<32x128xf32>
    %189 = arith.mulf %187, %188 : vector<32x128xf32>
    %190 = arith.addf %189, %2 : vector<32x128xf32>
    %cst_81 = arith.constant dense<0xFF800000> : vector<32xf32>
    %191 = vector.multi_reduction <maximumf>, %190, %cst_81 [1] : vector<32x128xf32> to vector<32xf32>
    %192 = vector.shape_cast %191 : vector<32xf32> to vector<32x1xf32>
    %193 = vector.broadcast %192 : vector<32x1xf32> to vector<32x128xf32>
    %194 = arith.subf %190, %193 : vector<32x128xf32>
    %195 = math.exp %194 : vector<32x128xf32>
    %196 = arith.truncf %195 : vector<32x128xf32> to vector<32x128xbf16>
    %cst_82 = arith.constant dense<0.000000e+00> : vector<32x128xf32>
    %197 = tpu.matmul %196, %1, %cst_82 {dimension_numbers = #tpu.dot_dimension_numbers<[1], [0], [0], [1], [0, 0, 1, 1], [], []>} : vector<32x128xbf16>, vector<128x128xbf16>, vector<32x128xf32> -> vector<32x128xf32>
    %198 = tpu.reciprocal %197 {approx = true} : vector<32x128xf32> -> vector<32x128xf32>
    %199 = arith.mulf %195, %198 : vector<32x128xf32>
    %200 = arith.truncf %199 : vector<32x128xf32> to vector<32x128xbf16>
    %cst_83 = arith.constant dense<0.000000e+00> : vector<32x128xf32>
    %201 = tpu.matmul %200, %186, %cst_83 {dimension_numbers = #tpu.dot_dimension_numbers<[1], [0], [0], [1], [0, 0, 1, 1], [], []>} : vector<32x128xbf16>, vector<128x128xbf16>, vector<32x128xf32> -> vector<32x128xf32>
    %c2192 = arith.constant 2192 : index
    %c0_84 = arith.constant 0 : index
    %202 = vector.load %arg2[%c2192, %c0_84] : memref<7576x128xbf16, #tpu.memory_space<vmem>>, vector<128x128xbf16>
    %203 = arith.truncf %201 : vector<32x128xf32> to vector<32x128xbf16>
    %cst_85 = arith.constant dense<0.000000e+00> : vector<32x128xf32>
    %204 = tpu.matmul %203, %202, %cst_85 {dimension_numbers = #tpu.dot_dimension_numbers<[1], [0], [0], [1], [0, 0, 1, 1], [], []>} : vector<32x128xbf16>, vector<128x128xbf16>, vector<32x128xf32> -> vector<32x128xf32>
    %c83 = arith.constant 83 : index
    %c0_86 = arith.constant 0 : index
    %205 = vector.load %arg3[%c83, %c0_86] : memref<131x128xf32, #tpu.memory_space<vmem>>, vector<1x128xf32>
    %206 = vector.broadcast %205 : vector<1x128xf32> to vector<32x128xf32>
    %207 = arith.addf %204, %206 : vector<32x128xf32>
    %208 = arith.addf %161, %207 : vector<32x128xf32>
    %cst_87 = arith.constant dense<0.000000e+00> : vector<32xf32>
    %209 = vector.multi_reduction <add>, %208, %cst_87 [1] : vector<32x128xf32> to vector<32xf32>
    %210 = vector.shape_cast %209 : vector<32xf32> to vector<32x1xf32>
    %cst_88 = arith.constant 1.280000e+02 : f32
    %211 = vector.broadcast %cst_88 : f32 to vector<32x1xf32>
    %212 = arith.divf %210, %211 : vector<32x1xf32>
    %213 = vector.broadcast %212 : vector<32x1xf32> to vector<32x128xf32>
    %214 = arith.subf %208, %213 : vector<32x128xf32>
    %215 = arith.mulf %214, %214 : vector<32x128xf32>
    %cst_89 = arith.constant dense<0.000000e+00> : vector<32xf32>
    %216 = vector.multi_reduction <add>, %215, %cst_89 [1] : vector<32x128xf32> to vector<32xf32>
    %217 = vector.shape_cast %216 : vector<32xf32> to vector<32x1xf32>
    %cst_90 = arith.constant 1.280000e+02 : f32
    %218 = vector.broadcast %cst_90 : f32 to vector<32x1xf32>
    %219 = arith.divf %217, %218 : vector<32x1xf32>
    %cst_91 = arith.constant 9.99999974E-6 : f32
    %220 = vector.broadcast %cst_91 : f32 to vector<32x1xf32>
    %221 = arith.addf %219, %220 : vector<32x1xf32>
    %222 = math.rsqrt %221 : vector<32x1xf32>
    %223 = vector.broadcast %222 : vector<32x1xf32> to vector<32x128xf32>
    %224 = arith.mulf %214, %223 : vector<32x128xf32>
    %c89 = arith.constant 89 : index
    %c0_92 = arith.constant 0 : index
    %225 = vector.load %arg3[%c89, %c0_92] : memref<131x128xf32, #tpu.memory_space<vmem>>, vector<1x128xf32>
    %226 = vector.broadcast %225 : vector<1x128xf32> to vector<32x128xf32>
    %227 = arith.mulf %224, %226 : vector<32x128xf32>
    %c90 = arith.constant 90 : index
    %c0_93 = arith.constant 0 : index
    %228 = vector.load %arg3[%c90, %c0_93] : memref<131x128xf32, #tpu.memory_space<vmem>>, vector<1x128xf32>
    %229 = vector.broadcast %228 : vector<1x128xf32> to vector<32x128xf32>
    %230 = arith.addf %227, %229 : vector<32x128xf32>
    %c2320 = arith.constant 2320 : index
    %c0_94 = arith.constant 0 : index
    %231 = vector.load %arg2[%c2320, %c0_94] : memref<7576x128xbf16, #tpu.memory_space<vmem>>, vector<128x128xbf16>
    %232 = arith.truncf %230 : vector<32x128xf32> to vector<32x128xbf16>
    %cst_95 = arith.constant dense<0.000000e+00> : vector<32x128xf32>
    %233 = tpu.matmul %232, %231, %cst_95 {dimension_numbers = #tpu.dot_dimension_numbers<[1], [0], [0], [1], [0, 0, 1, 1], [], []>} : vector<32x128xbf16>, vector<128x128xbf16>, vector<32x128xf32> -> vector<32x128xf32>
    %c84 = arith.constant 84 : index
    %c0_96 = arith.constant 0 : index
    %234 = vector.load %arg3[%c84, %c0_96] : memref<131x128xf32, #tpu.memory_space<vmem>>, vector<1x128xf32>
    %235 = vector.broadcast %234 : vector<1x128xf32> to vector<32x128xf32>
    %236 = arith.addf %233, %235 : vector<32x128xf32>
    %cst_97 = arith.constant 0.000000e+00 : f32
    %237 = vector.broadcast %cst_97 : f32 to vector<32x128xf32>
    %238 = arith.maximumf %236, %237 : vector<32x128xf32>
    %c2448 = arith.constant 2448 : index
    %c0_98 = arith.constant 0 : index
    %239 = vector.load %arg2[%c2448, %c0_98] : memref<7576x128xbf16, #tpu.memory_space<vmem>>, vector<128x128xbf16>
    %240 = arith.truncf %238 : vector<32x128xf32> to vector<32x128xbf16>
    %cst_99 = arith.constant dense<0.000000e+00> : vector<32x128xf32>
    %241 = tpu.matmul %240, %239, %cst_99 {dimension_numbers = #tpu.dot_dimension_numbers<[1], [0], [0], [1], [0, 0, 1, 1], [], []>} : vector<32x128xbf16>, vector<128x128xbf16>, vector<32x128xf32> -> vector<32x128xf32>
    %c2576 = arith.constant 2576 : index
    %c0_100 = arith.constant 0 : index
    %242 = vector.load %arg2[%c2576, %c0_100] : memref<7576x128xbf16, #tpu.memory_space<vmem>>, vector<128x128xbf16>
    %243 = arith.truncf %230 : vector<32x128xf32> to vector<32x128xbf16>
    %cst_101 = arith.constant dense<0.000000e+00> : vector<32x128xf32>
    %244 = tpu.matmul %243, %242, %cst_101 {dimension_numbers = #tpu.dot_dimension_numbers<[1], [0], [0], [1], [0, 0, 1, 1], [], []>} : vector<32x128xbf16>, vector<128x128xbf16>, vector<32x128xf32> -> vector<32x128xf32>
    %c85 = arith.constant 85 : index
    %c0_102 = arith.constant 0 : index
    %245 = vector.load %arg3[%c85, %c0_102] : memref<131x128xf32, #tpu.memory_space<vmem>>, vector<1x128xf32>
    %246 = vector.broadcast %245 : vector<1x128xf32> to vector<32x128xf32>
    %247 = arith.addf %244, %246 : vector<32x128xf32>
    %cst_103 = arith.constant 0.000000e+00 : f32
    %248 = vector.broadcast %cst_103 : f32 to vector<32x128xf32>
    %249 = arith.maximumf %247, %248 : vector<32x128xf32>
    %c2704 = arith.constant 2704 : index
    %c0_104 = arith.constant 0 : index
    %250 = vector.load %arg2[%c2704, %c0_104] : memref<7576x128xbf16, #tpu.memory_space<vmem>>, vector<128x128xbf16>
    %251 = arith.truncf %249 : vector<32x128xf32> to vector<32x128xbf16>
    %cst_105 = arith.constant dense<0.000000e+00> : vector<32x128xf32>
    %252 = tpu.matmul %251, %250, %cst_105 {dimension_numbers = #tpu.dot_dimension_numbers<[1], [0], [0], [1], [0, 0, 1, 1], [], []>} : vector<32x128xbf16>, vector<128x128xbf16>, vector<32x128xf32> -> vector<32x128xf32>
    %253 = arith.addf %241, %252 : vector<32x128xf32>
    %c2832 = arith.constant 2832 : index
    %c0_106 = arith.constant 0 : index
    %254 = vector.load %arg2[%c2832, %c0_106] : memref<7576x128xbf16, #tpu.memory_space<vmem>>, vector<128x128xbf16>
    %255 = arith.truncf %230 : vector<32x128xf32> to vector<32x128xbf16>
    %cst_107 = arith.constant dense<0.000000e+00> : vector<32x128xf32>
    %256 = tpu.matmul %255, %254, %cst_107 {dimension_numbers = #tpu.dot_dimension_numbers<[1], [0], [0], [1], [0, 0, 1, 1], [], []>} : vector<32x128xbf16>, vector<128x128xbf16>, vector<32x128xf32> -> vector<32x128xf32>
    %c86 = arith.constant 86 : index
    %c0_108 = arith.constant 0 : index
    %257 = vector.load %arg3[%c86, %c0_108] : memref<131x128xf32, #tpu.memory_space<vmem>>, vector<1x128xf32>
    %258 = vector.broadcast %257 : vector<1x128xf32> to vector<32x128xf32>
    %259 = arith.addf %256, %258 : vector<32x128xf32>
    %cst_109 = arith.constant 0.000000e+00 : f32
    %260 = vector.broadcast %cst_109 : f32 to vector<32x128xf32>
    %261 = arith.maximumf %259, %260 : vector<32x128xf32>
    %c2960 = arith.constant 2960 : index
    %c0_110 = arith.constant 0 : index
    %262 = vector.load %arg2[%c2960, %c0_110] : memref<7576x128xbf16, #tpu.memory_space<vmem>>, vector<128x128xbf16>
    %263 = arith.truncf %261 : vector<32x128xf32> to vector<32x128xbf16>
    %cst_111 = arith.constant dense<0.000000e+00> : vector<32x128xf32>
    %264 = tpu.matmul %263, %262, %cst_111 {dimension_numbers = #tpu.dot_dimension_numbers<[1], [0], [0], [1], [0, 0, 1, 1], [], []>} : vector<32x128xbf16>, vector<128x128xbf16>, vector<32x128xf32> -> vector<32x128xf32>
    %265 = arith.addf %253, %264 : vector<32x128xf32>
    %c3088 = arith.constant 3088 : index
    %c0_112 = arith.constant 0 : index
    %266 = vector.load %arg2[%c3088, %c0_112] : memref<7576x128xbf16, #tpu.memory_space<vmem>>, vector<128x128xbf16>
    %267 = arith.truncf %230 : vector<32x128xf32> to vector<32x128xbf16>
    %cst_113 = arith.constant dense<0.000000e+00> : vector<32x128xf32>
    %268 = tpu.matmul %267, %266, %cst_113 {dimension_numbers = #tpu.dot_dimension_numbers<[1], [0], [0], [1], [0, 0, 1, 1], [], []>} : vector<32x128xbf16>, vector<128x128xbf16>, vector<32x128xf32> -> vector<32x128xf32>
    %c87 = arith.constant 87 : index
    %c0_114 = arith.constant 0 : index
    %269 = vector.load %arg3[%c87, %c0_114] : memref<131x128xf32, #tpu.memory_space<vmem>>, vector<1x128xf32>
    %270 = vector.broadcast %269 : vector<1x128xf32> to vector<32x128xf32>
    %271 = arith.addf %268, %270 : vector<32x128xf32>
    %cst_115 = arith.constant 0.000000e+00 : f32
    %272 = vector.broadcast %cst_115 : f32 to vector<32x128xf32>
    %273 = arith.maximumf %271, %272 : vector<32x128xf32>
    %c3216 = arith.constant 3216 : index
    %c0_116 = arith.constant 0 : index
    %274 = vector.load %arg2[%c3216, %c0_116] : memref<7576x128xbf16, #tpu.memory_space<vmem>>, vector<128x128xbf16>
    %275 = arith.truncf %273 : vector<32x128xf32> to vector<32x128xbf16>
    %cst_117 = arith.constant dense<0.000000e+00> : vector<32x128xf32>
    %276 = tpu.matmul %275, %274, %cst_117 {dimension_numbers = #tpu.dot_dimension_numbers<[1], [0], [0], [1], [0, 0, 1, 1], [], []>} : vector<32x128xbf16>, vector<128x128xbf16>, vector<32x128xf32> -> vector<32x128xf32>
    %277 = arith.addf %265, %276 : vector<32x128xf32>
    %c88 = arith.constant 88 : index
    %c0_118 = arith.constant 0 : index
    %278 = vector.load %arg3[%c88, %c0_118] : memref<131x128xf32, #tpu.memory_space<vmem>>, vector<1x128xf32>
    %279 = vector.broadcast %278 : vector<1x128xf32> to vector<32x128xf32>
    %280 = arith.addf %277, %279 : vector<32x128xf32>
    %281 = arith.addf %230, %280 : vector<32x128xf32>
    %cst_119 = arith.constant dense<0.000000e+00> : vector<32xf32>
    %282 = vector.multi_reduction <add>, %281, %cst_119 [1] : vector<32x128xf32> to vector<32xf32>
    %283 = vector.shape_cast %282 : vector<32xf32> to vector<32x1xf32>
    %cst_120 = arith.constant 1.280000e+02 : f32
    %284 = vector.broadcast %cst_120 : f32 to vector<32x1xf32>
    %285 = arith.divf %283, %284 : vector<32x1xf32>
    %286 = vector.broadcast %285 : vector<32x1xf32> to vector<32x128xf32>
    %287 = arith.subf %281, %286 : vector<32x128xf32>
    %288 = arith.mulf %287, %287 : vector<32x128xf32>
    %cst_121 = arith.constant dense<0.000000e+00> : vector<32xf32>
    %289 = vector.multi_reduction <add>, %288, %cst_121 [1] : vector<32x128xf32> to vector<32xf32>
    %290 = vector.shape_cast %289 : vector<32xf32> to vector<32x1xf32>
    %cst_122 = arith.constant 1.280000e+02 : f32
    %291 = vector.broadcast %cst_122 : f32 to vector<32x1xf32>
    %292 = arith.divf %290, %291 : vector<32x1xf32>
    %cst_123 = arith.constant 9.99999974E-6 : f32
    %293 = vector.broadcast %cst_123 : f32 to vector<32x1xf32>
    %294 = arith.addf %292, %293 : vector<32x1xf32>
    %295 = math.rsqrt %294 : vector<32x1xf32>
    %296 = vector.broadcast %295 : vector<32x1xf32> to vector<32x128xf32>
    %297 = arith.mulf %287, %296 : vector<32x128xf32>
    %c91 = arith.constant 91 : index
    %c0_124 = arith.constant 0 : index
    %298 = vector.load %arg3[%c91, %c0_124] : memref<131x128xf32, #tpu.memory_space<vmem>>, vector<1x128xf32>
    %299 = vector.broadcast %298 : vector<1x128xf32> to vector<32x128xf32>
    %300 = arith.mulf %297, %299 : vector<32x128xf32>
    %c92 = arith.constant 92 : index
    %c0_125 = arith.constant 0 : index
    %301 = vector.load %arg3[%c92, %c0_125] : memref<131x128xf32, #tpu.memory_space<vmem>>, vector<1x128xf32>
    %302 = vector.broadcast %301 : vector<1x128xf32> to vector<32x128xf32>
    %303 = arith.addf %300, %302 : vector<32x128xf32>
    %c3344 = arith.constant 3344 : index
    %c0_126 = arith.constant 0 : index
    %304 = vector.load %arg2[%c3344, %c0_126] : memref<7576x128xbf16, #tpu.memory_space<vmem>>, vector<128x128xbf16>
    %305 = arith.truncf %19 : vector<32x128xf32> to vector<32x128xbf16>
    %cst_127 = arith.constant dense<0.000000e+00> : vector<32x128xf32>
    %306 = tpu.matmul %305, %304, %cst_127 {dimension_numbers = #tpu.dot_dimension_numbers<[1], [0], [0], [1], [0, 0, 1, 1], [], []>} : vector<32x128xbf16>, vector<128x128xbf16>, vector<32x128xf32> -> vector<32x128xf32>
    %c93 = arith.constant 93 : index
    %c0_128 = arith.constant 0 : index
    %307 = vector.load %arg3[%c93, %c0_128] : memref<131x128xf32, #tpu.memory_space<vmem>>, vector<1x128xf32>
    %308 = vector.broadcast %307 : vector<1x128xf32> to vector<32x128xf32>
    %309 = arith.addf %306, %308 : vector<32x128xf32>
    %310 = arith.truncf %309 : vector<32x128xf32> to vector<32x128xbf16>
    %c3472 = arith.constant 3472 : index
    %c0_129 = arith.constant 0 : index
    %311 = vector.load %arg2[%c3472, %c0_129] : memref<7576x128xbf16, #tpu.memory_space<vmem>>, vector<128x128xbf16>
    %312 = arith.truncf %19 : vector<32x128xf32> to vector<32x128xbf16>
    %cst_130 = arith.constant dense<0.000000e+00> : vector<32x128xf32>
    %313 = tpu.matmul %312, %311, %cst_130 {dimension_numbers = #tpu.dot_dimension_numbers<[1], [0], [0], [1], [0, 0, 1, 1], [], []>} : vector<32x128xbf16>, vector<128x128xbf16>, vector<32x128xf32> -> vector<32x128xf32>
    %c94 = arith.constant 94 : index
    %c0_131 = arith.constant 0 : index
    %314 = vector.load %arg3[%c94, %c0_131] : memref<131x128xf32, #tpu.memory_space<vmem>>, vector<1x128xf32>
    %315 = vector.broadcast %314 : vector<1x128xf32> to vector<32x128xf32>
    %316 = arith.addf %313, %315 : vector<32x128xf32>
    %317 = arith.truncf %316 : vector<32x128xf32> to vector<32x128xbf16>
    %c3600 = arith.constant 3600 : index
    %c0_132 = arith.constant 0 : index
    %318 = vector.load %arg2[%c3600, %c0_132] : memref<7576x128xbf16, #tpu.memory_space<vmem>>, vector<128x128xbf16>
    %319 = arith.truncf %19 : vector<32x128xf32> to vector<32x128xbf16>
    %cst_133 = arith.constant dense<0.000000e+00> : vector<32x128xf32>
    %320 = tpu.matmul %319, %318, %cst_133 {dimension_numbers = #tpu.dot_dimension_numbers<[1], [0], [0], [1], [0, 0, 1, 1], [], []>} : vector<32x128xbf16>, vector<128x128xbf16>, vector<32x128xf32> -> vector<32x128xf32>
    %c95 = arith.constant 95 : index
    %c0_134 = arith.constant 0 : index
    %321 = vector.load %arg3[%c95, %c0_134] : memref<131x128xf32, #tpu.memory_space<vmem>>, vector<1x128xf32>
    %322 = vector.broadcast %321 : vector<1x128xf32> to vector<32x128xf32>
    %323 = arith.addf %320, %322 : vector<32x128xf32>
    %324 = arith.truncf %323 : vector<32x128xf32> to vector<32x128xbf16>
    %325 = tpu.concatenate %317, %317, %317, %317 in 0 : vector<32x128xbf16>, vector<32x128xbf16>, vector<32x128xbf16>, vector<32x128xbf16> -> vector<128x128xbf16>
    %326 = arith.mulf %325, %0 : vector<128x128xbf16>
    %327 = tpu.concatenate %324, %324, %324, %324 in 0 : vector<32x128xbf16>, vector<32x128xbf16>, vector<32x128xbf16>, vector<32x128xbf16> -> vector<128x128xbf16>
    %328 = arith.mulf %327, %0 : vector<128x128xbf16>
    %cst_135 = arith.constant dense<0.000000e+00> : vector<32x128xf32>
    %329 = tpu.matmul %310, %326, %cst_135 {dimension_numbers = #tpu.dot_dimension_numbers<[1], [1], [0], [0], [0, 0, 1, 0], [], []>} : vector<32x128xbf16>, vector<128x128xbf16>, vector<32x128xf32> -> vector<32x128xf32>
    %cst_136 = arith.constant 0.176776692 : f32
    %330 = vector.broadcast %cst_136 : f32 to vector<32x128xf32>
    %331 = arith.mulf %329, %330 : vector<32x128xf32>
    %332 = arith.addf %331, %2 : vector<32x128xf32>
    %cst_137 = arith.constant dense<0xFF800000> : vector<32xf32>
    %333 = vector.multi_reduction <maximumf>, %332, %cst_137 [1] : vector<32x128xf32> to vector<32xf32>
    %334 = vector.shape_cast %333 : vector<32xf32> to vector<32x1xf32>
    %335 = vector.broadcast %334 : vector<32x1xf32> to vector<32x128xf32>
    %336 = arith.subf %332, %335 : vector<32x128xf32>
    %337 = math.exp %336 : vector<32x128xf32>
    %338 = arith.truncf %337 : vector<32x128xf32> to vector<32x128xbf16>
    %cst_138 = arith.constant dense<0.000000e+00> : vector<32x128xf32>
    %339 = tpu.matmul %338, %1, %cst_138 {dimension_numbers = #tpu.dot_dimension_numbers<[1], [0], [0], [1], [0, 0, 1, 1], [], []>} : vector<32x128xbf16>, vector<128x128xbf16>, vector<32x128xf32> -> vector<32x128xf32>
    %340 = tpu.reciprocal %339 {approx = true} : vector<32x128xf32> -> vector<32x128xf32>
    %341 = arith.mulf %337, %340 : vector<32x128xf32>
    %342 = arith.truncf %341 : vector<32x128xf32> to vector<32x128xbf16>
    %cst_139 = arith.constant dense<0.000000e+00> : vector<32x128xf32>
    %343 = tpu.matmul %342, %328, %cst_139 {dimension_numbers = #tpu.dot_dimension_numbers<[1], [0], [0], [1], [0, 0, 1, 1], [], []>} : vector<32x128xbf16>, vector<128x128xbf16>, vector<32x128xf32> -> vector<32x128xf32>
    %c3728 = arith.constant 3728 : index
    %c0_140 = arith.constant 0 : index
    %344 = vector.load %arg2[%c3728, %c0_140] : memref<7576x128xbf16, #tpu.memory_space<vmem>>, vector<128x128xbf16>
    %345 = arith.truncf %343 : vector<32x128xf32> to vector<32x128xbf16>
    %cst_141 = arith.constant dense<0.000000e+00> : vector<32x128xf32>
    %346 = tpu.matmul %345, %344, %cst_141 {dimension_numbers = #tpu.dot_dimension_numbers<[1], [0], [0], [1], [0, 0, 1, 1], [], []>} : vector<32x128xbf16>, vector<128x128xbf16>, vector<32x128xf32> -> vector<32x128xf32>
    %c96 = arith.constant 96 : index
    %c0_142 = arith.constant 0 : index
    %347 = vector.load %arg3[%c96, %c0_142] : memref<131x128xf32, #tpu.memory_space<vmem>>, vector<1x128xf32>
    %348 = vector.broadcast %347 : vector<1x128xf32> to vector<32x128xf32>
    %349 = arith.addf %346, %348 : vector<32x128xf32>
    %350 = arith.addf %19, %349 : vector<32x128xf32>
    %cst_143 = arith.constant dense<0.000000e+00> : vector<32xf32>
    %351 = vector.multi_reduction <add>, %350, %cst_143 [1] : vector<32x128xf32> to vector<32xf32>
    %352 = vector.shape_cast %351 : vector<32xf32> to vector<32x1xf32>
    %cst_144 = arith.constant 1.280000e+02 : f32
    %353 = vector.broadcast %cst_144 : f32 to vector<32x1xf32>
    %354 = arith.divf %352, %353 : vector<32x1xf32>
    %355 = vector.broadcast %354 : vector<32x1xf32> to vector<32x128xf32>
    %356 = arith.subf %350, %355 : vector<32x128xf32>
    %357 = arith.mulf %356, %356 : vector<32x128xf32>
    %cst_145 = arith.constant dense<0.000000e+00> : vector<32xf32>
    %358 = vector.multi_reduction <add>, %357, %cst_145 [1] : vector<32x128xf32> to vector<32xf32>
    %359 = vector.shape_cast %358 : vector<32xf32> to vector<32x1xf32>
    %cst_146 = arith.constant 1.280000e+02 : f32
    %360 = vector.broadcast %cst_146 : f32 to vector<32x1xf32>
    %361 = arith.divf %359, %360 : vector<32x1xf32>
    %cst_147 = arith.constant 9.99999974E-6 : f32
    %362 = vector.broadcast %cst_147 : f32 to vector<32x1xf32>
    %363 = arith.addf %361, %362 : vector<32x1xf32>
    %364 = math.rsqrt %363 : vector<32x1xf32>
    %365 = vector.broadcast %364 : vector<32x1xf32> to vector<32x128xf32>
    %366 = arith.mulf %356, %365 : vector<32x128xf32>
    %c106 = arith.constant 106 : index
    %c0_148 = arith.constant 0 : index
    %367 = vector.load %arg3[%c106, %c0_148] : memref<131x128xf32, #tpu.memory_space<vmem>>, vector<1x128xf32>
    %368 = vector.broadcast %367 : vector<1x128xf32> to vector<32x128xf32>
    %369 = arith.mulf %366, %368 : vector<32x128xf32>
    %c107 = arith.constant 107 : index
    %c0_149 = arith.constant 0 : index
    %370 = vector.load %arg3[%c107, %c0_149] : memref<131x128xf32, #tpu.memory_space<vmem>>, vector<1x128xf32>
    %371 = vector.broadcast %370 : vector<1x128xf32> to vector<32x128xf32>
    %372 = arith.addf %369, %371 : vector<32x128xf32>
    %c3856 = arith.constant 3856 : index
    %c0_150 = arith.constant 0 : index
    %373 = vector.load %arg2[%c3856, %c0_150] : memref<7576x128xbf16, #tpu.memory_space<vmem>>, vector<128x128xbf16>
    %374 = arith.truncf %372 : vector<32x128xf32> to vector<32x128xbf16>
    %cst_151 = arith.constant dense<0.000000e+00> : vector<32x128xf32>
    %375 = tpu.matmul %374, %373, %cst_151 {dimension_numbers = #tpu.dot_dimension_numbers<[1], [0], [0], [1], [0, 0, 1, 1], [], []>} : vector<32x128xbf16>, vector<128x128xbf16>, vector<32x128xf32> -> vector<32x128xf32>
    %c97 = arith.constant 97 : index
    %c0_152 = arith.constant 0 : index
    %376 = vector.load %arg3[%c97, %c0_152] : memref<131x128xf32, #tpu.memory_space<vmem>>, vector<1x128xf32>
    %377 = vector.broadcast %376 : vector<1x128xf32> to vector<32x128xf32>
    %378 = arith.addf %375, %377 : vector<32x128xf32>
    %379 = arith.truncf %378 : vector<32x128xf32> to vector<32x128xbf16>
    %c3984 = arith.constant 3984 : index
    %c0_153 = arith.constant 0 : index
    %380 = vector.load %arg2[%c3984, %c0_153] : memref<7576x128xbf16, #tpu.memory_space<vmem>>, vector<128x128xbf16>
    %381 = arith.truncf %303 : vector<32x128xf32> to vector<32x128xbf16>
    %cst_154 = arith.constant dense<0.000000e+00> : vector<32x128xf32>
    %382 = tpu.matmul %381, %380, %cst_154 {dimension_numbers = #tpu.dot_dimension_numbers<[1], [0], [0], [1], [0, 0, 1, 1], [], []>} : vector<32x128xbf16>, vector<128x128xbf16>, vector<32x128xf32> -> vector<32x128xf32>
    %c98 = arith.constant 98 : index
    %c0_155 = arith.constant 0 : index
    %383 = vector.load %arg3[%c98, %c0_155] : memref<131x128xf32, #tpu.memory_space<vmem>>, vector<1x128xf32>
    %384 = vector.broadcast %383 : vector<1x128xf32> to vector<32x128xf32>
    %385 = arith.addf %382, %384 : vector<32x128xf32>
    %386 = arith.truncf %385 : vector<32x128xf32> to vector<32x128xbf16>
    %c4112 = arith.constant 4112 : index
    %c0_156 = arith.constant 0 : index
    %387 = vector.load %arg2[%c4112, %c0_156] : memref<7576x128xbf16, #tpu.memory_space<vmem>>, vector<128x128xbf16>
    %388 = arith.truncf %303 : vector<32x128xf32> to vector<32x128xbf16>
    %cst_157 = arith.constant dense<0.000000e+00> : vector<32x128xf32>
    %389 = tpu.matmul %388, %387, %cst_157 {dimension_numbers = #tpu.dot_dimension_numbers<[1], [0], [0], [1], [0, 0, 1, 1], [], []>} : vector<32x128xbf16>, vector<128x128xbf16>, vector<32x128xf32> -> vector<32x128xf32>
    %c99 = arith.constant 99 : index
    %c0_158 = arith.constant 0 : index
    %390 = vector.load %arg3[%c99, %c0_158] : memref<131x128xf32, #tpu.memory_space<vmem>>, vector<1x128xf32>
    %391 = vector.broadcast %390 : vector<1x128xf32> to vector<32x128xf32>
    %392 = arith.addf %389, %391 : vector<32x128xf32>
    %393 = arith.truncf %392 : vector<32x128xf32> to vector<32x128xbf16>
    %394 = tpu.concatenate %386, %386, %386, %386 in 0 : vector<32x128xbf16>, vector<32x128xbf16>, vector<32x128xbf16>, vector<32x128xbf16> -> vector<128x128xbf16>
    %395 = arith.mulf %394, %0 : vector<128x128xbf16>
    %396 = tpu.concatenate %393, %393, %393, %393 in 0 : vector<32x128xbf16>, vector<32x128xbf16>, vector<32x128xbf16>, vector<32x128xbf16> -> vector<128x128xbf16>
    %397 = arith.mulf %396, %0 : vector<128x128xbf16>
    %cst_159 = arith.constant dense<0.000000e+00> : vector<32x128xf32>
    %398 = tpu.matmul %379, %395, %cst_159 {dimension_numbers = #tpu.dot_dimension_numbers<[1], [1], [0], [0], [0, 0, 1, 0], [], []>} : vector<32x128xbf16>, vector<128x128xbf16>, vector<32x128xf32> -> vector<32x128xf32>
    %cst_160 = arith.constant 0.176776692 : f32
    %399 = vector.broadcast %cst_160 : f32 to vector<32x128xf32>
    %400 = arith.mulf %398, %399 : vector<32x128xf32>
    %401 = arith.addf %400, %2 : vector<32x128xf32>
    %cst_161 = arith.constant dense<0xFF800000> : vector<32xf32>
    %402 = vector.multi_reduction <maximumf>, %401, %cst_161 [1] : vector<32x128xf32> to vector<32xf32>
    %403 = vector.shape_cast %402 : vector<32xf32> to vector<32x1xf32>
    %404 = vector.broadcast %403 : vector<32x1xf32> to vector<32x128xf32>
    %405 = arith.subf %401, %404 : vector<32x128xf32>
    %406 = math.exp %405 : vector<32x128xf32>
    %407 = arith.truncf %406 : vector<32x128xf32> to vector<32x128xbf16>
    %cst_162 = arith.constant dense<0.000000e+00> : vector<32x128xf32>
    %408 = tpu.matmul %407, %1, %cst_162 {dimension_numbers = #tpu.dot_dimension_numbers<[1], [0], [0], [1], [0, 0, 1, 1], [], []>} : vector<32x128xbf16>, vector<128x128xbf16>, vector<32x128xf32> -> vector<32x128xf32>
    %409 = tpu.reciprocal %408 {approx = true} : vector<32x128xf32> -> vector<32x128xf32>
    %410 = arith.mulf %406, %409 : vector<32x128xf32>
    %411 = arith.truncf %410 : vector<32x128xf32> to vector<32x128xbf16>
    %cst_163 = arith.constant dense<0.000000e+00> : vector<32x128xf32>
    %412 = tpu.matmul %411, %397, %cst_163 {dimension_numbers = #tpu.dot_dimension_numbers<[1], [0], [0], [1], [0, 0, 1, 1], [], []>} : vector<32x128xbf16>, vector<128x128xbf16>, vector<32x128xf32> -> vector<32x128xf32>
    %c4240 = arith.constant 4240 : index
    %c0_164 = arith.constant 0 : index
    %413 = vector.load %arg2[%c4240, %c0_164] : memref<7576x128xbf16, #tpu.memory_space<vmem>>, vector<128x128xbf16>
    %414 = arith.truncf %412 : vector<32x128xf32> to vector<32x128xbf16>
    %cst_165 = arith.constant dense<0.000000e+00> : vector<32x128xf32>
    %415 = tpu.matmul %414, %413, %cst_165 {dimension_numbers = #tpu.dot_dimension_numbers<[1], [0], [0], [1], [0, 0, 1, 1], [], []>} : vector<32x128xbf16>, vector<128x128xbf16>, vector<32x128xf32> -> vector<32x128xf32>
    %c100 = arith.constant 100 : index
    %c0_166 = arith.constant 0 : index
    %416 = vector.load %arg3[%c100, %c0_166] : memref<131x128xf32, #tpu.memory_space<vmem>>, vector<1x128xf32>
    %417 = vector.broadcast %416 : vector<1x128xf32> to vector<32x128xf32>
    %418 = arith.addf %415, %417 : vector<32x128xf32>
    %419 = arith.addf %372, %418 : vector<32x128xf32>
    %cst_167 = arith.constant dense<0.000000e+00> : vector<32xf32>
    %420 = vector.multi_reduction <add>, %419, %cst_167 [1] : vector<32x128xf32> to vector<32xf32>
    %421 = vector.shape_cast %420 : vector<32xf32> to vector<32x1xf32>
    %cst_168 = arith.constant 1.280000e+02 : f32
    %422 = vector.broadcast %cst_168 : f32 to vector<32x1xf32>
    %423 = arith.divf %421, %422 : vector<32x1xf32>
    %424 = vector.broadcast %423 : vector<32x1xf32> to vector<32x128xf32>
    %425 = arith.subf %419, %424 : vector<32x128xf32>
    %426 = arith.mulf %425, %425 : vector<32x128xf32>
    %cst_169 = arith.constant dense<0.000000e+00> : vector<32xf32>
    %427 = vector.multi_reduction <add>, %426, %cst_169 [1] : vector<32x128xf32> to vector<32xf32>
    %428 = vector.shape_cast %427 : vector<32xf32> to vector<32x1xf32>
    %cst_170 = arith.constant 1.280000e+02 : f32
    %429 = vector.broadcast %cst_170 : f32 to vector<32x1xf32>
    %430 = arith.divf %428, %429 : vector<32x1xf32>
    %cst_171 = arith.constant 9.99999974E-6 : f32
    %431 = vector.broadcast %cst_171 : f32 to vector<32x1xf32>
    %432 = arith.addf %430, %431 : vector<32x1xf32>
    %433 = math.rsqrt %432 : vector<32x1xf32>
    %434 = vector.broadcast %433 : vector<32x1xf32> to vector<32x128xf32>
    %435 = arith.mulf %425, %434 : vector<32x128xf32>
    %c108 = arith.constant 108 : index
    %c0_172 = arith.constant 0 : index
    %436 = vector.load %arg3[%c108, %c0_172] : memref<131x128xf32, #tpu.memory_space<vmem>>, vector<1x128xf32>
    %437 = vector.broadcast %436 : vector<1x128xf32> to vector<32x128xf32>
    %438 = arith.mulf %435, %437 : vector<32x128xf32>
    %c109 = arith.constant 109 : index
    %c0_173 = arith.constant 0 : index
    %439 = vector.load %arg3[%c109, %c0_173] : memref<131x128xf32, #tpu.memory_space<vmem>>, vector<1x128xf32>
    %440 = vector.broadcast %439 : vector<1x128xf32> to vector<32x128xf32>
    %441 = arith.addf %438, %440 : vector<32x128xf32>
    %c4368 = arith.constant 4368 : index
    %c0_174 = arith.constant 0 : index
    %442 = vector.load %arg2[%c4368, %c0_174] : memref<7576x128xbf16, #tpu.memory_space<vmem>>, vector<128x128xbf16>
    %443 = arith.truncf %441 : vector<32x128xf32> to vector<32x128xbf16>
    %cst_175 = arith.constant dense<0.000000e+00> : vector<32x128xf32>
    %444 = tpu.matmul %443, %442, %cst_175 {dimension_numbers = #tpu.dot_dimension_numbers<[1], [0], [0], [1], [0, 0, 1, 1], [], []>} : vector<32x128xbf16>, vector<128x128xbf16>, vector<32x128xf32> -> vector<32x128xf32>
    %c101 = arith.constant 101 : index
    %c0_176 = arith.constant 0 : index
    %445 = vector.load %arg3[%c101, %c0_176] : memref<131x128xf32, #tpu.memory_space<vmem>>, vector<1x128xf32>
    %446 = vector.broadcast %445 : vector<1x128xf32> to vector<32x128xf32>
    %447 = arith.addf %444, %446 : vector<32x128xf32>
    %cst_177 = arith.constant 0.000000e+00 : f32
    %448 = vector.broadcast %cst_177 : f32 to vector<32x128xf32>
    %449 = arith.maximumf %447, %448 : vector<32x128xf32>
    %c4496 = arith.constant 4496 : index
    %c0_178 = arith.constant 0 : index
    %450 = vector.load %arg2[%c4496, %c0_178] : memref<7576x128xbf16, #tpu.memory_space<vmem>>, vector<128x128xbf16>
    %451 = arith.truncf %449 : vector<32x128xf32> to vector<32x128xbf16>
    %cst_179 = arith.constant dense<0.000000e+00> : vector<32x128xf32>
    %452 = tpu.matmul %451, %450, %cst_179 {dimension_numbers = #tpu.dot_dimension_numbers<[1], [0], [0], [1], [0, 0, 1, 1], [], []>} : vector<32x128xbf16>, vector<128x128xbf16>, vector<32x128xf32> -> vector<32x128xf32>
    %c4624 = arith.constant 4624 : index
    %c0_180 = arith.constant 0 : index
    %453 = vector.load %arg2[%c4624, %c0_180] : memref<7576x128xbf16, #tpu.memory_space<vmem>>, vector<128x128xbf16>
    %454 = arith.truncf %441 : vector<32x128xf32> to vector<32x128xbf16>
    %cst_181 = arith.constant dense<0.000000e+00> : vector<32x128xf32>
    %455 = tpu.matmul %454, %453, %cst_181 {dimension_numbers = #tpu.dot_dimension_numbers<[1], [0], [0], [1], [0, 0, 1, 1], [], []>} : vector<32x128xbf16>, vector<128x128xbf16>, vector<32x128xf32> -> vector<32x128xf32>
    %c102 = arith.constant 102 : index
    %c0_182 = arith.constant 0 : index
    %456 = vector.load %arg3[%c102, %c0_182] : memref<131x128xf32, #tpu.memory_space<vmem>>, vector<1x128xf32>
    %457 = vector.broadcast %456 : vector<1x128xf32> to vector<32x128xf32>
    %458 = arith.addf %455, %457 : vector<32x128xf32>
    %cst_183 = arith.constant 0.000000e+00 : f32
    %459 = vector.broadcast %cst_183 : f32 to vector<32x128xf32>
    %460 = arith.maximumf %458, %459 : vector<32x128xf32>
    %c4752 = arith.constant 4752 : index
    %c0_184 = arith.constant 0 : index
    %461 = vector.load %arg2[%c4752, %c0_184] : memref<7576x128xbf16, #tpu.memory_space<vmem>>, vector<128x128xbf16>
    %462 = arith.truncf %460 : vector<32x128xf32> to vector<32x128xbf16>
    %cst_185 = arith.constant dense<0.000000e+00> : vector<32x128xf32>
    %463 = tpu.matmul %462, %461, %cst_185 {dimension_numbers = #tpu.dot_dimension_numbers<[1], [0], [0], [1], [0, 0, 1, 1], [], []>} : vector<32x128xbf16>, vector<128x128xbf16>, vector<32x128xf32> -> vector<32x128xf32>
    %464 = arith.addf %452, %463 : vector<32x128xf32>
    %c4880 = arith.constant 4880 : index
    %c0_186 = arith.constant 0 : index
    %465 = vector.load %arg2[%c4880, %c0_186] : memref<7576x128xbf16, #tpu.memory_space<vmem>>, vector<128x128xbf16>
    %466 = arith.truncf %441 : vector<32x128xf32> to vector<32x128xbf16>
    %cst_187 = arith.constant dense<0.000000e+00> : vector<32x128xf32>
    %467 = tpu.matmul %466, %465, %cst_187 {dimension_numbers = #tpu.dot_dimension_numbers<[1], [0], [0], [1], [0, 0, 1, 1], [], []>} : vector<32x128xbf16>, vector<128x128xbf16>, vector<32x128xf32> -> vector<32x128xf32>
    %c103 = arith.constant 103 : index
    %c0_188 = arith.constant 0 : index
    %468 = vector.load %arg3[%c103, %c0_188] : memref<131x128xf32, #tpu.memory_space<vmem>>, vector<1x128xf32>
    %469 = vector.broadcast %468 : vector<1x128xf32> to vector<32x128xf32>
    %470 = arith.addf %467, %469 : vector<32x128xf32>
    %cst_189 = arith.constant 0.000000e+00 : f32
    %471 = vector.broadcast %cst_189 : f32 to vector<32x128xf32>
    %472 = arith.maximumf %470, %471 : vector<32x128xf32>
    %c5008 = arith.constant 5008 : index
    %c0_190 = arith.constant 0 : index
    %473 = vector.load %arg2[%c5008, %c0_190] : memref<7576x128xbf16, #tpu.memory_space<vmem>>, vector<128x128xbf16>
    %474 = arith.truncf %472 : vector<32x128xf32> to vector<32x128xbf16>
    %cst_191 = arith.constant dense<0.000000e+00> : vector<32x128xf32>
    %475 = tpu.matmul %474, %473, %cst_191 {dimension_numbers = #tpu.dot_dimension_numbers<[1], [0], [0], [1], [0, 0, 1, 1], [], []>} : vector<32x128xbf16>, vector<128x128xbf16>, vector<32x128xf32> -> vector<32x128xf32>
    %476 = arith.addf %464, %475 : vector<32x128xf32>
    %c5136 = arith.constant 5136 : index
    %c0_192 = arith.constant 0 : index
    %477 = vector.load %arg2[%c5136, %c0_192] : memref<7576x128xbf16, #tpu.memory_space<vmem>>, vector<128x128xbf16>
    %478 = arith.truncf %441 : vector<32x128xf32> to vector<32x128xbf16>
    %cst_193 = arith.constant dense<0.000000e+00> : vector<32x128xf32>
    %479 = tpu.matmul %478, %477, %cst_193 {dimension_numbers = #tpu.dot_dimension_numbers<[1], [0], [0], [1], [0, 0, 1, 1], [], []>} : vector<32x128xbf16>, vector<128x128xbf16>, vector<32x128xf32> -> vector<32x128xf32>
    %c104 = arith.constant 104 : index
    %c0_194 = arith.constant 0 : index
    %480 = vector.load %arg3[%c104, %c0_194] : memref<131x128xf32, #tpu.memory_space<vmem>>, vector<1x128xf32>
    %481 = vector.broadcast %480 : vector<1x128xf32> to vector<32x128xf32>
    %482 = arith.addf %479, %481 : vector<32x128xf32>
    %cst_195 = arith.constant 0.000000e+00 : f32
    %483 = vector.broadcast %cst_195 : f32 to vector<32x128xf32>
    %484 = arith.maximumf %482, %483 : vector<32x128xf32>
    %c5264 = arith.constant 5264 : index
    %c0_196 = arith.constant 0 : index
    %485 = vector.load %arg2[%c5264, %c0_196] : memref<7576x128xbf16, #tpu.memory_space<vmem>>, vector<128x128xbf16>
    %486 = arith.truncf %484 : vector<32x128xf32> to vector<32x128xbf16>
    %cst_197 = arith.constant dense<0.000000e+00> : vector<32x128xf32>
    %487 = tpu.matmul %486, %485, %cst_197 {dimension_numbers = #tpu.dot_dimension_numbers<[1], [0], [0], [1], [0, 0, 1, 1], [], []>} : vector<32x128xbf16>, vector<128x128xbf16>, vector<32x128xf32> -> vector<32x128xf32>
    %488 = arith.addf %476, %487 : vector<32x128xf32>
    %c105 = arith.constant 105 : index
    %c0_198 = arith.constant 0 : index
    %489 = vector.load %arg3[%c105, %c0_198] : memref<131x128xf32, #tpu.memory_space<vmem>>, vector<1x128xf32>
    %490 = vector.broadcast %489 : vector<1x128xf32> to vector<32x128xf32>
    %491 = arith.addf %488, %490 : vector<32x128xf32>
    %492 = arith.addf %441, %491 : vector<32x128xf32>
    %cst_199 = arith.constant dense<0.000000e+00> : vector<32xf32>
    %493 = vector.multi_reduction <add>, %492, %cst_199 [1] : vector<32x128xf32> to vector<32xf32>
    %494 = vector.shape_cast %493 : vector<32xf32> to vector<32x1xf32>
    %cst_200 = arith.constant 1.280000e+02 : f32
    %495 = vector.broadcast %cst_200 : f32 to vector<32x1xf32>
    %496 = arith.divf %494, %495 : vector<32x1xf32>
    %497 = vector.broadcast %496 : vector<32x1xf32> to vector<32x128xf32>
    %498 = arith.subf %492, %497 : vector<32x128xf32>
    %499 = arith.mulf %498, %498 : vector<32x128xf32>
    %cst_201 = arith.constant dense<0.000000e+00> : vector<32xf32>
    %500 = vector.multi_reduction <add>, %499, %cst_201 [1] : vector<32x128xf32> to vector<32xf32>
    %501 = vector.shape_cast %500 : vector<32xf32> to vector<32x1xf32>
    %cst_202 = arith.constant 1.280000e+02 : f32
    %502 = vector.broadcast %cst_202 : f32 to vector<32x1xf32>
    %503 = arith.divf %501, %502 : vector<32x1xf32>
    %cst_203 = arith.constant 9.99999974E-6 : f32
    %504 = vector.broadcast %cst_203 : f32 to vector<32x1xf32>
    %505 = arith.addf %503, %504 : vector<32x1xf32>
    %506 = math.rsqrt %505 : vector<32x1xf32>
    %507 = vector.broadcast %506 : vector<32x1xf32> to vector<32x128xf32>
    %508 = arith.mulf %498, %507 : vector<32x128xf32>
    %c110 = arith.constant 110 : index
    %c0_204 = arith.constant 0 : index
    %509 = vector.load %arg3[%c110, %c0_204] : memref<131x128xf32, #tpu.memory_space<vmem>>, vector<1x128xf32>
    %510 = vector.broadcast %509 : vector<1x128xf32> to vector<32x128xf32>
    %511 = arith.mulf %508, %510 : vector<32x128xf32>
    %c111 = arith.constant 111 : index
    %c0_205 = arith.constant 0 : index
    %512 = vector.load %arg3[%c111, %c0_205] : memref<131x128xf32, #tpu.memory_space<vmem>>, vector<1x128xf32>
    %513 = vector.broadcast %512 : vector<1x128xf32> to vector<32x128xf32>
    %514 = arith.addf %511, %513 : vector<32x128xf32>
    %c5392 = arith.constant 5392 : index
    %c0_206 = arith.constant 0 : index
    %515 = vector.load %arg2[%c5392, %c0_206] : memref<7576x128xbf16, #tpu.memory_space<vmem>>, vector<128x128xbf16>
    %516 = arith.truncf %514 : vector<32x128xf32> to vector<32x128xbf16>
    %cst_207 = arith.constant dense<0.000000e+00> : vector<32x128xf32>
    %517 = tpu.matmul %516, %515, %cst_207 {dimension_numbers = #tpu.dot_dimension_numbers<[1], [0], [0], [1], [0, 0, 1, 1], [], []>} : vector<32x128xbf16>, vector<128x128xbf16>, vector<32x128xf32> -> vector<32x128xf32>
    %c112 = arith.constant 112 : index
    %c0_208 = arith.constant 0 : index
    %518 = vector.load %arg3[%c112, %c0_208] : memref<131x128xf32, #tpu.memory_space<vmem>>, vector<1x128xf32>
    %519 = vector.broadcast %518 : vector<1x128xf32> to vector<32x128xf32>
    %520 = arith.addf %517, %519 : vector<32x128xf32>
    %521 = arith.truncf %520 : vector<32x128xf32> to vector<32x128xbf16>
    %c5520 = arith.constant 5520 : index
    %c0_209 = arith.constant 0 : index
    %522 = vector.load %arg2[%c5520, %c0_209] : memref<7576x128xbf16, #tpu.memory_space<vmem>>, vector<128x128xbf16>
    %523 = arith.truncf %514 : vector<32x128xf32> to vector<32x128xbf16>
    %cst_210 = arith.constant dense<0.000000e+00> : vector<32x128xf32>
    %524 = tpu.matmul %523, %522, %cst_210 {dimension_numbers = #tpu.dot_dimension_numbers<[1], [0], [0], [1], [0, 0, 1, 1], [], []>} : vector<32x128xbf16>, vector<128x128xbf16>, vector<32x128xf32> -> vector<32x128xf32>
    %c113 = arith.constant 113 : index
    %c0_211 = arith.constant 0 : index
    %525 = vector.load %arg3[%c113, %c0_211] : memref<131x128xf32, #tpu.memory_space<vmem>>, vector<1x128xf32>
    %526 = vector.broadcast %525 : vector<1x128xf32> to vector<32x128xf32>
    %527 = arith.addf %524, %526 : vector<32x128xf32>
    %528 = arith.truncf %527 : vector<32x128xf32> to vector<32x128xbf16>
    %c5648 = arith.constant 5648 : index
    %c0_212 = arith.constant 0 : index
    %529 = vector.load %arg2[%c5648, %c0_212] : memref<7576x128xbf16, #tpu.memory_space<vmem>>, vector<128x128xbf16>
    %530 = arith.truncf %514 : vector<32x128xf32> to vector<32x128xbf16>
    %cst_213 = arith.constant dense<0.000000e+00> : vector<32x128xf32>
    %531 = tpu.matmul %530, %529, %cst_213 {dimension_numbers = #tpu.dot_dimension_numbers<[1], [0], [0], [1], [0, 0, 1, 1], [], []>} : vector<32x128xbf16>, vector<128x128xbf16>, vector<32x128xf32> -> vector<32x128xf32>
    %c114 = arith.constant 114 : index
    %c0_214 = arith.constant 0 : index
    %532 = vector.load %arg3[%c114, %c0_214] : memref<131x128xf32, #tpu.memory_space<vmem>>, vector<1x128xf32>
    %533 = vector.broadcast %532 : vector<1x128xf32> to vector<32x128xf32>
    %534 = arith.addf %531, %533 : vector<32x128xf32>
    %535 = arith.truncf %534 : vector<32x128xf32> to vector<32x128xbf16>
    %536 = tpu.concatenate %528, %528, %528, %528 in 0 : vector<32x128xbf16>, vector<32x128xbf16>, vector<32x128xbf16>, vector<32x128xbf16> -> vector<128x128xbf16>
    %537 = arith.mulf %536, %0 : vector<128x128xbf16>
    %538 = tpu.concatenate %535, %535, %535, %535 in 0 : vector<32x128xbf16>, vector<32x128xbf16>, vector<32x128xbf16>, vector<32x128xbf16> -> vector<128x128xbf16>
    %539 = arith.mulf %538, %0 : vector<128x128xbf16>
    %cst_215 = arith.constant dense<0.000000e+00> : vector<32x128xf32>
    %540 = tpu.matmul %521, %537, %cst_215 {dimension_numbers = #tpu.dot_dimension_numbers<[1], [1], [0], [0], [0, 0, 1, 0], [], []>} : vector<32x128xbf16>, vector<128x128xbf16>, vector<32x128xf32> -> vector<32x128xf32>
    %cst_216 = arith.constant 0.176776692 : f32
    %541 = vector.broadcast %cst_216 : f32 to vector<32x128xf32>
    %542 = arith.mulf %540, %541 : vector<32x128xf32>
    %543 = arith.addf %542, %2 : vector<32x128xf32>
    %cst_217 = arith.constant dense<0xFF800000> : vector<32xf32>
    %544 = vector.multi_reduction <maximumf>, %543, %cst_217 [1] : vector<32x128xf32> to vector<32xf32>
    %545 = vector.shape_cast %544 : vector<32xf32> to vector<32x1xf32>
    %546 = vector.broadcast %545 : vector<32x1xf32> to vector<32x128xf32>
    %547 = arith.subf %543, %546 : vector<32x128xf32>
    %548 = math.exp %547 : vector<32x128xf32>
    %549 = arith.truncf %548 : vector<32x128xf32> to vector<32x128xbf16>
    %cst_218 = arith.constant dense<0.000000e+00> : vector<32x128xf32>
    %550 = tpu.matmul %549, %1, %cst_218 {dimension_numbers = #tpu.dot_dimension_numbers<[1], [0], [0], [1], [0, 0, 1, 1], [], []>} : vector<32x128xbf16>, vector<128x128xbf16>, vector<32x128xf32> -> vector<32x128xf32>
    %551 = tpu.reciprocal %550 {approx = true} : vector<32x128xf32> -> vector<32x128xf32>
    %552 = arith.mulf %548, %551 : vector<32x128xf32>
    %553 = arith.truncf %552 : vector<32x128xf32> to vector<32x128xbf16>
    %cst_219 = arith.constant dense<0.000000e+00> : vector<32x128xf32>
    %554 = tpu.matmul %553, %539, %cst_219 {dimension_numbers = #tpu.dot_dimension_numbers<[1], [0], [0], [1], [0, 0, 1, 1], [], []>} : vector<32x128xbf16>, vector<128x128xbf16>, vector<32x128xf32> -> vector<32x128xf32>
    %c5776 = arith.constant 5776 : index
    %c0_220 = arith.constant 0 : index
    %555 = vector.load %arg2[%c5776, %c0_220] : memref<7576x128xbf16, #tpu.memory_space<vmem>>, vector<128x128xbf16>
    %556 = arith.truncf %554 : vector<32x128xf32> to vector<32x128xbf16>
    %cst_221 = arith.constant dense<0.000000e+00> : vector<32x128xf32>
    %557 = tpu.matmul %556, %555, %cst_221 {dimension_numbers = #tpu.dot_dimension_numbers<[1], [0], [0], [1], [0, 0, 1, 1], [], []>} : vector<32x128xbf16>, vector<128x128xbf16>, vector<32x128xf32> -> vector<32x128xf32>
    %c115 = arith.constant 115 : index
    %c0_222 = arith.constant 0 : index
    %558 = vector.load %arg3[%c115, %c0_222] : memref<131x128xf32, #tpu.memory_space<vmem>>, vector<1x128xf32>
    %559 = vector.broadcast %558 : vector<1x128xf32> to vector<32x128xf32>
    %560 = arith.addf %557, %559 : vector<32x128xf32>
    %561 = arith.addf %514, %560 : vector<32x128xf32>
    %cst_223 = arith.constant dense<0.000000e+00> : vector<32xf32>
    %562 = vector.multi_reduction <add>, %561, %cst_223 [1] : vector<32x128xf32> to vector<32xf32>
    %563 = vector.shape_cast %562 : vector<32xf32> to vector<32x1xf32>
    %cst_224 = arith.constant 1.280000e+02 : f32
    %564 = vector.broadcast %cst_224 : f32 to vector<32x1xf32>
    %565 = arith.divf %563, %564 : vector<32x1xf32>
    %566 = vector.broadcast %565 : vector<32x1xf32> to vector<32x128xf32>
    %567 = arith.subf %561, %566 : vector<32x128xf32>
    %568 = arith.mulf %567, %567 : vector<32x128xf32>
    %cst_225 = arith.constant dense<0.000000e+00> : vector<32xf32>
    %569 = vector.multi_reduction <add>, %568, %cst_225 [1] : vector<32x128xf32> to vector<32xf32>
    %570 = vector.shape_cast %569 : vector<32xf32> to vector<32x1xf32>
    %cst_226 = arith.constant 1.280000e+02 : f32
    %571 = vector.broadcast %cst_226 : f32 to vector<32x1xf32>
    %572 = arith.divf %570, %571 : vector<32x1xf32>
    %cst_227 = arith.constant 9.99999974E-6 : f32
    %573 = vector.broadcast %cst_227 : f32 to vector<32x1xf32>
    %574 = arith.addf %572, %573 : vector<32x1xf32>
    %575 = math.rsqrt %574 : vector<32x1xf32>
    %576 = vector.broadcast %575 : vector<32x1xf32> to vector<32x128xf32>
    %577 = arith.mulf %567, %576 : vector<32x128xf32>
    %c125 = arith.constant 125 : index
    %c0_228 = arith.constant 0 : index
    %578 = vector.load %arg3[%c125, %c0_228] : memref<131x128xf32, #tpu.memory_space<vmem>>, vector<1x128xf32>
    %579 = vector.broadcast %578 : vector<1x128xf32> to vector<32x128xf32>
    %580 = arith.mulf %577, %579 : vector<32x128xf32>
    %c126 = arith.constant 126 : index
    %c0_229 = arith.constant 0 : index
    %581 = vector.load %arg3[%c126, %c0_229] : memref<131x128xf32, #tpu.memory_space<vmem>>, vector<1x128xf32>
    %582 = vector.broadcast %581 : vector<1x128xf32> to vector<32x128xf32>
    %583 = arith.addf %580, %582 : vector<32x128xf32>
    %c5904 = arith.constant 5904 : index
    %c0_230 = arith.constant 0 : index
    %584 = vector.load %arg2[%c5904, %c0_230] : memref<7576x128xbf16, #tpu.memory_space<vmem>>, vector<128x128xbf16>
    %585 = arith.truncf %583 : vector<32x128xf32> to vector<32x128xbf16>
    %cst_231 = arith.constant dense<0.000000e+00> : vector<32x128xf32>
    %586 = tpu.matmul %585, %584, %cst_231 {dimension_numbers = #tpu.dot_dimension_numbers<[1], [0], [0], [1], [0, 0, 1, 1], [], []>} : vector<32x128xbf16>, vector<128x128xbf16>, vector<32x128xf32> -> vector<32x128xf32>
    %c116 = arith.constant 116 : index
    %c0_232 = arith.constant 0 : index
    %587 = vector.load %arg3[%c116, %c0_232] : memref<131x128xf32, #tpu.memory_space<vmem>>, vector<1x128xf32>
    %588 = vector.broadcast %587 : vector<1x128xf32> to vector<32x128xf32>
    %589 = arith.addf %586, %588 : vector<32x128xf32>
    %590 = arith.truncf %589 : vector<32x128xf32> to vector<32x128xbf16>
    %c6032 = arith.constant 6032 : index
    %c0_233 = arith.constant 0 : index
    %591 = vector.load %arg2[%c6032, %c0_233] : memref<7576x128xbf16, #tpu.memory_space<vmem>>, vector<128x128xbf16>
    %592 = arith.truncf %303 : vector<32x128xf32> to vector<32x128xbf16>
    %cst_234 = arith.constant dense<0.000000e+00> : vector<32x128xf32>
    %593 = tpu.matmul %592, %591, %cst_234 {dimension_numbers = #tpu.dot_dimension_numbers<[1], [0], [0], [1], [0, 0, 1, 1], [], []>} : vector<32x128xbf16>, vector<128x128xbf16>, vector<32x128xf32> -> vector<32x128xf32>
    %c117 = arith.constant 117 : index
    %c0_235 = arith.constant 0 : index
    %594 = vector.load %arg3[%c117, %c0_235] : memref<131x128xf32, #tpu.memory_space<vmem>>, vector<1x128xf32>
    %595 = vector.broadcast %594 : vector<1x128xf32> to vector<32x128xf32>
    %596 = arith.addf %593, %595 : vector<32x128xf32>
    %597 = arith.truncf %596 : vector<32x128xf32> to vector<32x128xbf16>
    %c6160 = arith.constant 6160 : index
    %c0_236 = arith.constant 0 : index
    %598 = vector.load %arg2[%c6160, %c0_236] : memref<7576x128xbf16, #tpu.memory_space<vmem>>, vector<128x128xbf16>
    %599 = arith.truncf %303 : vector<32x128xf32> to vector<32x128xbf16>
    %cst_237 = arith.constant dense<0.000000e+00> : vector<32x128xf32>
    %600 = tpu.matmul %599, %598, %cst_237 {dimension_numbers = #tpu.dot_dimension_numbers<[1], [0], [0], [1], [0, 0, 1, 1], [], []>} : vector<32x128xbf16>, vector<128x128xbf16>, vector<32x128xf32> -> vector<32x128xf32>
    %c118 = arith.constant 118 : index
    %c0_238 = arith.constant 0 : index
    %601 = vector.load %arg3[%c118, %c0_238] : memref<131x128xf32, #tpu.memory_space<vmem>>, vector<1x128xf32>
    %602 = vector.broadcast %601 : vector<1x128xf32> to vector<32x128xf32>
    %603 = arith.addf %600, %602 : vector<32x128xf32>
    %604 = arith.truncf %603 : vector<32x128xf32> to vector<32x128xbf16>
    %605 = tpu.concatenate %597, %597, %597, %597 in 0 : vector<32x128xbf16>, vector<32x128xbf16>, vector<32x128xbf16>, vector<32x128xbf16> -> vector<128x128xbf16>
    %606 = arith.mulf %605, %0 : vector<128x128xbf16>
    %607 = tpu.concatenate %604, %604, %604, %604 in 0 : vector<32x128xbf16>, vector<32x128xbf16>, vector<32x128xbf16>, vector<32x128xbf16> -> vector<128x128xbf16>
    %608 = arith.mulf %607, %0 : vector<128x128xbf16>
    %cst_239 = arith.constant dense<0.000000e+00> : vector<32x128xf32>
    %609 = tpu.matmul %590, %606, %cst_239 {dimension_numbers = #tpu.dot_dimension_numbers<[1], [1], [0], [0], [0, 0, 1, 0], [], []>} : vector<32x128xbf16>, vector<128x128xbf16>, vector<32x128xf32> -> vector<32x128xf32>
    %cst_240 = arith.constant 0.176776692 : f32
    %610 = vector.broadcast %cst_240 : f32 to vector<32x128xf32>
    %611 = arith.mulf %609, %610 : vector<32x128xf32>
    %612 = arith.addf %611, %2 : vector<32x128xf32>
    %cst_241 = arith.constant dense<0xFF800000> : vector<32xf32>
    %613 = vector.multi_reduction <maximumf>, %612, %cst_241 [1] : vector<32x128xf32> to vector<32xf32>
    %614 = vector.shape_cast %613 : vector<32xf32> to vector<32x1xf32>
    %615 = vector.broadcast %614 : vector<32x1xf32> to vector<32x128xf32>
    %616 = arith.subf %612, %615 : vector<32x128xf32>
    %617 = math.exp %616 : vector<32x128xf32>
    %618 = arith.truncf %617 : vector<32x128xf32> to vector<32x128xbf16>
    %cst_242 = arith.constant dense<0.000000e+00> : vector<32x128xf32>
    %619 = tpu.matmul %618, %1, %cst_242 {dimension_numbers = #tpu.dot_dimension_numbers<[1], [0], [0], [1], [0, 0, 1, 1], [], []>} : vector<32x128xbf16>, vector<128x128xbf16>, vector<32x128xf32> -> vector<32x128xf32>
    %620 = tpu.reciprocal %619 {approx = true} : vector<32x128xf32> -> vector<32x128xf32>
    %621 = arith.mulf %617, %620 : vector<32x128xf32>
    %622 = arith.truncf %621 : vector<32x128xf32> to vector<32x128xbf16>
    %cst_243 = arith.constant dense<0.000000e+00> : vector<32x128xf32>
    %623 = tpu.matmul %622, %608, %cst_243 {dimension_numbers = #tpu.dot_dimension_numbers<[1], [0], [0], [1], [0, 0, 1, 1], [], []>} : vector<32x128xbf16>, vector<128x128xbf16>, vector<32x128xf32> -> vector<32x128xf32>
    %c6288 = arith.constant 6288 : index
    %c0_244 = arith.constant 0 : index
    %624 = vector.load %arg2[%c6288, %c0_244] : memref<7576x128xbf16, #tpu.memory_space<vmem>>, vector<128x128xbf16>
    %625 = arith.truncf %623 : vector<32x128xf32> to vector<32x128xbf16>
    %cst_245 = arith.constant dense<0.000000e+00> : vector<32x128xf32>
    %626 = tpu.matmul %625, %624, %cst_245 {dimension_numbers = #tpu.dot_dimension_numbers<[1], [0], [0], [1], [0, 0, 1, 1], [], []>} : vector<32x128xbf16>, vector<128x128xbf16>, vector<32x128xf32> -> vector<32x128xf32>
    %c119 = arith.constant 119 : index
    %c0_246 = arith.constant 0 : index
    %627 = vector.load %arg3[%c119, %c0_246] : memref<131x128xf32, #tpu.memory_space<vmem>>, vector<1x128xf32>
    %628 = vector.broadcast %627 : vector<1x128xf32> to vector<32x128xf32>
    %629 = arith.addf %626, %628 : vector<32x128xf32>
    %630 = arith.addf %583, %629 : vector<32x128xf32>
    %cst_247 = arith.constant dense<0.000000e+00> : vector<32xf32>
    %631 = vector.multi_reduction <add>, %630, %cst_247 [1] : vector<32x128xf32> to vector<32xf32>
    %632 = vector.shape_cast %631 : vector<32xf32> to vector<32x1xf32>
    %cst_248 = arith.constant 1.280000e+02 : f32
    %633 = vector.broadcast %cst_248 : f32 to vector<32x1xf32>
    %634 = arith.divf %632, %633 : vector<32x1xf32>
    %635 = vector.broadcast %634 : vector<32x1xf32> to vector<32x128xf32>
    %636 = arith.subf %630, %635 : vector<32x128xf32>
    %637 = arith.mulf %636, %636 : vector<32x128xf32>
    %cst_249 = arith.constant dense<0.000000e+00> : vector<32xf32>
    %638 = vector.multi_reduction <add>, %637, %cst_249 [1] : vector<32x128xf32> to vector<32xf32>
    %639 = vector.shape_cast %638 : vector<32xf32> to vector<32x1xf32>
    %cst_250 = arith.constant 1.280000e+02 : f32
    %640 = vector.broadcast %cst_250 : f32 to vector<32x1xf32>
    %641 = arith.divf %639, %640 : vector<32x1xf32>
    %cst_251 = arith.constant 9.99999974E-6 : f32
    %642 = vector.broadcast %cst_251 : f32 to vector<32x1xf32>
    %643 = arith.addf %641, %642 : vector<32x1xf32>
    %644 = math.rsqrt %643 : vector<32x1xf32>
    %645 = vector.broadcast %644 : vector<32x1xf32> to vector<32x128xf32>
    %646 = arith.mulf %636, %645 : vector<32x128xf32>
    %c127 = arith.constant 127 : index
    %c0_252 = arith.constant 0 : index
    %647 = vector.load %arg3[%c127, %c0_252] : memref<131x128xf32, #tpu.memory_space<vmem>>, vector<1x128xf32>
    %648 = vector.broadcast %647 : vector<1x128xf32> to vector<32x128xf32>
    %649 = arith.mulf %646, %648 : vector<32x128xf32>
    %c128 = arith.constant 128 : index
    %c0_253 = arith.constant 0 : index
    %650 = vector.load %arg3[%c128, %c0_253] : memref<131x128xf32, #tpu.memory_space<vmem>>, vector<1x128xf32>
    %651 = vector.broadcast %650 : vector<1x128xf32> to vector<32x128xf32>
    %652 = arith.addf %649, %651 : vector<32x128xf32>
    %c6416 = arith.constant 6416 : index
    %c0_254 = arith.constant 0 : index
    %653 = vector.load %arg2[%c6416, %c0_254] : memref<7576x128xbf16, #tpu.memory_space<vmem>>, vector<128x128xbf16>
    %654 = arith.truncf %652 : vector<32x128xf32> to vector<32x128xbf16>
    %cst_255 = arith.constant dense<0.000000e+00> : vector<32x128xf32>
    %655 = tpu.matmul %654, %653, %cst_255 {dimension_numbers = #tpu.dot_dimension_numbers<[1], [0], [0], [1], [0, 0, 1, 1], [], []>} : vector<32x128xbf16>, vector<128x128xbf16>, vector<32x128xf32> -> vector<32x128xf32>
    %c120 = arith.constant 120 : index
    %c0_256 = arith.constant 0 : index
    %656 = vector.load %arg3[%c120, %c0_256] : memref<131x128xf32, #tpu.memory_space<vmem>>, vector<1x128xf32>
    %657 = vector.broadcast %656 : vector<1x128xf32> to vector<32x128xf32>
    %658 = arith.addf %655, %657 : vector<32x128xf32>
    %cst_257 = arith.constant 0.000000e+00 : f32
    %659 = vector.broadcast %cst_257 : f32 to vector<32x128xf32>
    %660 = arith.maximumf %658, %659 : vector<32x128xf32>
    %c6544 = arith.constant 6544 : index
    %c0_258 = arith.constant 0 : index
    %661 = vector.load %arg2[%c6544, %c0_258] : memref<7576x128xbf16, #tpu.memory_space<vmem>>, vector<128x128xbf16>
    %662 = arith.truncf %660 : vector<32x128xf32> to vector<32x128xbf16>
    %cst_259 = arith.constant dense<0.000000e+00> : vector<32x128xf32>
    %663 = tpu.matmul %662, %661, %cst_259 {dimension_numbers = #tpu.dot_dimension_numbers<[1], [0], [0], [1], [0, 0, 1, 1], [], []>} : vector<32x128xbf16>, vector<128x128xbf16>, vector<32x128xf32> -> vector<32x128xf32>
    %c6672 = arith.constant 6672 : index
    %c0_260 = arith.constant 0 : index
    %664 = vector.load %arg2[%c6672, %c0_260] : memref<7576x128xbf16, #tpu.memory_space<vmem>>, vector<128x128xbf16>
    %665 = arith.truncf %652 : vector<32x128xf32> to vector<32x128xbf16>
    %cst_261 = arith.constant dense<0.000000e+00> : vector<32x128xf32>
    %666 = tpu.matmul %665, %664, %cst_261 {dimension_numbers = #tpu.dot_dimension_numbers<[1], [0], [0], [1], [0, 0, 1, 1], [], []>} : vector<32x128xbf16>, vector<128x128xbf16>, vector<32x128xf32> -> vector<32x128xf32>
    %c121 = arith.constant 121 : index
    %c0_262 = arith.constant 0 : index
    %667 = vector.load %arg3[%c121, %c0_262] : memref<131x128xf32, #tpu.memory_space<vmem>>, vector<1x128xf32>
    %668 = vector.broadcast %667 : vector<1x128xf32> to vector<32x128xf32>
    %669 = arith.addf %666, %668 : vector<32x128xf32>
    %cst_263 = arith.constant 0.000000e+00 : f32
    %670 = vector.broadcast %cst_263 : f32 to vector<32x128xf32>
    %671 = arith.maximumf %669, %670 : vector<32x128xf32>
    %c6800 = arith.constant 6800 : index
    %c0_264 = arith.constant 0 : index
    %672 = vector.load %arg2[%c6800, %c0_264] : memref<7576x128xbf16, #tpu.memory_space<vmem>>, vector<128x128xbf16>
    %673 = arith.truncf %671 : vector<32x128xf32> to vector<32x128xbf16>
    %cst_265 = arith.constant dense<0.000000e+00> : vector<32x128xf32>
    %674 = tpu.matmul %673, %672, %cst_265 {dimension_numbers = #tpu.dot_dimension_numbers<[1], [0], [0], [1], [0, 0, 1, 1], [], []>} : vector<32x128xbf16>, vector<128x128xbf16>, vector<32x128xf32> -> vector<32x128xf32>
    %675 = arith.addf %663, %674 : vector<32x128xf32>
    %c6928 = arith.constant 6928 : index
    %c0_266 = arith.constant 0 : index
    %676 = vector.load %arg2[%c6928, %c0_266] : memref<7576x128xbf16, #tpu.memory_space<vmem>>, vector<128x128xbf16>
    %677 = arith.truncf %652 : vector<32x128xf32> to vector<32x128xbf16>
    %cst_267 = arith.constant dense<0.000000e+00> : vector<32x128xf32>
    %678 = tpu.matmul %677, %676, %cst_267 {dimension_numbers = #tpu.dot_dimension_numbers<[1], [0], [0], [1], [0, 0, 1, 1], [], []>} : vector<32x128xbf16>, vector<128x128xbf16>, vector<32x128xf32> -> vector<32x128xf32>
    %c122 = arith.constant 122 : index
    %c0_268 = arith.constant 0 : index
    %679 = vector.load %arg3[%c122, %c0_268] : memref<131x128xf32, #tpu.memory_space<vmem>>, vector<1x128xf32>
    %680 = vector.broadcast %679 : vector<1x128xf32> to vector<32x128xf32>
    %681 = arith.addf %678, %680 : vector<32x128xf32>
    %cst_269 = arith.constant 0.000000e+00 : f32
    %682 = vector.broadcast %cst_269 : f32 to vector<32x128xf32>
    %683 = arith.maximumf %681, %682 : vector<32x128xf32>
    %c7056 = arith.constant 7056 : index
    %c0_270 = arith.constant 0 : index
    %684 = vector.load %arg2[%c7056, %c0_270] : memref<7576x128xbf16, #tpu.memory_space<vmem>>, vector<128x128xbf16>
    %685 = arith.truncf %683 : vector<32x128xf32> to vector<32x128xbf16>
    %cst_271 = arith.constant dense<0.000000e+00> : vector<32x128xf32>
    %686 = tpu.matmul %685, %684, %cst_271 {dimension_numbers = #tpu.dot_dimension_numbers<[1], [0], [0], [1], [0, 0, 1, 1], [], []>} : vector<32x128xbf16>, vector<128x128xbf16>, vector<32x128xf32> -> vector<32x128xf32>
    %687 = arith.addf %675, %686 : vector<32x128xf32>
    %c7184 = arith.constant 7184 : index
    %c0_272 = arith.constant 0 : index
    %688 = vector.load %arg2[%c7184, %c0_272] : memref<7576x128xbf16, #tpu.memory_space<vmem>>, vector<128x128xbf16>
    %689 = arith.truncf %652 : vector<32x128xf32> to vector<32x128xbf16>
    %cst_273 = arith.constant dense<0.000000e+00> : vector<32x128xf32>
    %690 = tpu.matmul %689, %688, %cst_273 {dimension_numbers = #tpu.dot_dimension_numbers<[1], [0], [0], [1], [0, 0, 1, 1], [], []>} : vector<32x128xbf16>, vector<128x128xbf16>, vector<32x128xf32> -> vector<32x128xf32>
    %c123 = arith.constant 123 : index
    %c0_274 = arith.constant 0 : index
    %691 = vector.load %arg3[%c123, %c0_274] : memref<131x128xf32, #tpu.memory_space<vmem>>, vector<1x128xf32>
    %692 = vector.broadcast %691 : vector<1x128xf32> to vector<32x128xf32>
    %693 = arith.addf %690, %692 : vector<32x128xf32>
    %cst_275 = arith.constant 0.000000e+00 : f32
    %694 = vector.broadcast %cst_275 : f32 to vector<32x128xf32>
    %695 = arith.maximumf %693, %694 : vector<32x128xf32>
    %c7312 = arith.constant 7312 : index
    %c0_276 = arith.constant 0 : index
    %696 = vector.load %arg2[%c7312, %c0_276] : memref<7576x128xbf16, #tpu.memory_space<vmem>>, vector<128x128xbf16>
    %697 = arith.truncf %695 : vector<32x128xf32> to vector<32x128xbf16>
    %cst_277 = arith.constant dense<0.000000e+00> : vector<32x128xf32>
    %698 = tpu.matmul %697, %696, %cst_277 {dimension_numbers = #tpu.dot_dimension_numbers<[1], [0], [0], [1], [0, 0, 1, 1], [], []>} : vector<32x128xbf16>, vector<128x128xbf16>, vector<32x128xf32> -> vector<32x128xf32>
    %699 = arith.addf %687, %698 : vector<32x128xf32>
    %c124 = arith.constant 124 : index
    %c0_278 = arith.constant 0 : index
    %700 = vector.load %arg3[%c124, %c0_278] : memref<131x128xf32, #tpu.memory_space<vmem>>, vector<1x128xf32>
    %701 = vector.broadcast %700 : vector<1x128xf32> to vector<32x128xf32>
    %702 = arith.addf %699, %701 : vector<32x128xf32>
    %703 = arith.addf %652, %702 : vector<32x128xf32>
    %cst_279 = arith.constant dense<0.000000e+00> : vector<32xf32>
    %704 = vector.multi_reduction <add>, %703, %cst_279 [1] : vector<32x128xf32> to vector<32xf32>
    %705 = vector.shape_cast %704 : vector<32xf32> to vector<32x1xf32>
    %cst_280 = arith.constant 1.280000e+02 : f32
    %706 = vector.broadcast %cst_280 : f32 to vector<32x1xf32>
    %707 = arith.divf %705, %706 : vector<32x1xf32>
    %708 = vector.broadcast %707 : vector<32x1xf32> to vector<32x128xf32>
    %709 = arith.subf %703, %708 : vector<32x128xf32>
    %710 = arith.mulf %709, %709 : vector<32x128xf32>
    %cst_281 = arith.constant dense<0.000000e+00> : vector<32xf32>
    %711 = vector.multi_reduction <add>, %710, %cst_281 [1] : vector<32x128xf32> to vector<32xf32>
    %712 = vector.shape_cast %711 : vector<32xf32> to vector<32x1xf32>
    %cst_282 = arith.constant 1.280000e+02 : f32
    %713 = vector.broadcast %cst_282 : f32 to vector<32x1xf32>
    %714 = arith.divf %712, %713 : vector<32x1xf32>
    %cst_283 = arith.constant 9.99999974E-6 : f32
    %715 = vector.broadcast %cst_283 : f32 to vector<32x1xf32>
    %716 = arith.addf %714, %715 : vector<32x1xf32>
    %717 = math.rsqrt %716 : vector<32x1xf32>
    %718 = vector.broadcast %717 : vector<32x1xf32> to vector<32x128xf32>
    %719 = arith.mulf %709, %718 : vector<32x128xf32>
    %c129 = arith.constant 129 : index
    %c0_284 = arith.constant 0 : index
    %720 = vector.load %arg3[%c129, %c0_284] : memref<131x128xf32, #tpu.memory_space<vmem>>, vector<1x128xf32>
    %721 = vector.broadcast %720 : vector<1x128xf32> to vector<32x128xf32>
    %722 = arith.mulf %719, %721 : vector<32x128xf32>
    %c130 = arith.constant 130 : index
    %c0_285 = arith.constant 0 : index
    %723 = vector.load %arg3[%c130, %c0_285] : memref<131x128xf32, #tpu.memory_space<vmem>>, vector<1x128xf32>
    %724 = vector.broadcast %723 : vector<1x128xf32> to vector<32x128xf32>
    %725 = arith.addf %722, %724 : vector<32x128xf32>
    %c7440 = arith.constant 7440 : index
    %c0_286 = arith.constant 0 : index
    %726 = vector.load %arg2[%c7440, %c0_286] : memref<7576x128xbf16, #tpu.memory_space<vmem>>, vector<128x128xbf16>
    %727 = arith.truncf %725 : vector<32x128xf32> to vector<32x128xbf16>
    %cst_287 = arith.constant dense<0.000000e+00> : vector<32x128xf32>
    %728 = tpu.matmul %727, %726, %cst_287 {dimension_numbers = #tpu.dot_dimension_numbers<[1], [0], [0], [1], [0, 0, 1, 1], [], []>} : vector<32x128xbf16>, vector<128x128xbf16>, vector<32x128xf32> -> vector<32x128xf32>
    %c66 = arith.constant 66 : index
    %c0_288 = arith.constant 0 : index
    %729 = vector.load %arg3[%c66, %c0_288] : memref<131x128xf32, #tpu.memory_space<vmem>>, vector<1x128xf32>
    %730 = vector.broadcast %729 : vector<1x128xf32> to vector<32x128xf32>
    %731 = arith.addf %728, %730 : vector<32x128xf32>
    %c0_289 = arith.constant 0 : index
    %c0_290 = arith.constant 0 : index
    %732 = vector.load %arg4[%c0_289, %c0_290] : memref<32x128xf32, #tpu.memory_space<vmem>>, vector<32x128xf32>
    tpu.vector_store %arg4[%c0_289, %c0_290], %731 {strides = array<i32>} : memref<32x128xf32, #tpu.memory_space<vmem>>, vector<32x128xf32>,
    return
  }
}

</mosaic_0001>

<bundles_post_ra>
// kernel: forward.1
= control target key start
LH: loop header
LB: loop body
LE: loop exit
PB: predicated region body
PF: predicated region fallthrough
CT: control target
= control target key end

     0   :  { %9 = vsyncpa [#allocation3], 0  ;;  %s11176_s0 = inlined_call_operand.hbm [shape: f32[32,16], index: 0, kind: input, shape index: {}]   ;;  %s11177_s1 = inlined_call_operand.hbm [shape: f32[32,8], index: 1, kind: input, shape index: {}]   ;;  %s11178_s2 = inlined_call_operand.hbm [shape: bf16[7576,128], index: 2, kind: input, shape index: {}]   ;;  %s11179_s3 = inlined_call_operand.hbm [shape: f32[131,128], index: 3, kind: input, shape index: {}]   ;;  %s11180_s4 = inlined_call_operand.vmem [shape: f32[32,128], index: 4, kind: output, shape index: {}]  }
   0x1   :  { %10 = vsyncpa [#allocation5], 0 }
   0x2   :  { %11 = vsyncpa [#allocation8], 0  ;;  %s29_s17 = sshll.u32 %s11177_s1, 4  ;;  %s10148_s18 = smov [#allocation4]   ;;  %s30_s17 = int_to_ptr.hbm [resolvable:$true] %s29_s17 }
   0x3   :  { %s31_s19 = sshll.u32 %s10148_s18, 4  ;;  %s16_s22 = sshll.u32 %s11176_s0, 4  ;;  %s32_s19 = int_to_ptr.vmem [resolvable:$true] %s31_s19  ;;  %s17_s22 = int_to_ptr.hbm [resolvable:$true] %s16_s22 }
   0x4   :  { %s10149_s23 = smov 128   ;;  %s10150_s24 = smov 8  }
   0x5   :  { %37 = dma.hbm_to_vmem [thread:$0]  %s30_s17, 512, %s32_s19, [#allocation5], %s10149_s23, %s10149_s23, %s10150_s24  }
   0x6   :  { %s10151_s25 = smov [#allocation2]   ;;  %s42_s29 = sshll.u32 %s11178_s2, 4  ;;  %s43_s29 = int_to_ptr.hbm [resolvable:$true] %s42_s29 }
   0x7   :  { %s18_s26 = sshll.u32 %s10151_s25, 4  ;;  %s10152_s1 = smov [#allocation6]   ;;  %s19_s26 = int_to_ptr.vmem [resolvable:$true] %s18_s26 }
   0x8   :  { %24 = dma.hbm_to_vmem [thread:$0]  %s17_s22, 512, %s19_s26, [#allocation3], %s10149_s23, %s10149_s23, %s10150_s24  }
   0x9   :  { %s44_s30 = sshll.u32 %s10152_s1, 4  ;;  %s55_s0 = sshll.u32 %s11179_s3, 4  ;;  %s45_s30 = int_to_ptr.vmem [resolvable:$true] %s44_s30  ;;  %s56_s0 = int_to_ptr.hbm [resolvable:$true] %s55_s0 }
   0xa   :  { %s10153_s7 = smov 64   ;;  %s10154_s8 = smov 4  }
   0xb   :  { %50 = dma.hbm_to_vmem [thread:$0]  %s43_s29, 60608, %s45_s30, [#allocation5], %s10153_s7, %s10153_s7, %s10154_s8  }
   0xc   :  { %s10155_s9 = smov [#allocation7]  }
   0xd   :  { %s57_s10 = sshll.u32 %s10155_s9, 4  ;;  %s58_s10 = int_to_ptr.vmem [resolvable:$true] %s57_s10 }
   0xe   :  { %63 = dma.hbm_to_vmem [thread:$0]  %s56_s0, 2176, %s58_s10, [#allocation8], %s10149_s23, %s10149_s23, %s10150_s24  }
   0xf   :  { %10142 = dma.done.wait [#allocation3], 512  }
  0x10   :  { %10143 = vsyncadd [#allocation3], 4294966784 }
  0x11   :  { %10144 = dma.done.wait [#allocation5], 61120  }
  0x12   :  { %10145 = vsyncadd [#allocation5], 4294906176 }
  0x13   :  { %10146 = dma.done.wait [#allocation8], 2176  }
  0x14   :  { %10147 = vsyncadd [#allocation8], 4294965120  ;;  %v9247_v0 = vld [vmem:[#allocation6] sm:$0xff]  ;;  %v122_v2 = vld [vmem:[#allocation2 + $0x8] sm:$0xff]  ;;  %vm137_vm0 = vcmask 130048   ;;  %vm183_vm1 = vcmask 1043456  }
  0x15   :  { %v121_v1 = vld [vmem:[#allocation2] sm:$0xff]  ;;  %151 = vmatpush.bf16.msra.mxu0 %v9247_v0  ;;  %v9254_v7 = vld [vmem:[#allocation6 + $0xb8] sm:$0xff]  ;;  %v9253_v10 = vld [vmem:[#allocation6 + $0xb0] sm:$0xff]  ;;  %vm176_vm2 = vcmask 64512  }
  0x16   :  { %v127_v3 = vpack.c.bf16 %v122_v2, %v121_v1  ;;  %v9255_v4 = vld [vmem:[#allocation6 + $0xc0] sm:$0xff]  ;;  %v9262_v8 = vld [vmem:[#allocation6 + $0xf8] sm:$0xff]  ;;  %v9261_v11 = vld [vmem:[#allocation6 + $0xf0] sm:$0xff] }
  0x17   :  { %v9263_v5 = vld [vmem:[#allocation6 + $0x100] sm:$0xff]  ;;  %278 = vmatpush.bf16.msra.mxu2 %v9255_v4  ;;  %v9270_v9 = vld [vmem:[#allocation6 + $0x138] sm:$0xff]  ;;  %v9269_v12 = vld [vmem:[#allocation6 + $0x130] sm:$0xff] }
  0x18   :  { %v9271_v6 = vld [vmem:[#allocation6 + $0x140] sm:$0xff]  ;;  %365 = vmatpush.bf16.msra.mxu3 %v9263_v5  ;;  %7379 = vmatmul.msk.bf16.vlgmr.msra.gmra.mxu0 %vm137_vm0, %v127_v3  ;;  %v9252_v13 = vld [vmem:[#allocation6 + $0xa8] sm:$0xff]  ;;  %v123_v16 = vld [vmem:[#allocation2 + $0x10] sm:$0xff] }
  0x19   :  { %454 = vmatpush.bf16.msrb.mxu0 %v9271_v6  ;;  %v9260_v14 = vld [vmem:[#allocation6 + $0xe8] sm:$0xff]  ;;  %v124_v17 = vld [vmem:[#allocation2 + $0x18] sm:$0xff]  ;;  %v9251_v19 = vld [vmem:[#allocation6 + $0xa0] sm:$0xff] }
  0x1a   :  { %v9268_v15 = vld [vmem:[#allocation6 + $0x128] sm:$0xff]  ;;  %v128_v18 = vpack.c.bf16 %v124_v17, %v123_v16  ;;  %v9259_v20 = vld [vmem:[#allocation6 + $0xe0] sm:$0xff]  ;;  %v9250_v22 = vld [vmem:[#allocation6 + $0x98] sm:$0xff] }
  0x1b   :  { %279 = vmatpush.bf16.msra.mxu2 %v9254_v7  ;;  %v9267_v21 = vld [vmem:[#allocation6 + $0x120] sm:$0xff]  ;;  %v9258_v23 = vld [vmem:[#allocation6 + $0xd8] sm:$0xff]  ;;  %v9249_v25 = vld [vmem:[#allocation6 + $0x90] sm:$0xff] }
  0x1c   :  { %366 = vmatpush.bf16.msra.mxu3 %v9262_v8  ;;  %v9266_v24 = vld [vmem:[#allocation6 + $0x118] sm:$0xff]  ;;  %v9257_v26 = vld [vmem:[#allocation6 + $0xd0] sm:$0xff]  ;;  %v9248_v28 = vld [vmem:[#allocation6 + $0x88] sm:$0xff] }
  0x1d   :  { %455 = vmatpush.bf16.msrb.mxu0 %v9270_v9  ;;  %v9265_v27 = vld [vmem:[#allocation6 + $0x110] sm:$0xff]  ;;  %v9256_v29 = vld [vmem:[#allocation6 + $0xc8] sm:$0xff]  ;;  %v119_v43 = vld [vmem:[#allocation7 + $0x10] sm:$0xff] }
  0x1e   :  { %v9264_v30 = vld [vmem:[#allocation6 + $0x108] sm:$0xff]  ;;  %v118_v35 = vld [vmem:[#allocation7 + $0x8] sm:$0xff]  ;;  %v9762_v56 = vld [vmem:[#allocation7 + $0x45] ss:$0 sm:$0xff] }
  0x1f   :  { %280 = vmatpush.bf16.msra.mxu2 %v9253_v10  ;;  %v9761_v32 = vld [vmem:[#allocation7 + $0x40] ss:$0 sm:$0xff]  ;;  %v120_v44 = vld [vmem:[#allocation7 + $0x18] sm:$0xff]  ;;  %v9764_v0 = vld [vmem:[#allocation7 + $0x44] ss:$0 sm:$0xff] }
  0x20   :  { %367 = vmatpush.bf16.msra.mxu3 %v9261_v11  ;;  %v117_v34 = vld [vmem:[#allocation7] sm:$0xff]  ;;  %v171_v53 = vld [vmem:[#allocation6 + $0xec8] sm:$0xf]  ;;  %v9743_v10 = vld [vmem:[#allocation6 + $0x40] sm:$0xff]  }
  0x21   :  { %456 = vmatpush.bf16.msrb.mxu0 %v9269_v12  ;;  %v185_v54 = vsel %vm183_vm1, %v171_v53, 0 }
  0x22   :  { %194 = vmatpush.bf16.msra.mxu1 %v185_v54 }
  0x23   :  { %281 = vmatpush.bf16.msra.mxu2 %v9252_v13 }
  0x24   :  { %368 = vmatpush.bf16.msra.mxu3 %v9260_v14 }
  0x25   :  { %457 = vmatpush.bf16.msrb.mxu0 %v9268_v15  ;;  %v9742_v15 = vld [vmem:[#allocation6 + $0x38] sm:$0xff]  }
  0x27   :  { %282 = vmatpush.bf16.msra.mxu2 %v9251_v19 }
  0x28   :  { %7380 = vmatmul.msk.bf16.gmra.mxu0 %vm137_vm0, %v128_v18  ;;  %369 = vmatpush.bf16.msra.mxu3 %v9259_v20  ;;  %v10208_v20 = vunpack.c.l.bf16 %v9743_v10 }
  0x29   :  { %458 = vmatpush.bf16.msrb.mxu0 %v9267_v21  ;;  %v10210_v21 = vunpack.c.h.bf16 %v9743_v10  ;;  %v169_v10 = vld [vmem:[#allocation4 + $0x10] sm:$0xff] }
  0x2b   :  { %283 = vmatpush.bf16.msra.mxu2 %v9250_v22 }
  0x2c   :  { %370 = vmatpush.bf16.msra.mxu3 %v9258_v23 }
  0x2d   :  { %459 = vmatpush.bf16.msrb.mxu0 %v9266_v24  ;;  %v10212_v24 = vunpack.c.l.bf16 %v9742_v15 }
  0x2f   :  { %284 = vmatpush.bf16.msra.mxu2 %v9249_v25  ;;  %v10214_v25 = vunpack.c.h.bf16 %v9742_v15 }
  0x30   :  { %371 = vmatpush.bf16.msra.mxu3 %v9257_v26 }
  0x31   :  { %460 = vmatpush.bf16.msrb.mxu0 %v9265_v27 }
  0x33   :  { %285 = vmatpush.bf16.msra.mxu2 %v9248_v28 }
  0x34   :  { %372 = vmatpush.bf16.msra.mxu3 %v9256_v29 }
  0x35   :  { %461 = vmatpush.bf16.msrb.mxu0 %v9264_v30  ;;  %v9741_v30 = vld [vmem:[#allocation6 + $0x30] sm:$0xff]  }
  0x95   :  { %v153_v31 = vpop.f32.mrf.mxu0 }
  0x96   :  { %v154_v33 = vadd.f32 %v9761_v32, %v153_v31 }
  0x98   :  { %v10196_v38 = vadd.f32 %v154_v33, %v117_v34 }
  0x9d   :  { %v155_v36 = vpop.f32.mrf.mxu0 }
  0x9e   :  { %v156_v37 = vadd.f32 %v9761_v32, %v155_v36  ;;  %v167_v36 = vld [vmem:[#allocation4] sm:$0xff] }
  0xa0   :  { %v10198_v39 = vadd.f32 %v156_v37, %v118_v35  ;;  %v168_v37 = vld [vmem:[#allocation4 + $0x8] sm:$0xff] }
  0xa2   :  { %v226_v40 = vpack.c.bf16 %v10198_v39, %v10196_v38 }
  0xa4   :  { %286 = vmatmul.bf16.vlgmr.msra.gmra.mxu2 %v226_v40  ;;  %373 = vmatmul.bf16.vlgmr.msra.gmra.mxu3 %v226_v40 }
  0xa5   :  { %462 = vmatmul.bf16.vlgmr.msrb.gmra.mxu0 %v226_v40  ;;  %v158_v41 = vpop.f32.mrf.mxu0 }
  0xa6   :  { %v159_v42 = vadd.f32 %v9761_v32, %v158_v41 }
  0xa8   :  { %v10202_v47 = vadd.f32 %v159_v42, %v119_v43  ;;  %v10228_v42 = vunpack.c.l.bf16 %v9741_v30  ;;  %v10230_v43 = vunpack.c.h.bf16 %v9741_v30 }
  0xad   :  { %v160_v45 = vpop.f32.mrf.mxu0 }
  0xae   :  { %v161_v46 = vadd.f32 %v9761_v32, %v160_v45 }
  0xb0   :  { %v10204_v48 = vadd.f32 %v161_v46, %v120_v44 }
  0xb2   :  { %v227_v49 = vpack.c.bf16 %v10204_v48, %v10202_v47 }
  0xb4   :  { %291 = vmatmul.bf16.gmra.mxu2 %v227_v49  ;;  %378 = vmatmul.bf16.gmra.mxu3 %v227_v49 }
  0xb5   :  { %467 = vmatmul.bf16.gmra.mxu0 %v227_v49  ;;  %v9740_v49 = vld [vmem:[#allocation6 + $0x28] sm:$0xff]  }
 0x122   :  { %v463_v50 = vpop.f32.mrf.mxu0 }
 0x123   :  { %v464_v59 = vadd.f32 %v9762_v56, %v463_v50  ;;  %v172_v50 = vpack.c.bf16 %v168_v37, %v167_v36 }
 0x125   :  { %v473_v63 = vpack.c.bf16 %v464_v59, %v464_v59  ;;  %7381 = vmatmul.msk.bf16.vlgmr.msra.gmra.mxu1 %vm176_vm2, %v172_v50 }
 0x127   :  { %v374_v51 = vpop.f32.mrf.mxu3  ;;  %v537_v7 = vunpack.c.l.b16 %v473_v63 }
 0x128   :  { %v375_v9 = vadd.f32 %v9764_v0, %v374_v51 }
 0x12a   :  { %v465_v52 = vpop.f32.mrf.mxu0  ;;  %v384_v22 = vpack.c.bf16 %v375_v9, %v375_v9 }
 0x12b   :  { %v466_v58 = vadd.f32 %v9762_v56, %v465_v52 }
 0x12c   :  { %v481_v40 = vunpack.c.l.b16 %v384_v22 }
 0x12d   :  { %v474_v60 = vpack.c.bf16 %v466_v58, %v466_v58 }
 0x12f   :  { %v376_v55 = vpop.f32.mrf.mxu3  ;;  %v538_v2 = vunpack.c.l.b16 %v474_v60  ;;  %v10251_v60 = vunpack.c.h.bf16 %v9740_v49 }
 0x130   :  { %v377_v5 = vadd.f32 %v9764_v0, %v376_v55 }
 0x131   :  { %v541_v11 = vpack.c.b16 %v538_v2, %v537_v7 }
 0x132   :  { %v468_v57 = vpop.f32.mrf.mxu0  ;;  %v385_v16 = vpack.c.bf16 %v377_v5, %v377_v5 }
 0x133   :  { %v469_v61 = vadd.f32 %v9762_v56, %v468_v57  ;;  %v10216_v26 = vunpack.c.l.bf16 %v541_v11  ;;  %v10218_v27 = vunpack.c.h.bf16 %v541_v11  ;;  %v170_v11 = vld [vmem:[#allocation4 + $0x18] sm:$0xff] }
 0x134   :  { %v482_v31 = vunpack.c.l.b16 %v385_v16  ;;  %v9737_v16 = vld [vmem:[#allocation6 + $0x10] sm:$0xff]  }
 0x135   :  { %v475_v3 = vpack.c.bf16 %v469_v61, %v469_v61  ;;  %v561_v45 = vmul.f32 %v10212_v24, %v10216_v26  ;;  %v562_v46 = vmul.f32 %v10214_v25, %v10218_v27  ;;  %v9739_v61 = vld [vmem:[#allocation6 + $0x20] sm:$0xff]  }
 0x136   :  { %v485_v51 = vpack.c.b16 %v482_v31, %v481_v40  ;;  %v10263_v5 = vunpack.c.h.bf16 %v9739_v61  ;;  %v10283_v31 = vunpack.c.h.bf16 %v9737_v16 }
 0x137   :  { %v379_v62 = vpop.f32.mrf.mxu3  ;;  %v539_v12 = vunpack.c.l.b16 %v475_v3  ;;  %v571_v57 = vpack.c.bf16 %v562_v46, %v561_v45 }
 0x138   :  { %v380_v6 = vadd.f32 %v9764_v0, %v379_v62  ;;  %v10253_v62 = vunpack.c.l.bf16 %v485_v51  ;;  %v10255_v63 = vunpack.c.h.bf16 %v485_v51 }
 0x13a   :  { %v470_v1 = vpop.f32.mrf.mxu0  ;;  %v386_v17 = vpack.c.bf16 %v380_v6, %v380_v6  ;;  %v9738_v6 = vld [vmem:[#allocation6 + $0x18] sm:$0xff]   ;;  %v521_v7 = vmul.f32 %v10212_v24, %v10253_v62 }
 0x13b   :  { %v471_v4 = vadd.f32 %v9762_v56, %v470_v1  ;;  %v10245_v56 = vunpack.c.l.bf16 %v9740_v49  ;;  %v10257_v1 = vunpack.c.l.bf16 %v9739_v61  ;;  %v10269_v9 = vunpack.c.l.bf16 %v9738_v6 }
 0x13c   :  { %v483_v32 = vunpack.c.l.b16 %v386_v17  ;;  %v10275_v15 = vunpack.c.h.bf16 %v9738_v6 }
 0x13d   :  { %v476_v8 = vpack.c.bf16 %v471_v4, %v471_v4  ;;  %v557_v3 = vmul.f32 %v10245_v56, %v10216_v26  ;;  %v558_v4 = vmul.f32 %v10251_v60, %v10218_v27  ;;  %v517_v50 = vmul.f32 %v10245_v56, %v10253_v62 }
 0x13e   :  { %v554_v30 = vmul.f32 %v10275_v15, %v10218_v27 }
 0x13f   :  { %v540_v13 = vunpack.c.l.b16 %v476_v8  ;;  %v381_v14 = vpop.f32.mrf.mxu3  ;;  %v522_v8 = vmul.f32 %v10214_v25, %v10255_v63 }
 0x140   :  { %v382_v18 = vadd.f32 %v9764_v0, %v381_v14 }
 0x141   :  { %v542_v19 = vpack.c.b16 %v540_v13, %v539_v12  ;;  %v569_v12 = vpack.c.bf16 %v558_v4, %v557_v3  ;;  %v531_v17 = vpack.c.bf16 %v522_v8, %v521_v7  ;;  %v9763_v8 = vld [vmem:[#allocation7 + $0x43] ss:$0 sm:$0xff] }
 0x142   :  { %v387_v23 = vpack.c.bf16 %v382_v18, %v382_v18  ;;  %v173_v18 = vpack.c.bf16 %v170_v11, %v169_v10 }
 0x143   :  { %v10220_v28 = vunpack.c.l.bf16 %v542_v19  ;;  %v10222_v29 = vunpack.c.h.bf16 %v542_v19  ;;  %v10277_v19 = vunpack.c.l.bf16 %v9737_v16 }
 0x144   :  { %v484_v33 = vunpack.c.l.b16 %v387_v23  ;;  %v553_v23 = vmul.f32 %v10269_v9, %v10216_v26  ;;  %7382 = vmatmul.msk.bf16.gmra.mxu1 %vm176_vm2, %v173_v18 }
 0x145   :  { %v563_v34 = vmul.f32 %v10208_v20, %v10220_v28  ;;  %v564_v35 = vmul.f32 %v10210_v21, %v10222_v29  ;;  %v559_v58 = vmul.f32 %v10228_v42, %v10220_v28  ;;  %v560_v59 = vmul.f32 %v10230_v43, %v10222_v29 }
 0x146   :  { %v486_v41 = vpack.c.b16 %v484_v33, %v483_v32  ;;  %v555_v13 = vmul.f32 %v10257_v1, %v10220_v28  ;;  %v556_v14 = vmul.f32 %v10263_v5, %v10222_v29  ;;  %v9736_v32 = vld [vmem:[#allocation6 + $0x8] sm:$0xff]   ;;  %v567_v36 = vpack.c.bf16 %v554_v30, %v553_v23  ;;  %v9245_v23 = vld [vmem:[#allocation6 + $0x78] sm:$0xff] }
 0x147   :  { %v572_v44 = vpack.c.bf16 %v564_v35, %v563_v34  ;;  %v570_v2 = vpack.c.bf16 %v560_v59, %v559_v58  ;;  %v10290_v35 = vunpack.c.l.bf16 %v9736_v32  ;;  %v551_v37 = vmul.f32 %v10277_v19, %v10220_v28  ;;  %v287_v59 = vpop.f32.mrf.mxu2 }
 0x148   :  { %v10236_v52 = vunpack.c.l.bf16 %v486_v41  ;;  %v10238_v53 = vunpack.c.h.bf16 %v486_v41  ;;  %v568_v22 = vpack.c.bf16 %v556_v14, %v555_v13  ;;  %v552_v40 = vmul.f32 %v10283_v31, %v10222_v29 }
 0x149   :  { %699 = vmatpush.bf16.msrb.mxu3 %v572_v44  ;;  %v10296_v41 = vunpack.c.h.bf16 %v9736_v32  ;;  %v549_v46 = vmul.f32 %v10290_v35, %v10216_v26  ;;  %v518_v28 = vmul.f32 %v10251_v60, %v10255_v63  ;;  %v509_v4 = vmul.f32 %v10290_v35, %v10253_v62  ;;  %v113_v32 = vld [vmem:[#allocation7 + $0x20] sm:$0xff] }
 0x14a   :  { %v523_v54 = vmul.f32 %v10208_v20, %v10236_v52  ;;  %v524_v55 = vmul.f32 %v10210_v21, %v10238_v53  ;;  %v519_v33 = vmul.f32 %v10228_v42, %v10236_v52  ;;  %v520_v34 = vmul.f32 %v10230_v43, %v10238_v53 }
 0x14b   :  { %v566_v45 = vpack.c.bf16 %v552_v40, %v551_v37  ;;  %v550_v49 = vmul.f32 %v10296_v41, %v10218_v27  ;;  %v529_v51 = vpack.c.bf16 %v518_v28, %v517_v50  ;;  %v516_v26 = vmul.f32 %v10263_v5, %v10238_v53  ;;  %v114_v40 = vld [vmem:[#allocation7 + $0x28] sm:$0xff] }
 0x14c   :  { %v532_v0 = vpack.c.bf16 %v524_v55, %v523_v54  ;;  %v530_v44 = vpack.c.bf16 %v520_v34, %v519_v33  ;;  %v515_v54 = vmul.f32 %v10257_v1, %v10236_v52  ;;  %v513_v27 = vmul.f32 %v10269_v9, %v10253_v62 }
 0x14d   :  { %700 = vmatpush.bf16.msrb.mxu3 %v571_v57  ;;  %v565_v29 = vpack.c.bf16 %v550_v49, %v549_v46  ;;  %v514_v57 = vmul.f32 %v10275_v15, %v10255_v63  ;;  %v511_v61 = vmul.f32 %v10277_v19, %v10236_v52  ;;  %v510_v6 = vmul.f32 %v10296_v41, %v10255_v63  ;;  %v115_v49 = vld [vmem:[#allocation7 + $0x30] sm:$0xff] }
 0x14e   :  { %573 = vmatpush.bf16.xpose.msrb.mxu1 %v532_v0  ;;  %v528_v55 = vpack.c.bf16 %v516_v26, %v515_v54  ;;  %v512_v0 = vmul.f32 %v10283_v31, %v10238_v53  ;;  %v288_v11 = vadd.f32 %v9763_v8, %v287_v59  ;;  %v9239_v59 = vld [vmem:[#allocation6 + $0x48] sm:$0xff] }
 0x14f   :  { %v527_v58 = vpack.c.bf16 %v514_v57, %v513_v27  ;;  %v289_v3 = vpop.f32.mrf.mxu2  ;;  %v525_v7 = vpack.c.bf16 %v510_v6, %v509_v4  ;;  %v9242_v27 = vld [vmem:[#allocation6 + $0x60] sm:$0xff]  ;;  %v9241_v57 = vld [vmem:[#allocation6 + $0x58] sm:$0xff] }
 0x150   :  { %v290_v10 = vadd.f32 %v9763_v8, %v289_v3 }
 0x151   :  { %701 = vmatpush.bf16.msrb.mxu3 %v570_v2  ;;  %v526_v2 = vpack.c.bf16 %v512_v0, %v511_v61 }
 0x152   :  { %v297_v13 = vpack.c.bf16 %v290_v10, %v288_v11 }
 0x155   :  { %702 = vmatpush.bf16.msrb.mxu3 %v569_v12 }
 0x156   :  { %574 = vmatpush.bf16.xpose.msrb.mxu1 %v531_v17 }
 0x157   :  { %v292_v12 = vpop.f32.mrf.mxu2 }
 0x158   :  { %v293_v53 = vadd.f32 %v9763_v8, %v292_v12 }
 0x159   :  { %703 = vmatpush.bf16.msrb.mxu3 %v568_v22  ;;  %v9246_v22 = vld [vmem:[#allocation6 + $0x80] sm:$0xff] }
 0x15a   :  { %670 = vmatpush.bf16.msrb.mxu2 %v9246_v22 }
 0x15d   :  { %704 = vmatpush.bf16.msrb.mxu3 %v567_v36  ;;  %v9244_v36 = vld [vmem:[#allocation6 + $0x70] sm:$0xff] }
 0x15e   :  { %575 = vmatpush.bf16.xpose.msrb.mxu1 %v530_v44  ;;  %671 = vmatpush.bf16.msrb.mxu2 %v9245_v23 }
 0x15f   :  { %v294_v52 = vpop.f32.mrf.mxu2 }
 0x160   :  { %v295_v14 = vadd.f32 %v9763_v8, %v294_v52 }
 0x161   :  { %705 = vmatpush.bf16.msrb.mxu3 %v566_v45 }
 0x162   :  { %v298_v16 = vpack.c.bf16 %v295_v14, %v293_v53  ;;  %672 = vmatpush.bf16.msrb.mxu2 %v9244_v36  ;;  %v9277_v36 = vld [vmem:[#allocation6 + $0x170] sm:$0xff] }
 0x165   :  { %706 = vmatpush.bf16.msrb.mxu3 %v565_v29 }
 0x166   :  { %576 = vmatpush.bf16.xpose.msrb.mxu1 %v529_v51  ;;  %v116_v51 = vld [vmem:[#allocation7 + $0x38] sm:$0xff] }
 0x16e   :  { %577 = vmatpush.bf16.xpose.msrb.mxu1 %v528_v55  ;;  %v9243_v55 = vld [vmem:[#allocation6 + $0x68] sm:$0xff] }
 0x16f   :  { %673 = vmatpush.bf16.msrb.mxu2 %v9243_v55 }
 0x173   :  { %674 = vmatpush.bf16.msrb.mxu2 %v9242_v27 }
 0x176   :  { %578 = vmatpush.bf16.xpose.msrb.mxu1 %v527_v58  ;;  %v9240_v58 = vld [vmem:[#allocation6 + $0x50] sm:$0xff] }
 0x177   :  { %675 = vmatpush.bf16.msrb.mxu2 %v9241_v57 }
 0x17b   :  { %676 = vmatpush.bf16.msrb.mxu2 %v9240_v58  ;;  %v9273_v58 = vld [vmem:[#allocation6 + $0x150] sm:$0xff] }
 0x17e   :  { %579 = vmatpush.bf16.xpose.msrb.mxu1 %v526_v2 }
 0x17f   :  { %677 = vmatpush.bf16.msrb.mxu2 %v9239_v59  ;;  %v9272_v59 = vld [vmem:[#allocation6 + $0x148] sm:$0xff] }
 0x186   :  { %580 = vmatpush.bf16.xpose.msrb.mxu1 %v525_v7 }
 0x18d   :  { %581 = vmatmul.bf16.vlgmr.msrb.gmra.mxu1 %v297_v13 }
 0x19d   :  { %586 = vmatmul.bf16.gmra.mxu1 %v298_v16 }
 0x1a2   :  { %v10322_v17 = vpop.f32.mrf.mxu1 }
 0x1aa   :  { %v10324_v18 = vpop.f32.mrf.mxu1 }
 0x1c1   :  { %v10326_v62 = vpop.f32.mrf.mxu1 }
 0x1c9   :  { %v10328_v63 = vpop.f32.mrf.mxu1 }
 0x20a   :  { %v582_v30 = vpop.f32.mrf.mxu1 }
 0x20b   :  { %v592_v33 = vmul.f32 0.17677669, %v582_v30 }
 0x20d   :  { %v596_v34 = vadd.f32 %v592_v33, %v113_v32  ;;  %v9279_v32 = vld [vmem:[#allocation6 + $0x180] sm:$0xff]  ;;  %v9278_v33 = vld [vmem:[#allocation6 + $0x178] sm:$0xff] }
 0x20e   :  { %786 = vmatpush.bf16.msra.mxu0 %v9279_v32  ;;  %v10156_v32 = vmov 128.0  }
 0x20f   :  { %600 = vmax.xlane.f32.xlu0 %v596_v34 }
 0x212   :  { %v584_v37 = vpop.f32.mrf.mxu1  ;;  %787 = vmatpush.bf16.msra.mxu0 %v9278_v33 }
 0x213   :  { %v593_v44 = vmul.f32 0.17677669, %v584_v37 }
 0x215   :  { %v597_v45 = vadd.f32 %v593_v44, %v114_v40  ;;  %v9276_v40 = vld [vmem:[#allocation6 + $0x168] sm:$0xff] }
 0x216   :  { %788 = vmatpush.bf16.msra.mxu0 %v9277_v36 }
 0x217   :  { %602 = vmax.xlane.f32.xlu0 %v597_v45 }
 0x21a   :  { %v587_v46 = vpop.f32.mrf.mxu1  ;;  %789 = vmatpush.bf16.msra.mxu0 %v9276_v40 }
 0x21b   :  { %v594_v50 = vmul.f32 0.17677669, %v587_v46 }
 0x21d   :  { %v598_v28 = vadd.f32 %v594_v50, %v115_v49 }
 0x21f   :  { %604 = vmax.xlane.f32.xlu1 %v598_v28 }
 0x222   :  { %v589_v29 = vpop.f32.mrf.mxu1 }
 0x223   :  { %v595_v54 = vmul.f32 0.17677669, %v589_v29  ;;  %v9274_v29 = vld [vmem:[#allocation6 + $0x158] sm:$0xff] }
 0x225   :  { %v599_v26 = vadd.f32 %v595_v54, %v116_v51 }
 0x227   :  { %606 = vmax.xlane.f32.xlu1 %v599_v26 }
 0x282   :  { %v601_v61 = vpop.xlane.xlu0 %600 }
 0x283   :  { %v608_v0 = vsub.f32 %v596_v34, %v601_v61 }
 0x285   :  { %v612_v2 = vmul.f32 1.442695, %v608_v0 }
 0x287   :  { %9828 = vpow2.f32 %v612_v2 }
 0x28a   :  { %v603_v3 = vpop.xlane.xlu0 %602 }
 0x28b   :  { %v609_v4 = vsub.f32 %v597_v45, %v603_v3 }
 0x28d   :  { %v614_v6 = vmul.f32 1.442695, %v609_v4  ;;  %v9829_v8 = vpop.eup %9828 }
 0x28f   :  { %9830 = vpow2.f32 %v614_v6 }
 0x292   :  { %v605_v7 = vpop.xlane.xlu1 %604 }
 0x293   :  { %v610_v11 = vsub.f32 %v598_v28, %v605_v7  ;;  %v9275_v28 = vld [vmem:[#allocation6 + $0x160] sm:$0xff]  ;;  %v9766_v7 = vld [vmem:[#allocation7 + $0x46] ss:$0 sm:$0xff] }
 0x294   :  { %790 = vmatpush.bf16.msra.mxu0 %v9275_v28 }
 0x295   :  { %v9831_v10 = vpop.eup %9830  ;;  %v616_v13 = vmul.f32 1.442695, %v610_v11 }
 0x296   :  { %v620_v12 = vpack.c.bf16 %v9831_v10, %v9829_v8 }
 0x297   :  { %9832 = vpow2.f32 %v616_v13 }
 0x298   :  { %678 = vmatmul.bf16.vlgmr.msrb.gmra.mxu2 %v620_v12  ;;  %791 = vmatpush.bf16.msra.mxu0 %v9274_v29 }
 0x29a   :  { %v607_v52 = vpop.xlane.xlu1 %606 }
 0x29b   :  { %v611_v14 = vsub.f32 %v599_v26, %v607_v52 }
 0x29c   :  { %792 = vmatpush.bf16.msra.mxu0 %v9273_v58  ;;  %v9303_v58 = vld [vmem:[#allocation6 + $0x240] sm:$0xff] }
 0x29d   :  { %v618_v53 = vmul.f32 1.442695, %v611_v14  ;;  %v9833_v16 = vpop.eup %9832  ;;  %1083 = vmatpush.bf16.msra.mxu3 %v9303_v58 }
 0x29f   :  { %9834 = vpow2.f32 %v618_v53 }
 0x2a0   :  { %793 = vmatpush.bf16.msra.mxu0 %v9272_v59  ;;  %v9287_v59 = vld [vmem:[#allocation6 + $0x1c0] sm:$0xff] }
 0x2a1   :  { %976 = vmatpush.bf16.msra.mxu2 %v9287_v59 }
 0x2a5   :  { %v9835_v22 = vpop.eup %9834 }
 0x2a6   :  { %v621_v23 = vpack.c.bf16 %v9835_v22, %v9833_v16 }
 0x2a8   :  { %683 = vmatmul.bf16.gmra.mxu2 %v621_v23 }
 0x31b   :  { %v679_v30 = vpop.f32.mrf.mxu2 }
 0x31c   :  { %9836 = vrcp.f32 %v679_v30 }
 0x322   :  { %v9837_v37 = vpop.eup %9836 }
 0x323   :  { %v681_v34 = vpop.f32.mrf.mxu2  ;;  %v693_v46 = vmul.f32 %v9837_v37, %v9829_v8 }
 0x324   :  { %9838 = vrcp.f32 %v681_v34 }
 0x32a   :  { %v9839_v44 = vpop.eup %9838 }
 0x32b   :  { %v684_v45 = vpop.f32.mrf.mxu2  ;;  %v694_v49 = vmul.f32 %v9839_v44, %v9831_v10 }
 0x32c   :  { %9840 = vrcp.f32 %v684_v45 }
 0x32d   :  { %v697_v50 = vpack.c.bf16 %v694_v49, %v693_v46 }
 0x32f   :  { %707 = vmatmul.bf16.vlgmr.msrb.gmra.mxu3 %v697_v50 }
 0x332   :  { %v9841_v54 = vpop.eup %9840 }
 0x333   :  { %v686_v51 = vpop.f32.mrf.mxu2  ;;  %v695_v55 = vmul.f32 %v9841_v54, %v9833_v16 }
 0x334   :  { %9842 = vrcp.f32 %v686_v51 }
 0x335   :  { %9844 = vrcp.f32 %v10156_v32  ;;  %v9319_v32 = vld [vmem:[#allocation6 + $0x2c0] sm:$0xff] }
 0x33a   :  { %v9843_v26 = vpop.eup %9842 }
 0x33b   :  { %v696_v27 = vmul.f32 %v9843_v26, %v9835_v22  ;;  %v9845_v33 = vpop.eup %9844 }
 0x33c   :  { %vm822_vm3 = vweird.f32 %v9845_v33 }
 0x33d   :  { %v698_v57 = vpack.c.bf16 %v696_v27, %v695_v55 }
 0x33f   :  { %712 = vmatmul.bf16.gmra.mxu3 %v698_v57 }
 0x3b2   :  { %v708_v61 = vpop.f32.mrf.mxu3 }
 0x3ba   :  { %v710_v0 = vpop.f32.mrf.mxu3 }
 0x3bb   :  { %v734_v2 = vpack.c.bf16 %v710_v0, %v708_v61  ;;  %v9302_v61 = vld [vmem:[#allocation6 + $0x238] sm:$0xff] }
 0x3bc   :  { %v9286_v0 = vld [vmem:[#allocation6 + $0x1b8] sm:$0xff]  ;;  %1084 = vmatpush.bf16.msra.mxu3 %v9302_v61 }
 0x3bd   :  { %794 = vmatmul.bf16.vlgmr.msra.gmra.mxu0 %v734_v2  ;;  %977 = vmatpush.bf16.msra.mxu2 %v9286_v0  ;;  %v9301_v2 = vld [vmem:[#allocation6 + $0x230] sm:$0xff] }
 0x3c0   :  { %1085 = vmatpush.bf16.msra.mxu3 %v9301_v2 }
 0x3c2   :  { %v713_v3 = vpop.f32.mrf.mxu3 }
 0x3ca   :  { %v715_v4 = vpop.f32.mrf.mxu3 }
 0x3cb   :  { %v735_v6 = vpack.c.bf16 %v715_v4, %v713_v3  ;;  %v9285_v3 = vld [vmem:[#allocation6 + $0x1b0] sm:$0xff]  ;;  %v9300_v4 = vld [vmem:[#allocation6 + $0x228] sm:$0xff] }
 0x3cc   :  { %978 = vmatpush.bf16.msra.mxu2 %v9285_v3  ;;  %1086 = vmatpush.bf16.msra.mxu3 %v9300_v4 }
 0x3cd   :  { %799 = vmatmul.bf16.gmra.mxu0 %v735_v6  ;;  %v9284_v6 = vld [vmem:[#allocation6 + $0x1a8] sm:$0xff] }
 0x3d0   :  { %979 = vmatpush.bf16.msra.mxu2 %v9284_v6 }
 0x43a   :  { %v795_v8 = vpop.f32.mrf.mxu0 }
 0x43b   :  { %v796_v10 = vadd.f32 %v9766_v7, %v795_v8  ;;  %v9283_v8 = vld [vmem:[#allocation6 + $0x1a0] sm:$0xff] }
 0x43c   :  { %980 = vmatpush.bf16.msra.mxu2 %v9283_v8  ;;  %v9314_v8 = vld [vmem:[#allocation6 + $0x298] sm:$0xff] }
 0x43d   :  { %v805_v11 = vadd.f32 %v796_v10, %v10196_v38  ;;  %v818_v38 = vmul.f32 128.0, %v9845_v33  ;;  %v9298_v10 = vld [vmem:[#allocation6 + $0x218] sm:$0xff] }
 0x43f   :  { %809 = vadd.xlane.f32.xlu2 %v805_v11  ;;  %v819_v34 = vsub.f32 1.0, %v818_v38 }
 0x441   :  { %v820_v36 = vmul.f32 %v9845_v33, %v819_v34 }
 0x442   :  { %v797_v12 = vpop.f32.mrf.mxu0 }
 0x443   :  { %v798_v13 = vadd.f32 %v9766_v7, %v797_v12  ;;  %v821_v37 = vadd.f32 %v9845_v33, %v820_v36  ;;  %v9318_v36 = vld [vmem:[#allocation6 + $0x2b8] sm:$0xff] }
 0x445   :  { %v806_v52 = vadd.f32 %v798_v13, %v10198_v39  ;;  %v10334_v39 = vsel %vm822_vm3, %v9845_v33, %v821_v37 }
 0x447   :  { %811 = vadd.xlane.f32.xlu2 %v806_v52 }
 0x44a   :  { %v800_v14 = vpop.f32.mrf.mxu0 }
 0x44b   :  { %v801_v53 = vadd.f32 %v9766_v7, %v800_v14  ;;  %v9281_v14 = vld [vmem:[#allocation6 + $0x190] sm:$0xff] }
 0x44d   :  { %v807_v16 = vadd.f32 %v801_v53, %v10202_v47 }
 0x44f   :  { %813 = vadd.xlane.f32.xlu0 %v807_v16 }
 0x452   :  { %v802_v22 = vpop.f32.mrf.mxu0 }
 0x453   :  { %v803_v23 = vadd.f32 %v9766_v7, %v802_v22  ;;  %v9299_v7 = vld [vmem:[#allocation6 + $0x220] sm:$0xff]  ;;  %v9280_v22 = vld [vmem:[#allocation6 + $0x188] sm:$0xff] }
 0x454   :  { %1087 = vmatpush.bf16.msra.mxu3 %v9299_v7  ;;  %v9767_v7 = vld [vmem:[#allocation7 + $0x4c] ss:$0 sm:$0xff] }
 0x455   :  { %v808_v30 = vadd.f32 %v803_v23, %v10204_v48 }
 0x457   :  { %815 = vadd.xlane.f32.xlu1 %v808_v30 }
 0x458   :  { %1088 = vmatpush.bf16.msra.mxu3 %v9298_v10 }
 0x4b2   :  { %v810_v40 = vpop.xlane.xlu2 %809 }
 0x4b3   :  { %v824_v44 = vmul.f32 %v10334_v39, %v810_v40  ;;  %v9317_v40 = vld [vmem:[#allocation6 + $0x2b0] sm:$0xff] }
 0x4b5   :  { %v10337_v47 = vsub.f32 %v805_v11, %v824_v44  ;;  %v9282_v11 = vld [vmem:[#allocation6 + $0x198] sm:$0xff] }
 0x4b6   :  { %981 = vmatpush.bf16.msra.mxu2 %v9282_v11 }
 0x4b7   :  { %v832_v45 = vmul.f32 %v10337_v47, %v10337_v47 }
 0x4b9   :  { %836 = vadd.xlane.f32.xlu2 %v832_v45 }
 0x4ba   :  { %v812_v48 = vpop.xlane.xlu2 %811  ;;  %982 = vmatpush.bf16.msra.mxu2 %v9281_v14 }
 0x4bb   :  { %v825_v46 = vmul.f32 %v10334_v39, %v812_v48 }
 0x4bd   :  { %v10342_v49 = vsub.f32 %v806_v52, %v825_v46  ;;  %v9297_v52 = vld [vmem:[#allocation6 + $0x210] sm:$0xff] }
 0x4be   :  { %1089 = vmatpush.bf16.msra.mxu3 %v9297_v52  ;;  %983 = vmatpush.bf16.msra.mxu2 %v9280_v22 }
 0x4bf   :  { %v833_v50 = vmul.f32 %v10342_v49, %v10342_v49 }
 0x4c1   :  { %838 = vadd.xlane.f32.xlu0 %v833_v50 }
 0x4c2   :  { %v814_v28 = vpop.xlane.xlu0 %813  ;;  %1324 = vmatpush.bf16.msrb.mxu2 %v9319_v32 }
 0x4c3   :  { %v826_v29 = vmul.f32 %v10334_v39, %v814_v28 }
 0x4c5   :  { %v10347_v51 = vsub.f32 %v807_v16, %v826_v29  ;;  %v9296_v16 = vld [vmem:[#allocation6 + $0x208] sm:$0xff] }
 0x4c6   :  { %1090 = vmatpush.bf16.msra.mxu3 %v9296_v16  ;;  %1325 = vmatpush.bf16.msrb.mxu2 %v9318_v36  ;;  %v9316_v29 = vld [vmem:[#allocation6 + $0x2a8] sm:$0xff]  ;;  %v9313_v16 = vld [vmem:[#allocation6 + $0x290] sm:$0xff] }
 0x4c7   :  { %v834_v54 = vmul.f32 %v10347_v51, %v10347_v51  ;;  %v9312_v36 = vld [vmem:[#allocation6 + $0x288] sm:$0xff] }
 0x4c9   :  { %840 = vadd.xlane.f32.xlu1 %v834_v54 }
 0x4ca   :  { %v816_v26 = vpop.xlane.xlu1 %815  ;;  %1326 = vmatpush.bf16.msrb.mxu2 %v9317_v40 }
 0x4cb   :  { %v827_v55 = vmul.f32 %v10334_v39, %v816_v26 }
 0x4cd   :  { %v10352_v27 = vsub.f32 %v808_v30, %v827_v55 }
 0x4ce   :  { %1327 = vmatpush.bf16.msrb.mxu2 %v9316_v29 }
 0x4cf   :  { %v835_v57 = vmul.f32 %v10352_v27, %v10352_v27 }
 0x4d1   :  { %842 = vadd.xlane.f32.xlu2 %v835_v57  ;;  %v9315_v57 = vld [vmem:[#allocation6 + $0x2a0] sm:$0xff] }
 0x4d2   :  { %1328 = vmatpush.bf16.msrb.mxu2 %v9315_v57 }
 0x4d6   :  { %1329 = vmatpush.bf16.msrb.mxu2 %v9314_v8  ;;  %v9290_v8 = vld [vmem:[#allocation6 + $0x1d8] sm:$0xff] }
 0x4da   :  { %1330 = vmatpush.bf16.msrb.mxu2 %v9313_v16  ;;  %v9326_v16 = vld [vmem:[#allocation6 + $0x2f8] sm:$0xff] }
 0x4de   :  { %1331 = vmatpush.bf16.msrb.mxu2 %v9312_v36 }
 0x52c   :  { %v837_v12 = vpop.xlane.xlu2 %836 }
 0x52d   :  { %v844_v13 = vmul.f32 %v837_v12, %v10334_v39 }
 0x52f   :  { %v848_v53 = vadd.f32 1e-05, %v844_v13 }
 0x531   :  { %9846 = vrsqrt.f32 %v848_v53  ;;  %vm858_vm5 = vweird.f32 %v848_v53 }
 0x534   :  { %v839_v23 = vpop.xlane.xlu0 %838 }
 0x535   :  { %v845_v30 = vmul.f32 %v839_v23, %v10334_v39 }
 0x537   :  { %v9847_v33 = vpop.eup %9846  ;;  %v849_v38 = vadd.f32 1e-05, %v845_v30 }
 0x538   :  { %v853_v34 = vmul.f32 %v9847_v33, %v848_v53  ;;  %vm859_vm4 = vweird.f32 %v9847_v33  ;;  %v9768_v53 = vld [vmem:[#allocation7 + $0x4d] ss:$0 sm:$0xff] }
 0x539   :  { %9848 = vrsqrt.f32 %v849_v38  ;;  %vm860_vm6 = vmor %vm858_vm5, %vm859_vm4  ;;  %vm868_vm8 = vweird.f32 %v849_v38 }
 0x53a   :  { %v854_v37 = vmul.f32 %v9847_v33, %v853_v34 }
 0x53c   :  { %v855_v44 = vmul.f32 0.5, %v854_v37  ;;  %v841_v45 = vpop.xlane.xlu1 %840 }
 0x53d   :  { %v846_v48 = vmul.f32 %v841_v45, %v10334_v39 }
 0x53e   :  { %v856_v46 = vsub.f32 1.5, %v855_v44 }
 0x53f   :  { %v9849_v50 = vpop.eup %9848  ;;  %v850_v28 = vadd.f32 1e-05, %v846_v48 }
 0x540   :  { %v857_v54 = vmul.f32 %v9847_v33, %v856_v46  ;;  %v863_v26 = vmul.f32 %v9849_v50, %v849_v38  ;;  %vm869_vm7 = vweird.f32 %v9849_v50 }
 0x541   :  { %9850 = vrsqrt.f32 %v850_v28  ;;  %vm870_vm9 = vmor %vm868_vm8, %vm869_vm7  ;;  %vm878_vm11 = vweird.f32 %v850_v28 }
 0x542   :  { %v864_v55 = vmul.f32 %v9849_v50, %v863_v26  ;;  %v861_v58 = vsel %vm860_vm6, %v9847_v33, %v857_v54 }
 0x543   :  { %v892_v4 = vmul.f32 %v861_v58, %v10337_v47  ;;  %v9295_v58 = vld [vmem:[#allocation6 + $0x200] sm:$0xff] }
 0x544   :  { %v865_v59 = vmul.f32 0.5, %v864_v55  ;;  %v843_v61 = vpop.xlane.xlu2 %842  ;;  %1239 = vmatpush.bf16.msra.mxu1 %v9295_v58 }
 0x545   :  { %v847_v0 = vmul.f32 %v843_v61, %v10334_v39  ;;  %v898_v14 = vmul.f32 %v9767_v7, %v892_v4  ;;  %v9309_v61 = vld [vmem:[#allocation6 + $0x270] sm:$0xff]  ;;  %v9307_v4 = vld [vmem:[#allocation6 + $0x260] sm:$0xff] }
 0x546   :  { %v866_v2 = vsub.f32 1.5, %v865_v59  ;;  %v9310_v59 = vld [vmem:[#allocation6 + $0x278] sm:$0xff] }
 0x547   :  { %v9851_v3 = vpop.eup %9850  ;;  %v851_v6 = vadd.f32 1e-05, %v847_v0  ;;  %v10362_v32 = vadd.f32 %v9768_v53, %v898_v14  ;;  %v9293_v0 = vld [vmem:[#allocation6 + $0x1f0] sm:$0xff]  ;;  %v9327_v14 = vld [vmem:[#allocation6 + $0x300] sm:$0xff] }
 0x548   :  { %v867_v10 = vmul.f32 %v9849_v50, %v866_v2  ;;  %v873_v11 = vmul.f32 %v9851_v3, %v850_v28  ;;  %vm879_vm10 = vweird.f32 %v9851_v3  ;;  %v9308_v2 = vld [vmem:[#allocation6 + $0x268] sm:$0xff]  ;;  %1413 = vmatpush.bf16.msrb.mxu3 %v9327_v14 }
 0x549   :  { %9852 = vrsqrt.f32 %v851_v6  ;;  %vm880_vm12 = vmor %vm878_vm11, %vm879_vm10  ;;  %vm888_vm14 = vweird.f32 %v851_v6 }
 0x54a   :  { %v871_v12 = vsel %vm870_vm9, %v9849_v50, %v867_v10  ;;  %v874_v13 = vmul.f32 %v9851_v3, %v873_v11  ;;  %v9305_v10 = vld [vmem:[#allocation6 + $0x250] sm:$0xff] }
 0x54b   :  { %v893_v52 = vmul.f32 %v871_v12, %v10342_v49  ;;  %v9289_v11 = vld [vmem:[#allocation6 + $0x1d0] sm:$0xff]  ;;  %v9304_v12 = vld [vmem:[#allocation6 + $0x248] sm:$0xff] }
 0x54c   :  { %v875_v22 = vmul.f32 0.5, %v874_v13  ;;  %v9288_v13 = vld [vmem:[#allocation6 + $0x1c8] sm:$0xff]  ;;  %1414 = vmatpush.bf16.msrb.mxu3 %v9326_v16 }
 0x54d   :  { %v899_v23 = vmul.f32 %v9767_v7, %v893_v52  ;;  %v9335_v52 = vld [vmem:[#allocation6 + $0x340] sm:$0xff] }
 0x54e   :  { %v876_v47 = vsub.f32 1.5, %v875_v22  ;;  %v9333_v22 = vld [vmem:[#allocation6 + $0x330] sm:$0xff] }
 0x54f   :  { %v9853_v30 = vpop.eup %9852  ;;  %v10364_v33 = vadd.f32 %v9768_v53, %v899_v23  ;;  %v9325_v23 = vld [vmem:[#allocation6 + $0x2f0] sm:$0xff] }
 0x550   :  { %v877_v38 = vmul.f32 %v9851_v3, %v876_v47  ;;  %v883_v34 = vmul.f32 %v9853_v30, %v851_v6  ;;  %vm889_vm13 = vweird.f32 %v9853_v30  ;;  %v9291_v6 = vld [vmem:[#allocation6 + $0x1e0] sm:$0xff]  ;;  %1415 = vmatpush.bf16.msrb.mxu3 %v9325_v23  ;;  %v9332_v47 = vld [vmem:[#allocation6 + $0x328] sm:$0xff] }
 0x551   :  { %v10368_v49 = vpack.c.bf16 %v10364_v33, %v10362_v32  ;;  %vm890_vm15 = vmor %vm888_vm14, %vm889_vm13 }
 0x552   :  { %v884_v37 = vmul.f32 %v9853_v30, %v883_v34  ;;  %v881_v40 = vsel %vm880_vm12, %v9851_v3, %v877_v38  ;;  %v9292_v3 = vld [vmem:[#allocation6 + $0x1e8] sm:$0xff]  ;;  %v9331_v38 = vld [vmem:[#allocation6 + $0x320] sm:$0xff] }
 0x553   :  { %984 = vmatmul.bf16.vlgmr.msra.gmra.mxu2 %v10368_v49  ;;  %1091 = vmatmul.bf16.vlgmr.msra.gmra.mxu3 %v10368_v49  ;;  %v894_v48 = vmul.f32 %v881_v40, %v10347_v51  ;;  %v9311_v51 = vld [vmem:[#allocation6 + $0x280] sm:$0xff]  ;;  %v9769_v40 = vld [vmem:[#allocation7 + $0x47] ss:$0 sm:$0xff] }
 0x554   :  { %v885_v44 = vmul.f32 0.5, %v884_v37  ;;  %1172 = vmatpush.bf16.msrb.mxu0 %v9311_v51  ;;  %v9323_v37 = vld [vmem:[#allocation6 + $0x2e0] sm:$0xff] }
 0x555   :  { %v900_v28 = vmul.f32 %v9767_v7, %v894_v48  ;;  %v9322_v48 = vld [vmem:[#allocation6 + $0x2d8] sm:$0xff] }
 0x556   :  { %v886_v45 = vsub.f32 1.5, %v885_v44  ;;  %v9770_v44 = vld [vmem:[#allocation7 + $0x48] ss:$0 sm:$0xff] }
 0x557   :  { %v10374_v26 = vadd.f32 %v9768_v53, %v900_v28 }
 0x558   :  { %v887_v46 = vmul.f32 %v9853_v30, %v886_v45  ;;  %1173 = vmatpush.bf16.msrb.mxu0 %v9310_v59  ;;  %v9330_v45 = vld [vmem:[#allocation6 + $0x318] sm:$0xff]  ;;  %v9321_v59 = vld [vmem:[#allocation6 + $0x2d0] sm:$0xff] }
 0x55a   :  { %v891_v50 = vsel %vm890_vm15, %v9853_v30, %v887_v46  ;;  %v9324_v30 = vld [vmem:[#allocation6 + $0x2e8] sm:$0xff]  ;;  %v9329_v46 = vld [vmem:[#allocation6 + $0x310] sm:$0xff] }
 0x55b   :  { %v895_v29 = vmul.f32 %v891_v50, %v10352_v27  ;;  %v9294_v27 = vld [vmem:[#allocation6 + $0x1f8] sm:$0xff]  ;;  %1416 = vmatpush.bf16.msrb.mxu3 %v9324_v30 }
 0x55c   :  { %1240 = vmatpush.bf16.msra.mxu1 %v9294_v27  ;;  %1174 = vmatpush.bf16.msrb.mxu0 %v9309_v61 }
 0x55d   :  { %v901_v54 = vmul.f32 %v9767_v7, %v895_v29  ;;  %v9306_v7 = vld [vmem:[#allocation6 + $0x258] sm:$0xff] }
 0x55f   :  { %v10376_v55 = vadd.f32 %v9768_v53, %v901_v54  ;;  %v9334_v53 = vld [vmem:[#allocation6 + $0x338] sm:$0xff]  ;;  %1417 = vmatpush.bf16.msrb.mxu3 %v9323_v37 }
 0x560   :  { %1241 = vmatpush.bf16.msra.mxu1 %v9293_v0  ;;  %1175 = vmatpush.bf16.msrb.mxu0 %v9308_v2 }
 0x561   :  { %v10380_v57 = vpack.c.bf16 %v10376_v55, %v10374_v26 }
 0x563   :  { %989 = vmatmul.bf16.gmra.mxu2 %v10380_v57  ;;  %1096 = vmatmul.bf16.gmra.mxu3 %v10380_v57 }
 0x564   :  { %1242 = vmatpush.bf16.msra.mxu1 %v9292_v3  ;;  %1176 = vmatpush.bf16.msrb.mxu0 %v9307_v4 }
 0x565   :  { %1418 = vmatpush.bf16.msrb.mxu3 %v9322_v48 }
 0x568   :  { %1243 = vmatpush.bf16.msra.mxu1 %v9291_v6  ;;  %1177 = vmatpush.bf16.msrb.mxu0 %v9306_v7  ;;  %v9328_v6 = vld [vmem:[#allocation6 + $0x308] sm:$0xff] }
 0x569   :  { %1419 = vmatpush.bf16.msrb.mxu3 %v9321_v59  ;;  %v9320_v7 = vld [vmem:[#allocation6 + $0x2c8] sm:$0xff] }
 0x56c   :  { %1244 = vmatpush.bf16.msra.mxu1 %v9290_v8  ;;  %1178 = vmatpush.bf16.msrb.mxu0 %v9305_v10 }
 0x56d   :  { %1420 = vmatpush.bf16.msrb.mxu3 %v9320_v7 }
 0x570   :  { %1245 = vmatpush.bf16.msra.mxu1 %v9289_v11  ;;  %1179 = vmatpush.bf16.msrb.mxu0 %v9304_v12 }
 0x573   :  { %1332 = vmatmul.bf16.vlgmr.msrb.gmra.mxu2 %v10368_v49 }
 0x574   :  { %1246 = vmatpush.bf16.msra.mxu1 %v9288_v13  ;;  %1502 = vmatpush.bf16.msra.mxu0 %v9335_v52 }
 0x578   :  { %1503 = vmatpush.bf16.msra.mxu0 %v9334_v53 }
 0x57c   :  { %1504 = vmatpush.bf16.msra.mxu0 %v9333_v22 }
 0x580   :  { %1505 = vmatpush.bf16.msra.mxu0 %v9332_v47 }
 0x583   :  { %1337 = vmatmul.bf16.gmra.mxu2 %v10380_v57 }
 0x584   :  { %1506 = vmatpush.bf16.msra.mxu0 %v9331_v38 }
 0x588   :  { %1507 = vmatpush.bf16.msra.mxu0 %v9330_v45 }
 0x58c   :  { %1508 = vmatpush.bf16.msra.mxu0 %v9329_v46 }
 0x590   :  { %1509 = vmatpush.bf16.msra.mxu0 %v9328_v6  ;;  %v9337_v6 = vld [vmem:[#allocation6 + $0x350] sm:$0xff] }
 0x5d6   :  { %v985_v34 = vpop.f32.mrf.mxu2  ;;  %v1092_v36 = vpop.f32.mrf.mxu3 }
 0x5d7   :  { %v986_v50 = vadd.f32 %v9769_v40, %v985_v34  ;;  %v1093_v29 = vadd.f32 %v9770_v44, %v1092_v36  ;;  %v9771_v36 = vld [vmem:[#allocation7 + $0x49] ss:$0 sm:$0xff] }
 0x5d9   :  { %v995_v27 = vmax.f32 %v986_v50, 0.0  ;;  %v1102_v61 = vmax.f32 %v1093_v29, 0.0 }
 0x5de   :  { %v987_v28 = vpop.f32.mrf.mxu2  ;;  %v1094_v54 = vpop.f32.mrf.mxu3 }
 0x5df   :  { %v988_v51 = vadd.f32 %v9769_v40, %v987_v28  ;;  %v1095_v58 = vadd.f32 %v9770_v44, %v1094_v54 }
 0x5e1   :  { %v996_v0 = vmax.f32 %v988_v51, 0.0  ;;  %v1103_v2 = vmax.f32 %v1095_v58, 0.0 }
 0x5e3   :  { %v1015_v3 = vpack.c.bf16 %v996_v0, %v995_v27  ;;  %v1122_v4 = vpack.c.bf16 %v1103_v2, %v1102_v61  ;;  %v9343_v27 = vld [vmem:[#allocation6 + $0x380] sm:$0xff]  ;;  %v9342_v61 = vld [vmem:[#allocation6 + $0x378] sm:$0xff]  ;;  %v9341_v0 = vld [vmem:[#allocation6 + $0x370] sm:$0xff] }
 0x5e4   :  { %1591 = vmatpush.bf16.msrb.mxu1 %v9343_v27  ;;  %v9340_v2 = vld [vmem:[#allocation6 + $0x368] sm:$0xff] }
 0x5e5   :  { %1180 = vmatmul.bf16.vlgmr.msrb.gmra.mxu0 %v1122_v4  ;;  %1247 = vmatmul.bf16.vlgmr.msra.gmra.mxu1 %v1015_v3  ;;  %v9339_v3 = vld [vmem:[#allocation6 + $0x360] sm:$0xff]  ;;  %v9338_v4 = vld [vmem:[#allocation6 + $0x358] sm:$0xff] }
 0x5e6   :  { %v990_v8 = vpop.f32.mrf.mxu2  ;;  %v1097_v10 = vpop.f32.mrf.mxu3 }
 0x5e7   :  { %v991_v11 = vadd.f32 %v9769_v40, %v990_v8  ;;  %v1098_v12 = vadd.f32 %v9770_v44, %v1097_v10  ;;  %v9336_v8 = vld [vmem:[#allocation6 + $0x348] sm:$0xff] }
 0x5e8   :  { %1592 = vmatpush.bf16.msrb.mxu1 %v9342_v61 }
 0x5e9   :  { %v997_v16 = vmax.f32 %v991_v11, 0.0  ;;  %v1104_v22 = vmax.f32 %v1098_v12, 0.0  ;;  %v9772_v12 = vld [vmem:[#allocation7 + $0x4a] ss:$0 sm:$0xff] }
 0x5ec   :  { %1593 = vmatpush.bf16.msrb.mxu1 %v9341_v0 }
 0x5ee   :  { %v992_v13 = vpop.f32.mrf.mxu2  ;;  %v1099_v52 = vpop.f32.mrf.mxu3 }
 0x5ef   :  { %v993_v14 = vadd.f32 %v9769_v40, %v992_v13  ;;  %v1100_v53 = vadd.f32 %v9770_v44, %v1099_v52 }
 0x5f0   :  { %1594 = vmatpush.bf16.msrb.mxu1 %v9340_v2 }
 0x5f1   :  { %v998_v23 = vmax.f32 %v993_v14, 0.0  ;;  %v1105_v47 = vmax.f32 %v1100_v53, 0.0 }
 0x5f3   :  { %v1123_v30 = vpack.c.bf16 %v1105_v47, %v1104_v22  ;;  %v1016_v38 = vpack.c.bf16 %v998_v23, %v997_v16 }
 0x5f4   :  { %1595 = vmatpush.bf16.msrb.mxu1 %v9339_v3 }
 0x5f5   :  { %1185 = vmatmul.bf16.gmra.mxu0 %v1123_v30  ;;  %1252 = vmatmul.bf16.gmra.mxu1 %v1016_v38 }
 0x5f6   :  { %v1333_v34 = vpop.f32.mrf.mxu2 }
 0x5f7   :  { %v1334_v37 = vadd.f32 %v9771_v36, %v1333_v34 }
 0x5f8   :  { %1596 = vmatpush.bf16.msrb.mxu1 %v9338_v4 }
 0x5f9   :  { %v1343_v46 = vmax.f32 %v1334_v37, 0.0 }
 0x5fc   :  { %1597 = vmatpush.bf16.msrb.mxu1 %v9337_v6 }
 0x5fe   :  { %v1335_v45 = vpop.f32.mrf.mxu2 }
 0x5ff   :  { %v1336_v48 = vadd.f32 %v9771_v36, %v1335_v45 }
 0x600   :  { %1598 = vmatpush.bf16.msrb.mxu1 %v9336_v8 }
 0x601   :  { %v1344_v50 = vmax.f32 %v1336_v48, 0.0 }
 0x603   :  { %v1363_v29 = vpack.c.bf16 %v1344_v50, %v1343_v46 }
 0x605   :  { %1421 = vmatmul.bf16.vlgmr.msrb.gmra.mxu3 %v1363_v29  ;;  %1510 = vmatmul.bf16.vlgmr.msra.gmra.mxu0 %v10368_v49 }
 0x606   :  { %v1338_v40 = vpop.f32.mrf.mxu2 }
 0x607   :  { %v1339_v44 = vadd.f32 %v9771_v36, %v1338_v40 }
 0x609   :  { %v1345_v51 = vmax.f32 %v1339_v44, 0.0 }
 0x60e   :  { %v1340_v28 = vpop.f32.mrf.mxu2 }
 0x60f   :  { %v1341_v54 = vadd.f32 %v9771_v36, %v1340_v28  ;;  %v9773_v28 = vld [vmem:[#allocation7 + $0x4b] ss:$0 sm:$0xff] }
 0x611   :  { %v1346_v58 = vmax.f32 %v1341_v54, 0.0 }
 0x613   :  { %v1364_v59 = vpack.c.bf16 %v1346_v58, %v1345_v51 }
 0x615   :  { %1426 = vmatmul.bf16.gmra.mxu3 %v1364_v59  ;;  %1515 = vmatmul.bf16.gmra.mxu0 %v10380_v57 }
 0x662   :  { %v1181_v49 = vpop.f32.mrf.mxu0  ;;  %v1248_v45 = vpop.f32.mrf.mxu1 }
 0x663   :  { %v1249_v40 = vadd.f32 %v1248_v45, %v1181_v49 }
 0x66a   :  { %v1183_v7 = vpop.f32.mrf.mxu0  ;;  %v1250_v48 = vpop.f32.mrf.mxu1 }
 0x66b   :  { %v1251_v27 = vadd.f32 %v1250_v48, %v1183_v7 }
 0x672   :  { %v1186_v10 = vpop.f32.mrf.mxu0  ;;  %v1253_v46 = vpop.f32.mrf.mxu1 }
 0x673   :  { %v1254_v8 = vadd.f32 %v1253_v46, %v1186_v10 }
 0x67a   :  { %v1188_v57 = vpop.f32.mrf.mxu0  ;;  %v1255_v29 = vpop.f32.mrf.mxu1 }
 0x682   :  { %v1511_v11 = vpop.f32.mrf.mxu0 }
 0x683   :  { %v1512_v13 = vadd.f32 %v9772_v12, %v1511_v11 }
 0x685   :  { %v1521_v53 = vmax.f32 %v1512_v13, 0.0 }
 0x688   :  { %v1422_v50 = vpop.f32.mrf.mxu3 }
 0x689   :  { %v1432_v44 = vadd.f32 %v1422_v50, %v1249_v40 }
 0x68a   :  { %v1513_v52 = vpop.f32.mrf.mxu0 }
 0x68b   :  { %v1514_v14 = vadd.f32 %v9772_v12, %v1513_v52 }
 0x68d   :  { %v1522_v16 = vmax.f32 %v1514_v14, 0.0 }
 0x68f   :  { %v1541_v22 = vpack.c.bf16 %v1522_v16, %v1521_v53  ;;  %v1256_v53 = vadd.f32 %v1255_v29, %v1188_v57 }
 0x690   :  { %v1424_v54 = vpop.f32.mrf.mxu3 }
 0x691   :  { %1599 = vmatmul.bf16.vlgmr.msrb.gmra.mxu1 %v1541_v22  ;;  %v1433_v0 = vadd.f32 %v1424_v54, %v1251_v27  ;;  %v9367_v54 = vld [vmem:[#allocation6 + $0x440] sm:$0xff]  ;;  %v9357_v27 = vld [vmem:[#allocation6 + $0x3f0] sm:$0xff] }
 0x692   :  { %v1516_v23 = vpop.f32.mrf.mxu0  ;;  %1960 = vmatpush.bf16.msrb.mxu0 %v9367_v54 }
 0x693   :  { %v1517_v47 = vadd.f32 %v9772_v12, %v1516_v23 }
 0x695   :  { %v1523_v34 = vmax.f32 %v1517_v47, 0.0 }
 0x698   :  { %v1427_v4 = vpop.f32.mrf.mxu3 }
 0x69a   :  { %v1518_v30 = vpop.f32.mrf.mxu0 }
 0x69b   :  { %v1519_v38 = vadd.f32 %v9772_v12, %v1518_v30  ;;  %v1434_v12 = vadd.f32 %v1427_v4, %v1254_v8  ;;  %v9364_v4 = vld [vmem:[#allocation6 + $0x428] sm:$0xff]  ;;  %v9347_v8 = vld [vmem:[#allocation6 + $0x3a0] sm:$0xff] }
 0x69d   :  { %v1524_v36 = vmax.f32 %v1519_v38, 0.0 }
 0x69f   :  { %v1542_v37 = vpack.c.bf16 %v1524_v36, %v1523_v34 }
 0x6a0   :  { %v1429_v14 = vpop.f32.mrf.mxu3 }
 0x6a1   :  { %1604 = vmatmul.bf16.gmra.mxu1 %v1542_v37  ;;  %v1435_v16 = vadd.f32 %v1429_v14, %v1256_v53  ;;  %v9353_v53 = vld [vmem:[#allocation6 + $0x3d0] sm:$0xff] }
 0x70e   :  { %v1600_v51 = vpop.f32.mrf.mxu1 }
 0x70f   :  { %v1610_v58 = vadd.f32 %v1600_v51, %v1432_v44  ;;  %v9359_v44 = vld [vmem:[#allocation6 + $0x400] sm:$0xff]  ;;  %v9358_v51 = vld [vmem:[#allocation6 + $0x3f8] sm:$0xff] }
 0x710   :  { %1871 = vmatpush.bf16.msra.mxu3 %v9359_v44 }
 0x711   :  { %v1616_v59 = vadd.f32 %v9773_v28, %v1610_v58  ;;  %v9350_v58 = vld [vmem:[#allocation6 + $0x3b8] sm:$0xff] }
 0x713   :  { %v1620_v61 = vadd.f32 %v1616_v59, %v10362_v32  ;;  %v9366_v59 = vld [vmem:[#allocation6 + $0x438] sm:$0xff] }
 0x714   :  { %1872 = vmatpush.bf16.msra.mxu3 %v9358_v51  ;;  %1961 = vmatpush.bf16.msrb.mxu0 %v9366_v59  ;;  %v10424_v59 = vld [vmem:[#allocation6 + $0x68] sm:$0xff] }
 0x715   :  { %1624 = vadd.xlane.f32.xlu0 %v1620_v61 }
 0x716   :  { %v1602_v2 = vpop.f32.mrf.mxu1 }
 0x717   :  { %v1611_v3 = vadd.f32 %v1602_v2, %v1433_v0  ;;  %v9365_v0 = vld [vmem:[#allocation6 + $0x430] sm:$0xff]  ;;  %v9356_v2 = vld [vmem:[#allocation6 + $0x3e8] sm:$0xff] }
 0x718   :  { %1873 = vmatpush.bf16.msra.mxu3 %v9357_v27  ;;  %1962 = vmatpush.bf16.msrb.mxu0 %v9365_v0 }
 0x719   :  { %v1617_v6 = vadd.f32 %v9773_v28, %v1611_v3  ;;  %v9348_v3 = vld [vmem:[#allocation6 + $0x3a8] sm:$0xff] }
 0x71b   :  { %v1621_v11 = vadd.f32 %v1617_v6, %v10364_v33  ;;  %v9355_v6 = vld [vmem:[#allocation6 + $0x3e0] sm:$0xff] }
 0x71c   :  { %1874 = vmatpush.bf16.msra.mxu3 %v9356_v2  ;;  %1963 = vmatpush.bf16.msrb.mxu0 %v9364_v4 }
 0x71d   :  { %1626 = vadd.xlane.f32.xlu1 %v1621_v11 }
 0x71e   :  { %v1605_v49 = vpop.f32.mrf.mxu1 }
 0x71f   :  { %v1612_v13 = vadd.f32 %v1605_v49, %v1434_v12  ;;  %v9354_v12 = vld [vmem:[#allocation6 + $0x3d8] sm:$0xff] }
 0x720   :  { %1875 = vmatpush.bf16.msra.mxu3 %v9355_v6  ;;  %v9346_v49 = vld [vmem:[#allocation6 + $0x398] sm:$0xff] }
 0x721   :  { %v1618_v52 = vadd.f32 %v9773_v28, %v1612_v13  ;;  %v9362_v13 = vld [vmem:[#allocation6 + $0x418] sm:$0xff] }
 0x723   :  { %v1622_v7 = vadd.f32 %v1618_v52, %v10374_v26 }
 0x724   :  { %1876 = vmatpush.bf16.msra.mxu3 %v9354_v12 }
 0x725   :  { %1628 = vadd.xlane.f32.xlu2 %v1622_v7 }
 0x726   :  { %v1607_v32 = vpop.f32.mrf.mxu1 }
 0x727   :  { %v1613_v22 = vadd.f32 %v1607_v32, %v1435_v16  ;;  %v9361_v16 = vld [vmem:[#allocation6 + $0x410] sm:$0xff] }
 0x728   :  { %1877 = vmatpush.bf16.msra.mxu3 %v9353_v53 }
 0x729   :  { %v1619_v23 = vadd.f32 %v9773_v28, %v1613_v22  ;;  %v9351_v28 = vld [vmem:[#allocation6 + $0x3c0] sm:$0xff]  ;;  %v9352_v22 = vld [vmem:[#allocation6 + $0x3c8] sm:$0xff] }
 0x72a   :  { %1784 = vmatpush.bf16.msra.mxu2 %v9351_v28 }
 0x72b   :  { %v1623_v47 = vadd.f32 %v1619_v23, %v10376_v55  ;;  %v9344_v23 = vld [vmem:[#allocation6 + $0x388] sm:$0xff] }
 0x72c   :  { %1878 = vmatpush.bf16.msra.mxu3 %v9352_v22  ;;  %v9775_v22 = vld [vmem:[#allocation7 + $0x4f] ss:$0 sm:$0xff] }
 0x72d   :  { %1630 = vadd.xlane.f32.xlu0 %v1623_v47 }
 0x72e   :  { %1785 = vmatpush.bf16.msra.mxu2 %v9350_v58 }
 0x788   :  { %v1625_v10 = vpop.xlane.xlu0 %1624 }
 0x789   :  { %v1632_v33 = vmul.f32 %v1625_v10, %v10334_v39 }
 0x78b   :  { %v10393_v30 = vsub.f32 %v1620_v61, %v1632_v33  ;;  %v9349_v61 = vld [vmem:[#allocation6 + $0x3b0] sm:$0xff]  ;;  %v10413_v33 = vld [vmem:[#allocation6 + $0x80] sm:$0xff] }
 0x78c   :  { %1786 = vmatpush.bf16.msra.mxu2 %v9349_v61 }
 0x78d   :  { %v1640_v38 = vmul.f32 %v10393_v30, %v10393_v30 }
 0x78f   :  { %1644 = vadd.xlane.f32.xlu1 %v1640_v38 }
 0x790   :  { %v1627_v57 = vpop.xlane.xlu1 %1626  ;;  %1787 = vmatpush.bf16.msra.mxu2 %v9348_v3  ;;  %v10427_v3 = vld [vmem:[#allocation6 + $0x60] sm:$0xff] }
 0x791   :  { %v1633_v26 = vmul.f32 %v1627_v57, %v10334_v39 }
 0x793   :  { %v10398_v34 = vsub.f32 %v1621_v11, %v1633_v26  ;;  %v9363_v11 = vld [vmem:[#allocation6 + $0x420] sm:$0xff] }
 0x794   :  { %1788 = vmatpush.bf16.msra.mxu2 %v9347_v8  ;;  %1964 = vmatpush.bf16.msrb.mxu0 %v9363_v11 }
 0x795   :  { %v1641_v36 = vmul.f32 %v10398_v34, %v10398_v34 }
 0x797   :  { %1646 = vadd.xlane.f32.xlu2 %v1641_v36 }
 0x798   :  { %v1629_v55 = vpop.xlane.xlu2 %1628  ;;  %1789 = vmatpush.bf16.msra.mxu2 %v9346_v49  ;;  %1965 = vmatpush.bf16.msrb.mxu0 %v9362_v13  ;;  %v9774_v49 = vld [vmem:[#allocation7 + $0x4e] ss:$0 sm:$0xff] }
 0x799   :  { %v1634_v37 = vmul.f32 %v1629_v55, %v10334_v39  ;;  %v10417_v55 = vld [vmem:[#allocation6 + $0x78] sm:$0xff] }
 0x79b   :  { %v10403_v45 = vsub.f32 %v1622_v7, %v1634_v37  ;;  %v9345_v7 = vld [vmem:[#allocation6 + $0x390] sm:$0xff] }
 0x79c   :  { %1790 = vmatpush.bf16.msra.mxu2 %v9345_v7  ;;  %1966 = vmatpush.bf16.msrb.mxu0 %v9361_v16 }
 0x79d   :  { %v1642_v48 = vmul.f32 %v10403_v45, %v10403_v45 }
 0x79f   :  { %1648 = vadd.xlane.f32.xlu0 %v1642_v48 }
 0x7a0   :  { %v1631_v46 = vpop.xlane.xlu0 %1630  ;;  %1791 = vmatpush.bf16.msra.mxu2 %v9344_v23 }
 0x7a1   :  { %v1635_v50 = vmul.f32 %v1631_v46, %v10334_v39 }
 0x7a3   :  { %v10408_v29 = vsub.f32 %v1623_v47, %v1635_v50  ;;  %v9360_v47 = vld [vmem:[#allocation6 + $0x408] sm:$0xff]  ;;  %v10420_v50 = vld [vmem:[#allocation6 + $0x70] sm:$0xff] }
 0x7a4   :  { %1967 = vmatpush.bf16.msrb.mxu0 %v9360_v47  ;;  %2112 = vmatpush.bf16.msrb.mxu2 %v10413_v33  ;;  %v10436_v47 = vld [vmem:[#allocation6 + $0x50] sm:$0xff] }
 0x7a5   :  { %v1643_v40 = vmul.f32 %v10408_v29, %v10408_v29 }
 0x7a7   :  { %1650 = vadd.xlane.f32.xlu1 %v1643_v40 }
 0x7a8   :  { %2113 = vmatpush.bf16.msrb.mxu2 %v10417_v55 }
 0x7ac   :  { %2114 = vmatpush.bf16.msrb.mxu2 %v10420_v50 }
 0x7b0   :  { %2115 = vmatpush.bf16.msrb.mxu2 %v10424_v59 }
 0x7b4   :  { %2116 = vmatpush.bf16.msrb.mxu2 %v10427_v3 }
 0x802   :  { %v1645_v52 = vpop.xlane.xlu1 %1644 }
 0x803   :  { %v1652_v14 = vmul.f32 %v1645_v52, %v10334_v39 }
 0x805   :  { %v1656_v32 = vadd.f32 1e-05, %v1652_v14  ;;  %v10432_v14 = vld [vmem:[#allocation6 + $0x58] sm:$0xff] }
 0x806   :  { %2117 = vmatpush.bf16.msrb.mxu2 %v10432_v14 }
 0x807   :  { %9854 = vrsqrt.f32 %v1656_v32  ;;  %vm1666_vm1 = vweird.f32 %v1656_v32 }
 0x80a   :  { %v1647_v10 = vpop.xlane.xlu2 %1646  ;;  %2118 = vmatpush.bf16.msrb.mxu2 %v10436_v47 }
 0x80b   :  { %v1653_v38 = vmul.f32 %v1647_v10, %v10334_v39 }
 0x80d   :  { %v9855_v57 = vpop.eup %9854  ;;  %v1657_v26 = vadd.f32 1e-05, %v1653_v38 }
 0x80e   :  { %v1661_v36 = vmul.f32 %v9855_v57, %v1656_v32  ;;  %vm1667_vm0 = vweird.f32 %v9855_v57 }
 0x80f   :  { %9856 = vrsqrt.f32 %v1657_v26  ;;  %vm1668_vm2 = vmor %vm1666_vm1, %vm1667_vm0  ;;  %vm1676_vm4 = vweird.f32 %v1657_v26 }
 0x810   :  { %v1662_v37 = vmul.f32 %v9855_v57, %v1661_v36 }
 0x812   :  { %v1663_v48 = vmul.f32 0.5, %v1662_v37  ;;  %v1649_v46 = vpop.xlane.xlu0 %1648 }
 0x813   :  { %v1654_v40 = vmul.f32 %v1649_v46, %v10334_v39 }
 0x814   :  { %v1664_v44 = vsub.f32 1.5, %v1663_v48  ;;  %v10443_v48 = vld [vmem:[#allocation6 + $0x48] sm:$0xff] }
 0x815   :  { %v9857_v28 = vpop.eup %9856  ;;  %v1658_v54 = vadd.f32 1e-05, %v1654_v40  ;;  %2119 = vmatpush.bf16.msrb.mxu2 %v10443_v48 }
 0x816   :  { %v1665_v51 = vmul.f32 %v9855_v57, %v1664_v44  ;;  %v1671_v58 = vmul.f32 %v9857_v28, %v1657_v26  ;;  %vm1677_vm3 = vweird.f32 %v9857_v28 }
 0x817   :  { %9858 = vrsqrt.f32 %v1658_v54  ;;  %vm1678_vm5 = vmor %vm1676_vm4, %vm1677_vm3  ;;  %vm1686_vm7 = vweird.f32 %v1658_v54 }
 0x818   :  { %v1672_v27 = vmul.f32 %v9857_v28, %v1671_v58  ;;  %v1669_v61 = vsel %vm1668_vm2, %v9855_v57, %v1665_v51 }
 0x819   :  { %v1700_v11 = vmul.f32 %v1669_v61, %v10393_v30 }
 0x81a   :  { %v1673_v0 = vmul.f32 0.5, %v1672_v27  ;;  %v1651_v2 = vpop.xlane.xlu1 %1650 }
 0x81b   :  { %v1655_v4 = vmul.f32 %v1651_v2, %v10334_v39  ;;  %v1706_v32 = vmul.f32 %v9774_v49, %v1700_v11 }
 0x81c   :  { %v1674_v6 = vsub.f32 1.5, %v1673_v0 }
 0x81d   :  { %v9859_v8 = vpop.eup %9858  ;;  %v1659_v12 = vadd.f32 1e-05, %v1655_v4  ;;  %v10439_v57 = vadd.f32 %v9775_v22, %v1706_v32 }
 0x81e   :  { %v1675_v13 = vmul.f32 %v9857_v28, %v1674_v6  ;;  %v1681_v52 = vmul.f32 %v9859_v8, %v1658_v54  ;;  %vm1687_vm6 = vweird.f32 %v9859_v8 }
 0x81f   :  { %9860 = vrsqrt.f32 %v1659_v12  ;;  %vm1688_vm8 = vmor %vm1686_vm7, %vm1687_vm6  ;;  %vm1696_vm10 = vweird.f32 %v1659_v12 }
 0x820   :  { %v1679_v53 = vsel %vm1678_vm5, %v9857_v28, %v1675_v13  ;;  %v1682_v7 = vmul.f32 %v9859_v8, %v1681_v52  ;;  %v9776_v13 = vld [vmem:[#allocation7 + $0x52] ss:$0 sm:$0xff] }
 0x821   :  { %v1701_v16 = vmul.f32 %v1679_v53, %v10398_v34 }
 0x822   :  { %v1683_v23 = vmul.f32 0.5, %v1682_v7 }
 0x823   :  { %v1707_v30 = vmul.f32 %v9774_v49, %v1701_v16 }
 0x824   :  { %v1684_v10 = vsub.f32 1.5, %v1683_v23 }
 0x825   :  { %v9861_v38 = vpop.eup %9860  ;;  %v10441_v26 = vadd.f32 %v9775_v22, %v1707_v30 }
 0x826   :  { %v1685_v36 = vmul.f32 %v9859_v8, %v1684_v10  ;;  %v1691_v37 = vmul.f32 %v9861_v38, %v1659_v12  ;;  %vm1697_vm9 = vweird.f32 %v9861_v38 }
 0x827   :  { %v1732_v34 = vpack.c.bf16 %v10441_v26, %v10439_v57  ;;  %vm1698_vm11 = vmor %vm1696_vm10, %vm1697_vm9 }
 0x828   :  { %v1692_v46 = vmul.f32 %v9861_v38, %v1691_v37  ;;  %v1689_v40 = vsel %vm1688_vm8, %v9859_v8, %v1685_v36 }
 0x829   :  { %1792 = vmatmul.bf16.vlgmr.msra.gmra.mxu2 %v1732_v34  ;;  %1879 = vmatmul.bf16.vlgmr.msra.gmra.mxu3 %v1732_v34  ;;  %v1702_v51 = vmul.f32 %v1689_v40, %v10403_v45 }
 0x82a   :  { %v1693_v44 = vmul.f32 0.5, %v1692_v46  ;;  %1968 = vmatmul.bf16.vlgmr.msrb.gmra.mxu0 %v1732_v34 }
 0x82b   :  { %v1708_v0 = vmul.f32 %v9774_v49, %v1702_v51 }
 0x82c   :  { %v1694_v28 = vsub.f32 1.5, %v1693_v44 }
 0x82d   :  { %v10450_v54 = vadd.f32 %v9775_v22, %v1708_v0 }
 0x82e   :  { %v1695_v58 = vmul.f32 %v9861_v38, %v1694_v28 }
 0x830   :  { %v1699_v27 = vsel %vm1698_vm11, %v9861_v38, %v1695_v58 }
 0x831   :  { %v1703_v61 = vmul.f32 %v1699_v27, %v10408_v29 }
 0x833   :  { %v1709_v2 = vmul.f32 %v9774_v49, %v1703_v61 }
 0x835   :  { %v10452_v4 = vadd.f32 %v9775_v22, %v1709_v2  ;;  %v9778_v22 = vld [vmem:[#allocation7 + $0x51] ss:$0 sm:$0xff] }
 0x837   :  { %v1733_v6 = vpack.c.bf16 %v10452_v4, %v10450_v54 }
 0x839   :  { %1797 = vmatmul.bf16.gmra.mxu2 %v1733_v6  ;;  %1884 = vmatmul.bf16.gmra.mxu3 %v1733_v6 }
 0x83a   :  { %1973 = vmatmul.bf16.gmra.mxu0 %v1733_v6 }
 0x8a7   :  { %v1969_v8 = vpop.f32.mrf.mxu0 }
 0x8a8   :  { %v1970_v29 = vadd.f32 %v9776_v13, %v1969_v8 }
 0x8aa   :  { %v1979_v32 = vpack.c.bf16 %v1970_v29, %v1970_v29 }
 0x8ac   :  { %v1880_v45 = vpop.f32.mrf.mxu3  ;;  %v2027_v34 = vunpack.c.l.b16 %v1979_v32 }
 0x8ad   :  { %v1881_v40 = vadd.f32 %v9778_v22, %v1880_v45 }
 0x8af   :  { %v1971_v11 = vpop.f32.mrf.mxu0  ;;  %v1890_v6 = vpack.c.bf16 %v1881_v40, %v1881_v40 }
 0x8b0   :  { %v1972_v53 = vadd.f32 %v9776_v13, %v1971_v11 }
 0x8b2   :  { %v1980_v7 = vpack.c.bf16 %v1972_v53, %v1972_v53 }
 0x8b4   :  { %v1882_v12 = vpop.f32.mrf.mxu3  ;;  %v2028_v30 = vunpack.c.l.b16 %v1980_v7 }
 0x8b5   :  { %v1883_v36 = vadd.f32 %v9778_v22, %v1882_v12 }
 0x8b6   :  { %v2031_v44 = vpack.c.b16 %v2028_v30, %v2027_v34 }
 0x8b7   :  { %v1974_v52 = vpop.f32.mrf.mxu0  ;;  %v1891_v27 = vpack.c.bf16 %v1883_v36, %v1883_v36 }
 0x8b8   :  { %v1975_v49 = vadd.f32 %v9776_v13, %v1974_v52  ;;  %v2035_v11 = vunpack.c.l.bf16 %v2031_v44  ;;  %v2036_v52 = vunpack.c.h.bf16 %v2031_v44 }
 0x8ba   :  { %v1981_v10 = vpack.c.bf16 %v1975_v49, %v1975_v49  ;;  %v2051_v30 = vmul.f32 %v10212_v24, %v2035_v11 }
 0x8bc   :  { %v1885_v16 = vpop.f32.mrf.mxu3  ;;  %v2029_v28 = vunpack.c.l.b16 %v1981_v10 }
 0x8bd   :  { %v1886_v37 = vadd.f32 %v9778_v22, %v1885_v16  ;;  %v1987_v16 = vunpack.c.l.b16 %v1890_v6 }
 0x8bf   :  { %v1976_v23 = vpop.f32.mrf.mxu0  ;;  %v1892_v61 = vpack.c.bf16 %v1886_v37, %v1886_v37 }
 0x8c0   :  { %v1977_v38 = vadd.f32 %v9776_v13, %v1976_v23  ;;  %v1988_v13 = vunpack.c.l.b16 %v1891_v27 }
 0x8c1   :  { %v1989_v12 = vunpack.c.l.b16 %v1892_v61  ;;  %v2047_v61 = vmul.f32 %v10245_v56, %v2035_v11 }
 0x8c2   :  { %v1982_v46 = vpack.c.bf16 %v1977_v38, %v1977_v38  ;;  %v1991_v10 = vpack.c.b16 %v1988_v13, %v1987_v16  ;;  %v2044_v16 = vmul.f32 %v10275_v15, %v2036_v52 }
 0x8c4   :  { %v2030_v51 = vunpack.c.l.b16 %v1982_v46  ;;  %v1887_v58 = vpop.f32.mrf.mxu3 }
 0x8c5   :  { %v1888_v0 = vadd.f32 %v9778_v22, %v1887_v58  ;;  %v2052_v22 = vmul.f32 %v10214_v25, %v2036_v52 }
 0x8c6   :  { %v2032_v2 = vpack.c.b16 %v2030_v51, %v2029_v28  ;;  %v1995_v28 = vunpack.c.l.bf16 %v1991_v10  ;;  %v1996_v51 = vunpack.c.h.bf16 %v1991_v10 }
 0x8c7   :  { %v1893_v8 = vpack.c.bf16 %v1888_v0, %v1888_v0  ;;  %v2061_v46 = vpack.c.bf16 %v2052_v22, %v2051_v30  ;;  %v2048_v0 = vmul.f32 %v10251_v60, %v2036_v52 }
 0x8c8   :  { %v2037_v53 = vunpack.c.l.bf16 %v2032_v2  ;;  %v2038_v29 = vunpack.c.h.bf16 %v2032_v2  ;;  %v2011_v2 = vmul.f32 %v10212_v24, %v1995_v28  ;;  %v2012_v6 = vmul.f32 %v10214_v25, %v1996_v51 }
 0x8c9   :  { %v1990_v7 = vunpack.c.l.b16 %v1893_v8  ;;  %v2059_v8 = vpack.c.bf16 %v2048_v0, %v2047_v61 }
 0x8ca   :  { %v2053_v49 = vmul.f32 %v10208_v20, %v2037_v53  ;;  %v2054_v45 = vmul.f32 %v10210_v21, %v2038_v29  ;;  %v2049_v40 = vmul.f32 %v10228_v42, %v2037_v53  ;;  %v2050_v44 = vmul.f32 %v10230_v43, %v2038_v29 }
 0x8cb   :  { %v1992_v32 = vpack.c.b16 %v1990_v7, %v1989_v12  ;;  %v2045_v13 = vmul.f32 %v10257_v1, %v2037_v53  ;;  %v2046_v12 = vmul.f32 %v10263_v5, %v2038_v29  ;;  %v2021_v7 = vpack.c.bf16 %v2012_v6, %v2011_v2  ;;  %v1793_v6 = vpop.f32.mrf.mxu2 }
 0x8cc   :  { %v2062_v23 = vpack.c.bf16 %v2054_v45, %v2053_v49  ;;  %v2060_v27 = vpack.c.bf16 %v2050_v44, %v2049_v40  ;;  %v2043_v45 = vmul.f32 %v10269_v9, %v2035_v11  ;;  %v2041_v22 = vmul.f32 %v10277_v19, %v2037_v53 }
 0x8cd   :  { %v1997_v38 = vunpack.c.l.bf16 %v1992_v32  ;;  %v1998_v36 = vunpack.c.h.bf16 %v1992_v32  ;;  %v2058_v49 = vpack.c.bf16 %v2046_v12, %v2045_v13  ;;  %v2042_v10 = vmul.f32 %v10283_v31, %v2038_v29 }
 0x8ce   :  { %2141 = vmatpush.bf16.msrb.mxu3 %v2062_v23  ;;  %v2057_v30 = vpack.c.bf16 %v2044_v16, %v2043_v45  ;;  %v2040_v40 = vmul.f32 %v10296_v41, %v2036_v52  ;;  %v2007_v44 = vmul.f32 %v10245_v56, %v1995_v28  ;;  %v2003_v2 = vmul.f32 %v10269_v9, %v1995_v28 }
 0x8cf   :  { %v2013_v37 = vmul.f32 %v10208_v20, %v1997_v38  ;;  %v2014_v34 = vmul.f32 %v10210_v21, %v1998_v36  ;;  %v2009_v32 = vmul.f32 %v10228_v42, %v1997_v38  ;;  %v2010_v23 = vmul.f32 %v10230_v43, %v1998_v36 }
 0x8d0   :  { %v2005_v53 = vmul.f32 %v10257_v1, %v1997_v38  ;;  %v2006_v29 = vmul.f32 %v10263_v5, %v1998_v36  ;;  %v2002_v13 = vmul.f32 %v10283_v31, %v1998_v36  ;;  %v2000_v45 = vmul.f32 %v10296_v41, %v1996_v51 }
 0x8d1   :  { %v2022_v58 = vpack.c.bf16 %v2014_v34, %v2013_v37  ;;  %v2020_v37 = vpack.c.bf16 %v2010_v23, %v2009_v32  ;;  %v2056_v34 = vpack.c.bf16 %v2042_v10, %v2041_v22  ;;  %v9777_v32 = vld [vmem:[#allocation7 + $0x50] ss:$0 sm:$0xff] }
 0x8d2   :  { %2142 = vmatpush.bf16.msrb.mxu3 %v2061_v46  ;;  %v2039_v46 = vmul.f32 %v10290_v35, %v2035_v11  ;;  %v2018_v0 = vpack.c.bf16 %v2006_v29, %v2005_v53  ;;  %v2004_v11 = vmul.f32 %v10275_v15, %v1996_v51 }
 0x8d3   :  { %2063 = vmatpush.bf16.xpose.msra.mxu1 %v2022_v58  ;;  %v2008_v58 = vmul.f32 %v10251_v60, %v1996_v51 }
 0x8d4   :  { %v2017_v52 = vpack.c.bf16 %v2004_v11, %v2003_v2 }
 0x8d5   :  { %v2019_v61 = vpack.c.bf16 %v2008_v58, %v2007_v44  ;;  %v10014_v44 = vld [vmem:[#allocation7 + $0x20] sm:$0xff] }
 0x8d6   :  { %2143 = vmatpush.bf16.msrb.mxu3 %v2060_v27  ;;  %v2055_v27 = vpack.c.bf16 %v2040_v40, %v2039_v46 }
 0x8da   :  { %2144 = vmatpush.bf16.msrb.mxu3 %v2059_v8  ;;  %v2001_v8 = vmul.f32 %v10277_v19, %v1997_v38 }
 0x8db   :  { %2064 = vmatpush.bf16.xpose.msra.mxu1 %v2021_v7  ;;  %v1795_v7 = vpop.f32.mrf.mxu2 }
 0x8dc   :  { %v2016_v12 = vpack.c.bf16 %v2002_v13, %v2001_v8  ;;  %v1796_v23 = vadd.f32 %v9777_v32, %v1795_v7 }
 0x8de   :  { %2145 = vmatpush.bf16.msrb.mxu3 %v2058_v49  ;;  %v1999_v49 = vmul.f32 %v10290_v35, %v1995_v28 }
 0x8e0   :  { %v2015_v16 = vpack.c.bf16 %v2000_v45, %v1999_v49 }
 0x8e2   :  { %2146 = vmatpush.bf16.msrb.mxu3 %v2057_v30  ;;  %v1794_v30 = vadd.f32 %v9777_v32, %v1793_v6  ;;  %v10017_v6 = vld [vmem:[#allocation7 + $0x38] sm:$0xff] }
 0x8e3   :  { %2065 = vmatpush.bf16.xpose.msra.mxu1 %v2020_v37  ;;  %v1798_v22 = vpop.f32.mrf.mxu2 }
 0x8e4   :  { %v1803_v10 = vpack.c.bf16 %v1796_v23, %v1794_v30  ;;  %v1799_v38 = vadd.f32 %v9777_v32, %v1798_v22 }
 0x8e6   :  { %2147 = vmatpush.bf16.msrb.mxu3 %v2056_v34 }
 0x8ea   :  { %2148 = vmatpush.bf16.msrb.mxu3 %v2055_v27  ;;  %v10015_v27 = vld [vmem:[#allocation7 + $0x28] sm:$0xff] }
 0x8eb   :  { %2066 = vmatpush.bf16.xpose.msra.mxu1 %v2019_v61  ;;  %v1800_v37 = vpop.f32.mrf.mxu2 }
 0x8ec   :  { %v1801_v34 = vadd.f32 %v9777_v32, %v1800_v37 }
 0x8ee   :  { %v1804_v46 = vpack.c.bf16 %v1801_v34, %v1799_v38 }
 0x8f3   :  { %2067 = vmatpush.bf16.xpose.msra.mxu1 %v2018_v0  ;;  %v10016_v0 = vld [vmem:[#allocation7 + $0x30] sm:$0xff] }
 0x8fb   :  { %2068 = vmatpush.bf16.xpose.msra.mxu1 %v2017_v52 }
 0x903   :  { %2069 = vmatpush.bf16.xpose.msra.mxu1 %v2016_v12 }
 0x90b   :  { %2070 = vmatpush.bf16.xpose.msra.mxu1 %v2015_v16 }
 0x912   :  { %2071 = vmatmul.bf16.vlgmr.msra.gmra.mxu1 %v1803_v10 }
 0x922   :  { %2076 = vmatmul.bf16.gmra.mxu1 %v1804_v46 }
 0x98f   :  { %v2072_v36 = vpop.f32.mrf.mxu1 }
 0x990   :  { %v2082_v40 = vmul.f32 0.17677669, %v2072_v36 }
 0x992   :  { %v2086_v58 = vadd.f32 %v10014_v44, %v2082_v40 }
 0x994   :  { %2090 = vmax.xlane.f32.xlu2 %v2086_v58 }
 0x997   :  { %v2074_v28 = vpop.f32.mrf.mxu1 }
 0x998   :  { %v2083_v51 = vmul.f32 0.17677669, %v2074_v28  ;;  %v9375_v28 = vld [vmem:[#allocation6 + $0x480] sm:$0xff] }
 0x999   :  { %2228 = vmatpush.bf16.msra.mxu0 %v9375_v28 }
 0x99a   :  { %v2087_v61 = vadd.f32 %v10015_v27, %v2083_v51  ;;  %v9374_v51 = vld [vmem:[#allocation6 + $0x478] sm:$0xff] }
 0x99c   :  { %2092 = vmax.xlane.f32.xlu0 %v2087_v61 }
 0x99d   :  { %2229 = vmatpush.bf16.msra.mxu0 %v9374_v51 }
 0x99f   :  { %v2077_v53 = vpop.f32.mrf.mxu1 }
 0x9a0   :  { %v2084_v29 = vmul.f32 0.17677669, %v2077_v53 }
 0x9a2   :  { %v2088_v2 = vadd.f32 %v10016_v0, %v2084_v29  ;;  %v9372_v29 = vld [vmem:[#allocation6 + $0x468] sm:$0xff] }
 0x9a4   :  { %2094 = vmax.xlane.f32.xlu1 %v2088_v2 }
 0x9a7   :  { %v2079_v11 = vpop.f32.mrf.mxu1 }
 0x9a8   :  { %v2085_v52 = vmul.f32 0.17677669, %v2079_v11 }
 0x9aa   :  { %v2089_v8 = vadd.f32 %v10017_v6, %v2085_v52 }
 0x9ac   :  { %2096 = vmax.xlane.f32.xlu2 %v2089_v8 }
 0xa07   :  { %v2091_v13 = vpop.xlane.xlu2 %2090 }
 0xa08   :  { %v2098_v12 = vsub.f32 %v2086_v58, %v2091_v13  ;;  %v9370_v13 = vld [vmem:[#allocation6 + $0x458] sm:$0xff] }
 0xa0a   :  { %v2102_v7 = vmul.f32 1.442695, %v2098_v12 }
 0xa0c   :  { %9862 = vpow2.f32 %v2102_v7 }
 0xa0f   :  { %v2093_v49 = vpop.xlane.xlu0 %2092 }
 0xa10   :  { %v2099_v45 = vsub.f32 %v2087_v61, %v2093_v49  ;;  %v9373_v61 = vld [vmem:[#allocation6 + $0x470] sm:$0xff] }
 0xa11   :  { %2230 = vmatpush.bf16.msra.mxu0 %v9373_v61 }
 0xa12   :  { %v2104_v16 = vmul.f32 1.442695, %v2099_v45  ;;  %v9863_v23 = vpop.eup %9862 }
 0xa14   :  { %9864 = vpow2.f32 %v2104_v16 }
 0xa15   :  { %2231 = vmatpush.bf16.msra.mxu0 %v9372_v29 }
 0xa17   :  { %v2095_v32 = vpop.xlane.xlu1 %2094 }
 0xa18   :  { %v2100_v22 = vsub.f32 %v2088_v2, %v2095_v32 }
 0xa1a   :  { %v9865_v30 = vpop.eup %9864  ;;  %v2106_v37 = vmul.f32 1.442695, %v2100_v22  ;;  %v9369_v22 = vld [vmem:[#allocation6 + $0x450] sm:$0xff] }
 0xa1b   :  { %v2110_v10 = vpack.c.bf16 %v9865_v30, %v9863_v23 }
 0xa1c   :  { %9866 = vpow2.f32 %v2106_v37 }
 0xa1d   :  { %2120 = vmatmul.bf16.vlgmr.msrb.gmra.mxu2 %v2110_v10 }
 0xa1f   :  { %v2097_v34 = vpop.xlane.xlu2 %2096 }
 0xa20   :  { %v2101_v38 = vsub.f32 %v2089_v8, %v2097_v34  ;;  %v9371_v8 = vld [vmem:[#allocation6 + $0x460] sm:$0xff] }
 0xa21   :  { %2232 = vmatpush.bf16.msra.mxu0 %v9371_v8 }
 0xa22   :  { %v2108_v46 = vmul.f32 1.442695, %v2101_v38  ;;  %v9867_v36 = vpop.eup %9866 }
 0xa24   :  { %9868 = vpow2.f32 %v2108_v46 }
 0xa25   :  { %2233 = vmatpush.bf16.msra.mxu0 %v9370_v13 }
 0xa29   :  { %2234 = vmatpush.bf16.msra.mxu0 %v9369_v22 }
 0xa2a   :  { %v9869_v40 = vpop.eup %9868 }
 0xa2b   :  { %v2111_v44 = vpack.c.bf16 %v9869_v40, %v9867_v36 }
 0xa2d   :  { %2125 = vmatmul.bf16.gmra.mxu2 %v2111_v44  ;;  %v9779_v44 = vld [vmem:[#allocation7 + $0x53] ss:$0 sm:$0xff] }
 0xaa0   :  { %v2121_v58 = vpop.f32.mrf.mxu2 }
 0xaa1   :  { %9870 = vrcp.f32 %v2121_v58 }
 0xaa7   :  { %v9871_v53 = vpop.eup %9870 }
 0xaa8   :  { %v2123_v27 = vpop.f32.mrf.mxu2  ;;  %v2135_v2 = vmul.f32 %v9871_v53, %v9863_v23  ;;  %v9368_v23 = vld [vmem:[#allocation6 + $0x448] sm:$0xff] }
 0xaa9   :  { %9872 = vrcp.f32 %v2123_v27  ;;  %2235 = vmatpush.bf16.msra.mxu0 %v9368_v23 }
 0xaaf   :  { %v9873_v0 = vpop.eup %9872 }
 0xab0   :  { %v2136_v11 = vmul.f32 %v9873_v0, %v9865_v30  ;;  %v2126_v52 = vpop.f32.mrf.mxu2 }
 0xab1   :  { %9874 = vrcp.f32 %v2126_v52 }
 0xab2   :  { %v2139_v6 = vpack.c.bf16 %v2136_v11, %v2135_v2 }
 0xab4   :  { %2149 = vmatmul.bf16.vlgmr.msrb.gmra.mxu3 %v2139_v6 }
 0xab7   :  { %v9875_v7 = vpop.eup %9874 }
 0xab8   :  { %v2128_v12 = vpop.f32.mrf.mxu2  ;;  %v2137_v45 = vmul.f32 %v9875_v7, %v9867_v36 }
 0xab9   :  { %9876 = vrcp.f32 %v2128_v12 }
 0xabf   :  { %v9877_v49 = vpop.eup %9876 }
 0xac0   :  { %v2138_v16 = vmul.f32 %v9877_v49, %v9869_v40 }
 0xac2   :  { %v2140_v32 = vpack.c.bf16 %v2138_v16, %v2137_v45 }
 0xac4   :  { %2154 = vmatmul.bf16.gmra.mxu3 %v2140_v32 }
 0xb37   :  { %v2150_v30 = vpop.f32.mrf.mxu3 }
 0xb3f   :  { %v2152_v10 = vpop.f32.mrf.mxu3 }
 0xb40   :  { %v2176_v37 = vpack.c.bf16 %v2152_v10, %v2150_v30  ;;  %v9383_v30 = vld [vmem:[#allocation6 + $0x4c0] sm:$0xff] }
 0xb41   :  { %v9399_v10 = vld [vmem:[#allocation6 + $0x540] sm:$0xff]  ;;  %2411 = vmatpush.bf16.msra.mxu2 %v9383_v30 }
 0xb42   :  { %2236 = vmatmul.bf16.vlgmr.msra.gmra.mxu0 %v2176_v37  ;;  %2518 = vmatpush.bf16.msra.mxu3 %v9399_v10  ;;  %v9382_v37 = vld [vmem:[#allocation6 + $0x4b8] sm:$0xff] }
 0xb45   :  { %2412 = vmatpush.bf16.msra.mxu2 %v9382_v37 }
 0xb47   :  { %v2155_v34 = vpop.f32.mrf.mxu3 }
 0xb4f   :  { %v2157_v38 = vpop.f32.mrf.mxu3 }
 0xb50   :  { %v2177_v46 = vpack.c.bf16 %v2157_v38, %v2155_v34  ;;  %v9398_v34 = vld [vmem:[#allocation6 + $0x538] sm:$0xff]  ;;  %v9381_v38 = vld [vmem:[#allocation6 + $0x4b0] sm:$0xff] }
 0xb51   :  { %2519 = vmatpush.bf16.msra.mxu3 %v9398_v34  ;;  %2413 = vmatpush.bf16.msra.mxu2 %v9381_v38  ;;  %v9412_v34 = vld [vmem:[#allocation6 + $0x5a8] sm:$0xff] }
 0xb52   :  { %2241 = vmatmul.bf16.gmra.mxu0 %v2177_v46  ;;  %v9397_v46 = vld [vmem:[#allocation6 + $0x530] sm:$0xff] }
 0xb55   :  { %2520 = vmatpush.bf16.msra.mxu3 %v9397_v46 }
 0xbbf   :  { %v2237_v58 = vpop.f32.mrf.mxu0 }
 0xbc0   :  { %v2238_v28 = vadd.f32 %v9779_v44, %v2237_v58  ;;  %v9396_v58 = vld [vmem:[#allocation6 + $0x528] sm:$0xff] }
 0xbc1   :  { %2521 = vmatpush.bf16.msra.mxu3 %v9396_v58  ;;  %v9411_v58 = vld [vmem:[#allocation6 + $0x5a0] sm:$0xff] }
 0xbc2   :  { %v2247_v36 = vadd.f32 %v2238_v28, %v10439_v57  ;;  %v9379_v28 = vld [vmem:[#allocation6 + $0x4a0] sm:$0xff] }
 0xbc4   :  { %2251 = vadd.xlane.f32.xlu0 %v2247_v36 }
 0xbc7   :  { %v2239_v40 = vpop.f32.mrf.mxu0 }
 0xbc8   :  { %v2240_v51 = vadd.f32 %v9779_v44, %v2239_v40  ;;  %v9378_v40 = vld [vmem:[#allocation6 + $0x498] sm:$0xff] }
 0xbca   :  { %v2248_v27 = vadd.f32 %v2240_v51, %v10441_v26  ;;  %v9394_v51 = vld [vmem:[#allocation6 + $0x518] sm:$0xff] }
 0xbcc   :  { %2253 = vadd.xlane.f32.xlu1 %v2248_v27 }
 0xbcf   :  { %v2242_v61 = vpop.f32.mrf.mxu0 }
 0xbd0   :  { %v2243_v53 = vadd.f32 %v9779_v44, %v2242_v61 }
 0xbd2   :  { %v2249_v29 = vadd.f32 %v2243_v53, %v10450_v54  ;;  %v9377_v53 = vld [vmem:[#allocation6 + $0x490] sm:$0xff] }
 0xbd4   :  { %2255 = vadd.xlane.f32.xlu2 %v2249_v29 }
 0xbd7   :  { %v2244_v0 = vpop.f32.mrf.mxu0 }
 0xbd8   :  { %v2245_v2 = vadd.f32 %v9779_v44, %v2244_v0  ;;  %v9380_v44 = vld [vmem:[#allocation6 + $0x4a8] sm:$0xff] }
 0xbd9   :  { %2414 = vmatpush.bf16.msra.mxu2 %v9380_v44 }
 0xbda   :  { %v2250_v11 = vadd.f32 %v2245_v2, %v10452_v4  ;;  %v9376_v2 = vld [vmem:[#allocation6 + $0x488] sm:$0xff] }
 0xbdc   :  { %2257 = vadd.xlane.f32.xlu0 %v2250_v11 }
 0xbdd   :  { %2415 = vmatpush.bf16.msra.mxu2 %v9379_v28 }
 0xbe1   :  { %2416 = vmatpush.bf16.msra.mxu2 %v9378_v40 }
 0xbe5   :  { %2417 = vmatpush.bf16.msra.mxu2 %v9377_v53  ;;  %v9780_v53 = vld [vmem:[#allocation7 + $0x59] ss:$0 sm:$0xff] }
 0xbe9   :  { %2418 = vmatpush.bf16.msra.mxu2 %v9376_v2 }
 0xc37   :  { %v2252_v52 = vpop.xlane.xlu0 %2251 }
 0xc38   :  { %v2259_v6 = vmul.f32 %v2252_v52, %v10334_v39 }
 0xc3a   :  { %v10493_v57 = vsub.f32 %v2247_v36, %v2259_v6  ;;  %v9395_v36 = vld [vmem:[#allocation6 + $0x520] sm:$0xff] }
 0xc3b   :  { %2522 = vmatpush.bf16.msra.mxu3 %v9395_v36 }
 0xc3c   :  { %v2267_v8 = vmul.f32 %v10493_v57, %v10493_v57 }
 0xc3e   :  { %2271 = vadd.xlane.f32.xlu1 %v2267_v8  ;;  %v9415_v8 = vld [vmem:[#allocation6 + $0x5c0] sm:$0xff] }
 0xc3f   :  { %v2254_v26 = vpop.xlane.xlu1 %2253  ;;  %2523 = vmatpush.bf16.msra.mxu3 %v9394_v51  ;;  %2759 = vmatpush.bf16.msrb.mxu2 %v9415_v8 }
 0xc40   :  { %v2260_v13 = vmul.f32 %v2254_v26, %v10334_v39 }
 0xc42   :  { %v10498_v12 = vsub.f32 %v2248_v27, %v2260_v13 }
 0xc44   :  { %v2268_v54 = vmul.f32 %v10498_v12, %v10498_v12 }
 0xc46   :  { %2273 = vadd.xlane.f32.xlu2 %v2268_v54 }
 0xc47   :  { %v2256_v4 = vpop.xlane.xlu2 %2255 }
 0xc48   :  { %v2261_v7 = vmul.f32 %v2256_v4, %v10334_v39  ;;  %v9414_v4 = vld [vmem:[#allocation6 + $0x5b8] sm:$0xff] }
 0xc49   :  { %2760 = vmatpush.bf16.msrb.mxu2 %v9414_v4 }
 0xc4a   :  { %v10503_v49 = vsub.f32 %v2249_v29, %v2261_v7  ;;  %v9393_v29 = vld [vmem:[#allocation6 + $0x510] sm:$0xff] }
 0xc4b   :  { %2524 = vmatpush.bf16.msra.mxu3 %v9393_v29 }
 0xc4c   :  { %v2269_v45 = vmul.f32 %v10503_v49, %v10503_v49 }
 0xc4e   :  { %2275 = vadd.xlane.f32.xlu0 %v2269_v45  ;;  %v9413_v45 = vld [vmem:[#allocation6 + $0x5b0] sm:$0xff] }
 0xc4f   :  { %v2258_v16 = vpop.xlane.xlu0 %2257  ;;  %2761 = vmatpush.bf16.msrb.mxu2 %v9413_v45 }
 0xc50   :  { %v2262_v32 = vmul.f32 %v2258_v16, %v10334_v39 }
 0xc52   :  { %v10508_v22 = vsub.f32 %v2250_v11, %v2262_v32  ;;  %v9392_v11 = vld [vmem:[#allocation6 + $0x508] sm:$0xff] }
 0xc53   :  { %2525 = vmatpush.bf16.msra.mxu3 %v9392_v11  ;;  %2762 = vmatpush.bf16.msrb.mxu2 %v9412_v34  ;;  %v9410_v11 = vld [vmem:[#allocation6 + $0x598] sm:$0xff] }
 0xc54   :  { %v2270_v23 = vmul.f32 %v10508_v22, %v10508_v22 }
 0xc56   :  { %2277 = vadd.xlane.f32.xlu1 %v2270_v23 }
 0xc57   :  { %2763 = vmatpush.bf16.msrb.mxu2 %v9411_v58 }
 0xc5b   :  { %2764 = vmatpush.bf16.msrb.mxu2 %v9410_v11 }
 0xcb1   :  { %v2272_v27 = vpop.xlane.xlu1 %2271 }
 0xcb2   :  { %v2279_v61 = vmul.f32 %v2272_v27, %v10334_v39 }
 0xcb4   :  { %v2283_v0 = vadd.f32 1e-05, %v2279_v61 }
 0xcb6   :  { %9878 = vrsqrt.f32 %v2283_v0  ;;  %vm2293_vm13 = vweird.f32 %v2283_v0 }
 0xcb9   :  { %v2274_v52 = vpop.xlane.xlu2 %2273 }
 0xcba   :  { %v2280_v6 = vmul.f32 %v2274_v52, %v10334_v39 }
 0xcbc   :  { %v9879_v26 = vpop.eup %9878  ;;  %v2284_v13 = vadd.f32 1e-05, %v2280_v6 }
 0xcbd   :  { %v2288_v54 = vmul.f32 %v9879_v26, %v2283_v0  ;;  %vm2294_vm12 = vweird.f32 %v9879_v26 }
 0xcbe   :  { %9880 = vrsqrt.f32 %v2284_v13  ;;  %vm2295_vm14 = vmor %vm2293_vm13, %vm2294_vm12  ;;  %vm2303_vm0 = vweird.f32 %v2284_v13 }
 0xcbf   :  { %v2289_v7 = vmul.f32 %v9879_v26, %v2288_v54 }
 0xcc1   :  { %v2290_v16 = vmul.f32 0.5, %v2289_v7  ;;  %v2276_v32 = vpop.xlane.xlu0 %2275  ;;  %v9409_v7 = vld [vmem:[#allocation6 + $0x590] sm:$0xff] }
 0xcc2   :  { %v2281_v23 = vmul.f32 %v2276_v32, %v10334_v39  ;;  %2765 = vmatpush.bf16.msrb.mxu2 %v9409_v7  ;;  %v9406_v7 = vld [vmem:[#allocation6 + $0x578] sm:$0xff] }
 0xcc3   :  { %v2291_v30 = vsub.f32 1.5, %v2290_v16 }
 0xcc4   :  { %v9881_v10 = vpop.eup %9880  ;;  %v2285_v37 = vadd.f32 1e-05, %v2281_v23 }
 0xcc5   :  { %v2292_v38 = vmul.f32 %v9879_v26, %v2291_v30  ;;  %v2298_v46 = vmul.f32 %v9881_v10, %v2284_v13  ;;  %vm2304_vm15 = vweird.f32 %v9881_v10 }
 0xcc6   :  { %9882 = vrsqrt.f32 %v2285_v37  ;;  %vm2305_vm1 = vmor %vm2303_vm0, %vm2304_vm15  ;;  %vm2313_vm3 = vweird.f32 %v2285_v37 }
 0xcc7   :  { %v2299_v44 = vmul.f32 %v9881_v10, %v2298_v46  ;;  %v2296_v28 = vsel %vm2295_vm14, %v9879_v26, %v2292_v38  ;;  %v9781_v26 = vld [vmem:[#allocation7 + $0x5a] ss:$0 sm:$0xff] }
 0xcc8   :  { %v2327_v29 = vmul.f32 %v2296_v28, %v10493_v57  ;;  %v9447_v46 = vld [vmem:[#allocation6 + $0x6c0] sm:$0xff]  ;;  %v9446_v28 = vld [vmem:[#allocation6 + $0x6b8] sm:$0xff] }
 0xcc9   :  { %v2300_v36 = vmul.f32 0.5, %v2299_v44  ;;  %v2278_v40 = vpop.xlane.xlu1 %2277 }
 0xcca   :  { %v2282_v51 = vmul.f32 %v2278_v40, %v10334_v39  ;;  %v2333_v54 = vmul.f32 %v9780_v53, %v2327_v29 }
 0xccb   :  { %v2301_v27 = vsub.f32 1.5, %v2300_v36 }
 0xccc   :  { %v9883_v61 = vpop.eup %9882  ;;  %v2286_v2 = vadd.f32 1e-05, %v2282_v51  ;;  %v10518_v23 = vadd.f32 %v9781_v26, %v2333_v54  ;;  %v9391_v54 = vld [vmem:[#allocation6 + $0x500] sm:$0xff] }
 0xccd   :  { %v2302_v52 = vmul.f32 %v9881_v10, %v2301_v27  ;;  %v2308_v0 = vmul.f32 %v9883_v61, %v2285_v37  ;;  %vm2314_vm2 = vweird.f32 %v9883_v61  ;;  %v9445_v37 = vld [vmem:[#allocation6 + $0x6b0] sm:$0xff]  ;;  %2674 = vmatpush.bf16.msrb.mxu1 %v9391_v54  ;;  %v9427_v54 = vld [vmem:[#allocation6 + $0x620] sm:$0xff] }
 0xcce   :  { %9884 = vrsqrt.f32 %v2286_v2  ;;  %vm2315_vm4 = vmor %vm2313_vm3, %vm2314_vm2  ;;  %vm2323_vm6 = vweird.f32 %v2286_v2 }
 0xccf   :  { %v2306_v6 = vsel %vm2305_vm1, %v9881_v10, %v2302_v52  ;;  %v2309_v8 = vmul.f32 %v9883_v61, %v2308_v0  ;;  %v9408_v10 = vld [vmem:[#allocation6 + $0x588] sm:$0xff] }
 0xcd0   :  { %v2328_v4 = vmul.f32 %v2306_v6, %v10498_v12  ;;  %2766 = vmatpush.bf16.msrb.mxu2 %v9408_v10 }
 0xcd1   :  { %v2310_v45 = vmul.f32 0.5, %v2309_v8 }
 0xcd2   :  { %v2334_v16 = vmul.f32 %v9780_v53, %v2328_v4  ;;  %v9765_v4 = vld [vmem:[#allocation7 + $0x41] ss:$0 sm:$0xff] }
 0xcd3   :  { %v2311_v32 = vsub.f32 1.5, %v2310_v45  ;;  %v9390_v45 = vld [vmem:[#allocation6 + $0x4f8] sm:$0xff] }
 0xcd4   :  { %v9885_v57 = vpop.eup %9884  ;;  %v10520_v30 = vadd.f32 %v9781_v26, %v2334_v16  ;;  %2675 = vmatpush.bf16.msrb.mxu1 %v9390_v45  ;;  %v10018_v16 = vld [vmem:[#allocation7] sm:$0xff]  ;;  %v9418_v45 = vld [vmem:[#allocation6 + $0x5d8] sm:$0xff] }
 0xcd5   :  { %v2312_v13 = vmul.f32 %v9883_v61, %v2311_v32  ;;  %v2318_v34 = vmul.f32 %v9885_v57, %v2286_v2  ;;  %vm2324_vm5 = vweird.f32 %v9885_v57  ;;  %v9440_v2 = vld [vmem:[#allocation6 + $0x688] sm:$0xff] }
 0xcd6   :  { %v10524_v38 = vpack.c.bf16 %v10520_v30, %v10518_v23  ;;  %vm2325_vm7 = vmor %vm2323_vm6, %vm2324_vm5 }
 0xcd7   :  { %v2319_v12 = vmul.f32 %v9885_v57, %v2318_v34  ;;  %v2316_v44 = vsel %vm2315_vm4, %v9883_v61, %v2312_v13  ;;  %v9444_v61 = vld [vmem:[#allocation6 + $0x6a8] sm:$0xff]  ;;  %v10020_v34 = vld [vmem:[#allocation7 + $0x10] sm:$0xff] }
 0xcd8   :  { %2419 = vmatmul.bf16.vlgmr.msra.gmra.mxu2 %v10524_v38  ;;  %2526 = vmatmul.bf16.vlgmr.msra.gmra.mxu3 %v10524_v38  ;;  %v2329_v40 = vmul.f32 %v2316_v44, %v10503_v49  ;;  %v9443_v49 = vld [vmem:[#allocation6 + $0x6a0] sm:$0xff]  ;;  %v9404_v13 = vld [vmem:[#allocation6 + $0x568] sm:$0xff] }
 0xcd9   :  { %v2320_v58 = vmul.f32 0.5, %v2319_v12  ;;  %3219 = vmatpush.bf16.msra.mxu2 %v9447_v46  ;;  %v10021_v12 = vld [vmem:[#allocation7 + $0x18] sm:$0xff] }
 0xcda   :  { %v2335_v11 = vmul.f32 %v9780_v53, %v2329_v40  ;;  %v9403_v44 = vld [vmem:[#allocation6 + $0x560] sm:$0xff]  ;;  %v9400_v40 = vld [vmem:[#allocation6 + $0x548] sm:$0xff] }
 0xcdb   :  { %v2321_v36 = vsub.f32 1.5, %v2320_v58  ;;  %v9387_v58 = vld [vmem:[#allocation6 + $0x4e0] sm:$0xff] }
 0xcdc   :  { %v10530_v0 = vadd.f32 %v9781_v26, %v2335_v11  ;;  %v9430_v11 = vld [vmem:[#allocation6 + $0x638] sm:$0xff] }
 0xcdd   :  { %v2322_v51 = vmul.f32 %v9885_v57, %v2321_v36  ;;  %3220 = vmatpush.bf16.msra.mxu2 %v9446_v28  ;;  %v9402_v28 = vld [vmem:[#allocation6 + $0x558] sm:$0xff]  ;;  %v9385_v36 = vld [vmem:[#allocation6 + $0x4d0] sm:$0xff] }
 0xcdf   :  { %v2326_v27 = vsel %vm2325_vm7, %v9885_v57, %v2322_v51  ;;  %v9384_v51 = vld [vmem:[#allocation6 + $0x4c8] sm:$0xff] }
 0xce0   :  { %v2330_v29 = vmul.f32 %v2326_v27, %v10508_v22  ;;  %v9442_v22 = vld [vmem:[#allocation6 + $0x698] sm:$0xff]  ;;  %v9431_v27 = vld [vmem:[#allocation6 + $0x640] sm:$0xff] }
 0xce1   :  { %3221 = vmatpush.bf16.msra.mxu2 %v9445_v37  ;;  %v9423_v37 = vld [vmem:[#allocation6 + $0x600] sm:$0xff] }
 0xce2   :  { %v2336_v52 = vmul.f32 %v9780_v53, %v2330_v29  ;;  %v9441_v53 = vld [vmem:[#allocation6 + $0x690] sm:$0xff]  ;;  %2848 = vmatpush.bf16.msrb.mxu3 %v9423_v37  ;;  %v9422_v29 = vld [vmem:[#allocation6 + $0x5f8] sm:$0xff]  ;;  %v9463_v37 = vld [vmem:[#allocation6 + $0x740] sm:$0xff] }
 0xce4   :  { %v10532_v6 = vadd.f32 %v9781_v26, %v2336_v52  ;;  %v9407_v26 = vld [vmem:[#allocation6 + $0x580] sm:$0xff]  ;;  %v9421_v52 = vld [vmem:[#allocation6 + $0x5f0] sm:$0xff] }
 0xce5   :  { %3222 = vmatpush.bf16.msra.mxu2 %v9444_v61  ;;  %2607 = vmatpush.bf16.msrb.mxu0 %v9407_v26  ;;  %v9429_v61 = vld [vmem:[#allocation6 + $0x630] sm:$0xff] }
 0xce6   :  { %v10536_v8 = vpack.c.bf16 %v10532_v6, %v10530_v0  ;;  %2849 = vmatpush.bf16.msrb.mxu3 %v9422_v29  ;;  %v9462_v29 = vld [vmem:[#allocation6 + $0x738] sm:$0xff] }
 0xce8   :  { %2424 = vmatmul.bf16.gmra.mxu2 %v10536_v8  ;;  %2531 = vmatmul.bf16.gmra.mxu3 %v10536_v8 }
 0xce9   :  { %3223 = vmatpush.bf16.msra.mxu2 %v9443_v49  ;;  %2608 = vmatpush.bf16.msrb.mxu0 %v9406_v7  ;;  %v9420_v49 = vld [vmem:[#allocation6 + $0x5e8] sm:$0xff]  ;;  %v9783_v7 = vld [vmem:[#allocation7 + $0x55] ss:$0 sm:$0xff] }
 0xcea   :  { %2850 = vmatpush.bf16.msrb.mxu3 %v9421_v52 }
 0xced   :  { %3224 = vmatpush.bf16.msra.mxu2 %v9442_v22  ;;  %v9428_v22 = vld [vmem:[#allocation6 + $0x628] sm:$0xff] }
 0xcee   :  { %2851 = vmatpush.bf16.msrb.mxu3 %v9420_v49 }
 0xcf1   :  { %3225 = vmatpush.bf16.msra.mxu2 %v9441_v53  ;;  %v9419_v53 = vld [vmem:[#allocation6 + $0x5e0] sm:$0xff] }
 0xcf2   :  { %2852 = vmatpush.bf16.msrb.mxu3 %v9419_v53 }
 0xcf5   :  { %3226 = vmatpush.bf16.msra.mxu2 %v9440_v2 }
 0xcf6   :  { %2853 = vmatpush.bf16.msrb.mxu3 %v9418_v45 }
 0xcf8   :  { %2767 = vmatmul.bf16.vlgmr.msrb.gmra.mxu2 %v10524_v38 }
 0xcf9   :  { %3547 = vmatpush.bf16.msrb.mxu2 %v10413_v33  ;;  %v197_v33 = vadd.f32 %v9765_v4, %v10322_v17 }
 0xcfb   :  { %v10551_v32 = vadd.f32 %v10018_v16, %v197_v33  ;;  %v9426_v33 = vld [vmem:[#allocation6 + $0x618] sm:$0xff] }
 0xcfd   :  { %3548 = vmatpush.bf16.msrb.mxu2 %v10417_v55  ;;  %v199_v55 = vadd.f32 %v9765_v4, %v10324_v18  ;;  %v202_v18 = vadd.f32 %v9765_v4, %v10326_v62  ;;  %v9386_v62 = vld [vmem:[#allocation6 + $0x4d8] sm:$0xff] }
 0xcff   :  { %v10563_v10 = vadd.f32 %v10020_v34, %v202_v18  ;;  %v9425_v18 = vld [vmem:[#allocation6 + $0x610] sm:$0xff] }
 0xd01   :  { %3549 = vmatpush.bf16.msrb.mxu2 %v10420_v50  ;;  %v9405_v50 = vld [vmem:[#allocation6 + $0x570] sm:$0xff] }
 0xd02   :  { %2609 = vmatpush.bf16.msrb.mxu0 %v9405_v50 }
 0xd05   :  { %3550 = vmatpush.bf16.msrb.mxu2 %v10424_v59  ;;  %v9389_v59 = vld [vmem:[#allocation6 + $0x4f0] sm:$0xff] }
 0xd06   :  { %2676 = vmatpush.bf16.msrb.mxu1 %v9389_v59  ;;  %2610 = vmatpush.bf16.msrb.mxu0 %v9404_v13 }
 0xd08   :  { %2772 = vmatmul.bf16.gmra.mxu2 %v10536_v8 }
 0xd09   :  { %3551 = vmatpush.bf16.msrb.mxu2 %v10427_v3  ;;  %v10019_v3 = vld [vmem:[#allocation7 + $0x8] sm:$0xff] }
 0xd0a   :  { %v10553_v57 = vadd.f32 %v10019_v3, %v199_v55  ;;  %2611 = vmatpush.bf16.msrb.mxu0 %v9403_v44  ;;  %v9417_v55 = vld [vmem:[#allocation6 + $0x5d0] sm:$0xff] }
 0xd0b   :  { %2854 = vmatpush.bf16.msrb.mxu3 %v9417_v55 }
 0xd0c   :  { %v10558_v17 = vpack.c.bf16 %v10553_v57, %v10551_v32 }
 0xd0d   :  { %3552 = vmatpush.bf16.msrb.mxu2 %v10432_v14  ;;  %v9388_v14 = vld [vmem:[#allocation6 + $0x4e8] sm:$0xff] }
 0xd0e   :  { %2677 = vmatpush.bf16.msrb.mxu1 %v9388_v14  ;;  %2612 = vmatpush.bf16.msrb.mxu0 %v9402_v28 }
 0xd11   :  { %3553 = vmatpush.bf16.msrb.mxu2 %v10436_v47  ;;  %v204_v47 = vadd.f32 %v9765_v4, %v10328_v63  ;;  %v9401_v63 = vld [vmem:[#allocation6 + $0x550] sm:$0xff]  ;;  %v9782_v4 = vld [vmem:[#allocation7 + $0x54] ss:$0 sm:$0xff] }
 0xd12   :  { %2678 = vmatpush.bf16.msrb.mxu1 %v9387_v58  ;;  %2613 = vmatpush.bf16.msrb.mxu0 %v9401_v63  ;;  %v9424_v63 = vld [vmem:[#allocation6 + $0x608] sm:$0xff] }
 0xd13   :  { %v10565_v46 = vadd.f32 %v10021_v12, %v204_v47 }
 0xd15   :  { %3554 = vmatpush.bf16.msrb.mxu2 %v10443_v48  ;;  %v10569_v48 = vpack.c.bf16 %v10565_v46, %v10563_v10 }
 0xd16   :  { %2679 = vmatpush.bf16.msrb.mxu1 %v9386_v62  ;;  %2614 = vmatpush.bf16.msrb.mxu0 %v9400_v40  ;;  %v9416_v62 = vld [vmem:[#allocation6 + $0x5c8] sm:$0xff] }
 0xd17   :  { %2855 = vmatpush.bf16.msrb.mxu3 %v9416_v62 }
 0xd18   :  { %3227 = vmatmul.bf16.vlgmr.msra.gmra.mxu2 %v10558_v17 }
 0xd1a   :  { %2680 = vmatpush.bf16.msrb.mxu1 %v9385_v36  ;;  %2937 = vmatpush.bf16.msra.mxu0 %v9431_v27  ;;  %v9455_v36 = vld [vmem:[#allocation6 + $0x700] sm:$0xff]  ;;  %v9454_v27 = vld [vmem:[#allocation6 + $0x6f8] sm:$0xff] }
 0xd1b   :  { %3306 = vmatpush.bf16.msra.mxu3 %v9455_v36  ;;  %v9448_v36 = vld [vmem:[#allocation6 + $0x6c8] sm:$0xff] }
 0xd1e   :  { %2681 = vmatpush.bf16.msrb.mxu1 %v9384_v51  ;;  %2938 = vmatpush.bf16.msra.mxu0 %v9430_v11  ;;  %v9453_v11 = vld [vmem:[#allocation6 + $0x6f0] sm:$0xff] }
 0xd1f   :  { %3307 = vmatpush.bf16.msra.mxu3 %v9454_v27 }
 0xd22   :  { %2939 = vmatpush.bf16.msra.mxu0 %v9429_v61 }
 0xd23   :  { %3308 = vmatpush.bf16.msra.mxu3 %v9453_v11 }
 0xd26   :  { %2940 = vmatpush.bf16.msra.mxu0 %v9428_v22 }
 0xd28   :  { %3232 = vmatmul.bf16.gmra.mxu2 %v10569_v48 }
 0xd2a   :  { %2941 = vmatpush.bf16.msra.mxu0 %v9427_v54 }
 0xd2e   :  { %2942 = vmatpush.bf16.msra.mxu0 %v9426_v33 }
 0xd32   :  { %2943 = vmatpush.bf16.msra.mxu0 %v9425_v18  ;;  %v9784_v18 = vld [vmem:[#allocation7 + $0x56] ss:$0 sm:$0xff] }
 0xd36   :  { %2944 = vmatpush.bf16.msra.mxu0 %v9424_v63 }
 0xd5b   :  { %v2420_v2 = vpop.f32.mrf.mxu2  ;;  %v2527_v26 = vpop.f32.mrf.mxu3 }
 0xd5c   :  { %v2421_v50 = vadd.f32 %v9782_v4, %v2420_v2  ;;  %v2528_v59 = vadd.f32 %v9783_v7, %v2527_v26  ;;  %v9461_v26 = vld [vmem:[#allocation6 + $0x730] sm:$0xff] }
 0xd5e   :  { %v2430_v47 = vmax.f32 %v2421_v50, 0.0  ;;  %v2537_v34 = vmax.f32 %v2528_v59, 0.0  ;;  %v9452_v50 = vld [vmem:[#allocation6 + $0x6e8] sm:$0xff] }
 0xd5f   :  { %v9460_v59 = vld [vmem:[#allocation6 + $0x728] sm:$0xff]  ;;  %3309 = vmatpush.bf16.msra.mxu3 %v9452_v50 }
 0xd60   :  { %v9432_v50 = vld [vmem:[#allocation6 + $0x648] sm:$0xff] }
 0xd63   :  { %v2422_v16 = vpop.f32.mrf.mxu2  ;;  %v2529_v3 = vpop.f32.mrf.mxu3 }
 0xd64   :  { %v2423_v13 = vadd.f32 %v9782_v4, %v2422_v16  ;;  %v2530_v14 = vadd.f32 %v9783_v7, %v2529_v3 }
 0xd66   :  { %v2431_v12 = vmax.f32 %v2423_v13, 0.0  ;;  %v2538_v44 = vmax.f32 %v2530_v14, 0.0  ;;  %v9451_v13 = vld [vmem:[#allocation6 + $0x6e0] sm:$0xff] }
 0xd67   :  { %3310 = vmatpush.bf16.msra.mxu3 %v9451_v13 }
 0xd68   :  { %v2450_v58 = vpack.c.bf16 %v2431_v12, %v2430_v47  ;;  %v2557_v28 = vpack.c.bf16 %v2538_v44, %v2537_v34  ;;  %v9458_v47 = vld [vmem:[#allocation6 + $0x718] sm:$0xff]  ;;  %v9449_v34 = vld [vmem:[#allocation6 + $0x6d0] sm:$0xff] }
 0xd6a   :  { %2615 = vmatmul.bf16.vlgmr.msrb.gmra.mxu0 %v2557_v28  ;;  %2682 = vmatmul.bf16.vlgmr.msrb.gmra.mxu1 %v2450_v58  ;;  %v9457_v28 = vld [vmem:[#allocation6 + $0x710] sm:$0xff] }
 0xd6b   :  { %v2425_v40 = vpop.f32.mrf.mxu2  ;;  %v2532_v51 = vpop.f32.mrf.mxu3  ;;  %3395 = vmatpush.bf16.msrb.mxu0 %v9463_v37 }
 0xd6c   :  { %v2426_v52 = vadd.f32 %v9782_v4, %v2425_v40  ;;  %v2533_v61 = vadd.f32 %v9783_v7, %v2532_v51  ;;  %v9456_v40 = vld [vmem:[#allocation6 + $0x708] sm:$0xff] }
 0xd6e   :  { %v2432_v54 = vmax.f32 %v2426_v52, 0.0  ;;  %v2539_v45 = vmax.f32 %v2533_v61, 0.0 }
 0xd6f   :  { %3396 = vmatpush.bf16.msrb.mxu0 %v9462_v29 }
 0xd73   :  { %v2427_v49 = vpop.f32.mrf.mxu2  ;;  %v2534_v22 = vpop.f32.mrf.mxu3  ;;  %3397 = vmatpush.bf16.msrb.mxu0 %v9461_v26 }
 0xd74   :  { %v2428_v53 = vadd.f32 %v9782_v4, %v2427_v49  ;;  %v2535_v2 = vadd.f32 %v9783_v7, %v2534_v22  ;;  %v9459_v4 = vld [vmem:[#allocation6 + $0x720] sm:$0xff]  ;;  %v9450_v7 = vld [vmem:[#allocation6 + $0x6d8] sm:$0xff] }
 0xd75   :  { %3311 = vmatpush.bf16.msra.mxu3 %v9450_v7  ;;  %v9438_v22 = vld [vmem:[#allocation6 + $0x678] sm:$0xff] }
 0xd76   :  { %v2433_v33 = vmax.f32 %v2428_v53, 0.0  ;;  %v2540_v55 = vmax.f32 %v2535_v2, 0.0  ;;  %v9437_v53 = vld [vmem:[#allocation6 + $0x670] sm:$0xff]  ;;  %v9436_v2 = vld [vmem:[#allocation6 + $0x668] sm:$0xff] }
 0xd77   :  { %3398 = vmatpush.bf16.msrb.mxu0 %v9460_v59 }
 0xd78   :  { %v2558_v16 = vpack.c.bf16 %v2540_v55, %v2539_v45  ;;  %v2451_v3 = vpack.c.bf16 %v2433_v33, %v2432_v54  ;;  %v9434_v33 = vld [vmem:[#allocation6 + $0x658] sm:$0xff] }
 0xd79   :  { %3312 = vmatpush.bf16.msra.mxu3 %v9449_v34 }
 0xd7a   :  { %2620 = vmatmul.bf16.gmra.mxu0 %v2558_v16  ;;  %2687 = vmatmul.bf16.gmra.mxu1 %v2451_v3 }
 0xd7b   :  { %v2768_v14 = vpop.f32.mrf.mxu2  ;;  %3399 = vmatpush.bf16.msrb.mxu0 %v9459_v4  ;;  %v9786_v4 = vld [vmem:[#allocation7 + $0x57] ss:$0 sm:$0xff] }
 0xd7c   :  { %v2769_v12 = vadd.f32 %v9784_v18, %v2768_v14 }
 0xd7d   :  { %3313 = vmatpush.bf16.msra.mxu3 %v9448_v36 }
 0xd7e   :  { %v2778_v62 = vmax.f32 %v2769_v12, 0.0 }
 0xd7f   :  { %3400 = vmatpush.bf16.msrb.mxu0 %v9458_v47 }
 0xd83   :  { %v2770_v44 = vpop.f32.mrf.mxu2  ;;  %3401 = vmatpush.bf16.msrb.mxu0 %v9457_v28 }
 0xd84   :  { %v2771_v58 = vadd.f32 %v9784_v18, %v2770_v44 }
 0xd86   :  { %v2779_v63 = vmax.f32 %v2771_v58, 0.0 }
 0xd87   :  { %3402 = vmatpush.bf16.msrb.mxu0 %v9456_v40 }
 0xd88   :  { %v2798_v51 = vpack.c.bf16 %v2779_v63, %v2778_v62 }
 0xd8a   :  { %2856 = vmatmul.bf16.vlgmr.msrb.gmra.mxu3 %v2798_v51  ;;  %2945 = vmatmul.bf16.vlgmr.msra.gmra.mxu0 %v10524_v38  ;;  %v9439_v38 = vld [vmem:[#allocation6 + $0x680] sm:$0xff] }
 0xd8b   :  { %v2773_v37 = vpop.f32.mrf.mxu2  ;;  %3026 = vmatpush.bf16.msra.mxu1 %v9439_v38 }
 0xd8c   :  { %v2774_v27 = vadd.f32 %v9784_v18, %v2773_v37 }
 0xd8e   :  { %v2780_v52 = vmax.f32 %v2774_v27, 0.0 }
 0xd8f   :  { %3027 = vmatpush.bf16.msra.mxu1 %v9438_v22 }
 0xd93   :  { %v2775_v29 = vpop.f32.mrf.mxu2  ;;  %3028 = vmatpush.bf16.msra.mxu1 %v9437_v53  ;;  %v9787_v53 = vld [vmem:[#allocation7 + $0x5f] ss:$0 sm:$0xff] }
 0xd94   :  { %v2776_v11 = vadd.f32 %v9784_v18, %v2775_v29 }
 0xd96   :  { %v2781_v61 = vmax.f32 %v2776_v11, 0.0 }
 0xd97   :  { %3029 = vmatpush.bf16.msra.mxu1 %v9436_v2 }
 0xd98   :  { %v2799_v49 = vpack.c.bf16 %v2781_v61, %v2780_v52 }
 0xd9a   :  { %2861 = vmatmul.bf16.gmra.mxu3 %v2799_v49  ;;  %2950 = vmatmul.bf16.gmra.mxu0 %v10536_v8  ;;  %v9435_v8 = vld [vmem:[#allocation6 + $0x660] sm:$0xff] }
 0xd9b   :  { %3030 = vmatpush.bf16.msra.mxu1 %v9435_v8 }
 0xd9f   :  { %3031 = vmatpush.bf16.msra.mxu1 %v9434_v33 }
 0xdaa   :  { %3314 = vmatmul.bf16.vlgmr.msra.gmra.mxu3 %v10558_v17  ;;  %3403 = vmatmul.bf16.vlgmr.msrb.gmra.mxu0 %v10558_v17 }
 0xdba   :  { %3319 = vmatmul.bf16.gmra.mxu3 %v10569_v48  ;;  %3408 = vmatmul.bf16.gmra.mxu0 %v10569_v48  ;;  %v9433_v48 = vld [vmem:[#allocation6 + $0x650] sm:$0xff] }
 0xdbb   :  { %3032 = vmatpush.bf16.msra.mxu1 %v9433_v48 }
 0xdbf   :  { %3033 = vmatpush.bf16.msra.mxu1 %v9432_v50 }
 0xde7   :  { %v2616_v26 = vpop.f32.mrf.mxu0  ;;  %v2683_v54 = vpop.f32.mrf.mxu1 }
 0xde8   :  { %v2684_v45 = vadd.f32 %v2683_v54, %v2616_v26 }
 0xdef   :  { %v10578_v17 = vpop.f32.mrf.mxu0  ;;  %v10580_v55 = vpop.f32.mrf.mxu1 }
 0xdf7   :  { %v2621_v59 = vpop.f32.mrf.mxu0  ;;  %v2688_v16 = vpop.f32.mrf.mxu1 }
 0xdf8   :  { %v2689_v3 = vadd.f32 %v2688_v16, %v2621_v59  ;;  %v9788_v59 = vld [vmem:[#allocation7 + $0x5e] ss:$0 sm:$0xff] }
 0xdff   :  { %v10582_v13 = vpop.f32.mrf.mxu0 }
 0xe07   :  { %v2946_v14 = vpop.f32.mrf.mxu0 }
 0xe08   :  { %v2947_v18 = vadd.f32 %v9786_v4, %v2946_v14 }
 0xe0a   :  { %v2956_v44 = vmax.f32 %v2947_v18, 0.0 }
 0xe0d   :  { %v2857_v7 = vpop.f32.mrf.mxu3 }
 0xe0e   :  { %v10584_v47 = vadd.f32 %v2857_v7, %v2684_v45 }
 0xe0f   :  { %v2948_v34 = vpop.f32.mrf.mxu0 }
 0xe10   :  { %v2949_v12 = vadd.f32 %v9786_v4, %v2948_v34 }
 0xe12   :  { %v2957_v58 = vmax.f32 %v2949_v12, 0.0 }
 0xe14   :  { %v2976_v28 = vpack.c.bf16 %v2957_v58, %v2956_v44 }
 0xe15   :  { %v10586_v62 = vpop.f32.mrf.mxu3 }
 0xe16   :  { %3034 = vmatmul.bf16.vlgmr.msra.gmra.mxu1 %v2976_v28 }
 0xe17   :  { %v2951_v63 = vpop.f32.mrf.mxu0 }
 0xe18   :  { %v2952_v40 = vadd.f32 %v9786_v4, %v2951_v63 }
 0xe1a   :  { %v2958_v29 = vmax.f32 %v2952_v40, 0.0 }
 0xe1d   :  { %v2862_v36 = vpop.f32.mrf.mxu3 }
 0xe1e   :  { %v10588_v51 = vadd.f32 %v2862_v36, %v2689_v3 }
 0xe1f   :  { %v2953_v37 = vpop.f32.mrf.mxu0 }
 0xe20   :  { %v2954_v27 = vadd.f32 %v9786_v4, %v2953_v37 }
 0xe22   :  { %v2959_v11 = vmax.f32 %v2954_v27, 0.0 }
 0xe24   :  { %v2977_v52 = vpack.c.bf16 %v2959_v11, %v2958_v29 }
 0xe25   :  { %v10590_v61 = vpop.f32.mrf.mxu3 }
 0xe26   :  { %3039 = vmatmul.bf16.gmra.mxu1 %v2977_v52 }
 0xe27   :  { %v3404_v49 = vpop.f32.mrf.mxu0 }
 0xe28   :  { %v3405_v45 = vadd.f32 %v9787_v53, %v3404_v49 }
 0xe2a   :  { %v3414_v48 = vpack.c.bf16 %v3405_v45, %v3405_v45 }
 0xe2c   :  { %v3462_v7 = vunpack.c.l.b16 %v3414_v48 }
 0xe2d   :  { %v3315_v38 = vpop.f32.mrf.mxu3 }
 0xe2e   :  { %v3316_v58 = vadd.f32 %v9788_v59, %v3315_v38 }
 0xe2f   :  { %v3406_v22 = vpop.f32.mrf.mxu0 }
 0xe30   :  { %v3407_v26 = vadd.f32 %v9787_v53, %v3406_v22  ;;  %v3325_v49 = vpack.c.bf16 %v3316_v58, %v3316_v58 }
 0xe32   :  { %v3415_v8 = vpack.c.bf16 %v3407_v26, %v3407_v26 }
 0xe34   :  { %v3463_v16 = vunpack.c.l.b16 %v3415_v8 }
 0xe35   :  { %v3317_v2 = vpop.f32.mrf.mxu3 }
 0xe36   :  { %v3318_v18 = vadd.f32 %v9788_v59, %v3317_v2  ;;  %v3466_v44 = vpack.c.b16 %v3463_v16, %v3462_v7 }
 0xe37   :  { %v3409_v54 = vpop.f32.mrf.mxu0 }
 0xe38   :  { %v3410_v33 = vadd.f32 %v9787_v53, %v3409_v54  ;;  %v3326_v36 = vpack.c.bf16 %v3318_v18, %v3318_v18  ;;  %v3470_v11 = vunpack.c.l.bf16 %v3466_v44  ;;  %v3471_v52 = vunpack.c.h.bf16 %v3466_v44 }
 0xe3a   :  { %v3416_v14 = vpack.c.bf16 %v3410_v33, %v3410_v33  ;;  %v3486_v33 = vmul.f32 %v10212_v24, %v3470_v11  ;;  %v3487_v48 = vmul.f32 %v10214_v25, %v3471_v52 }
 0xe3c   :  { %v3464_v28 = vunpack.c.l.b16 %v3416_v14  ;;  %v3496_v7 = vpack.c.bf16 %v3487_v48, %v3486_v33 }
 0xe3d   :  { %v3320_v50 = vpop.f32.mrf.mxu3 }
 0xe3e   :  { %v3321_v34 = vadd.f32 %v9788_v59, %v3320_v50  ;;  %v3422_v50 = vunpack.c.l.b16 %v3325_v49 }
 0xe3f   :  { %v3411_v3 = vpop.f32.mrf.mxu0 }
 0xe40   :  { %v3412_v4 = vadd.f32 %v9787_v53, %v3411_v3  ;;  %v3327_v37 = vpack.c.bf16 %v3321_v34, %v3321_v34  ;;  %v3423_v53 = vunpack.c.l.b16 %v3326_v36 }
 0xe42   :  { %v3417_v12 = vpack.c.bf16 %v3412_v4, %v3412_v4  ;;  %v3424_v45 = vunpack.c.l.b16 %v3327_v37  ;;  %v3426_v3 = vpack.c.b16 %v3423_v53, %v3422_v50  ;;  %v3483_v37 = vmul.f32 %v10251_v60, %v3471_v52 }
 0xe44   :  { %v3465_v63 = vunpack.c.l.b16 %v3417_v12  ;;  %v3430_v58 = vunpack.c.l.bf16 %v3426_v3 }
 0xe45   :  { %v3322_v40 = vpop.f32.mrf.mxu3 }
 0xe46   :  { %v3467_v27 = vpack.c.b16 %v3465_v63, %v3464_v28  ;;  %v3323_v29 = vadd.f32 %v9788_v59, %v3322_v40  ;;  %v3431_v28 = vunpack.c.h.bf16 %v3426_v3  ;;  %v3482_v40 = vmul.f32 %v10245_v56, %v3470_v11 }
 0xe48   :  { %v3472_v22 = vunpack.c.l.bf16 %v3467_v27  ;;  %v3473_v26 = vunpack.c.h.bf16 %v3467_v27  ;;  %v3328_v54 = vpack.c.bf16 %v3323_v29, %v3323_v29  ;;  %v3446_v27 = vmul.f32 %v10212_v24, %v3430_v58 }
 0xe49   :  { %v3447_v29 = vmul.f32 %v10214_v25, %v3431_v28  ;;  %v3494_v49 = vpack.c.bf16 %v3483_v37, %v3482_v40  ;;  %v3438_v37 = vmul.f32 %v10269_v9, %v3430_v58 }
 0xe4a   :  { %v3425_v2 = vunpack.c.l.b16 %v3328_v54  ;;  %v3488_v8 = vmul.f32 %v10208_v20, %v3472_v22  ;;  %v3489_v38 = vmul.f32 %v10210_v21, %v3473_v26  ;;  %v3484_v12 = vmul.f32 %v10228_v42, %v3472_v22 }
 0xe4b   :  { %v3485_v44 = vmul.f32 %v10230_v43, %v3473_v26  ;;  %v3480_v54 = vmul.f32 %v10257_v1, %v3472_v22  ;;  %v3481_v53 = vmul.f32 %v10263_v5, %v3473_v26 }
 0xe4c   :  { %v3427_v16 = vpack.c.b16 %v3425_v2, %v3424_v45  ;;  %v3497_v59 = vpack.c.bf16 %v3489_v38, %v3488_v8  ;;  %v3456_v45 = vpack.c.bf16 %v3447_v29, %v3446_v27  ;;  %v3478_v8 = vmul.f32 %v10269_v9, %v3470_v11  ;;  %v3228_v27 = vpop.f32.mrf.mxu2 }
 0xe4d   :  { %v3495_v36 = vpack.c.bf16 %v3485_v44, %v3484_v12  ;;  %v3493_v2 = vpack.c.bf16 %v3481_v53, %v3480_v54  ;;  %v3479_v38 = vmul.f32 %v10275_v15, %v3471_v52  ;;  %v3442_v12 = vmul.f32 %v10245_v56, %v3430_v58 }
 0xe4e   :  { %v3432_v14 = vunpack.c.l.bf16 %v3427_v16  ;;  %v3433_v4 = vunpack.c.h.bf16 %v3427_v16  ;;  %3576 = vmatpush.bf16.msrb.mxu3 %v3497_v59  ;;  %v3476_v16 = vmul.f32 %v10277_v19, %v3472_v22  ;;  %v3477_v59 = vmul.f32 %v10283_v31, %v3473_v26 }
 0xe4f   :  { %v3492_v50 = vpack.c.bf16 %v3479_v38, %v3478_v8  ;;  %v3443_v44 = vmul.f32 %v10251_v60, %v3431_v28  ;;  %v9785_v38 = vld [vmem:[#allocation7 + $0x5d] ss:$0 sm:$0xff] }
 0xe50   :  { %v3448_v18 = vmul.f32 %v10208_v20, %v3432_v14  ;;  %v3449_v34 = vmul.f32 %v10210_v21, %v3433_v4  ;;  %v3444_v33 = vmul.f32 %v10228_v42, %v3432_v14  ;;  %v3445_v48 = vmul.f32 %v10230_v43, %v3433_v4 }
 0xe51   :  { %v3440_v22 = vmul.f32 %v10257_v1, %v3432_v14  ;;  %v3441_v26 = vmul.f32 %v10263_v5, %v3433_v4  ;;  %v3436_v29 = vmul.f32 %v10277_v19, %v3432_v14 }
 0xe52   :  { %3577 = vmatpush.bf16.msrb.mxu3 %v3496_v7  ;;  %v3457_v63 = vpack.c.bf16 %v3449_v34, %v3448_v18  ;;  %v3455_v3 = vpack.c.bf16 %v3445_v48, %v3444_v33  ;;  %v3491_v7 = vpack.c.bf16 %v3477_v59, %v3476_v16  ;;  %v3474_v18 = vmul.f32 %v10290_v35, %v3470_v11 }
 0xe53   :  { %v3475_v34 = vmul.f32 %v10296_v41, %v3471_v52  ;;  %v3453_v40 = vpack.c.bf16 %v3441_v26, %v3440_v22  ;;  %v3439_v11 = vmul.f32 %v10275_v15, %v3431_v28  ;;  %v3229_v48 = vadd.f32 %v9785_v38, %v3228_v27 }
 0xe54   :  { %3498 = vmatpush.bf16.xpose.msrb.mxu1 %v3457_v63  ;;  %v3230_v53 = vpop.f32.mrf.mxu2  ;;  %v2686_v27 = vadd.f32 %v10580_v55, %v10578_v17 }
 0xe55   :  { %v3490_v63 = vpack.c.bf16 %v3475_v34, %v3474_v18  ;;  %v3452_v52 = vpack.c.bf16 %v3439_v11, %v3438_v37  ;;  %v3231_v33 = vadd.f32 %v9785_v38, %v3230_v53  ;;  %v9789_v37 = vld [vmem:[#allocation7 + $0x58] ss:$0 sm:$0xff]  ;;  %v10628_v11 = vld [vmem:[#allocation7 + $0x28] sm:$0xff] }
 0xe56   :  { %3578 = vmatpush.bf16.msrb.mxu3 %v3495_v36  ;;  %v3454_v36 = vpack.c.bf16 %v3443_v44, %v3442_v12  ;;  %v2868_v53 = vadd.f32 %v10586_v62, %v2686_v27  ;;  %v10641_v62 = vld [vmem:[#allocation7 + $0x38] sm:$0xff] }
 0xe57   :  { %v3238_v16 = vpack.c.bf16 %v3231_v33, %v3229_v48 }
 0xe5a   :  { %3579 = vmatpush.bf16.msrb.mxu3 %v3494_v49  ;;  %v3437_v49 = vmul.f32 %v10283_v31, %v3433_v4  ;;  %v2690_v4 = vpop.f32.mrf.mxu1 }
 0xe5c   :  { %3499 = vmatpush.bf16.xpose.msrb.mxu1 %v3456_v45  ;;  %v3451_v54 = vpack.c.bf16 %v3437_v49, %v3436_v29  ;;  %v3434_v45 = vmul.f32 %v10290_v35, %v3430_v58  ;;  %v2691_v49 = vadd.f32 %v2690_v4, %v10582_v13 }
 0xe5e   :  { %3580 = vmatpush.bf16.msrb.mxu3 %v3493_v2  ;;  %v3435_v2 = vmul.f32 %v10296_v41, %v3431_v28 }
 0xe60   :  { %v3450_v8 = vpack.c.bf16 %v3435_v2, %v3434_v45  ;;  %v2870_v2 = vadd.f32 %v10590_v61, %v2691_v49 }
 0xe62   :  { %3581 = vmatpush.bf16.msrb.mxu3 %v3492_v50  ;;  %v3233_v50 = vpop.f32.mrf.mxu2 }
 0xe63   :  { %v3234_v14 = vadd.f32 %v9785_v38, %v3233_v50 }
 0xe64   :  { %3500 = vmatpush.bf16.xpose.msrb.mxu1 %v3455_v3 }
 0xe66   :  { %3582 = vmatpush.bf16.msrb.mxu3 %v3491_v7 }
 0xe6a   :  { %3583 = vmatpush.bf16.msrb.mxu3 %v3490_v63  ;;  %v3235_v59 = vpop.f32.mrf.mxu2  ;;  %v10624_v63 = vld [vmem:[#allocation7 + $0x20] sm:$0xff] }
 0xe6b   :  { %v3236_v3 = vadd.f32 %v9785_v38, %v3235_v59 }
 0xe6c   :  { %3501 = vmatpush.bf16.xpose.msrb.mxu1 %v3454_v36 }
 0xe6d   :  { %v3239_v7 = vpack.c.bf16 %v3236_v3, %v3234_v14 }
 0xe74   :  { %3502 = vmatpush.bf16.xpose.msrb.mxu1 %v3453_v40 }
 0xe7c   :  { %3503 = vmatpush.bf16.xpose.msrb.mxu1 %v3452_v52 }
 0xe84   :  { %3504 = vmatpush.bf16.xpose.msrb.mxu1 %v3451_v54 }
 0xe8c   :  { %3505 = vmatpush.bf16.xpose.msrb.mxu1 %v3450_v8 }
 0xe93   :  { %3506 = vmatmul.bf16.vlgmr.msrb.gmra.mxu1 %v3238_v16  ;;  %v3035_v18 = vpop.f32.mrf.mxu1 }
 0xe94   :  { %v3045_v40 = vadd.f32 %v3035_v18, %v10584_v47  ;;  %v10636_v47 = vld [vmem:[#allocation7 + $0x30] sm:$0xff] }
 0xe96   :  { %v3051_v29 = vadd.f32 %v9789_v37, %v3045_v40 }
 0xe98   :  { %v3055_v33 = vadd.f32 %v3051_v29, %v10518_v23 }
 0xe9b   :  { %v3037_v34 = vpop.f32.mrf.mxu1 }
 0xe9c   :  { %v3046_v8 = vadd.f32 %v3037_v34, %v2868_v53 }
 0xe9e   :  { %v3052_v17 = vadd.f32 %v9789_v37, %v3046_v8 }
 0xea0   :  { %v3056_v59 = vadd.f32 %v3052_v17, %v10520_v30 }
 0xea3   :  { %3511 = vmatmul.bf16.gmra.mxu1 %v3239_v7  ;;  %v3040_v12 = vpop.f32.mrf.mxu1 }
 0xea4   :  { %v3047_v16 = vadd.f32 %v3040_v12, %v10588_v51 }
 0xea6   :  { %v3053_v23 = vadd.f32 %v9789_v37, %v3047_v16 }
 0xea8   :  { %v3057_v14 = vadd.f32 %v3053_v23, %v10530_v0  ;;  %v9485_v23 = vld [vmem:[#allocation6 + $0x7f0] sm:$0xff] }
 0xeab   :  { %v3042_v58 = vpop.f32.mrf.mxu1 }
 0xeac   :  { %v3048_v48 = vadd.f32 %v3042_v58, %v2870_v2 }
 0xeae   :  { %v3054_v50 = vadd.f32 %v9789_v37, %v3048_v48 }
 0xeb0   :  { %v3058_v3 = vadd.f32 %v3054_v50, %v10532_v6 }
 0xf10   :  { %v3507_v44 = vpop.f32.mrf.mxu1 }
 0xf11   :  { %v3517_v28 = vmul.f32 0.17677669, %v3507_v44 }
 0xf13   :  { %v3521_v36 = vadd.f32 %v10624_v63, %v3517_v28 }
 0xf15   :  { %3525 = vmax.xlane.f32.xlu2 %v3521_v36 }
 0xf18   :  { %v3509_v22 = vpop.f32.mrf.mxu1 }
 0xf19   :  { %v3518_v26 = vmul.f32 0.17677669, %v3509_v22 }
 0xf1b   :  { %v3522_v52 = vadd.f32 %v10628_v11, %v3518_v26 }
 0xf1d   :  { %3527 = vmax.xlane.f32.xlu0 %v3522_v52 }
 0xf20   :  { %v3512_v54 = vpop.f32.mrf.mxu1 }
 0xf21   :  { %v3519_v45 = vmul.f32 0.17677669, %v3512_v54 }
 0xf23   :  { %v3523_v38 = vadd.f32 %v10636_v47, %v3519_v45 }
 0xf25   :  { %3529 = vmax.xlane.f32.xlu1 %v3523_v38  ;;  %3059 = vadd.xlane.f32.xlu0 %v3055_v33 }
 0xf28   :  { %v3514_v55 = vpop.f32.mrf.mxu1 }
 0xf29   :  { %v3520_v13 = vmul.f32 0.17677669, %v3514_v55 }
 0xf2b   :  { %v3524_v61 = vadd.f32 %v10641_v62, %v3520_v13 }
 0xf2d   :  { %3531 = vmax.xlane.f32.xlu2 %v3524_v61  ;;  %3061 = vadd.xlane.f32.xlu1 %v3056_v59 }
 0xf2e   :  { %3065 = vadd.xlane.f32.xlu0 %v3058_v3 }
 0xf35   :  { %3063 = vadd.xlane.f32.xlu2 %v3057_v14 }
 0xf88   :  { %v3526_v7 = vpop.xlane.xlu2 %3525 }
 0xf89   :  { %v3533_v4 = vsub.f32 %v3521_v36, %v3526_v7 }
 0xf8b   :  { %v3537_v18 = vmul.f32 1.442695, %v3533_v4 }
 0xf8d   :  { %9886 = vpow2.f32 %v3537_v18 }
 0xf90   :  { %v3528_v34 = vpop.xlane.xlu0 %3527 }
 0xf91   :  { %v3534_v51 = vsub.f32 %v3522_v52, %v3528_v34  ;;  %v9484_v34 = vld [vmem:[#allocation6 + $0x7e8] sm:$0xff] }
 0xf93   :  { %v3539_v12 = vmul.f32 1.442695, %v3534_v51  ;;  %v10648_v6 = vpop.eup %9886 }
 0xf95   :  { %9888 = vpow2.f32 %v3539_v12 }
 0xf98   :  { %v3530_v58 = vpop.xlane.xlu1 %3529  ;;  %v3060_v44 = vpop.xlane.xlu0 %3059 }
 0xf99   :  { %v3067_v30 = vmul.f32 %v3060_v44, %v10334_v39  ;;  %v3535_v36 = vsub.f32 %v3523_v38, %v3530_v58  ;;  %v9483_v58 = vld [vmem:[#allocation6 + $0x7e0] sm:$0xff] }
 0xf9b   :  { %v10650_v28 = vpop.eup %9888  ;;  %v10652_v22 = vsub.f32 %v3055_v33, %v3067_v30  ;;  %v3541_v40 = vmul.f32 1.442695, %v3535_v36  ;;  %v9482_v30 = vld [vmem:[#allocation6 + $0x7d8] sm:$0xff] }
 0xf9c   :  { %v3545_v0 = vpack.c.bf16 %v10650_v28, %v10648_v6 }
 0xf9d   :  { %v3075_v26 = vmul.f32 %v10652_v22, %v10652_v22  ;;  %9890 = vpow2.f32 %v3541_v40 }
 0xf9e   :  { %3555 = vmatmul.bf16.vlgmr.msrb.gmra.mxu2 %v3545_v0 }
 0xf9f   :  { %3079 = vadd.xlane.f32.xlu1 %v3075_v26  ;;  %v9481_v26 = vld [vmem:[#allocation6 + $0x7d0] sm:$0xff] }
 0xfa0   :  { %v3532_v37 = vpop.xlane.xlu2 %3531  ;;  %v3062_v52 = vpop.xlane.xlu1 %3061 }
 0xfa1   :  { %v3536_v27 = vsub.f32 %v3524_v61, %v3532_v37  ;;  %v3068_v29 = vmul.f32 %v3062_v52, %v10334_v39  ;;  %v3066_v49 = vpop.xlane.xlu0 %3065  ;;  %v9487_v61 = vld [vmem:[#allocation6 + $0x800] sm:$0xff] }
 0xfa2   :  { %v3070_v54 = vmul.f32 %v3066_v49, %v10334_v39  ;;  %3935 = vmatpush.bf16.msra.mxu3 %v9487_v61 }
 0xfa3   :  { %v3543_v53 = vmul.f32 1.442695, %v3536_v27  ;;  %v10660_v45 = vsub.f32 %v3056_v59, %v3068_v29  ;;  %v10669_v17 = vpop.eup %9890  ;;  %v9486_v59 = vld [vmem:[#allocation6 + $0x7f8] sm:$0xff] }
 0xfa4   :  { %v10662_v2 = vsub.f32 %v3058_v3, %v3070_v54 }
 0xfa5   :  { %9892 = vpow2.f32 %v3543_v53  ;;  %v3076_v8 = vmul.f32 %v10660_v45, %v10660_v45 }
 0xfa6   :  { %v3078_v38 = vmul.f32 %v10662_v2, %v10662_v2  ;;  %3936 = vmatpush.bf16.msra.mxu3 %v9486_v59 }
 0xfa7   :  { %3081 = vadd.xlane.f32.xlu2 %v3076_v8 }
 0xfa8   :  { %3085 = vadd.xlane.f32.xlu1 %v3078_v38  ;;  %v3064_v33 = vpop.xlane.xlu2 %3063 }
 0xfa9   :  { %v3069_v48 = vmul.f32 %v3064_v33, %v10334_v39 }
 0xfaa   :  { %3937 = vmatpush.bf16.msra.mxu3 %v9485_v23 }
 0xfab   :  { %v10671_v55 = vpop.eup %9892  ;;  %v10673_v50 = vsub.f32 %v3057_v14, %v3069_v48  ;;  %v9480_v48 = vld [vmem:[#allocation6 + $0x7c8] sm:$0xff] }
 0xfac   :  { %v3546_v13 = vpack.c.bf16 %v10671_v55, %v10669_v17 }
 0xfad   :  { %v3077_v16 = vmul.f32 %v10673_v50, %v10673_v50 }
 0xfae   :  { %3560 = vmatmul.bf16.gmra.mxu2 %v3546_v13  ;;  %3938 = vmatpush.bf16.msra.mxu3 %v9484_v34 }
 0xfaf   :  { %3083 = vadd.xlane.f32.xlu0 %v3077_v16 }
 0xfb2   :  { %3939 = vmatpush.bf16.msra.mxu3 %v9483_v58 }
 0xfb6   :  { %3940 = vmatpush.bf16.msra.mxu3 %v9482_v30 }
 0xfba   :  { %3941 = vmatpush.bf16.msra.mxu3 %v9481_v26 }
 0xfbe   :  { %3942 = vmatpush.bf16.msra.mxu3 %v9480_v48 }
0x1012   :  { %v3080_v7 = vpop.xlane.xlu1 %3079 }
0x1013   :  { %v3087_v14 = vmul.f32 %v3080_v7, %v10334_v39 }
0x1015   :  { %v3091_v12 = vadd.f32 1e-05, %v3087_v14 }
0x1017   :  { %vm3101_vm12 = vweird.f32 %v3091_v12 }
0x101a   :  { %v3082_v3 = vpop.xlane.xlu2 %3081 }
0x101b   :  { %v3088_v4 = vmul.f32 %v3082_v3, %v10334_v39  ;;  %v3086_v37 = vpop.xlane.xlu1 %3085 }
0x101c   :  { %v3090_v54 = vmul.f32 %v3086_v37, %v10334_v39 }
0x101d   :  { %v3092_v51 = vadd.f32 1e-05, %v3088_v4 }
0x101e   :  { %v10685_v59 = vadd.f32 1e-05, %v3090_v54  ;;  %v9471_v54 = vld [vmem:[#allocation6 + $0x780] sm:$0xff] }
0x101f   :  { %9894 = vrsqrt.f32 %v3092_v51  ;;  %vm3111_vm10 = vweird.f32 %v3092_v51  ;;  %3663 = vmatpush.bf16.msra.mxu0 %v9471_v54 }
0x1020   :  { %vm3131_vm2 = vweird.f32 %v10685_v59 }
0x1021   :  { %v3556_v18 = vpop.f32.mrf.mxu2 }
0x1022   :  { %9896 = vrcp.f32 %v3556_v18  ;;  %v3084_v0 = vpop.xlane.xlu0 %3083 }
0x1023   :  { %9898 = vrsqrt.f32 %v3091_v12  ;;  %v3089_v27 = vmul.f32 %v3084_v0, %v10334_v39 }
0x1025   :  { %v9895_v36 = vpop.eup %9894  ;;  %v3093_v13 = vadd.f32 1e-05, %v3089_v27 }
0x1026   :  { %v3106_v49 = vmul.f32 %v9895_v36, %v3092_v51  ;;  %vm3112_vm8 = vweird.f32 %v9895_v36 }
0x1027   :  { %vm3113_vm11 = vmor %vm3111_vm10, %vm3112_vm8  ;;  %vm3121_vm0 = vweird.f32 %v3093_v13 }
0x1028   :  { %v9897_v40 = vpop.eup %9896  ;;  %v3107_v61 = vmul.f32 %v9895_v36, %v3106_v49 }
0x1029   :  { %v3558_v44 = vpop.f32.mrf.mxu2  ;;  %v9899_v52 = vpop.eup %9898  ;;  %v3570_v53 = vmul.f32 %v9897_v40, %v10648_v6 }
0x102a   :  { %9900 = vrcp.f32 %v3558_v44  ;;  %v3096_v33 = vmul.f32 %v9899_v52, %v3091_v12  ;;  %v3108_v23 = vmul.f32 0.5, %v3107_v61  ;;  %vm3102_vm9 = vweird.f32 %v9899_v52  ;;  %v9469_v61 = vld [vmem:[#allocation6 + $0x770] sm:$0xff] }
0x102b   :  { %9902 = vrsqrt.f32 %v3093_v13  ;;  %vm3103_vm13 = vmor %vm3101_vm12, %vm3102_vm9 }
0x102c   :  { %v3097_v3 = vmul.f32 %v9899_v52, %v3096_v33  ;;  %v9790_v33 = vld [vmem:[#allocation7 + $0x5b] ss:$0 sm:$0xff] }
0x102e   :  { %v3098_v7 = vmul.f32 0.5, %v3097_v3 }
0x1030   :  { %v9901_v29 = vpop.eup %9900  ;;  %v3099_v18 = vsub.f32 1.5, %v3098_v7 }
0x1031   :  { %v3571_v8 = vmul.f32 %v9901_v29, %v10650_v28  ;;  %v3561_v38 = vpop.f32.mrf.mxu2  ;;  %v3109_v28 = vsub.f32 1.5, %v3108_v23  ;;  %v9903_v4 = vpop.eup %9902 }
0x1032   :  { %9904 = vrcp.f32 %v3561_v38  ;;  %v3116_v30 = vmul.f32 %v9903_v4, %v3093_v13  ;;  %v3100_v40 = vmul.f32 %v9899_v52, %v3099_v18  ;;  %vm3122_vm14 = vweird.f32 %v9903_v4 }
0x1033   :  { %v3574_v16 = vpack.c.bf16 %v3571_v8, %v3570_v53  ;;  %9906 = vrsqrt.f32 %v10685_v59  ;;  %v3110_v44 = vmul.f32 %v9895_v36, %v3109_v28  ;;  %vm3123_vm1 = vmor %vm3121_vm0, %vm3122_vm14 }
0x1034   :  { %v3117_v49 = vmul.f32 %v9903_v4, %v3116_v30  ;;  %v3104_v53 = vsel %vm3103_vm13, %v9899_v52, %v3100_v40  ;;  %v9468_v52 = vld [vmem:[#allocation6 + $0x768] sm:$0xff]  ;;  %v9466_v30 = vld [vmem:[#allocation6 + $0x758] sm:$0xff] }
0x1035   :  { %3584 = vmatmul.bf16.vlgmr.msrb.gmra.mxu3 %v3574_v16  ;;  %v3114_v29 = vsel %vm3113_vm11, %v9895_v36, %v3110_v44  ;;  %v3135_v51 = vmul.f32 %v3104_v53, %v10652_v22  ;;  %v9791_v36 = vld [vmem:[#allocation7 + $0x5c] ss:$0 sm:$0xff]  ;;  %v9467_v22 = vld [vmem:[#allocation6 + $0x760] sm:$0xff]  ;;  %v9490_v53 = vld [vmem:[#allocation6 + $0x818] sm:$0xff] }
0x1036   :  { %v3136_v38 = vmul.f32 %v3114_v29, %v10660_v45  ;;  %v9493_v29 = vld [vmem:[#allocation6 + $0x830] sm:$0xff] }
0x1037   :  { %v3141_v3 = vmul.f32 %v9790_v33, %v3135_v51 }
0x1038   :  { %v9905_v14 = vpop.eup %9904  ;;  %v3142_v16 = vmul.f32 %v9790_v33, %v3136_v38 }
0x1039   :  { %v3563_v6 = vpop.f32.mrf.mxu2  ;;  %v9907_v34 = vpop.eup %9906  ;;  %v3572_v0 = vmul.f32 %v9905_v14, %v10669_v17  ;;  %v9470_v17 = vld [vmem:[#allocation6 + $0x778] sm:$0xff]  ;;  %v3147_v45 = vadd.f32 %v9791_v36, %v3141_v3 }
0x103a   :  { %9908 = vrcp.f32 %v3563_v6  ;;  %v3126_v37 = vmul.f32 %v9907_v34, %v10685_v59  ;;  %3664 = vmatpush.bf16.msra.mxu0 %v9470_v17  ;;  %v3148_v6 = vadd.f32 %v9791_v36, %v3142_v16  ;;  %vm3132_vm15 = vweird.f32 %v9907_v34  ;;  %v9465_v59 = vld [vmem:[#allocation6 + $0x750] sm:$0xff] }
0x103b   :  { %vm3133_vm3 = vmor %vm3131_vm2, %vm3132_vm15 }
0x103c   :  { %v3127_v8 = vmul.f32 %v9907_v34, %v3126_v37  ;;  %v10693_v14 = vpack.c.bf16 %v3148_v6, %v3147_v45 }
0x103e   :  { %v3128_v48 = vmul.f32 0.5, %v3127_v8  ;;  %3665 = vmatpush.bf16.msra.mxu0 %v9469_v61  ;;  %v9489_v8 = vld [vmem:[#allocation6 + $0x810] sm:$0xff] }
0x1040   :  { %v9909_v58 = vpop.eup %9908  ;;  %v3129_v23 = vsub.f32 1.5, %v3128_v48 }
0x1041   :  { %v3573_v26 = vmul.f32 %v9909_v58, %v10671_v55  ;;  %v3118_v55 = vmul.f32 0.5, %v3117_v49  ;;  %v9491_v49 = vld [vmem:[#allocation6 + $0x820] sm:$0xff] }
0x1042   :  { %v3130_v28 = vmul.f32 %v9907_v34, %v3129_v23  ;;  %3666 = vmatpush.bf16.msra.mxu0 %v9468_v52 }
0x1043   :  { %v3575_v27 = vpack.c.bf16 %v3573_v26, %v3572_v0  ;;  %v3119_v12 = vsub.f32 1.5, %v3118_v55  ;;  %v9488_v55 = vld [vmem:[#allocation6 + $0x808] sm:$0xff] }
0x1044   :  { %v3134_v58 = vsel %vm3133_vm3, %v9907_v34, %v3130_v28  ;;  %v9495_v34 = vld [vmem:[#allocation6 + $0x840] sm:$0xff] }
0x1045   :  { %3589 = vmatmul.bf16.gmra.mxu3 %v3575_v27  ;;  %v3120_v7 = vmul.f32 %v9903_v4, %v3119_v12  ;;  %v3138_v0 = vmul.f32 %v3134_v58, %v10662_v2  ;;  %v9492_v2 = vld [vmem:[#allocation6 + $0x828] sm:$0xff] }
0x1046   :  { %3667 = vmatpush.bf16.msra.mxu0 %v9467_v22 }
0x1047   :  { %v3124_v18 = vsel %vm3123_vm1, %v9903_v4, %v3120_v7  ;;  %v3144_v13 = vmul.f32 %v9790_v33, %v3138_v0  ;;  %v9464_v4 = vld [vmem:[#allocation6 + $0x748] sm:$0xff] }
0x1048   :  { %v3137_v44 = vmul.f32 %v3124_v18, %v10673_v50  ;;  %v9494_v50 = vld [vmem:[#allocation6 + $0x838] sm:$0xff] }
0x1049   :  { %v3150_v37 = vadd.f32 %v9791_v36, %v3144_v13 }
0x104a   :  { %v3143_v26 = vmul.f32 %v9790_v33, %v3137_v44  ;;  %3668 = vmatpush.bf16.msra.mxu0 %v9466_v30 }
0x104c   :  { %v3149_v40 = vadd.f32 %v9791_v36, %v3143_v26  ;;  %v9792_v36 = vld [vmem:[#allocation7 + $0x62] ss:$0 sm:$0xff] }
0x104e   :  { %v10699_v27 = vpack.c.bf16 %v3150_v37, %v3149_v40  ;;  %3669 = vmatpush.bf16.msra.mxu0 %v9465_v59 }
0x1052   :  { %3670 = vmatpush.bf16.msra.mxu0 %v9464_v4 }
0x1055   :  { %3943 = vmatmul.bf16.vlgmr.msra.gmra.mxu3 %v10693_v14 }
0x1056   :  { %4024 = vmatpush.bf16.msrb.mxu0 %v9495_v34 }
0x105a   :  { %4025 = vmatpush.bf16.msrb.mxu0 %v9494_v50 }
0x105e   :  { %4026 = vmatpush.bf16.msrb.mxu0 %v9493_v29 }
0x1062   :  { %4027 = vmatpush.bf16.msrb.mxu0 %v9492_v2 }
0x1065   :  { %3948 = vmatmul.bf16.gmra.mxu3 %v10699_v27 }
0x1066   :  { %4028 = vmatpush.bf16.msrb.mxu0 %v9491_v49 }
0x106a   :  { %4029 = vmatpush.bf16.msrb.mxu0 %v9490_v53 }
0x106e   :  { %4030 = vmatpush.bf16.msrb.mxu0 %v9489_v8 }
0x1072   :  { %4031 = vmatpush.bf16.msrb.mxu0 %v9488_v55 }
0x10b8   :  { %v3585_v54 = vpop.f32.mrf.mxu3 }
0x10c0   :  { %v3587_v38 = vpop.f32.mrf.mxu3 }
0x10c1   :  { %v3611_v17 = vpack.c.bf16 %v3587_v38, %v3585_v54 }
0x10c3   :  { %3671 = vmatmul.bf16.vlgmr.msra.gmra.mxu0 %v3611_v17 }
0x10c8   :  { %v3590_v33 = vpop.f32.mrf.mxu3 }
0x10d0   :  { %v3592_v51 = vpop.f32.mrf.mxu3 }
0x10d1   :  { %v3612_v48 = vpack.c.bf16 %v3592_v51, %v3590_v33 }
0x10d3   :  { %3676 = vmatmul.bf16.gmra.mxu0 %v3612_v48 }
0x10d8   :  { %v3944_v16 = vpop.f32.mrf.mxu3 }
0x10d9   :  { %v3945_v6 = vadd.f32 %v9792_v36, %v3944_v16 }
0x10db   :  { %v3954_v22 = vpack.c.bf16 %v3945_v6, %v3945_v6 }
0x10dd   :  { %v4051_v0 = vunpack.c.l.b16 %v3954_v22 }
0x10e0   :  { %v3946_v61 = vpop.f32.mrf.mxu3 }
0x10e1   :  { %v3947_v3 = vadd.f32 %v9792_v36, %v3946_v61 }
0x10e3   :  { %4032 = vmatmul.bf16.vlgmr.msrb.gmra.mxu0 %v10693_v14  ;;  %v3955_v7 = vpack.c.bf16 %v3947_v3, %v3947_v3 }
0x10e5   :  { %v4052_v58 = vunpack.c.l.b16 %v3955_v7 }
0x10e7   :  { %v4055_v13 = vpack.c.b16 %v4052_v58, %v4051_v0 }
0x10e8   :  { %v3949_v12 = vpop.f32.mrf.mxu3 }
0x10e9   :  { %v3950_v23 = vadd.f32 %v9792_v36, %v3949_v12  ;;  %v4059_v34 = vunpack.c.l.bf16 %v4055_v13  ;;  %v4060_v50 = vunpack.c.h.bf16 %v4055_v13 }
0x10eb   :  { %v3956_v45 = vpack.c.bf16 %v3950_v23, %v3950_v23  ;;  %v4075_v2 = vmul.f32 %v10212_v24, %v4059_v34  ;;  %v4076_v49 = vmul.f32 %v10214_v25, %v4060_v50  ;;  %v4071_v17 = vmul.f32 %v10245_v56, %v4059_v34 }
0x10ec   :  { %v4072_v55 = vmul.f32 %v10251_v60, %v4060_v50  ;;  %v4067_v61 = vmul.f32 %v10269_v9, %v4059_v34  ;;  %v4068_v12 = vmul.f32 %v10275_v15, %v4060_v50  ;;  %v4064_v7 = vmul.f32 %v10296_v41, %v4060_v50 }
0x10ed   :  { %v4053_v44 = vunpack.c.l.b16 %v3956_v45  ;;  %v4085_v54 = vpack.c.bf16 %v4076_v49, %v4075_v2 }
0x10ee   :  { %v4083_v33 = vpack.c.bf16 %v4072_v55, %v4071_v17 }
0x10f0   :  { %v3951_v52 = vpop.f32.mrf.mxu3 }
0x10f1   :  { %v3952_v28 = vadd.f32 %v9792_v36, %v3951_v52  ;;  %v4081_v36 = vpack.c.bf16 %v4068_v12, %v4067_v61  ;;  %v4063_v52 = vmul.f32 %v10290_v35, %v4059_v34 }
0x10f3   :  { %v3957_v18 = vpack.c.bf16 %v3952_v28, %v3952_v28  ;;  %4037 = vmatmul.bf16.gmra.mxu0 %v10699_v27  ;;  %v4079_v45 = vpack.c.bf16 %v4064_v7, %v4063_v52  ;;  %v9793_v28 = vld [vmem:[#allocation7 + $0x60] ss:$0 sm:$0xff] }
0x10f5   :  { %v4054_v30 = vunpack.c.l.b16 %v3957_v18 }
0x10f7   :  { %v4056_v26 = vpack.c.b16 %v4054_v30, %v4053_v44 }
0x10f9   :  { %v4061_v40 = vunpack.c.l.bf16 %v4056_v26  ;;  %v4062_v37 = vunpack.c.h.bf16 %v4056_v26 }
0x10fb   :  { %v4077_v59 = vmul.f32 %v10208_v20, %v4061_v40  ;;  %v4078_v4 = vmul.f32 %v10210_v21, %v4062_v37  ;;  %v4073_v53 = vmul.f32 %v10228_v42, %v4061_v40  ;;  %v4074_v8 = vmul.f32 %v10230_v43, %v4062_v37 }
0x10fc   :  { %v4069_v51 = vmul.f32 %v10257_v1, %v4061_v40  ;;  %v4070_v48 = vmul.f32 %v10263_v5, %v4062_v37  ;;  %v4065_v3 = vmul.f32 %v10277_v19, %v4061_v40  ;;  %v4066_v23 = vmul.f32 %v10283_v31, %v4062_v37 }
0x10fd   :  { %v4086_v29 = vpack.c.bf16 %v4078_v4, %v4077_v59  ;;  %v4084_v38 = vpack.c.bf16 %v4074_v8, %v4073_v53 }
0x10fe   :  { %v4082_v16 = vpack.c.bf16 %v4070_v48, %v4069_v51  ;;  %v4080_v6 = vpack.c.bf16 %v4066_v23, %v4065_v3 }
0x10ff   :  { %4127 = vmatpush.bf16.xpose.msra.mxu1 %v4086_v29 }
0x1107   :  { %4128 = vmatpush.bf16.xpose.msra.mxu1 %v4085_v54 }
0x110f   :  { %4129 = vmatpush.bf16.xpose.msra.mxu1 %v4084_v38 }
0x1117   :  { %4130 = vmatpush.bf16.xpose.msra.mxu1 %v4083_v33 }
0x111f   :  { %4131 = vmatpush.bf16.xpose.msra.mxu1 %v4082_v16 }
0x1127   :  { %4132 = vmatpush.bf16.xpose.msra.mxu1 %v4081_v36 }
0x112f   :  { %4133 = vmatpush.bf16.xpose.msra.mxu1 %v4080_v6 }
0x1137   :  { %4134 = vmatpush.bf16.xpose.msra.mxu1 %v4079_v45 }
0x1140   :  { %v3672_v22 = vpop.f32.mrf.mxu0 }
0x1141   :  { %v3673_v18 = vadd.f32 %v9793_v28, %v3672_v22 }
0x1143   :  { %v10721_v58 = vadd.f32 %v3673_v18, %v10551_v32 }
0x1145   :  { %3686 = vadd.xlane.f32.xlu2 %v10721_v58 }
0x1148   :  { %v3674_v44 = vpop.f32.mrf.mxu0 }
0x1149   :  { %v3675_v30 = vadd.f32 %v9793_v28, %v3674_v44 }
0x114b   :  { %v10725_v0 = vadd.f32 %v3675_v30, %v10553_v57  ;;  %v9794_v57 = vld [vmem:[#allocation7 + $0x63] ss:$0 sm:$0xff] }
0x114d   :  { %3688 = vadd.xlane.f32.xlu0 %v10725_v0 }
0x1150   :  { %v3677_v26 = vpop.f32.mrf.mxu0 }
0x1151   :  { %v3678_v13 = vadd.f32 %v9793_v28, %v3677_v26 }
0x1153   :  { %v10729_v40 = vadd.f32 %v3678_v13, %v10563_v10 }
0x1155   :  { %3690 = vadd.xlane.f32.xlu1 %v10729_v40 }
0x1158   :  { %v3679_v37 = vpop.f32.mrf.mxu0 }
0x1159   :  { %v3680_v59 = vadd.f32 %v9793_v28, %v3679_v37 }
0x115b   :  { %v10733_v32 = vadd.f32 %v3680_v59, %v10565_v46 }
0x115d   :  { %3692 = vadd.xlane.f32.xlu2 %v10733_v32 }
0x1160   :  { %v4033_v4 = vpop.f32.mrf.mxu0 }
0x1161   :  { %v4034_v2 = vadd.f32 %v9794_v57, %v4033_v4 }
0x1163   :  { %v4043_v53 = vpack.c.bf16 %v4034_v2, %v4034_v2 }
0x1165   :  { %v4091_v55 = vunpack.c.l.b16 %v4043_v53 }
0x1168   :  { %v4035_v34 = vpop.f32.mrf.mxu0 }
0x1169   :  { %v4036_v29 = vadd.f32 %v9794_v57, %v4035_v34 }
0x116b   :  { %v4044_v49 = vpack.c.bf16 %v4036_v29, %v4036_v29 }
0x116d   :  { %v4092_v8 = vunpack.c.l.b16 %v4044_v49 }
0x116f   :  { %v4095_v51 = vpack.c.b16 %v4092_v8, %v4091_v55 }
0x1170   :  { %v4038_v50 = vpop.f32.mrf.mxu0 }
0x1171   :  { %v4039_v54 = vadd.f32 %v9794_v57, %v4038_v50  ;;  %v4099_v61 = vunpack.c.l.bf16 %v4095_v51  ;;  %v4100_v12 = vunpack.c.h.bf16 %v4095_v51 }
0x1173   :  { %v4045_v38 = vpack.c.bf16 %v4039_v54, %v4039_v54  ;;  %v4115_v7 = vmul.f32 %v10212_v24, %v4099_v61  ;;  %v4116_v45 = vmul.f32 %v10214_v25, %v4100_v12  ;;  %v4111_v30 = vmul.f32 %v10245_v56, %v4099_v61 }
0x1174   :  { %v4112_v26 = vmul.f32 %v10251_v60, %v4100_v12  ;;  %v4107_v34 = vmul.f32 %v10269_v9, %v4099_v61  ;;  %v4103_v54 = vmul.f32 %v10290_v35, %v4099_v61  ;;  %v4104_v53 = vmul.f32 %v10296_v41, %v4100_v12 }
0x1175   :  { %v4093_v46 = vunpack.c.l.b16 %v4045_v38  ;;  %v4125_v28 = vpack.c.bf16 %v4116_v45, %v4115_v7  ;;  %v9476_v7 = vld [vmem:[#allocation6 + $0x7a8] sm:$0xff]  ;;  %v9475_v45 = vld [vmem:[#allocation6 + $0x7a0] sm:$0xff] }
0x1176   :  { %v4123_v13 = vpack.c.bf16 %v4112_v26, %v4111_v30  ;;  %v9472_v30 = vld [vmem:[#allocation6 + $0x788] sm:$0xff] }
0x1178   :  { %v4040_v10 = vpop.f32.mrf.mxu0 }
0x1179   :  { %v4041_v17 = vadd.f32 %v9794_v57, %v4040_v10  ;;  %v4108_v57 = vmul.f32 %v10275_v15, %v4100_v12  ;;  %v4119_v10 = vpack.c.bf16 %v4104_v53, %v4103_v54 }
0x117b   :  { %v4046_v33 = vpack.c.bf16 %v4041_v17, %v4041_v17  ;;  %v4121_v50 = vpack.c.bf16 %v4108_v57, %v4107_v34  ;;  %v10027_v57 = vld [vmem:[#allocation6 + $0x78] sm:$0xff] }
0x117d   :  { %v4094_v48 = vunpack.c.l.b16 %v4046_v33 }
0x117f   :  { %v4096_v16 = vpack.c.b16 %v4094_v48, %v4093_v46 }
0x1181   :  { %v4101_v36 = vunpack.c.l.bf16 %v4096_v16  ;;  %v4102_v3 = vunpack.c.h.bf16 %v4096_v16 }
0x1183   :  { %v4117_v23 = vmul.f32 %v10208_v20, %v4101_v36  ;;  %v4118_v6 = vmul.f32 %v10210_v21, %v4102_v3  ;;  %v4113_v22 = vmul.f32 %v10228_v42, %v4101_v36  ;;  %v4114_v18 = vmul.f32 %v10230_v43, %v4102_v3 }
0x1184   :  { %v4109_v37 = vmul.f32 %v10257_v1, %v4101_v36  ;;  %v4110_v59 = vmul.f32 %v10263_v5, %v4102_v3  ;;  %v4105_v29 = vmul.f32 %v10277_v19, %v4101_v36  ;;  %v4106_v2 = vmul.f32 %v10283_v31, %v4102_v3 }
0x1185   :  { %v4126_v52 = vpack.c.bf16 %v4118_v6, %v4117_v23  ;;  %v4124_v44 = vpack.c.bf16 %v4114_v18, %v4113_v22  ;;  %v9479_v6 = vld [vmem:[#allocation6 + $0x7c0] sm:$0xff]  ;;  %v9473_v18 = vld [vmem:[#allocation6 + $0x790] sm:$0xff] }
0x1186   :  { %v4122_v4 = vpack.c.bf16 %v4110_v59, %v4109_v37  ;;  %v4120_v49 = vpack.c.bf16 %v4106_v2, %v4105_v29  ;;  %3846 = vmatpush.bf16.msra.mxu2 %v9479_v6  ;;  %v9795_v6 = vld [vmem:[#allocation7 + $0x6a] ss:$0 sm:$0xff] }
0x1187   :  { %4205 = vmatpush.bf16.msrb.mxu3 %v4126_v52  ;;  %v9478_v52 = vld [vmem:[#allocation6 + $0x7b8] sm:$0xff] }
0x118a   :  { %3847 = vmatpush.bf16.msra.mxu2 %v9478_v52 }
0x118b   :  { %4206 = vmatpush.bf16.msrb.mxu3 %v4125_v28  ;;  %v9474_v28 = vld [vmem:[#allocation6 + $0x798] sm:$0xff] }
0x118f   :  { %4207 = vmatpush.bf16.msrb.mxu3 %v4124_v44 }
0x1193   :  { %4208 = vmatpush.bf16.msrb.mxu3 %v4123_v13  ;;  %v10026_v13 = vld [vmem:[#allocation6 + $0x80] sm:$0xff] }
0x1197   :  { %4209 = vmatpush.bf16.msrb.mxu3 %v4122_v4 }
0x119b   :  { %4210 = vmatpush.bf16.msrb.mxu3 %v4121_v50 }
0x119f   :  { %4211 = vmatpush.bf16.msrb.mxu3 %v4120_v49  ;;  %v10028_v49 = vld [vmem:[#allocation6 + $0x70] sm:$0xff] }
0x11a3   :  { %4212 = vmatpush.bf16.msrb.mxu3 %v4119_v10 }
0x11b8   :  { %v3687_v8 = vpop.xlane.xlu2 %3686 }
0x11b9   :  { %v3694_v38 = vmul.f32 %v3687_v8, %v10334_v39 }
0x11bb   :  { %v10754_v17 = vsub.f32 %v10721_v58, %v3694_v38 }
0x11bd   :  { %v3702_v55 = vmul.f32 %v10754_v17, %v10754_v17 }
0x11bf   :  { %3706 = vadd.xlane.f32.xlu0 %v3702_v55 }
0x11c0   :  { %v3689_v33 = vpop.xlane.xlu0 %3688 }
0x11c1   :  { %v3695_v51 = vmul.f32 %v3689_v33, %v10334_v39  ;;  %v10029_v33 = vld [vmem:[#allocation6 + $0x68] sm:$0xff] }
0x11c3   :  { %v10760_v46 = vsub.f32 %v10725_v0, %v3695_v51 }
0x11c5   :  { %v3703_v48 = vmul.f32 %v10760_v46, %v10760_v46 }
0x11c7   :  { %3708 = vadd.xlane.f32.xlu1 %v3703_v48 }
0x11c8   :  { %v3691_v16 = vpop.xlane.xlu1 %3690 }
0x11c9   :  { %v3696_v61 = vmul.f32 %v3691_v16, %v10334_v39 }
0x11cb   :  { %v10766_v58 = vsub.f32 %v10729_v40, %v3696_v61  ;;  %v9477_v40 = vld [vmem:[#allocation6 + $0x7b0] sm:$0xff] }
0x11cc   :  { %3848 = vmatpush.bf16.msra.mxu2 %v9477_v40 }
0x11cd   :  { %v3704_v12 = vmul.f32 %v10766_v58, %v10766_v58 }
0x11cf   :  { %3710 = vadd.xlane.f32.xlu2 %v3704_v12  ;;  %v10030_v12 = vld [vmem:[#allocation6 + $0x60] sm:$0xff] }
0x11d0   :  { %v3693_v36 = vpop.xlane.xlu2 %3692  ;;  %3849 = vmatpush.bf16.msra.mxu2 %v9476_v7 }
0x11d1   :  { %v3697_v3 = vmul.f32 %v3693_v36, %v10334_v39 }
0x11d3   :  { %v10772_v0 = vsub.f32 %v10733_v32, %v3697_v3 }
0x11d4   :  { %3850 = vmatpush.bf16.msra.mxu2 %v9475_v45 }
0x11d5   :  { %v3705_v23 = vmul.f32 %v10772_v0, %v10772_v0 }
0x11d7   :  { %3712 = vadd.xlane.f32.xlu0 %v3705_v23 }
0x11d8   :  { %3851 = vmatpush.bf16.msra.mxu2 %v9474_v28  ;;  %v10031_v28 = vld [vmem:[#allocation6 + $0x58] sm:$0xff] }
0x11dc   :  { %3852 = vmatpush.bf16.msra.mxu2 %v9473_v18  ;;  %v9796_v18 = vld [vmem:[#allocation7 + $0x6b] ss:$0 sm:$0xff] }
0x11e0   :  { %3853 = vmatpush.bf16.msra.mxu2 %v9472_v30 }
0x11e4   :  { %4176 = vmatpush.bf16.msrb.mxu2 %v10026_v13  ;;  %v10032_v13 = vld [vmem:[#allocation6 + $0x50] sm:$0xff] }
0x11e8   :  { %4177 = vmatpush.bf16.msrb.mxu2 %v10027_v57 }
0x11ec   :  { %4178 = vmatpush.bf16.msrb.mxu2 %v10028_v49 }
0x11f0   :  { %4179 = vmatpush.bf16.msrb.mxu2 %v10029_v33 }
0x11f4   :  { %4180 = vmatpush.bf16.msrb.mxu2 %v10030_v12 }
0x11f8   :  { %4181 = vmatpush.bf16.msrb.mxu2 %v10031_v28 }
0x11fc   :  { %4182 = vmatpush.bf16.msrb.mxu2 %v10032_v13 }
0x1232   :  { %v3707_v22 = vpop.xlane.xlu0 %3706 }
0x1233   :  { %v3714_v32 = vmul.f32 %v3707_v22, %v10334_v39 }
0x1235   :  { %v3718_v44 = vadd.f32 1e-05, %v3714_v32 }
0x1237   :  { %9910 = vrsqrt.f32 %v3718_v44  ;;  %vm3728_vm5 = vweird.f32 %v3718_v44 }
0x123a   :  { %v3709_v26 = vpop.xlane.xlu1 %3708 }
0x123b   :  { %v3715_v37 = vmul.f32 %v3709_v26, %v10334_v39 }
0x123d   :  { %v9911_v59 = vpop.eup %9910  ;;  %v3719_v4 = vadd.f32 1e-05, %v3715_v37 }
0x123e   :  { %v3723_v34 = vmul.f32 %v9911_v59, %v3718_v44  ;;  %vm3729_vm4 = vweird.f32 %v9911_v59 }
0x123f   :  { %9912 = vrsqrt.f32 %v3719_v4  ;;  %vm3730_vm6 = vmor %vm3728_vm5, %vm3729_vm4  ;;  %vm3738_vm8 = vweird.f32 %v3719_v4 }
0x1240   :  { %v3724_v50 = vmul.f32 %v9911_v59, %v3723_v34 }
0x1242   :  { %v3725_v29 = vmul.f32 0.5, %v3724_v50  ;;  %v3711_v2 = vpop.xlane.xlu2 %3710 }
0x1243   :  { %v3716_v54 = vmul.f32 %v3711_v2, %v10334_v39 }
0x1244   :  { %v3726_v53 = vsub.f32 1.5, %v3725_v29  ;;  %v10033_v29 = vld [vmem:[#allocation6 + $0x48] sm:$0xff] }
0x1245   :  { %v9913_v10 = vpop.eup %9912  ;;  %v3720_v8 = vadd.f32 1e-05, %v3716_v54  ;;  %4183 = vmatpush.bf16.msrb.mxu2 %v10033_v29 }
0x1246   :  { %v3727_v38 = vmul.f32 %v9911_v59, %v3726_v53  ;;  %v3733_v55 = vmul.f32 %v9913_v10, %v3719_v4  ;;  %vm3739_vm7 = vweird.f32 %v9913_v10 }
0x1247   :  { %9914 = vrsqrt.f32 %v3720_v8  ;;  %vm3740_vm9 = vmor %vm3738_vm8, %vm3739_vm7  ;;  %vm3748_vm11 = vweird.f32 %v3720_v8 }
0x1248   :  { %v3734_v51 = vmul.f32 %v9913_v10, %v3733_v55  ;;  %v3731_v48 = vsel %vm3730_vm6, %v9911_v59, %v3727_v38 }
0x1249   :  { %v3762_v52 = vmul.f32 %v3731_v48, %v10754_v17 }
0x124a   :  { %v3735_v16 = vmul.f32 0.5, %v3734_v51  ;;  %v3713_v61 = vpop.xlane.xlu0 %3712 }
0x124b   :  { %v3717_v36 = vmul.f32 %v3713_v61, %v10334_v39  ;;  %v3768_v44 = vmul.f32 %v9795_v6, %v3762_v52 }
0x124c   :  { %v3736_v3 = vsub.f32 1.5, %v3735_v16 }
0x124d   :  { %v9915_v23 = vpop.eup %9914  ;;  %v3721_v40 = vadd.f32 1e-05, %v3717_v36  ;;  %v10782_v34 = vadd.f32 %v9796_v18, %v3768_v44  ;;  %v9797_v36 = vld [vmem:[#allocation7 + $0x61] ss:$0 sm:$0xff] }
0x124e   :  { %v3737_v7 = vmul.f32 %v9913_v10, %v3736_v3  ;;  %v3743_v45 = vmul.f32 %v9915_v23, %v3720_v8  ;;  %vm3749_vm10 = vweird.f32 %v9915_v23 }
0x124f   :  { %9916 = vrsqrt.f32 %v3721_v40  ;;  %vm3750_vm12 = vmor %vm3748_vm11, %vm3749_vm10  ;;  %vm3758_vm14 = vweird.f32 %v3721_v40 }
0x1250   :  { %v3741_v22 = vsel %vm3740_vm9, %v9913_v10, %v3737_v7  ;;  %v3744_v32 = vmul.f32 %v9915_v23, %v3743_v45 }
0x1251   :  { %v3763_v30 = vmul.f32 %v3741_v22, %v10760_v46 }
0x1252   :  { %v3745_v26 = vmul.f32 0.5, %v3744_v32 }
0x1253   :  { %v3769_v37 = vmul.f32 %v9795_v6, %v3763_v30 }
0x1254   :  { %v3746_v59 = vsub.f32 1.5, %v3745_v26 }
0x1255   :  { %v9917_v17 = vpop.eup %9916  ;;  %v10784_v4 = vadd.f32 %v9796_v18, %v3769_v37 }
0x1256   :  { %v3747_v57 = vmul.f32 %v9915_v23, %v3746_v59  ;;  %v3753_v50 = vmul.f32 %v9917_v17, %v3721_v40  ;;  %vm3759_vm13 = vweird.f32 %v9917_v17 }
0x1257   :  { %v3794_v2 = vpack.c.bf16 %v10784_v4, %v10782_v34  ;;  %vm3760_vm15 = vmor %vm3758_vm14, %vm3759_vm13 }
0x1258   :  { %v3754_v46 = vmul.f32 %v9917_v17, %v3753_v50  ;;  %v3751_v49 = vsel %vm3750_vm12, %v9915_v23, %v3747_v57 }
0x1259   :  { %3854 = vmatmul.bf16.vlgmr.msra.gmra.mxu2 %v3794_v2  ;;  %v3764_v10 = vmul.f32 %v3751_v49, %v10766_v58 }
0x125a   :  { %v3755_v54 = vmul.f32 0.5, %v3754_v46 }
0x125b   :  { %v3770_v51 = vmul.f32 %v9795_v6, %v3764_v10 }
0x125c   :  { %v3756_v53 = vsub.f32 1.5, %v3755_v54 }
0x125d   :  { %v10790_v16 = vadd.f32 %v9796_v18, %v3770_v51 }
0x125e   :  { %v3757_v38 = vmul.f32 %v9917_v17, %v3756_v53 }
0x1260   :  { %v3761_v55 = vsel %vm3760_vm15, %v9917_v17, %v3757_v38 }
0x1261   :  { %v3765_v33 = vmul.f32 %v3761_v55, %v10772_v0 }
0x1263   :  { %v3771_v48 = vmul.f32 %v9795_v6, %v3765_v33 }
0x1265   :  { %v10792_v8 = vadd.f32 %v9796_v18, %v3771_v48 }
0x1267   :  { %v3795_v61 = vpack.c.bf16 %v10792_v8, %v10790_v16 }
0x1269   :  { %3859 = vmatmul.bf16.gmra.mxu2 %v3795_v61 }
0x12dc   :  { %v3855_v12 = vpop.f32.mrf.mxu2 }
0x12dd   :  { %v3856_v58 = vadd.f32 %v9797_v36, %v3855_v12 }
0x12e4   :  { %v3857_v3 = vpop.f32.mrf.mxu2 }
0x12e5   :  { %v3858_v23 = vadd.f32 %v9797_v36, %v3857_v3  ;;  %v9502_v3 = vld [vmem:[#allocation6 + $0x878] sm:$0xff] }
0x12e7   :  { %v3865_v52 = vpack.c.bf16 %v3858_v23, %v3856_v58  ;;  %v9501_v23 = vld [vmem:[#allocation6 + $0x870] sm:$0xff] }
0x12e9   :  { %4135 = vmatmul.bf16.vlgmr.msra.gmra.mxu1 %v3865_v52 }
0x12ec   :  { %v3860_v40 = vpop.f32.mrf.mxu2 }
0x12ed   :  { %v3861_v0 = vadd.f32 %v9797_v36, %v3860_v40  ;;  %v9500_v40 = vld [vmem:[#allocation6 + $0x868] sm:$0xff] }
0x12f4   :  { %v3862_v7 = vpop.f32.mrf.mxu2 }
0x12f5   :  { %v3863_v45 = vadd.f32 %v9797_v36, %v3862_v7  ;;  %v9503_v36 = vld [vmem:[#allocation6 + $0x880] sm:$0xff] }
0x12f6   :  { %4292 = vmatpush.bf16.msra.mxu0 %v9503_v36 }
0x12f7   :  { %v3866_v6 = vpack.c.bf16 %v3863_v45, %v3861_v0 }
0x12f9   :  { %4140 = vmatmul.bf16.gmra.mxu1 %v3866_v6 }
0x12fa   :  { %4293 = vmatpush.bf16.msra.mxu0 %v9502_v3 }
0x12fe   :  { %4294 = vmatpush.bf16.msra.mxu0 %v9501_v23 }
0x1302   :  { %4295 = vmatpush.bf16.msra.mxu0 %v9500_v40 }
0x1366   :  { %v4136_v28 = vpop.f32.mrf.mxu1 }
0x1367   :  { %v4146_v22 = vmul.f32 0.17677669, %v4136_v28 }
0x1369   :  { %v4150_v32 = vadd.f32 %v10624_v63, %v4146_v22  ;;  %v9499_v22 = vld [vmem:[#allocation6 + $0x860] sm:$0xff] }
0x136a   :  { %4296 = vmatpush.bf16.msra.mxu0 %v9499_v22  ;;  %v9527_v22 = vld [vmem:[#allocation6 + $0x940] sm:$0xff] }
0x136b   :  { %4154 = vmax.xlane.f32.xlu1 %v4150_v32  ;;  %4582 = vmatpush.bf16.msra.mxu3 %v9527_v22 }
0x136e   :  { %v4138_v18 = vpop.f32.mrf.mxu1 }
0x136f   :  { %v4147_v44 = vmul.f32 0.17677669, %v4138_v18 }
0x1371   :  { %v4151_v30 = vadd.f32 %v10628_v11, %v4147_v44 }
0x1373   :  { %4156 = vmax.xlane.f32.xlu2 %v4151_v30 }
0x1376   :  { %v4141_v26 = vpop.f32.mrf.mxu1 }
0x1377   :  { %v4148_v13 = vmul.f32 0.17677669, %v4141_v26 }
0x1379   :  { %v4152_v37 = vadd.f32 %v10636_v47, %v4148_v13 }
0x137b   :  { %4158 = vmax.xlane.f32.xlu0 %v4152_v37 }
0x137e   :  { %v4143_v59 = vpop.f32.mrf.mxu1 }
0x137f   :  { %v4149_v17 = vmul.f32 0.17677669, %v4143_v59  ;;  %v9497_v59 = vld [vmem:[#allocation6 + $0x850] sm:$0xff] }
0x1381   :  { %v4153_v57 = vadd.f32 %v10641_v62, %v4149_v17  ;;  %v9496_v17 = vld [vmem:[#allocation6 + $0x848] sm:$0xff] }
0x1383   :  { %4160 = vmax.xlane.f32.xlu1 %v4153_v57 }
0x13de   :  { %v4155_v50 = vpop.xlane.xlu1 %4154 }
0x13df   :  { %v4162_v29 = vsub.f32 %v4150_v32, %v4155_v50  ;;  %v9498_v32 = vld [vmem:[#allocation6 + $0x858] sm:$0xff] }
0x13e0   :  { %4297 = vmatpush.bf16.msra.mxu0 %v9498_v32  ;;  %v9511_v32 = vld [vmem:[#allocation6 + $0x8c0] sm:$0xff] }
0x13e1   :  { %v4166_v2 = vmul.f32 1.442695, %v4162_v29  ;;  %4475 = vmatpush.bf16.msra.mxu2 %v9511_v32 }
0x13e3   :  { %9918 = vpow2.f32 %v4166_v2 }
0x13e4   :  { %4298 = vmatpush.bf16.msra.mxu0 %v9497_v59  ;;  %v9523_v59 = vld [vmem:[#allocation6 + $0x920] sm:$0xff] }
0x13e6   :  { %v4157_v63 = vpop.xlane.xlu2 %4156 }
0x13e7   :  { %v4163_v46 = vsub.f32 %v4151_v30, %v4157_v63 }
0x13e8   :  { %4299 = vmatpush.bf16.msra.mxu0 %v9496_v17  ;;  %v9507_v17 = vld [vmem:[#allocation6 + $0x8a0] sm:$0xff] }
0x13e9   :  { %v4168_v49 = vmul.f32 1.442695, %v4163_v46  ;;  %v9919_v54 = vpop.eup %9918 }
0x13eb   :  { %9920 = vpow2.f32 %v4168_v49  ;;  %v9798_v49 = vld [vmem:[#allocation7 + $0x64] ss:$0 sm:$0xff] }
0x13ee   :  { %v4159_v11 = vpop.xlane.xlu0 %4158 }
0x13ef   :  { %v4164_v38 = vsub.f32 %v4152_v37, %v4159_v11 }
0x13f1   :  { %v9921_v53 = vpop.eup %9920  ;;  %v4170_v47 = vmul.f32 1.442695, %v4164_v38 }
0x13f2   :  { %v4174_v10 = vpack.c.bf16 %v9921_v53, %v9919_v54 }
0x13f3   :  { %9922 = vpow2.f32 %v4170_v47 }
0x13f4   :  { %4184 = vmatmul.bf16.vlgmr.msrb.gmra.mxu2 %v4174_v10 }
0x13f6   :  { %v4161_v55 = vpop.xlane.xlu1 %4160 }
0x13f7   :  { %v4165_v33 = vsub.f32 %v4153_v57, %v4161_v55 }
0x13f9   :  { %v4172_v51 = vmul.f32 1.442695, %v4165_v33  ;;  %v9923_v62 = vpop.eup %9922 }
0x13fb   :  { %9924 = vpow2.f32 %v4172_v51 }
0x1401   :  { %v9925_v48 = vpop.eup %9924 }
0x1402   :  { %v4175_v61 = vpack.c.bf16 %v9925_v48, %v9923_v62 }
0x1404   :  { %4189 = vmatmul.bf16.gmra.mxu2 %v4175_v61 }
0x1477   :  { %v4185_v12 = vpop.f32.mrf.mxu2 }
0x1478   :  { %9926 = vrcp.f32 %v4185_v12 }
0x147e   :  { %v9927_v52 = vpop.eup %9926 }
0x147f   :  { %v4187_v58 = vpop.f32.mrf.mxu2  ;;  %v4199_v0 = vmul.f32 %v9927_v52, %v9919_v54 }
0x1480   :  { %9928 = vrcp.f32 %v4187_v58 }
0x1486   :  { %v9929_v7 = vpop.eup %9928 }
0x1487   :  { %v4200_v45 = vmul.f32 %v9929_v7, %v9921_v53  ;;  %v4190_v6 = vpop.f32.mrf.mxu2 }
0x1488   :  { %9930 = vrcp.f32 %v4190_v6 }
0x1489   :  { %v4203_v28 = vpack.c.bf16 %v4200_v45, %v4199_v0 }
0x148b   :  { %4213 = vmatmul.bf16.vlgmr.msrb.gmra.mxu3 %v4203_v28 }
0x148e   :  { %v9931_v44 = vpop.eup %9930 }
0x148f   :  { %v4192_v18 = vpop.f32.mrf.mxu2  ;;  %v4201_v26 = vmul.f32 %v9931_v44, %v9923_v62  ;;  %v9510_v44 = vld [vmem:[#allocation6 + $0x8b8] sm:$0xff] }
0x1490   :  { %9932 = vrcp.f32 %v4192_v18  ;;  %v9526_v18 = vld [vmem:[#allocation6 + $0x938] sm:$0xff]  ;;  %4476 = vmatpush.bf16.msra.mxu2 %v9510_v44 }
0x1491   :  { %4583 = vmatpush.bf16.msra.mxu3 %v9526_v18 }
0x1496   :  { %v9933_v30 = vpop.eup %9932 }
0x1497   :  { %v4202_v13 = vmul.f32 %v9933_v30, %v9925_v48  ;;  %v9525_v30 = vld [vmem:[#allocation6 + $0x930] sm:$0xff] }
0x1498   :  { %4584 = vmatpush.bf16.msra.mxu3 %v9525_v30  ;;  %v9799_v30 = vld [vmem:[#allocation7 + $0x6c] ss:$0 sm:$0xff] }
0x1499   :  { %v4204_v37 = vpack.c.bf16 %v4202_v13, %v4201_v26  ;;  %v9509_v26 = vld [vmem:[#allocation6 + $0x8b0] sm:$0xff]  ;;  %v9524_v13 = vld [vmem:[#allocation6 + $0x928] sm:$0xff] }
0x149a   :  { %4477 = vmatpush.bf16.msra.mxu2 %v9509_v26 }
0x149b   :  { %4218 = vmatmul.bf16.gmra.mxu3 %v4204_v37  ;;  %v9508_v37 = vld [vmem:[#allocation6 + $0x8a8] sm:$0xff] }
0x149c   :  { %4585 = vmatpush.bf16.msra.mxu3 %v9524_v13 }
0x149e   :  { %4478 = vmatpush.bf16.msra.mxu2 %v9508_v37  ;;  %v9538_v37 = vld [vmem:[#allocation6 + $0x998] sm:$0xff] }
0x14a0   :  { %4586 = vmatpush.bf16.msra.mxu3 %v9523_v59 }
0x14a2   :  { %4479 = vmatpush.bf16.msra.mxu2 %v9507_v17 }
0x150e   :  { %v4214_v57 = vpop.f32.mrf.mxu3 }
0x1516   :  { %v4216_v50 = vpop.f32.mrf.mxu3 }
0x1517   :  { %v4240_v29 = vpack.c.bf16 %v4216_v50, %v4214_v57  ;;  %v9522_v57 = vld [vmem:[#allocation6 + $0x918] sm:$0xff] }
0x1518   :  { %v9506_v50 = vld [vmem:[#allocation6 + $0x898] sm:$0xff]  ;;  %4587 = vmatpush.bf16.msra.mxu3 %v9522_v57 }
0x1519   :  { %4300 = vmatmul.bf16.vlgmr.msra.gmra.mxu0 %v4240_v29  ;;  %4480 = vmatpush.bf16.msra.mxu2 %v9506_v50 }
0x151e   :  { %v4219_v2 = vpop.f32.mrf.mxu3 }
0x1526   :  { %v4221_v63 = vpop.f32.mrf.mxu3 }
0x1527   :  { %v4241_v46 = vpack.c.bf16 %v4221_v63, %v4219_v2  ;;  %v9521_v63 = vld [vmem:[#allocation6 + $0x910] sm:$0xff] }
0x1528   :  { %4588 = vmatpush.bf16.msra.mxu3 %v9521_v63 }
0x1529   :  { %4305 = vmatmul.bf16.gmra.mxu0 %v4241_v46  ;;  %v9505_v46 = vld [vmem:[#allocation6 + $0x890] sm:$0xff] }
0x152a   :  { %4481 = vmatpush.bf16.msra.mxu2 %v9505_v46  ;;  %v9537_v46 = vld [vmem:[#allocation6 + $0x990] sm:$0xff] }
0x1596   :  { %v4301_v11 = vpop.f32.mrf.mxu0 }
0x1597   :  { %v4302_v54 = vadd.f32 %v9798_v49, %v4301_v11  ;;  %v9520_v11 = vld [vmem:[#allocation6 + $0x908] sm:$0xff] }
0x1598   :  { %4589 = vmatpush.bf16.msra.mxu3 %v9520_v11 }
0x1599   :  { %v4311_v53 = vadd.f32 %v4302_v54, %v10782_v34  ;;  %v9504_v54 = vld [vmem:[#allocation6 + $0x888] sm:$0xff] }
0x159a   :  { %4482 = vmatpush.bf16.msra.mxu2 %v9504_v54 }
0x159b   :  { %4315 = vadd.xlane.f32.xlu2 %v4311_v53 }
0x159e   :  { %v4303_v10 = vpop.f32.mrf.mxu0 }
0x159f   :  { %v4304_v38 = vadd.f32 %v9798_v49, %v4303_v10 }
0x15a1   :  { %v4312_v47 = vadd.f32 %v4304_v38, %v10784_v4  ;;  %v9543_v38 = vld [vmem:[#allocation6 + $0x9c0] sm:$0xff] }
0x15a2   :  { %4823 = vmatpush.bf16.msrb.mxu2 %v9543_v38 }
0x15a3   :  { %4317 = vadd.xlane.f32.xlu0 %v4312_v47 }
0x15a6   :  { %v4306_v55 = vpop.f32.mrf.mxu0 }
0x15a7   :  { %v4307_v33 = vadd.f32 %v9798_v49, %v4306_v55 }
0x15a9   :  { %v4313_v51 = vadd.f32 %v4307_v33, %v10790_v16 }
0x15ab   :  { %4319 = vadd.xlane.f32.xlu1 %v4313_v51 }
0x15ae   :  { %v4308_v62 = vpop.f32.mrf.mxu0 }
0x15af   :  { %v4309_v48 = vadd.f32 %v9798_v49, %v4308_v62 }
0x15b1   :  { %v4314_v61 = vadd.f32 %v4309_v48, %v10792_v8  ;;  %v9541_v48 = vld [vmem:[#allocation6 + $0x9b0] sm:$0xff] }
0x15b3   :  { %4321 = vadd.xlane.f32.xlu2 %v4314_v61 }
0x160e   :  { %v4316_v12 = vpop.xlane.xlu2 %4315 }
0x160f   :  { %v4323_v36 = vmul.f32 %v4316_v12, %v10334_v39 }
0x1611   :  { %v10805_v34 = vsub.f32 %v4311_v53, %v4323_v36 }
0x1613   :  { %v4331_v3 = vmul.f32 %v10805_v34, %v10805_v34 }
0x1615   :  { %4335 = vadd.xlane.f32.xlu0 %v4331_v3 }
0x1616   :  { %v4318_v4 = vpop.xlane.xlu0 %4317 }
0x1617   :  { %v4324_v58 = vmul.f32 %v4318_v4, %v10334_v39 }
0x1619   :  { %v10810_v23 = vsub.f32 %v4312_v47, %v4324_v58 }
0x161b   :  { %v4332_v16 = vmul.f32 %v10810_v23, %v10810_v23 }
0x161d   :  { %4337 = vadd.xlane.f32.xlu1 %v4332_v16  ;;  %v9540_v16 = vld [vmem:[#allocation6 + $0x9a8] sm:$0xff] }
0x161e   :  { %v4320_v8 = vpop.xlane.xlu1 %4319 }
0x161f   :  { %v4325_v52 = vmul.f32 %v4320_v8, %v10334_v39 }
0x1621   :  { %v10815_v40 = vsub.f32 %v4313_v51, %v4325_v52  ;;  %v9542_v51 = vld [vmem:[#allocation6 + $0x9b8] sm:$0xff] }
0x1622   :  { %4824 = vmatpush.bf16.msrb.mxu2 %v9542_v51 }
0x1623   :  { %v4333_v7 = vmul.f32 %v10815_v40, %v10815_v40 }
0x1625   :  { %4339 = vadd.xlane.f32.xlu2 %v4333_v7 }
0x1626   :  { %v4322_v0 = vpop.xlane.xlu2 %4321  ;;  %4825 = vmatpush.bf16.msrb.mxu2 %v9541_v48 }
0x1627   :  { %v4326_v45 = vmul.f32 %v4322_v0, %v10334_v39  ;;  %v9539_v0 = vld [vmem:[#allocation6 + $0x9a0] sm:$0xff] }
0x1629   :  { %v10820_v6 = vsub.f32 %v4314_v61, %v4326_v45 }
0x162a   :  { %4826 = vmatpush.bf16.msrb.mxu2 %v9540_v16 }
0x162b   :  { %v4334_v28 = vmul.f32 %v10820_v6, %v10820_v6 }
0x162d   :  { %4341 = vadd.xlane.f32.xlu0 %v4334_v28 }
0x162e   :  { %4827 = vmatpush.bf16.msrb.mxu2 %v9539_v0  ;;  %v9534_v0 = vld [vmem:[#allocation6 + $0x978] sm:$0xff] }
0x1632   :  { %4828 = vmatpush.bf16.msrb.mxu2 %v9538_v37  ;;  %v9513_v37 = vld [vmem:[#allocation6 + $0x8d0] sm:$0xff] }
0x1636   :  { %4829 = vmatpush.bf16.msrb.mxu2 %v9537_v46  ;;  %v9549_v46 = vld [vmem:[#allocation6 + $0x9f0] sm:$0xff] }
0x1688   :  { %v4336_v29 = vpop.xlane.xlu0 %4335 }
0x1689   :  { %v4343_v2 = vmul.f32 %v4336_v29, %v10334_v39  ;;  %v9800_v29 = vld [vmem:[#allocation7 + $0x6d] ss:$0 sm:$0xff] }
0x168b   :  { %v4347_v49 = vadd.f32 1e-05, %v4343_v2 }
0x168d   :  { %9934 = vrsqrt.f32 %v4347_v49  ;;  %vm4357_vm1 = vweird.f32 %v4347_v49 }
0x1690   :  { %v4338_v53 = vpop.xlane.xlu1 %4337 }
0x1691   :  { %v4344_v10 = vmul.f32 %v4338_v53, %v10334_v39 }
0x1693   :  { %v9935_v47 = vpop.eup %9934  ;;  %v4348_v55 = vadd.f32 1e-05, %v4344_v10 }
0x1694   :  { %v4352_v33 = vmul.f32 %v9935_v47, %v4347_v49  ;;  %vm4358_vm0 = vweird.f32 %v9935_v47 }
0x1695   :  { %9936 = vrsqrt.f32 %v4348_v55  ;;  %vm4359_vm2 = vmor %vm4357_vm1, %vm4358_vm0  ;;  %vm4367_vm4 = vweird.f32 %v4348_v55 }
0x1696   :  { %v4353_v62 = vmul.f32 %v9935_v47, %v4352_v33 }
0x1698   :  { %v4354_v61 = vmul.f32 0.5, %v4353_v62  ;;  %v4340_v12 = vpop.xlane.xlu2 %4339 }
0x1699   :  { %v4345_v36 = vmul.f32 %v4340_v12, %v10334_v39 }
0x169a   :  { %v4355_v3 = vsub.f32 1.5, %v4354_v61 }
0x169b   :  { %v9937_v4 = vpop.eup %9936  ;;  %v4349_v58 = vadd.f32 1e-05, %v4345_v36 }
0x169c   :  { %v4356_v8 = vmul.f32 %v9935_v47, %v4355_v3  ;;  %v4362_v52 = vmul.f32 %v9937_v4, %v4348_v55  ;;  %vm4368_vm3 = vweird.f32 %v9937_v4  ;;  %v9536_v55 = vld [vmem:[#allocation6 + $0x988] sm:$0xff] }
0x169d   :  { %9938 = vrsqrt.f32 %v4349_v58  ;;  %vm4369_vm5 = vmor %vm4367_vm4, %vm4368_vm3  ;;  %vm4377_vm7 = vweird.f32 %v4349_v58  ;;  %4830 = vmatpush.bf16.msrb.mxu2 %v9536_v55  ;;  %v9801_v55 = vld [vmem:[#allocation7 + $0x65] ss:$0 sm:$0xff] }
0x169e   :  { %v4363_v7 = vmul.f32 %v9937_v4, %v4362_v52  ;;  %v4360_v45 = vsel %vm4359_vm2, %v9935_v47, %v4356_v8 }
0x169f   :  { %v4391_v26 = vmul.f32 %v4360_v45, %v10805_v34  ;;  %v9533_v45 = vld [vmem:[#allocation6 + $0x970] sm:$0xff] }
0x16a0   :  { %v4364_v28 = vmul.f32 0.5, %v4363_v7  ;;  %v4342_v22 = vpop.xlane.xlu0 %4341  ;;  %v9519_v7 = vld [vmem:[#allocation6 + $0x900] sm:$0xff] }
0x16a1   :  { %v4346_v32 = vmul.f32 %v4342_v22, %v10334_v39  ;;  %v4397_v2 = vmul.f32 %v9799_v30, %v4391_v26  ;;  %4738 = vmatpush.bf16.msrb.mxu1 %v9519_v7  ;;  %v9532_v22 = vld [vmem:[#allocation6 + $0x968] sm:$0xff]  ;;  %v9514_v26 = vld [vmem:[#allocation6 + $0x8d8] sm:$0xff] }
0x16a2   :  { %v4365_v18 = vsub.f32 1.5, %v4364_v28  ;;  %v9517_v28 = vld [vmem:[#allocation6 + $0x8f0] sm:$0xff] }
0x16a3   :  { %v9939_v44 = vpop.eup %9938  ;;  %v4350_v13 = vadd.f32 1e-05, %v4346_v32  ;;  %v10830_v53 = vadd.f32 %v9800_v29, %v4397_v2  ;;  %v9516_v32 = vld [vmem:[#allocation6 + $0x8e8] sm:$0xff]  ;;  %v9550_v2 = vld [vmem:[#allocation6 + $0x9f8] sm:$0xff] }
0x16a4   :  { %v4366_v59 = vmul.f32 %v9937_v4, %v4365_v18  ;;  %v4372_v17 = vmul.f32 %v9939_v44, %v4349_v58  ;;  %vm4378_vm6 = vweird.f32 %v9939_v44  ;;  %v9531_v18 = vld [vmem:[#allocation6 + $0x960] sm:$0xff] }
0x16a5   :  { %9940 = vrsqrt.f32 %v4350_v13  ;;  %vm4379_vm8 = vmor %vm4377_vm7, %vm4378_vm6  ;;  %vm4387_vm10 = vweird.f32 %v4350_v13 }
0x16a6   :  { %v4370_v57 = vsel %vm4369_vm5, %v9937_v4, %v4366_v59  ;;  %v4373_v50 = vmul.f32 %v9939_v44, %v4372_v17  ;;  %v9528_v59 = vld [vmem:[#allocation6 + $0x948] sm:$0xff] }
0x16a7   :  { %v4392_v63 = vmul.f32 %v4370_v57, %v10810_v23  ;;  %v9512_v17 = vld [vmem:[#allocation6 + $0x8c8] sm:$0xff]  ;;  %v9559_v57 = vld [vmem:[#allocation6 + $0xa40] sm:$0xff] }
0x16a8   :  { %v4374_v49 = vmul.f32 0.5, %v4373_v50  ;;  %v9551_v50 = vld [vmem:[#allocation6 + $0xa00] sm:$0xff] }
0x16a9   :  { %v4398_v11 = vmul.f32 %v9799_v30, %v4392_v63  ;;  %4912 = vmatpush.bf16.msrb.mxu3 %v9551_v50  ;;  %v9557_v63 = vld [vmem:[#allocation6 + $0xa30] sm:$0xff] }
0x16aa   :  { %v4375_v54 = vsub.f32 1.5, %v4374_v49  ;;  %v9556_v49 = vld [vmem:[#allocation6 + $0xa28] sm:$0xff] }
0x16ab   :  { %v9941_v34 = vpop.eup %9940  ;;  %v10832_v10 = vadd.f32 %v9800_v29, %v4398_v11  ;;  %v9548_v11 = vld [vmem:[#allocation6 + $0x9e8] sm:$0xff] }
0x16ac   :  { %v4376_v38 = vmul.f32 %v9939_v44, %v4375_v54  ;;  %v4382_v47 = vmul.f32 %v9941_v34, %v4350_v13  ;;  %vm4388_vm9 = vweird.f32 %v9941_v34  ;;  %v9529_v13 = vld [vmem:[#allocation6 + $0x950] sm:$0xff]  ;;  %v9555_v54 = vld [vmem:[#allocation6 + $0xa20] sm:$0xff] }
0x16ad   :  { %v10836_v33 = vpack.c.bf16 %v10832_v10, %v10830_v53  ;;  %vm4389_vm11 = vmor %vm4387_vm10, %vm4388_vm9  ;;  %4913 = vmatpush.bf16.msrb.mxu3 %v9550_v2 }
0x16ae   :  { %v4383_v23 = vmul.f32 %v9941_v34, %v4382_v47  ;;  %v4380_v51 = vsel %vm4379_vm8, %v9939_v44, %v4376_v38  ;;  %v9515_v44 = vld [vmem:[#allocation6 + $0x8e0] sm:$0xff] }
0x16af   :  { %4483 = vmatmul.bf16.vlgmr.msra.gmra.mxu2 %v10836_v33  ;;  %4590 = vmatmul.bf16.vlgmr.msra.gmra.mxu3 %v10836_v33  ;;  %v4393_v61 = vmul.f32 %v4380_v51, %v10815_v40  ;;  %v9535_v40 = vld [vmem:[#allocation6 + $0x980] sm:$0xff]  ;;  %v9554_v51 = vld [vmem:[#allocation6 + $0xa18] sm:$0xff] }
0x16b0   :  { %v4384_v62 = vmul.f32 0.5, %v4383_v23  ;;  %4671 = vmatpush.bf16.msrb.mxu0 %v9535_v40  ;;  %v9547_v47 = vld [vmem:[#allocation6 + $0x9e0] sm:$0xff]  ;;  %v9802_v23 = vld [vmem:[#allocation7 + $0x66] ss:$0 sm:$0xff] }
0x16b1   :  { %v4399_v4 = vmul.f32 %v9799_v30, %v4393_v61  ;;  %4914 = vmatpush.bf16.msrb.mxu3 %v9549_v46  ;;  %v9545_v40 = vld [vmem:[#allocation6 + $0x9d0] sm:$0xff] }
0x16b2   :  { %v4385_v48 = vsub.f32 1.5, %v4384_v62  ;;  %v9546_v62 = vld [vmem:[#allocation6 + $0x9d8] sm:$0xff] }
0x16b3   :  { %v10842_v16 = vadd.f32 %v9800_v29, %v4399_v4 }
0x16b4   :  { %v4386_v12 = vmul.f32 %v9941_v34, %v4385_v48  ;;  %4672 = vmatpush.bf16.msrb.mxu0 %v9534_v0  ;;  %v9553_v48 = vld [vmem:[#allocation6 + $0xa10] sm:$0xff] }
0x16b5   :  { %4915 = vmatpush.bf16.msrb.mxu3 %v9548_v11 }
0x16b6   :  { %v4390_v36 = vsel %vm4389_vm11, %v9941_v34, %v4386_v12 }
0x16b7   :  { %v4394_v3 = vmul.f32 %v4390_v36, %v10820_v6  ;;  %v9518_v6 = vld [vmem:[#allocation6 + $0x8f8] sm:$0xff] }
0x16b8   :  { %4739 = vmatpush.bf16.msrb.mxu1 %v9518_v6  ;;  %4673 = vmatpush.bf16.msrb.mxu0 %v9533_v45 }
0x16b9   :  { %v4400_v58 = vmul.f32 %v9799_v30, %v4394_v3  ;;  %v9530_v30 = vld [vmem:[#allocation6 + $0x958] sm:$0xff]  ;;  %4916 = vmatpush.bf16.msrb.mxu3 %v9547_v47 }
0x16bb   :  { %v10844_v8 = vadd.f32 %v9800_v29, %v4400_v58  ;;  %v9558_v29 = vld [vmem:[#allocation6 + $0xa38] sm:$0xff] }
0x16bc   :  { %4740 = vmatpush.bf16.msrb.mxu1 %v9517_v28  ;;  %4674 = vmatpush.bf16.msrb.mxu0 %v9532_v22 }
0x16bd   :  { %v10848_v52 = vpack.c.bf16 %v10844_v8, %v10842_v16  ;;  %4917 = vmatpush.bf16.msrb.mxu3 %v9546_v62 }
0x16bf   :  { %4488 = vmatmul.bf16.gmra.mxu2 %v10848_v52  ;;  %4595 = vmatmul.bf16.gmra.mxu3 %v10848_v52 }
0x16c0   :  { %4741 = vmatpush.bf16.msrb.mxu1 %v9516_v32  ;;  %4675 = vmatpush.bf16.msrb.mxu0 %v9531_v18  ;;  %v9552_v32 = vld [vmem:[#allocation6 + $0xa08] sm:$0xff] }
0x16c1   :  { %4918 = vmatpush.bf16.msrb.mxu3 %v9545_v40  ;;  %v9544_v18 = vld [vmem:[#allocation6 + $0x9c8] sm:$0xff]  ;;  %v9566_v40 = vld [vmem:[#allocation6 + $0xa78] sm:$0xff] }
0x16c4   :  { %4742 = vmatpush.bf16.msrb.mxu1 %v9515_v44  ;;  %4676 = vmatpush.bf16.msrb.mxu0 %v9530_v30 }
0x16c5   :  { %4919 = vmatpush.bf16.msrb.mxu3 %v9544_v18 }
0x16c8   :  { %4743 = vmatpush.bf16.msrb.mxu1 %v9514_v26  ;;  %4677 = vmatpush.bf16.msrb.mxu0 %v9529_v13 }
0x16cc   :  { %4744 = vmatpush.bf16.msrb.mxu1 %v9513_v37  ;;  %4678 = vmatpush.bf16.msrb.mxu0 %v9528_v59 }
0x16cf   :  { %4831 = vmatmul.bf16.vlgmr.msrb.gmra.mxu2 %v10836_v33 }
0x16d0   :  { %4745 = vmatpush.bf16.msrb.mxu1 %v9512_v17  ;;  %5001 = vmatpush.bf16.msra.mxu0 %v9559_v57 }
0x16d4   :  { %5002 = vmatpush.bf16.msra.mxu0 %v9558_v29 }
0x16d8   :  { %5003 = vmatpush.bf16.msra.mxu0 %v9557_v63 }
0x16dc   :  { %5004 = vmatpush.bf16.msra.mxu0 %v9556_v49 }
0x16df   :  { %4836 = vmatmul.bf16.gmra.mxu2 %v10848_v52 }
0x16e0   :  { %5005 = vmatpush.bf16.msra.mxu0 %v9555_v54  ;;  %v9803_v54 = vld [vmem:[#allocation7 + $0x67] ss:$0 sm:$0xff] }
0x16e4   :  { %5006 = vmatpush.bf16.msra.mxu0 %v9554_v51 }
0x16e8   :  { %5007 = vmatpush.bf16.msra.mxu0 %v9553_v48 }
0x16ec   :  { %5008 = vmatpush.bf16.msra.mxu0 %v9552_v32  ;;  %v9560_v32 = vld [vmem:[#allocation6 + $0xa48] sm:$0xff] }
0x1732   :  { %v4484_v34 = vpop.f32.mrf.mxu2  ;;  %v4591_v38 = vpop.f32.mrf.mxu3 }
0x1733   :  { %v4485_v61 = vadd.f32 %v9801_v55, %v4484_v34  ;;  %v4592_v12 = vadd.f32 %v9802_v23, %v4591_v38 }
0x1735   :  { %v4494_v7 = vmax.f32 %v4485_v61, 0.0  ;;  %v4601_v0 = vmax.f32 %v4592_v12, 0.0 }
0x173a   :  { %v4486_v36 = vpop.f32.mrf.mxu2  ;;  %v4593_v3 = vpop.f32.mrf.mxu3 }
0x173b   :  { %v4487_v4 = vadd.f32 %v9801_v55, %v4486_v36  ;;  %v4594_v58 = vadd.f32 %v9802_v23, %v4593_v3 }
0x173d   :  { %v4495_v6 = vmax.f32 %v4487_v4, 0.0  ;;  %v4602_v45 = vmax.f32 %v4594_v58, 0.0  ;;  %v9567_v58 = vld [vmem:[#allocation6 + $0xa80] sm:$0xff] }
0x173e   :  { %5090 = vmatpush.bf16.msra.mxu1 %v9567_v58 }
0x173f   :  { %v4514_v28 = vpack.c.bf16 %v4495_v6, %v4494_v7  ;;  %v4621_v22 = vpack.c.bf16 %v4602_v45, %v4601_v0  ;;  %v9565_v7 = vld [vmem:[#allocation6 + $0xa70] sm:$0xff]  ;;  %v9564_v0 = vld [vmem:[#allocation6 + $0xa68] sm:$0xff]  ;;  %v9563_v6 = vld [vmem:[#allocation6 + $0xa60] sm:$0xff] }
0x1740   :  { %v9562_v45 = vld [vmem:[#allocation6 + $0xa58] sm:$0xff] }
0x1741   :  { %4679 = vmatmul.bf16.vlgmr.msrb.gmra.mxu0 %v4621_v22  ;;  %4746 = vmatmul.bf16.vlgmr.msrb.gmra.mxu1 %v4514_v28  ;;  %v9561_v28 = vld [vmem:[#allocation6 + $0xa50] sm:$0xff] }
0x1742   :  { %v4489_v44 = vpop.f32.mrf.mxu2  ;;  %v4596_v30 = vpop.f32.mrf.mxu3  ;;  %5091 = vmatpush.bf16.msra.mxu1 %v9566_v40 }
0x1743   :  { %v4490_v26 = vadd.f32 %v9801_v55, %v4489_v44  ;;  %v4597_v13 = vadd.f32 %v9802_v23, %v4596_v30  ;;  %v9804_v30 = vld [vmem:[#allocation7 + $0x68] ss:$0 sm:$0xff] }
0x1745   :  { %v4496_v50 = vmax.f32 %v4490_v26, 0.0  ;;  %v4603_v29 = vmax.f32 %v4597_v13, 0.0 }
0x1746   :  { %5092 = vmatpush.bf16.msra.mxu1 %v9565_v7 }
0x174a   :  { %v4491_v37 = vpop.f32.mrf.mxu2  ;;  %v4598_v59 = vpop.f32.mrf.mxu3  ;;  %5093 = vmatpush.bf16.msra.mxu1 %v9564_v0 }
0x174b   :  { %v4492_v17 = vadd.f32 %v9801_v55, %v4491_v37  ;;  %v4599_v57 = vadd.f32 %v9802_v23, %v4598_v59 }
0x174d   :  { %v4497_v2 = vmax.f32 %v4492_v17, 0.0  ;;  %v4604_v63 = vmax.f32 %v4599_v57, 0.0 }
0x174e   :  { %5094 = vmatpush.bf16.msra.mxu1 %v9563_v6 }
0x174f   :  { %v4622_v46 = vpack.c.bf16 %v4604_v63, %v4603_v29  ;;  %v4515_v49 = vpack.c.bf16 %v4497_v2, %v4496_v50 }
0x1751   :  { %4684 = vmatmul.bf16.gmra.mxu0 %v4622_v46  ;;  %4751 = vmatmul.bf16.gmra.mxu1 %v4515_v49 }
0x1752   :  { %v4832_v11 = vpop.f32.mrf.mxu2  ;;  %5095 = vmatpush.bf16.msra.mxu1 %v9562_v45 }
0x1753   :  { %v4833_v34 = vadd.f32 %v9803_v54, %v4832_v11 }
0x1755   :  { %v4842_v51 = vmax.f32 %v4833_v34, 0.0 }
0x1756   :  { %5096 = vmatpush.bf16.msra.mxu1 %v9561_v28 }
0x175a   :  { %v4834_v38 = vpop.f32.mrf.mxu2  ;;  %5097 = vmatpush.bf16.msra.mxu1 %v9560_v32 }
0x175b   :  { %v4835_v47 = vadd.f32 %v9803_v54, %v4834_v38 }
0x175d   :  { %v4843_v62 = vmax.f32 %v4835_v47, 0.0 }
0x175f   :  { %v4862_v48 = vpack.c.bf16 %v4843_v62, %v4842_v51 }
0x1761   :  { %4920 = vmatmul.bf16.vlgmr.msrb.gmra.mxu3 %v4862_v48  ;;  %5009 = vmatmul.bf16.vlgmr.msra.gmra.mxu0 %v10836_v33 }
0x1762   :  { %v4837_v55 = vpop.f32.mrf.mxu2 }
0x1763   :  { %v4838_v23 = vadd.f32 %v9803_v54, %v4837_v55  ;;  %v9805_v55 = vld [vmem:[#allocation7 + $0x69] ss:$0 sm:$0xff] }
0x1765   :  { %v4844_v36 = vmax.f32 %v4838_v23, 0.0 }
0x176a   :  { %v4839_v61 = vpop.f32.mrf.mxu2 }
0x176b   :  { %v4840_v12 = vadd.f32 %v9803_v54, %v4839_v61 }
0x176d   :  { %v4845_v3 = vmax.f32 %v4840_v12, 0.0 }
0x176f   :  { %v4863_v4 = vpack.c.bf16 %v4845_v3, %v4844_v36 }
0x1771   :  { %4925 = vmatmul.bf16.gmra.mxu3 %v4863_v4  ;;  %5014 = vmatmul.bf16.gmra.mxu0 %v10848_v52 }
0x17be   :  { %v4680_v33 = vpop.f32.mrf.mxu0  ;;  %v4747_v54 = vpop.f32.mrf.mxu1 }
0x17bf   :  { %v4748_v62 = vadd.f32 %v4747_v54, %v4680_v33 }
0x17c6   :  { %v4682_v22 = vpop.f32.mrf.mxu0  ;;  %v4749_v34 = vpop.f32.mrf.mxu1 }
0x17c7   :  { %v4750_v3 = vadd.f32 %v4749_v34, %v4682_v22 }
0x17ce   :  { %v4685_v18 = vpop.f32.mrf.mxu0  ;;  %v4752_v38 = vpop.f32.mrf.mxu1 }
0x17cf   :  { %v4753_v45 = vadd.f32 %v4752_v38, %v4685_v18 }
0x17d6   :  { %v4687_v52 = vpop.f32.mrf.mxu0  ;;  %v4754_v51 = vpop.f32.mrf.mxu1 }
0x17de   :  { %v5010_v44 = vpop.f32.mrf.mxu0 }
0x17df   :  { %v5011_v26 = vadd.f32 %v9804_v30, %v5010_v44 }
0x17e1   :  { %v5020_v59 = vmax.f32 %v5011_v26, 0.0 }
0x17e4   :  { %v4921_v47 = vpop.f32.mrf.mxu3 }
0x17e5   :  { %v4931_v48 = vadd.f32 %v4921_v47, %v4748_v62  ;;  %v9575_v62 = vld [vmem:[#allocation6 + $0xac0] sm:$0xff] }
0x17e6   :  { %v5012_v13 = vpop.f32.mrf.mxu0  ;;  %5283 = vmatpush.bf16.msra.mxu2 %v9575_v62 }
0x17e7   :  { %v5013_v37 = vadd.f32 %v9804_v30, %v5012_v13  ;;  %v4755_v13 = vadd.f32 %v4754_v51, %v4687_v52  ;;  %v9583_v51 = vld [vmem:[#allocation6 + $0xb00] sm:$0xff] }
0x17e8   :  { %5370 = vmatpush.bf16.msra.mxu3 %v9583_v51 }
0x17e9   :  { %v5021_v17 = vmax.f32 %v5013_v37, 0.0 }
0x17eb   :  { %v5040_v57 = vpack.c.bf16 %v5021_v17, %v5020_v59 }
0x17ec   :  { %v4923_v23 = vpop.f32.mrf.mxu3 }
0x17ed   :  { %5098 = vmatmul.bf16.vlgmr.msra.gmra.mxu1 %v5040_v57  ;;  %v4932_v58 = vadd.f32 %v4923_v23, %v4750_v3  ;;  %v9574_v23 = vld [vmem:[#allocation6 + $0xab8] sm:$0xff]  ;;  %v9589_v3 = vld [vmem:[#allocation6 + $0xb30] sm:$0xff] }
0x17ee   :  { %v5015_v50 = vpop.f32.mrf.mxu0  ;;  %5284 = vmatpush.bf16.msra.mxu2 %v9574_v23 }
0x17ef   :  { %v5016_v29 = vadd.f32 %v9804_v30, %v5015_v50 }
0x17f1   :  { %v5022_v46 = vmax.f32 %v5016_v29, 0.0 }
0x17f4   :  { %v4926_v0 = vpop.f32.mrf.mxu3 }
0x17f5   :  { %v4933_v32 = vadd.f32 %v4926_v0, %v4753_v45  ;;  %v9571_v0 = vld [vmem:[#allocation6 + $0xaa0] sm:$0xff]  ;;  %v9578_v45 = vld [vmem:[#allocation6 + $0xad8] sm:$0xff] }
0x17f6   :  { %v5017_v2 = vpop.f32.mrf.mxu0 }
0x17f7   :  { %v5018_v63 = vadd.f32 %v9804_v30, %v5017_v2 }
0x17f9   :  { %v5023_v49 = vmax.f32 %v5018_v63, 0.0 }
0x17fb   :  { %v5041_v11 = vpack.c.bf16 %v5023_v49, %v5022_v46 }
0x17fc   :  { %v4928_v26 = vpop.f32.mrf.mxu3 }
0x17fd   :  { %5103 = vmatmul.bf16.gmra.mxu1 %v5041_v11  ;;  %v4934_v37 = vadd.f32 %v4928_v26, %v4755_v13  ;;  %v9569_v26 = vld [vmem:[#allocation6 + $0xa90] sm:$0xff] }
0x17fe   :  { %v9585_v13 = vld [vmem:[#allocation6 + $0xb10] sm:$0xff] }
0x186a   :  { %v5099_v61 = vpop.f32.mrf.mxu1 }
0x186b   :  { %v5109_v12 = vadd.f32 %v5099_v61, %v4931_v48  ;;  %v9591_v48 = vld [vmem:[#allocation6 + $0xb40] sm:$0xff]  ;;  %v9590_v61 = vld [vmem:[#allocation6 + $0xb38] sm:$0xff] }
0x186c   :  { %5459 = vmatpush.bf16.msrb.mxu0 %v9591_v48 }
0x186d   :  { %v5115_v36 = vadd.f32 %v9805_v55, %v5109_v12  ;;  %v9581_v12 = vld [vmem:[#allocation6 + $0xaf0] sm:$0xff] }
0x186f   :  { %v5119_v4 = vadd.f32 %v5115_v36, %v10830_v53  ;;  %v9573_v36 = vld [vmem:[#allocation6 + $0xab0] sm:$0xff] }
0x1870   :  { %5460 = vmatpush.bf16.msrb.mxu0 %v9590_v61  ;;  %5285 = vmatpush.bf16.msra.mxu2 %v9573_v36 }
0x1871   :  { %5123 = vadd.xlane.f32.xlu1 %v5119_v4 }
0x1872   :  { %v5101_v40 = vpop.f32.mrf.mxu1 }
0x1873   :  { %v5110_v7 = vadd.f32 %v5101_v40, %v4932_v58  ;;  %v9572_v58 = vld [vmem:[#allocation6 + $0xaa8] sm:$0xff] }
0x1874   :  { %5461 = vmatpush.bf16.msrb.mxu0 %v9589_v3  ;;  %v9588_v40 = vld [vmem:[#allocation6 + $0xb28] sm:$0xff]  ;;  %5286 = vmatpush.bf16.msra.mxu2 %v9572_v58  ;;  %v10895_v3 = vld [vmem:[#allocation6 + $0x60] sm:$0xff] }
0x1875   :  { %v5116_v6 = vadd.f32 %v9805_v55, %v5110_v7  ;;  %v9579_v7 = vld [vmem:[#allocation6 + $0xae0] sm:$0xff] }
0x1877   :  { %v5120_v28 = vadd.f32 %v5116_v6, %v10832_v10  ;;  %v9587_v6 = vld [vmem:[#allocation6 + $0xb20] sm:$0xff] }
0x1878   :  { %5462 = vmatpush.bf16.msrb.mxu0 %v9588_v40  ;;  %5287 = vmatpush.bf16.msra.mxu2 %v9571_v0 }
0x1879   :  { %5125 = vadd.xlane.f32.xlu2 %v5120_v28 }
0x187a   :  { %v5104_v33 = vpop.f32.mrf.mxu1 }
0x187b   :  { %v5111_v44 = vadd.f32 %v5104_v33, %v4933_v32  ;;  %v9586_v32 = vld [vmem:[#allocation6 + $0xb18] sm:$0xff] }
0x187c   :  { %5463 = vmatpush.bf16.msrb.mxu0 %v9587_v6 }
0x187d   :  { %v5117_v30 = vadd.f32 %v9805_v55, %v5111_v44 }
0x187f   :  { %v5121_v22 = vadd.f32 %v5117_v30, %v10842_v16  ;;  %v9577_v30 = vld [vmem:[#allocation6 + $0xad0] sm:$0xff] }
0x1880   :  { %5464 = vmatpush.bf16.msrb.mxu0 %v9586_v32  ;;  %v10900_v32 = vld [vmem:[#allocation6 + $0x58] sm:$0xff] }
0x1881   :  { %5127 = vadd.xlane.f32.xlu0 %v5121_v22 }
0x1882   :  { %v5106_v53 = vpop.f32.mrf.mxu1 }
0x1883   :  { %v5112_v59 = vadd.f32 %v5106_v53, %v4934_v37  ;;  %v9576_v37 = vld [vmem:[#allocation6 + $0xac8] sm:$0xff] }
0x1884   :  { %5465 = vmatpush.bf16.msrb.mxu0 %v9585_v13  ;;  %v9568_v53 = vld [vmem:[#allocation6 + $0xa88] sm:$0xff] }
0x1885   :  { %v5118_v17 = vadd.f32 %v9805_v55, %v5112_v59  ;;  %v9582_v55 = vld [vmem:[#allocation6 + $0xaf8] sm:$0xff]  ;;  %v9584_v59 = vld [vmem:[#allocation6 + $0xb08] sm:$0xff] }
0x1886   :  { %5371 = vmatpush.bf16.msra.mxu3 %v9582_v55  ;;  %v10892_v55 = vld [vmem:[#allocation6 + $0x68] sm:$0xff] }
0x1887   :  { %v5122_v57 = vadd.f32 %v5118_v17, %v10844_v8 }
0x1888   :  { %5466 = vmatpush.bf16.msrb.mxu0 %v9584_v59 }
0x1889   :  { %5129 = vadd.xlane.f32.xlu1 %v5122_v57 }
0x188a   :  { %5372 = vmatpush.bf16.msra.mxu3 %v9581_v12 }
0x18e4   :  { %v5124_v18 = vpop.xlane.xlu1 %5123 }
0x18e5   :  { %v5131_v10 = vmul.f32 %v5124_v18, %v10334_v39 }
0x18e7   :  { %v10861_v50 = vsub.f32 %v5119_v4, %v5131_v10  ;;  %v9580_v4 = vld [vmem:[#allocation6 + $0xae8] sm:$0xff] }
0x18e8   :  { %5373 = vmatpush.bf16.msra.mxu3 %v9580_v4 }
0x18e9   :  { %v5139_v29 = vmul.f32 %v10861_v50, %v10861_v50 }
0x18eb   :  { %5143 = vadd.xlane.f32.xlu2 %v5139_v29 }
0x18ec   :  { %v5126_v52 = vpop.xlane.xlu2 %5125  ;;  %5374 = vmatpush.bf16.msra.mxu3 %v9579_v7  ;;  %v9806_v7 = vld [vmem:[#allocation7 + $0x6e] ss:$0 sm:$0xff] }
0x18ed   :  { %v5132_v16 = vmul.f32 %v5126_v52, %v10334_v39 }
0x18ef   :  { %v10866_v2 = vsub.f32 %v5120_v28, %v5132_v16  ;;  %v9570_v28 = vld [vmem:[#allocation6 + $0xa98] sm:$0xff] }
0x18f0   :  { %5375 = vmatpush.bf16.msra.mxu3 %v9578_v45  ;;  %5288 = vmatpush.bf16.msra.mxu2 %v9570_v28  ;;  %v10885_v16 = vld [vmem:[#allocation6 + $0x78] sm:$0xff] }
0x18f1   :  { %v5140_v63 = vmul.f32 %v10866_v2, %v10866_v2 }
0x18f3   :  { %5145 = vadd.xlane.f32.xlu0 %v5140_v63 }
0x18f4   :  { %v5128_v8 = vpop.xlane.xlu0 %5127  ;;  %5376 = vmatpush.bf16.msra.mxu3 %v9577_v30  ;;  %5289 = vmatpush.bf16.msra.mxu2 %v9569_v26  ;;  %v9807_v30 = vld [vmem:[#allocation7 + $0x6f] ss:$0 sm:$0xff] }
0x18f5   :  { %v5133_v46 = vmul.f32 %v5128_v8, %v10334_v39 }
0x18f7   :  { %v10871_v49 = vsub.f32 %v5121_v22, %v5133_v46 }
0x18f8   :  { %5377 = vmatpush.bf16.msra.mxu3 %v9576_v37  ;;  %5290 = vmatpush.bf16.msra.mxu2 %v9568_v53  ;;  %v10904_v37 = vld [vmem:[#allocation6 + $0x50] sm:$0xff] }
0x18f9   :  { %v5141_v11 = vmul.f32 %v10871_v49, %v10871_v49 }
0x18fb   :  { %5147 = vadd.xlane.f32.xlu1 %v5141_v11  ;;  %v10888_v11 = vld [vmem:[#allocation6 + $0x70] sm:$0xff] }
0x18fc   :  { %v5130_v54 = vpop.xlane.xlu1 %5129 }
0x18fd   :  { %v5134_v34 = vmul.f32 %v5130_v54, %v10334_v39 }
0x18ff   :  { %v10876_v38 = vsub.f32 %v5122_v57, %v5134_v34  ;;  %v10881_v57 = vld [vmem:[#allocation6 + $0x80] sm:$0xff] }
0x1900   :  { %5611 = vmatpush.bf16.msrb.mxu2 %v10881_v57 }
0x1901   :  { %v5142_v47 = vmul.f32 %v10876_v38, %v10876_v38 }
0x1903   :  { %5149 = vadd.xlane.f32.xlu2 %v5142_v47 }
0x1904   :  { %5612 = vmatpush.bf16.msrb.mxu2 %v10885_v16 }
0x1908   :  { %5613 = vmatpush.bf16.msrb.mxu2 %v10888_v11 }
0x190c   :  { %5614 = vmatpush.bf16.msrb.mxu2 %v10892_v55 }
0x1910   :  { %5615 = vmatpush.bf16.msrb.mxu2 %v10895_v3 }
0x1914   :  { %5616 = vmatpush.bf16.msrb.mxu2 %v10900_v32 }
0x1918   :  { %5617 = vmatpush.bf16.msrb.mxu2 %v10904_v37 }
0x195e   :  { %v5144_v33 = vpop.xlane.xlu2 %5143 }
0x195f   :  { %v5151_v44 = vmul.f32 %v5144_v33, %v10334_v39 }
0x1961   :  { %v5155_v22 = vadd.f32 1e-05, %v5151_v44 }
0x1963   :  { %9942 = vrsqrt.f32 %v5155_v22  ;;  %vm5165_vm13 = vweird.f32 %v5155_v22 }
0x1966   :  { %v5146_v17 = vpop.xlane.xlu0 %5145 }
0x1967   :  { %v5152_v18 = vmul.f32 %v5146_v17, %v10334_v39 }
0x1969   :  { %v9943_v10 = vpop.eup %9942  ;;  %v5156_v29 = vadd.f32 1e-05, %v5152_v18 }
0x196a   :  { %v5160_v52 = vmul.f32 %v9943_v10, %v5155_v22  ;;  %vm5166_vm12 = vweird.f32 %v9943_v10 }
0x196b   :  { %9944 = vrsqrt.f32 %v5156_v29  ;;  %vm5167_vm14 = vmor %vm5165_vm13, %vm5166_vm12  ;;  %vm5175_vm0 = vweird.f32 %v5156_v29 }
0x196c   :  { %v5161_v63 = vmul.f32 %v9943_v10, %v5160_v52  ;;  %v10911_v52 = vld [vmem:[#allocation6 + $0x48] sm:$0xff] }
0x196d   :  { %5618 = vmatpush.bf16.msrb.mxu2 %v10911_v52 }
0x196e   :  { %v5162_v8 = vmul.f32 0.5, %v5161_v63  ;;  %v5148_v46 = vpop.xlane.xlu1 %5147 }
0x196f   :  { %v5153_v54 = vmul.f32 %v5148_v46, %v10334_v39 }
0x1970   :  { %v5163_v34 = vsub.f32 1.5, %v5162_v8 }
0x1971   :  { %v9945_v47 = vpop.eup %9944  ;;  %v5157_v51 = vadd.f32 1e-05, %v5153_v54 }
0x1972   :  { %v5164_v62 = vmul.f32 %v9943_v10, %v5163_v34  ;;  %v5170_v48 = vmul.f32 %v9945_v47, %v5156_v29  ;;  %vm5176_vm15 = vweird.f32 %v9945_v47 }
0x1973   :  { %9946 = vrsqrt.f32 %v5157_v51  ;;  %vm5177_vm1 = vmor %vm5175_vm0, %vm5176_vm15  ;;  %vm5185_vm3 = vweird.f32 %v5157_v51 }
0x1974   :  { %v5171_v23 = vmul.f32 %v9945_v47, %v5170_v48  ;;  %v5168_v61 = vsel %vm5167_vm14, %v9943_v10, %v5164_v62 }
0x1975   :  { %v5199_v0 = vmul.f32 %v5168_v61, %v10861_v50 }
0x1976   :  { %v5172_v12 = vmul.f32 0.5, %v5171_v23  ;;  %v5150_v36 = vpop.xlane.xlu2 %5149 }
0x1977   :  { %v5154_v4 = vmul.f32 %v5150_v36, %v10334_v39  ;;  %v5205_v26 = vmul.f32 %v9806_v7, %v5199_v0  ;;  %v9808_v0 = vld [vmem:[#allocation7 + $0x72] ss:$0 sm:$0xff] }
0x1978   :  { %v5173_v58 = vsub.f32 1.5, %v5172_v12 }
0x1979   :  { %v9947_v40 = vpop.eup %9946  ;;  %v5158_v6 = vadd.f32 1e-05, %v5154_v4  ;;  %v10907_v17 = vadd.f32 %v9807_v30, %v5205_v26 }
0x197a   :  { %v5174_v45 = vmul.f32 %v9945_v47, %v5173_v58  ;;  %v5180_v28 = vmul.f32 %v9947_v40, %v5157_v51  ;;  %vm5186_vm2 = vweird.f32 %v9947_v40 }
0x197b   :  { %9948 = vrsqrt.f32 %v5158_v6  ;;  %vm5187_vm4 = vmor %vm5185_vm3, %vm5186_vm2  ;;  %vm5195_vm6 = vweird.f32 %v5158_v6 }
0x197c   :  { %v5178_v33 = vsel %vm5177_vm1, %v9945_v47, %v5174_v45  ;;  %v5181_v44 = vmul.f32 %v9947_v40, %v5180_v28 }
0x197d   :  { %v5200_v13 = vmul.f32 %v5178_v33, %v10866_v2 }
0x197e   :  { %v5182_v22 = vmul.f32 0.5, %v5181_v44 }
0x197f   :  { %v5206_v50 = vmul.f32 %v9806_v7, %v5200_v13 }
0x1980   :  { %v5183_v53 = vsub.f32 1.5, %v5182_v22 }
0x1981   :  { %v9949_v59 = vpop.eup %9948  ;;  %v10909_v18 = vadd.f32 %v9807_v30, %v5206_v50 }
0x1982   :  { %v5184_v10 = vmul.f32 %v9947_v40, %v5183_v53  ;;  %v5190_v29 = vmul.f32 %v9949_v59, %v5158_v6  ;;  %vm5196_vm5 = vweird.f32 %v9949_v59 }
0x1983   :  { %v5231_v2 = vpack.c.bf16 %v10909_v18, %v10907_v17  ;;  %vm5197_vm7 = vmor %vm5195_vm6, %vm5196_vm5 }
0x1984   :  { %v5191_v63 = vmul.f32 %v9949_v59, %v5190_v29  ;;  %v5188_v8 = vsel %vm5187_vm4, %v9947_v40, %v5184_v10 }
0x1985   :  { %5291 = vmatmul.bf16.vlgmr.msra.gmra.mxu2 %v5231_v2  ;;  %5378 = vmatmul.bf16.vlgmr.msra.gmra.mxu3 %v5231_v2  ;;  %v5201_v34 = vmul.f32 %v5188_v8, %v10871_v49 }
0x1986   :  { %v5192_v46 = vmul.f32 0.5, %v5191_v63  ;;  %5467 = vmatmul.bf16.vlgmr.msrb.gmra.mxu0 %v5231_v2 }
0x1987   :  { %v5207_v23 = vmul.f32 %v9806_v7, %v5201_v34 }
0x1988   :  { %v5193_v54 = vsub.f32 1.5, %v5192_v46 }
0x1989   :  { %v10918_v51 = vadd.f32 %v9807_v30, %v5207_v23 }
0x198a   :  { %v5194_v47 = vmul.f32 %v9949_v59, %v5193_v54 }
0x198c   :  { %v5198_v62 = vsel %vm5197_vm7, %v9949_v59, %v5194_v47 }
0x198d   :  { %v5202_v48 = vmul.f32 %v5198_v62, %v10876_v38 }
0x198f   :  { %v5208_v61 = vmul.f32 %v9806_v7, %v5202_v48 }
0x1991   :  { %v10920_v12 = vadd.f32 %v9807_v30, %v5208_v61  ;;  %v9810_v30 = vld [vmem:[#allocation7 + $0x71] ss:$0 sm:$0xff] }
0x1993   :  { %v5232_v36 = vpack.c.bf16 %v10920_v12, %v10918_v51 }
0x1995   :  { %5296 = vmatmul.bf16.gmra.mxu2 %v5232_v36  ;;  %5383 = vmatmul.bf16.gmra.mxu3 %v5232_v36 }
0x1996   :  { %5472 = vmatmul.bf16.gmra.mxu0 %v5232_v36 }
0x1a03   :  { %v5468_v4 = vpop.f32.mrf.mxu0 }
0x1a04   :  { %v5469_v38 = vadd.f32 %v9808_v0, %v5468_v4 }
0x1a06   :  { %v5478_v44 = vpack.c.bf16 %v5469_v38, %v5469_v38 }
0x1a08   :  { %v5379_v49 = vpop.f32.mrf.mxu3  ;;  %v5526_v10 = vunpack.c.l.b16 %v5478_v44 }
0x1a09   :  { %v5380_v2 = vadd.f32 %v9810_v30, %v5379_v49 }
0x1a0b   :  { %v5470_v58 = vpop.f32.mrf.mxu0  ;;  %v5389_v23 = vpack.c.bf16 %v5380_v2, %v5380_v2 }
0x1a0c   :  { %v5471_v45 = vadd.f32 %v9808_v0, %v5470_v58 }
0x1a0e   :  { %v5479_v28 = vpack.c.bf16 %v5471_v45, %v5471_v45 }
0x1a10   :  { %v5381_v40 = vpop.f32.mrf.mxu3  ;;  %v5527_v13 = vunpack.c.l.b16 %v5479_v28  ;;  %v5486_v28 = vunpack.c.l.b16 %v5389_v23 }
0x1a11   :  { %v5382_v53 = vadd.f32 %v9810_v30, %v5381_v40 }
0x1a12   :  { %v5530_v63 = vpack.c.b16 %v5527_v13, %v5526_v10 }
0x1a13   :  { %v5473_v6 = vpop.f32.mrf.mxu0  ;;  %v5390_v34 = vpack.c.bf16 %v5382_v53, %v5382_v53 }
0x1a14   :  { %v5474_v7 = vadd.f32 %v9808_v0, %v5473_v6  ;;  %v5534_v36 = vunpack.c.l.bf16 %v5530_v63  ;;  %v5535_v4 = vunpack.c.h.bf16 %v5530_v63 }
0x1a16   :  { %v5480_v22 = vpack.c.bf16 %v5474_v7, %v5474_v7  ;;  %v5550_v44 = vmul.f32 %v10212_v24, %v5534_v36 }
0x1a18   :  { %v5384_v33 = vpop.f32.mrf.mxu3  ;;  %v5528_v8 = vunpack.c.l.b16 %v5480_v22 }
0x1a19   :  { %v5385_v59 = vadd.f32 %v9810_v30, %v5384_v33 }
0x1a1b   :  { %v5475_v26 = vpop.f32.mrf.mxu0  ;;  %v5391_v47 = vpack.c.bf16 %v5385_v59, %v5385_v59 }
0x1a1c   :  { %v5476_v50 = vadd.f32 %v9808_v0, %v5475_v26  ;;  %v5487_v0 = vunpack.c.l.b16 %v5390_v34  ;;  %v5547_v34 = vmul.f32 %v10251_v60, %v5535_v4 }
0x1a1d   :  { %v5488_v40 = vunpack.c.l.b16 %v5391_v47 }
0x1a1e   :  { %v5481_v29 = vpack.c.bf16 %v5476_v50, %v5476_v50  ;;  %v5490_v26 = vpack.c.b16 %v5487_v0, %v5486_v28 }
0x1a20   :  { %v5529_v46 = vunpack.c.l.b16 %v5481_v29  ;;  %v5386_v54 = vpop.f32.mrf.mxu3  ;;  %v5494_v2 = vunpack.c.l.bf16 %v5490_v26  ;;  %v5495_v63 = vunpack.c.h.bf16 %v5490_v26 }
0x1a21   :  { %v5387_v62 = vadd.f32 %v9810_v30, %v5386_v54  ;;  %v5551_v30 = vmul.f32 %v10214_v25, %v5535_v4  ;;  %v5546_v54 = vmul.f32 %v10245_v56, %v5534_v36 }
0x1a22   :  { %v5531_v48 = vpack.c.b16 %v5529_v46, %v5528_v8  ;;  %v5510_v47 = vmul.f32 %v10212_v24, %v5494_v2 }
0x1a23   :  { %v5392_v61 = vpack.c.bf16 %v5387_v62, %v5387_v62  ;;  %v5560_v59 = vpack.c.bf16 %v5551_v30, %v5550_v44  ;;  %v5511_v62 = vmul.f32 %v10214_v25, %v5495_v63 }
0x1a24   :  { %v5536_v58 = vunpack.c.l.bf16 %v5531_v48  ;;  %v5537_v6 = vunpack.c.h.bf16 %v5531_v48  ;;  %v5558_v48 = vpack.c.bf16 %v5547_v34, %v5546_v54  ;;  %v5502_v54 = vmul.f32 %v10269_v9, %v5494_v2  ;;  %v5292_v34 = vpop.f32.mrf.mxu2 }
0x1a25   :  { %v5489_v45 = vunpack.c.l.b16 %v5392_v61  ;;  %v5520_v0 = vpack.c.bf16 %v5511_v62, %v5510_v47 }
0x1a26   :  { %v5552_v38 = vmul.f32 %v10208_v20, %v5536_v58  ;;  %v5553_v49 = vmul.f32 %v10210_v21, %v5537_v6  ;;  %v5548_v10 = vmul.f32 %v10228_v42, %v5536_v58  ;;  %v5549_v29 = vmul.f32 %v10230_v43, %v5537_v6 }
0x1a27   :  { %v5491_v7 = vpack.c.b16 %v5489_v45, %v5488_v40  ;;  %v5544_v23 = vmul.f32 %v10257_v1, %v5536_v58  ;;  %v5545_v61 = vmul.f32 %v10263_v5, %v5537_v6  ;;  %v5542_v45 = vmul.f32 %v10269_v9, %v5534_v36 }
0x1a28   :  { %v5561_v33 = vpack.c.bf16 %v5553_v49, %v5552_v38  ;;  %v5559_v46 = vpack.c.bf16 %v5549_v29, %v5548_v10  ;;  %v5543_v38 = vmul.f32 %v10275_v15, %v5535_v4  ;;  %v5541_v44 = vmul.f32 %v10283_v31, %v5537_v6 }
0x1a29   :  { %v5496_v13 = vunpack.c.l.bf16 %v5491_v7  ;;  %v5497_v22 = vunpack.c.h.bf16 %v5491_v7  ;;  %v5557_v40 = vpack.c.bf16 %v5545_v61, %v5544_v23  ;;  %v5507_v10 = vmul.f32 %v10251_v60, %v5495_v63 }
0x1a2a   :  { %5640 = vmatpush.bf16.msrb.mxu3 %v5561_v33  ;;  %v5556_v7 = vpack.c.bf16 %v5543_v38, %v5542_v45  ;;  %v5540_v33 = vmul.f32 %v10277_v19, %v5536_v58  ;;  %v5498_v61 = vmul.f32 %v10290_v35, %v5494_v2  ;;  %v9809_v45 = vld [vmem:[#allocation7 + $0x70] ss:$0 sm:$0xff] }
0x1a2b   :  { %v5512_v50 = vmul.f32 %v10208_v20, %v5496_v13  ;;  %v5513_v53 = vmul.f32 %v10210_v21, %v5497_v22  ;;  %v5508_v49 = vmul.f32 %v10228_v42, %v5496_v13  ;;  %v5509_v28 = vmul.f32 %v10230_v43, %v5497_v22 }
0x1a2c   :  { %v5555_v26 = vpack.c.bf16 %v5541_v44, %v5540_v33  ;;  %v5504_v58 = vmul.f32 %v10257_v1, %v5496_v13  ;;  %v5505_v6 = vmul.f32 %v10263_v5, %v5497_v22  ;;  %v5500_v47 = vmul.f32 %v10277_v19, %v5496_v13  ;;  %v5294_v23 = vpop.f32.mrf.mxu2 }
0x1a2d   :  { %v5521_v8 = vpack.c.bf16 %v5513_v53, %v5512_v50  ;;  %v5519_v30 = vpack.c.bf16 %v5509_v28, %v5508_v49  ;;  %v5538_v50 = vmul.f32 %v10290_v35, %v5534_v36  ;;  %v5539_v53 = vmul.f32 %v10296_v41, %v5535_v4 }
0x1a2e   :  { %5641 = vmatpush.bf16.msrb.mxu3 %v5560_v59  ;;  %v5506_v59 = vmul.f32 %v10245_v56, %v5494_v2  ;;  %v5503_v36 = vmul.f32 %v10275_v15, %v5495_v63  ;;  %v5501_v62 = vmul.f32 %v10283_v31, %v5497_v22  ;;  %v5295_v38 = vadd.f32 %v9809_v45, %v5294_v23 }
0x1a2f   :  { %5562 = vmatpush.bf16.xpose.msrb.mxu1 %v5521_v8  ;;  %v5554_v29 = vpack.c.bf16 %v5539_v53, %v5538_v50  ;;  %v5293_v49 = vadd.f32 %v9809_v45, %v5292_v34  ;;  %v10956_v50 = vld [vmem:[#allocation7 + $0x20] sm:$0xff] }
0x1a30   :  { %v5518_v8 = vpack.c.bf16 %v5507_v10, %v5506_v59  ;;  %v5516_v4 = vpack.c.bf16 %v5503_v36, %v5502_v54  ;;  %v10959_v59 = vld [vmem:[#allocation7 + $0x28] sm:$0xff]  ;;  %v10965_v36 = vld [vmem:[#allocation7 + $0x38] sm:$0xff] }
0x1a32   :  { %5642 = vmatpush.bf16.msrb.mxu3 %v5559_v46  ;;  %v5517_v46 = vpack.c.bf16 %v5505_v6, %v5504_v58  ;;  %v10962_v58 = vld [vmem:[#allocation7 + $0x30] sm:$0xff] }
0x1a34   :  { %v5297_v28 = vpop.f32.mrf.mxu2 }
0x1a35   :  { %v5298_v13 = vadd.f32 %v9809_v45, %v5297_v28 }
0x1a36   :  { %5643 = vmatpush.bf16.msrb.mxu3 %v5558_v48  ;;  %v5515_v48 = vpack.c.bf16 %v5501_v62, %v5500_v47 }
0x1a37   :  { %5563 = vmatpush.bf16.xpose.msrb.mxu1 %v5520_v0  ;;  %v5499_v0 = vmul.f32 %v10296_v41, %v5495_v63 }
0x1a3a   :  { %5644 = vmatpush.bf16.msrb.mxu3 %v5557_v40  ;;  %v5514_v40 = vpack.c.bf16 %v5499_v0, %v5498_v61 }
0x1a3c   :  { %v5299_v33 = vpop.f32.mrf.mxu2 }
0x1a3d   :  { %v5300_v44 = vadd.f32 %v9809_v45, %v5299_v33 }
0x1a3e   :  { %5645 = vmatpush.bf16.msrb.mxu3 %v5556_v7  ;;  %v5302_v7 = vpack.c.bf16 %v5295_v38, %v5293_v49 }
0x1a3f   :  { %5564 = vmatpush.bf16.xpose.msrb.mxu1 %v5519_v30  ;;  %v5303_v30 = vpack.c.bf16 %v5300_v44, %v5298_v13 }
0x1a42   :  { %5646 = vmatpush.bf16.msrb.mxu3 %v5555_v26 }
0x1a46   :  { %5647 = vmatpush.bf16.msrb.mxu3 %v5554_v29 }
0x1a47   :  { %5565 = vmatpush.bf16.xpose.msrb.mxu1 %v5518_v8 }
0x1a4f   :  { %5566 = vmatpush.bf16.xpose.msrb.mxu1 %v5517_v46 }
0x1a57   :  { %5567 = vmatpush.bf16.xpose.msrb.mxu1 %v5516_v4 }
0x1a5f   :  { %5568 = vmatpush.bf16.xpose.msrb.mxu1 %v5515_v48 }
0x1a67   :  { %5569 = vmatpush.bf16.xpose.msrb.mxu1 %v5514_v40 }
0x1a6e   :  { %5570 = vmatmul.bf16.vlgmr.msrb.gmra.mxu1 %v5302_v7 }
0x1a7e   :  { %5575 = vmatmul.bf16.gmra.mxu1 %v5303_v30 }
0x1aeb   :  { %v5571_v22 = vpop.f32.mrf.mxu1 }
0x1aec   :  { %v5581_v26 = vmul.f32 0.17677669, %v5571_v22 }
0x1aee   :  { %v5585_v2 = vadd.f32 %v10956_v50, %v5581_v26  ;;  %v9615_v26 = vld [vmem:[#allocation6 + $0xc00] sm:$0xff] }
0x1aef   :  { %5997 = vmatpush.bf16.msra.mxu3 %v9615_v26  ;;  %v9594_v26 = vld [vmem:[#allocation6 + $0xb58] sm:$0xff] }
0x1af0   :  { %5589 = vmax.xlane.f32.xlu0 %v5585_v2 }
0x1af3   :  { %v5573_v63 = vpop.f32.mrf.mxu1 }
0x1af4   :  { %v5582_v53 = vmul.f32 0.17677669, %v5573_v63  ;;  %v9613_v63 = vld [vmem:[#allocation6 + $0xbf0] sm:$0xff] }
0x1af6   :  { %v5586_v10 = vadd.f32 %v10959_v59, %v5582_v53  ;;  %v9612_v53 = vld [vmem:[#allocation6 + $0xbe8] sm:$0xff] }
0x1af8   :  { %5591 = vmax.xlane.f32.xlu1 %v5586_v10 }
0x1afb   :  { %v5576_v29 = vpop.f32.mrf.mxu1 }
0x1afc   :  { %v5583_v8 = vmul.f32 0.17677669, %v5576_v29  ;;  %v9611_v29 = vld [vmem:[#allocation6 + $0xbe0] sm:$0xff] }
0x1afe   :  { %v5587_v6 = vadd.f32 %v10962_v58, %v5583_v8  ;;  %v9610_v8 = vld [vmem:[#allocation6 + $0xbd8] sm:$0xff] }
0x1b00   :  { %5593 = vmax.xlane.f32.xlu2 %v5587_v6 }
0x1b03   :  { %v5578_v46 = vpop.f32.mrf.mxu1 }
0x1b04   :  { %v5584_v54 = vmul.f32 0.17677669, %v5578_v46  ;;  %v9609_v46 = vld [vmem:[#allocation6 + $0xbd0] sm:$0xff] }
0x1b06   :  { %v5588_v4 = vadd.f32 %v10965_v36, %v5584_v54 }
0x1b08   :  { %5595 = vmax.xlane.f32.xlu0 %v5588_v4 }
0x1b63   :  { %v5590_v34 = vpop.xlane.xlu0 %5589 }
0x1b64   :  { %v5597_v47 = vsub.f32 %v5585_v2, %v5590_v34  ;;  %v9614_v2 = vld [vmem:[#allocation6 + $0xbf8] sm:$0xff]  ;;  %v9608_v34 = vld [vmem:[#allocation6 + $0xbc8] sm:$0xff] }
0x1b65   :  { %5998 = vmatpush.bf16.msra.mxu3 %v9614_v2  ;;  %v9623_v2 = vld [vmem:[#allocation6 + $0xc40] sm:$0xff] }
0x1b66   :  { %v5601_v62 = vmul.f32 1.442695, %v5597_v47 }
0x1b68   :  { %9950 = vpow2.f32 %v5601_v62 }
0x1b69   :  { %5999 = vmatpush.bf16.msra.mxu3 %v9613_v63  ;;  %v9622_v63 = vld [vmem:[#allocation6 + $0xc38] sm:$0xff] }
0x1b6b   :  { %v5592_v48 = vpop.xlane.xlu1 %5591 }
0x1b6c   :  { %v5598_v23 = vsub.f32 %v5586_v10, %v5592_v48 }
0x1b6d   :  { %6000 = vmatpush.bf16.msra.mxu3 %v9612_v53  ;;  %v9621_v53 = vld [vmem:[#allocation6 + $0xc30] sm:$0xff] }
0x1b6e   :  { %v5603_v61 = vmul.f32 1.442695, %v5598_v23  ;;  %v9951_v40 = vpop.eup %9950 }
0x1b70   :  { %9952 = vpow2.f32 %v5603_v61 }
0x1b71   :  { %6001 = vmatpush.bf16.msra.mxu3 %v9611_v29  ;;  %v9619_v29 = vld [vmem:[#allocation6 + $0xc20] sm:$0xff] }
0x1b73   :  { %v5594_v0 = vpop.xlane.xlu2 %5593 }
0x1b74   :  { %v5599_v49 = vsub.f32 %v5587_v6, %v5594_v0 }
0x1b75   :  { %6002 = vmatpush.bf16.msra.mxu3 %v9610_v8 }
0x1b76   :  { %v9953_v45 = vpop.eup %9952  ;;  %v5605_v28 = vmul.f32 1.442695, %v5599_v49 }
0x1b77   :  { %v5609_v38 = vpack.c.bf16 %v9953_v45, %v9951_v40 }
0x1b78   :  { %9954 = vpow2.f32 %v5605_v28 }
0x1b79   :  { %5619 = vmatmul.bf16.vlgmr.msrb.gmra.mxu2 %v5609_v38  ;;  %6003 = vmatpush.bf16.msra.mxu3 %v9609_v46  ;;  %v9617_v46 = vld [vmem:[#allocation6 + $0xc10] sm:$0xff] }
0x1b7b   :  { %v5596_v7 = vpop.xlane.xlu0 %5595 }
0x1b7c   :  { %v5600_v33 = vsub.f32 %v5588_v4, %v5596_v7 }
0x1b7d   :  { %6004 = vmatpush.bf16.msra.mxu3 %v9608_v34  ;;  %v9616_v34 = vld [vmem:[#allocation6 + $0xc08] sm:$0xff] }
0x1b7e   :  { %v5607_v44 = vmul.f32 1.442695, %v5600_v33  ;;  %v9955_v13 = vpop.eup %9954  ;;  %v9599_v33 = vld [vmem:[#allocation6 + $0xb80] sm:$0xff] }
0x1b7f   :  { %5727 = vmatpush.bf16.msra.mxu0 %v9599_v33 }
0x1b80   :  { %9956 = vpow2.f32 %v5607_v44  ;;  %v9598_v44 = vld [vmem:[#allocation6 + $0xb78] sm:$0xff] }
0x1b83   :  { %5728 = vmatpush.bf16.msra.mxu0 %v9598_v44 }
0x1b86   :  { %v9957_v30 = vpop.eup %9956 }
0x1b87   :  { %v5610_v22 = vpack.c.bf16 %v9957_v30, %v9955_v13 }
0x1b89   :  { %5624 = vmatmul.bf16.gmra.mxu2 %v5610_v22  ;;  %v9597_v22 = vld [vmem:[#allocation6 + $0xb70] sm:$0xff] }
0x1b8a   :  { %5729 = vmatpush.bf16.msra.mxu0 %v9597_v22 }
0x1bfc   :  { %v5620_v10 = vpop.f32.mrf.mxu2 }
0x1bfd   :  { %9958 = vrcp.f32 %v5620_v10  ;;  %v9620_v10 = vld [vmem:[#allocation6 + $0xc28] sm:$0xff] }
0x1c03   :  { %v9959_v54 = vpop.eup %9958 }
0x1c04   :  { %v5622_v6 = vpop.f32.mrf.mxu2  ;;  %v5634_v47 = vmul.f32 %v9959_v54, %v9951_v40  ;;  %v9596_v40 = vld [vmem:[#allocation6 + $0xb68] sm:$0xff] }
0x1c05   :  { %9960 = vrcp.f32 %v5622_v6  ;;  %5730 = vmatpush.bf16.msra.mxu0 %v9596_v40  ;;  %v9618_v6 = vld [vmem:[#allocation6 + $0xc18] sm:$0xff] }
0x1c0b   :  { %v9961_v4 = vpop.eup %9960 }
0x1c0c   :  { %v5635_v62 = vmul.f32 %v9961_v4, %v9953_v45  ;;  %v5625_v48 = vpop.f32.mrf.mxu2  ;;  %v9595_v45 = vld [vmem:[#allocation6 + $0xb60] sm:$0xff] }
0x1c0d   :  { %9962 = vrcp.f32 %v5625_v48  ;;  %5731 = vmatpush.bf16.msra.mxu0 %v9595_v45 }
0x1c0e   :  { %v5638_v23 = vpack.c.bf16 %v5635_v62, %v5634_v47 }
0x1c10   :  { %5648 = vmatmul.bf16.vlgmr.msrb.gmra.mxu3 %v5638_v23 }
0x1c11   :  { %5732 = vmatpush.bf16.msra.mxu0 %v9594_v26 }
0x1c13   :  { %v9963_v0 = vpop.eup %9962 }
0x1c14   :  { %v5627_v61 = vpop.f32.mrf.mxu2  ;;  %v5636_v49 = vmul.f32 %v9963_v0, %v9955_v13  ;;  %v9593_v13 = vld [vmem:[#allocation6 + $0xb50] sm:$0xff] }
0x1c15   :  { %9964 = vrcp.f32 %v5627_v61  ;;  %5733 = vmatpush.bf16.msra.mxu0 %v9593_v13 }
0x1c1b   :  { %v9965_v38 = vpop.eup %9964 }
0x1c1c   :  { %v5637_v28 = vmul.f32 %v9965_v38, %v9957_v30  ;;  %v9592_v30 = vld [vmem:[#allocation6 + $0xb48] sm:$0xff]  ;;  %v9811_v38 = vld [vmem:[#allocation7 + $0x75] ss:$0 sm:$0xff] }
0x1c1d   :  { %5734 = vmatpush.bf16.msra.mxu0 %v9592_v30 }
0x1c1e   :  { %v5639_v7 = vpack.c.bf16 %v5637_v28, %v5636_v49 }
0x1c20   :  { %5653 = vmatmul.bf16.gmra.mxu3 %v5639_v7 }
0x1c21   :  { %6086 = vmatpush.bf16.msrb.mxu0 %v9623_v2 }
0x1c25   :  { %6087 = vmatpush.bf16.msrb.mxu0 %v9622_v63 }
0x1c29   :  { %6088 = vmatpush.bf16.msrb.mxu0 %v9621_v53 }
0x1c2d   :  { %6089 = vmatpush.bf16.msrb.mxu0 %v9620_v10 }
0x1c30   :  { %6005 = vmatmul.bf16.vlgmr.msra.gmra.mxu3 %v10693_v14 }
0x1c31   :  { %6090 = vmatpush.bf16.msrb.mxu0 %v9619_v29 }
0x1c35   :  { %6091 = vmatpush.bf16.msrb.mxu0 %v9618_v6 }
0x1c39   :  { %6092 = vmatpush.bf16.msrb.mxu0 %v9617_v46 }
0x1c3d   :  { %6093 = vmatpush.bf16.msrb.mxu0 %v9616_v34 }
0x1c40   :  { %6010 = vmatmul.bf16.gmra.mxu3 %v10699_v27 }
0x1c93   :  { %v5649_v8 = vpop.f32.mrf.mxu3 }
0x1c9b   :  { %v5651_v54 = vpop.f32.mrf.mxu3 }
0x1c9c   :  { %v5675_v4 = vpack.c.bf16 %v5651_v54, %v5649_v8 }
0x1c9e   :  { %5735 = vmatmul.bf16.vlgmr.msra.gmra.mxu0 %v5675_v4 }
0x1ca3   :  { %v5654_v47 = vpop.f32.mrf.mxu3 }
0x1cab   :  { %v5656_v62 = vpop.f32.mrf.mxu3 }
0x1cac   :  { %v5676_v48 = vpack.c.bf16 %v5656_v62, %v5654_v47 }
0x1cae   :  { %5740 = vmatmul.bf16.gmra.mxu0 %v5676_v48 }
0x1cb3   :  { %v6006_v23 = vpop.f32.mrf.mxu3 }
0x1cb4   :  { %v6007_v7 = vadd.f32 %v9811_v38, %v6006_v23 }
0x1cb6   :  { %v6016_v45 = vpack.c.bf16 %v6007_v7, %v6007_v7 }
0x1cb8   :  { %v6113_v63 = vunpack.c.l.b16 %v6016_v45 }
0x1cbb   :  { %v6008_v61 = vpop.f32.mrf.mxu3 }
0x1cbc   :  { %v6009_v49 = vadd.f32 %v9811_v38, %v6008_v61 }
0x1cbe   :  { %6094 = vmatmul.bf16.vlgmr.msrb.gmra.mxu0 %v10693_v14  ;;  %v6017_v44 = vpack.c.bf16 %v6009_v49, %v6009_v49 }
0x1cc0   :  { %v6114_v13 = vunpack.c.l.b16 %v6017_v44 }
0x1cc2   :  { %v6117_v10 = vpack.c.b16 %v6114_v13, %v6113_v63  ;;  %v9812_v63 = vld [vmem:[#allocation7 + $0x73] ss:$0 sm:$0xff] }
0x1cc3   :  { %v6011_v0 = vpop.f32.mrf.mxu3 }
0x1cc4   :  { %v6012_v28 = vadd.f32 %v9811_v38, %v6011_v0  ;;  %v6121_v46 = vunpack.c.l.bf16 %v6117_v10  ;;  %v6122_v54 = vunpack.c.h.bf16 %v6117_v10 }
0x1cc6   :  { %v6018_v22 = vpack.c.bf16 %v6012_v28, %v6012_v28  ;;  %v6137_v34 = vmul.f32 %v10212_v24, %v6121_v46  ;;  %v6133_v61 = vmul.f32 %v10245_v56, %v6121_v46  ;;  %v6134_v0 = vmul.f32 %v10251_v60, %v6122_v54 }
0x1cc7   :  { %v6130_v44 = vmul.f32 %v10275_v15, %v6122_v54  ;;  %v6125_v13 = vmul.f32 %v10290_v35, %v6121_v46 }
0x1cc8   :  { %v6115_v30 = vunpack.c.l.b16 %v6018_v22 }
0x1ccb   :  { %v6013_v33 = vpop.f32.mrf.mxu3 }
0x1ccc   :  { %v6014_v40 = vadd.f32 %v9811_v38, %v6013_v33  ;;  %v6145_v38 = vpack.c.bf16 %v6134_v0, %v6133_v61  ;;  %v6129_v33 = vmul.f32 %v10269_v9, %v6121_v46 }
0x1cce   :  { %v6019_v26 = vpack.c.bf16 %v6014_v40, %v6014_v40  ;;  %6099 = vmatmul.bf16.gmra.mxu0 %v10699_v27  ;;  %v6138_v27 = vmul.f32 %v10214_v25, %v6122_v54  ;;  %v6143_v22 = vpack.c.bf16 %v6130_v44, %v6129_v33 }
0x1cd0   :  { %v6116_v2 = vunpack.c.l.b16 %v6019_v26  ;;  %v6147_v47 = vpack.c.bf16 %v6138_v27, %v6137_v34 }
0x1cd2   :  { %v6118_v53 = vpack.c.b16 %v6116_v2, %v6115_v30  ;;  %v6126_v30 = vmul.f32 %v10296_v41, %v6122_v54 }
0x1cd4   :  { %v6123_v14 = vunpack.c.l.bf16 %v6118_v53  ;;  %v6124_v29 = vunpack.c.h.bf16 %v6118_v53  ;;  %v6141_v2 = vpack.c.bf16 %v6126_v30, %v6125_v13 }
0x1cd6   :  { %v6139_v8 = vmul.f32 %v10208_v20, %v6123_v14  ;;  %v6140_v6 = vmul.f32 %v10210_v21, %v6124_v29  ;;  %v6135_v62 = vmul.f32 %v10228_v42, %v6123_v14  ;;  %v6136_v48 = vmul.f32 %v10230_v43, %v6124_v29 }
0x1cd7   :  { %v6131_v49 = vmul.f32 %v10257_v1, %v6123_v14  ;;  %v6132_v28 = vmul.f32 %v10263_v5, %v6124_v29  ;;  %v6127_v40 = vmul.f32 %v10277_v19, %v6123_v14  ;;  %v6128_v45 = vmul.f32 %v10283_v31, %v6124_v29 }
0x1cd8   :  { %v6148_v4 = vpack.c.bf16 %v6140_v6, %v6139_v8  ;;  %v6146_v23 = vpack.c.bf16 %v6136_v48, %v6135_v62 }
0x1cd9   :  { %v6144_v7 = vpack.c.bf16 %v6132_v28, %v6131_v49  ;;  %v6142_v26 = vpack.c.bf16 %v6128_v45, %v6127_v40 }
0x1cda   :  { %6189 = vmatpush.bf16.xpose.msra.mxu1 %v6148_v4 }
0x1ce2   :  { %6190 = vmatpush.bf16.xpose.msra.mxu1 %v6147_v47 }
0x1cea   :  { %6191 = vmatpush.bf16.xpose.msra.mxu1 %v6146_v23 }
0x1cf2   :  { %6192 = vmatpush.bf16.xpose.msra.mxu1 %v6145_v38 }
0x1cfa   :  { %6193 = vmatpush.bf16.xpose.msra.mxu1 %v6144_v7 }
0x1d02   :  { %6194 = vmatpush.bf16.xpose.msra.mxu1 %v6143_v22 }
0x1d0a   :  { %6195 = vmatpush.bf16.xpose.msra.mxu1 %v6142_v26 }
0x1d12   :  { %6196 = vmatpush.bf16.xpose.msra.mxu1 %v6141_v2 }
0x1d1b   :  { %v5736_v53 = vpop.f32.mrf.mxu0 }
0x1d1c   :  { %v5737_v10 = vadd.f32 %v9812_v63, %v5736_v53 }
0x1d1e   :  { %v10989_v8 = vadd.f32 %v5737_v10, %v10907_v17 }
0x1d20   :  { %5750 = vadd.xlane.f32.xlu1 %v10989_v8 }
0x1d23   :  { %v5738_v6 = vpop.f32.mrf.mxu0 }
0x1d24   :  { %v5739_v14 = vadd.f32 %v9812_v63, %v5738_v6 }
0x1d26   :  { %v10993_v29 = vadd.f32 %v5739_v14, %v10909_v18  ;;  %v9813_v18 = vld [vmem:[#allocation7 + $0x76] ss:$0 sm:$0xff] }
0x1d28   :  { %5752 = vadd.xlane.f32.xlu2 %v10993_v29 }
0x1d2b   :  { %v5741_v46 = vpop.f32.mrf.mxu0 }
0x1d2c   :  { %v5742_v4 = vadd.f32 %v9812_v63, %v5741_v46 }
0x1d2e   :  { %v10997_v54 = vadd.f32 %v5742_v4, %v10918_v51 }
0x1d30   :  { %5754 = vadd.xlane.f32.xlu0 %v10997_v54 }
0x1d33   :  { %v5743_v34 = vpop.f32.mrf.mxu0 }
0x1d34   :  { %v5744_v27 = vadd.f32 %v9812_v63, %v5743_v34 }
0x1d36   :  { %v11001_v17 = vadd.f32 %v5744_v27, %v10920_v12 }
0x1d38   :  { %5756 = vadd.xlane.f32.xlu1 %v11001_v17 }
0x1d3b   :  { %v6095_v47 = vpop.f32.mrf.mxu0 }
0x1d3c   :  { %v6096_v61 = vadd.f32 %v9813_v18, %v6095_v47 }
0x1d3e   :  { %v6105_v49 = vpack.c.bf16 %v6096_v61, %v6096_v61 }
0x1d40   :  { %v6153_v44 = vunpack.c.l.b16 %v6105_v49 }
0x1d43   :  { %v6097_v62 = vpop.f32.mrf.mxu0 }
0x1d44   :  { %v6098_v23 = vadd.f32 %v9813_v18, %v6097_v62 }
0x1d46   :  { %v6106_v0 = vpack.c.bf16 %v6098_v23, %v6098_v23 }
0x1d48   :  { %v6154_v28 = vunpack.c.l.b16 %v6106_v0 }
0x1d4a   :  { %v6157_v40 = vpack.c.b16 %v6154_v28, %v6153_v44 }
0x1d4b   :  { %v6100_v48 = vpop.f32.mrf.mxu0 }
0x1d4c   :  { %v6101_v38 = vadd.f32 %v9813_v18, %v6100_v48  ;;  %v6161_v13 = vunpack.c.l.bf16 %v6157_v40  ;;  %v6162_v30 = vunpack.c.h.bf16 %v6157_v40  ;;  %v9606_v40 = vld [vmem:[#allocation6 + $0xbb8] sm:$0xff] }
0x1d4e   :  { %v6107_v7 = vpack.c.bf16 %v6101_v38, %v6101_v38  ;;  %v6177_v14 = vmul.f32 %v10212_v24, %v6161_v13  ;;  %v6178_v46 = vmul.f32 %v10214_v25, %v6162_v30  ;;  %v6173_v62 = vmul.f32 %v10245_v56, %v6161_v13 }
0x1d4f   :  { %v6169_v48 = vmul.f32 %v10269_v9, %v6161_v13  ;;  %v6165_v61 = vmul.f32 %v10290_v35, %v6161_v13 }
0x1d50   :  { %v6155_v12 = vunpack.c.l.b16 %v6107_v7  ;;  %v6187_v4 = vpack.c.bf16 %v6178_v46, %v6177_v14 }
0x1d53   :  { %v6102_v51 = vpop.f32.mrf.mxu0 }
0x1d54   :  { %v6103_v33 = vadd.f32 %v9813_v18, %v6102_v51  ;;  %v6174_v18 = vmul.f32 %v10251_v60, %v6162_v30 }
0x1d56   :  { %v6108_v22 = vpack.c.bf16 %v6103_v33, %v6103_v33 }
0x1d58   :  { %v6156_v45 = vunpack.c.l.b16 %v6108_v22  ;;  %v9607_v22 = vld [vmem:[#allocation6 + $0xbc0] sm:$0xff] }
0x1d59   :  { %5910 = vmatpush.bf16.msra.mxu2 %v9607_v22 }
0x1d5a   :  { %v6158_v26 = vpack.c.b16 %v6156_v45, %v6155_v12  ;;  %v9604_v12 = vld [vmem:[#allocation6 + $0xba8] sm:$0xff]  ;;  %v9603_v45 = vld [vmem:[#allocation6 + $0xba0] sm:$0xff] }
0x1d5c   :  { %v6163_v2 = vunpack.c.l.bf16 %v6158_v26  ;;  %v6164_v63 = vunpack.c.h.bf16 %v6158_v26  ;;  %v9602_v26 = vld [vmem:[#allocation6 + $0xb98] sm:$0xff] }
0x1d5d   :  { %5911 = vmatpush.bf16.msra.mxu2 %v9606_v40 }
0x1d5e   :  { %v6179_v53 = vmul.f32 %v10208_v20, %v6163_v2  ;;  %v6180_v10 = vmul.f32 %v10210_v21, %v6164_v63  ;;  %v6175_v34 = vmul.f32 %v10228_v42, %v6163_v2  ;;  %v6176_v27 = vmul.f32 %v10230_v43, %v6164_v63 }
0x1d5f   :  { %v6185_v20 = vpack.c.bf16 %v6174_v18, %v6173_v62  ;;  %v6171_v21 = vmul.f32 %v10257_v1, %v6163_v2  ;;  %v6172_v24 = vmul.f32 %v10263_v5, %v6164_v63  ;;  %v6170_v42 = vmul.f32 %v10275_v15, %v6162_v30 }
0x1d60   :  { %v6188_v6 = vpack.c.bf16 %v6180_v10, %v6179_v53  ;;  %v6186_v47 = vpack.c.bf16 %v6176_v27, %v6175_v34  ;;  %v6167_v23 = vmul.f32 %v10277_v19, %v6163_v2  ;;  %v6168_v56 = vmul.f32 %v10283_v31, %v6164_v63  ;;  %v9600_v63 = vld [vmem:[#allocation6 + $0xb88] sm:$0xff] }
0x1d61   :  { %v6184_v25 = vpack.c.bf16 %v6172_v24, %v6171_v21  ;;  %v6183_v43 = vpack.c.bf16 %v6170_v42, %v6169_v48  ;;  %v6166_v1 = vmul.f32 %v10296_v41, %v6162_v30  ;;  %v9601_v30 = vld [vmem:[#allocation6 + $0xb90] sm:$0xff] }
0x1d62   :  { %6267 = vmatpush.bf16.msrb.mxu3 %v6188_v6  ;;  %v6182_v60 = vpack.c.bf16 %v6168_v56, %v6167_v23  ;;  %v9814_v23 = vld [vmem:[#allocation7 + $0x7d] ss:$0 sm:$0xff] }
0x1d63   :  { %v6181_v5 = vpack.c.bf16 %v6166_v1, %v6165_v61 }
0x1d66   :  { %6268 = vmatpush.bf16.msrb.mxu3 %v6187_v4 }
0x1d6a   :  { %6269 = vmatpush.bf16.msrb.mxu3 %v6186_v47 }
0x1d6e   :  { %6270 = vmatpush.bf16.msrb.mxu3 %v6185_v20 }
0x1d72   :  { %6271 = vmatpush.bf16.msrb.mxu3 %v6184_v25 }
0x1d76   :  { %6272 = vmatpush.bf16.msrb.mxu3 %v6183_v43 }
0x1d7a   :  { %6273 = vmatpush.bf16.msrb.mxu3 %v6182_v60 }
0x1d7e   :  { %6274 = vmatpush.bf16.msrb.mxu3 %v6181_v5 }
0x1d93   :  { %v5751_v0 = vpop.xlane.xlu1 %5750 }
0x1d94   :  { %v5758_v9 = vmul.f32 %v5751_v0, %v10334_v39  ;;  %v9815_v0 = vld [vmem:[#allocation7 + $0x7e] ss:$0 sm:$0xff] }
0x1d96   :  { %v11022_v15 = vsub.f32 %v10989_v8, %v5758_v9 }
0x1d98   :  { %v5766_v19 = vmul.f32 %v11022_v15, %v11022_v15 }
0x1d9a   :  { %5770 = vadd.xlane.f32.xlu2 %v5766_v19 }
0x1d9b   :  { %v5753_v31 = vpop.xlane.xlu2 %5752 }
0x1d9c   :  { %v5759_v38 = vmul.f32 %v5753_v31, %v10334_v39 }
0x1d9e   :  { %v11028_v35 = vsub.f32 %v10993_v29, %v5759_v38 }
0x1da0   :  { %v5767_v41 = vmul.f32 %v11028_v35, %v11028_v35 }
0x1da2   :  { %5772 = vadd.xlane.f32.xlu0 %v5767_v41 }
0x1da3   :  { %v5755_v49 = vpop.xlane.xlu0 %5754 }
0x1da4   :  { %v5760_v51 = vmul.f32 %v5755_v49, %v10334_v39 }
0x1da6   :  { %v11034_v8 = vsub.f32 %v10997_v54, %v5760_v51  ;;  %v9605_v54 = vld [vmem:[#allocation6 + $0xbb0] sm:$0xff] }
0x1da7   :  { %5912 = vmatpush.bf16.msra.mxu2 %v9605_v54 }
0x1da8   :  { %v5768_v28 = vmul.f32 %v11034_v8, %v11034_v8 }
0x1daa   :  { %5774 = vadd.xlane.f32.xlu1 %v5768_v28 }
0x1dab   :  { %v5757_v7 = vpop.xlane.xlu1 %5756  ;;  %5913 = vmatpush.bf16.msra.mxu2 %v9604_v12 }
0x1dac   :  { %v5761_v33 = vmul.f32 %v5757_v7, %v10334_v39 }
0x1dae   :  { %v11040_v29 = vsub.f32 %v11001_v17, %v5761_v33 }
0x1daf   :  { %5914 = vmatpush.bf16.msra.mxu2 %v9603_v45 }
0x1db0   :  { %v5769_v44 = vmul.f32 %v11040_v29, %v11040_v29 }
0x1db2   :  { %5776 = vadd.xlane.f32.xlu2 %v5769_v44 }
0x1db3   :  { %5915 = vmatpush.bf16.msra.mxu2 %v9602_v26 }
0x1db7   :  { %5916 = vmatpush.bf16.msra.mxu2 %v9601_v30  ;;  %v9816_v30 = vld [vmem:[#allocation7 + $0x74] ss:$0 sm:$0xff] }
0x1dbb   :  { %5917 = vmatpush.bf16.msra.mxu2 %v9600_v63 }
0x1dbf   :  { %6238 = vmatpush.bf16.msrb.mxu2 %v10881_v57 }
0x1dc3   :  { %6239 = vmatpush.bf16.msrb.mxu2 %v10885_v16 }
0x1dc7   :  { %6240 = vmatpush.bf16.msrb.mxu2 %v10888_v11 }
0x1dcb   :  { %6241 = vmatpush.bf16.msrb.mxu2 %v10892_v55 }
0x1dcf   :  { %6242 = vmatpush.bf16.msrb.mxu2 %v10895_v3 }
0x1dd3   :  { %6243 = vmatpush.bf16.msrb.mxu2 %v10900_v32 }
0x1dd7   :  { %6244 = vmatpush.bf16.msrb.mxu2 %v10904_v37 }
0x1ddb   :  { %6245 = vmatpush.bf16.msrb.mxu2 %v10911_v52 }
0x1e0d   :  { %v5771_v13 = vpop.xlane.xlu2 %5770 }
0x1e0e   :  { %v5778_v17 = vmul.f32 %v5771_v13, %v10334_v39 }
0x1e10   :  { %v5782_v2 = vadd.f32 1e-05, %v5778_v17 }
0x1e12   :  { %9966 = vrsqrt.f32 %v5782_v2  ;;  %vm5792_vm9 = vweird.f32 %v5782_v2 }
0x1e15   :  { %v5773_v53 = vpop.xlane.xlu0 %5772 }
0x1e16   :  { %v5779_v10 = vmul.f32 %v5773_v53, %v10334_v39 }
0x1e18   :  { %v9967_v6 = vpop.eup %9966  ;;  %v5783_v14 = vadd.f32 1e-05, %v5779_v10 }
0x1e19   :  { %v5787_v46 = vmul.f32 %v9967_v6, %v5782_v2  ;;  %vm5793_vm8 = vweird.f32 %v9967_v6 }
0x1e1a   :  { %9968 = vrsqrt.f32 %v5783_v14  ;;  %vm5794_vm10 = vmor %vm5792_vm9, %vm5793_vm8  ;;  %vm5802_vm12 = vweird.f32 %v5783_v14 }
0x1e1b   :  { %v5788_v4 = vmul.f32 %v9967_v6, %v5787_v46 }
0x1e1d   :  { %v5789_v34 = vmul.f32 0.5, %v5788_v4  ;;  %v5775_v27 = vpop.xlane.xlu1 %5774 }
0x1e1e   :  { %v5780_v47 = vmul.f32 %v5775_v27, %v10334_v39 }
0x1e1f   :  { %v5790_v62 = vsub.f32 1.5, %v5789_v34 }
0x1e20   :  { %v9969_v18 = vpop.eup %9968  ;;  %v5784_v20 = vadd.f32 1e-05, %v5780_v47 }
0x1e21   :  { %v5791_v21 = vmul.f32 %v9967_v6, %v5790_v62  ;;  %v5797_v57 = vmul.f32 %v9969_v18, %v5783_v14  ;;  %vm5803_vm11 = vweird.f32 %v9969_v18 }
0x1e22   :  { %9970 = vrsqrt.f32 %v5784_v20  ;;  %vm5804_vm13 = vmor %vm5802_vm12, %vm5803_vm11  ;;  %vm5812_vm15 = vweird.f32 %v5784_v20 }
0x1e23   :  { %v5798_v24 = vmul.f32 %v9969_v18, %v5797_v57  ;;  %v5795_v16 = vsel %vm5794_vm10, %v9967_v6, %v5791_v21 }
0x1e24   :  { %v5826_v56 = vmul.f32 %v5795_v16, %v11022_v15 }
0x1e25   :  { %v5799_v25 = vmul.f32 0.5, %v5798_v24  ;;  %v5777_v48 = vpop.xlane.xlu2 %5776 }
0x1e26   :  { %v5781_v11 = vmul.f32 %v5777_v48, %v10334_v39  ;;  %v5832_v3 = vmul.f32 %v9814_v23, %v5826_v56 }
0x1e27   :  { %v5800_v42 = vsub.f32 1.5, %v5799_v25 }
0x1e28   :  { %v9971_v43 = vpop.eup %9970  ;;  %v5785_v60 = vadd.f32 1e-05, %v5781_v11  ;;  %v11057_v41 = vadd.f32 %v9815_v0, %v5832_v3 }
0x1e29   :  { %v5801_v61 = vmul.f32 %v9969_v18, %v5800_v42  ;;  %v5807_v55 = vmul.f32 %v9971_v43, %v5784_v20  ;;  %vm5813_vm14 = vweird.f32 %v9971_v43 }
0x1e2a   :  { %9972 = vrsqrt.f32 %v5785_v60  ;;  %vm5814_vm0 = vmor %vm5812_vm15, %vm5813_vm14  ;;  %vm5822_vm2 = vweird.f32 %v5785_v60 }
0x1e2b   :  { %v5805_v1 = vsel %vm5804_vm13, %v9969_v18, %v5801_v61  ;;  %v5808_v5 = vmul.f32 %v9971_v43, %v5807_v55 }
0x1e2c   :  { %v5827_v9 = vmul.f32 %v5805_v1, %v11028_v35 }
0x1e2d   :  { %v5809_v19 = vmul.f32 0.5, %v5808_v5 }
0x1e2e   :  { %v5833_v31 = vmul.f32 %v9814_v23, %v5827_v9 }
0x1e2f   :  { %v5810_v38 = vsub.f32 1.5, %v5809_v19 }
0x1e30   :  { %v9973_v15 = vpop.eup %9972  ;;  %v11059_v49 = vadd.f32 %v9815_v0, %v5833_v31  ;;  %v9631_v31 = vld [vmem:[#allocation6 + $0xc80] sm:$0xff] }
0x1e31   :  { %v5811_v51 = vmul.f32 %v9971_v43, %v5810_v38  ;;  %v5817_v32 = vmul.f32 %v9973_v15, %v5785_v60  ;;  %vm5823_vm1 = vweird.f32 %v9973_v15  ;;  %6354 = vmatpush.bf16.msra.mxu0 %v9631_v31  ;;  %v9630_v38 = vld [vmem:[#allocation6 + $0xc78] sm:$0xff]  ;;  %v9636_v31 = vld [vmem:[#allocation6 + $0xca8] sm:$0xff] }
0x1e32   :  { %v5858_v28 = vpack.c.bf16 %v11059_v49, %v11057_v41  ;;  %vm5824_vm3 = vmor %vm5822_vm2, %vm5823_vm1 }
0x1e33   :  { %v5818_v35 = vmul.f32 %v9973_v15, %v5817_v32  ;;  %v5815_v37 = vsel %vm5814_vm0, %v9971_v43, %v5811_v51  ;;  %v9629_v51 = vld [vmem:[#allocation6 + $0xc70] sm:$0xff] }
0x1e34   :  { %5918 = vmatmul.bf16.vlgmr.msra.gmra.mxu2 %v5858_v28  ;;  %v5828_v44 = vmul.f32 %v5815_v37, %v11034_v8  ;;  %v9628_v28 = vld [vmem:[#allocation6 + $0xc68] sm:$0xff] }
0x1e35   :  { %v5819_v7 = vmul.f32 0.5, %v5818_v35  ;;  %6355 = vmatpush.bf16.msra.mxu0 %v9630_v38  ;;  %v9651_v38 = vld [vmem:[#allocation6 + $0xd20] sm:$0xff] }
0x1e36   :  { %v5834_v52 = vmul.f32 %v9814_v23, %v5828_v44 }
0x1e37   :  { %v5820_v33 = vsub.f32 1.5, %v5819_v7 }
0x1e38   :  { %v11066_v45 = vadd.f32 %v9815_v0, %v5834_v52 }
0x1e39   :  { %v5821_v22 = vmul.f32 %v9973_v15, %v5820_v33  ;;  %6356 = vmatpush.bf16.msra.mxu0 %v9629_v51  ;;  %v9650_v51 = vld [vmem:[#allocation6 + $0xd18] sm:$0xff] }
0x1e3b   :  { %v5825_v40 = vsel %vm5824_vm3, %v9973_v15, %v5821_v22  ;;  %v9627_v22 = vld [vmem:[#allocation6 + $0xc60] sm:$0xff] }
0x1e3c   :  { %v5829_v54 = vmul.f32 %v5825_v40, %v11040_v29  ;;  %v9626_v40 = vld [vmem:[#allocation6 + $0xc58] sm:$0xff] }
0x1e3d   :  { %6357 = vmatpush.bf16.msra.mxu0 %v9628_v28 }
0x1e3e   :  { %v5835_v12 = vmul.f32 %v9814_v23, %v5829_v54 }
0x1e40   :  { %v11068_v26 = vadd.f32 %v9815_v0, %v5835_v12 }
0x1e41   :  { %6358 = vmatpush.bf16.msra.mxu0 %v9627_v22  ;;  %v9632_v22 = vld [vmem:[#allocation6 + $0xc88] sm:$0xff] }
0x1e42   :  { %v5859_v13 = vpack.c.bf16 %v11068_v26, %v11066_v45 }
0x1e44   :  { %5923 = vmatmul.bf16.gmra.mxu2 %v5859_v13 }
0x1e45   :  { %6359 = vmatpush.bf16.msra.mxu0 %v9626_v40 }
0x1eb7   :  { %v5919_v17 = vpop.f32.mrf.mxu2 }
0x1eb8   :  { %v5920_v8 = vadd.f32 %v9816_v30, %v5919_v17 }
0x1ebf   :  { %v5921_v2 = vpop.f32.mrf.mxu2 }
0x1ec0   :  { %v5922_v63 = vadd.f32 %v9816_v30, %v5921_v2  ;;  %v9625_v2 = vld [vmem:[#allocation6 + $0xc50] sm:$0xff] }
0x1ec1   :  { %6360 = vmatpush.bf16.msra.mxu0 %v9625_v2 }
0x1ec2   :  { %v5929_v53 = vpack.c.bf16 %v5922_v63, %v5920_v8  ;;  %v9624_v8 = vld [vmem:[#allocation6 + $0xc48] sm:$0xff] }
0x1ec4   :  { %6197 = vmatmul.bf16.vlgmr.msra.gmra.mxu1 %v5929_v53 }
0x1ec5   :  { %6361 = vmatpush.bf16.msra.mxu0 %v9624_v8  ;;  %v9669_v8 = vld [vmem:[#allocation6 + $0xdb0] sm:$0xff] }
0x1ec7   :  { %v5924_v10 = vpop.f32.mrf.mxu2 }
0x1ec8   :  { %v5925_v29 = vadd.f32 %v9816_v30, %v5924_v10 }
0x1ecf   :  { %v5926_v6 = vpop.f32.mrf.mxu2 }
0x1ed0   :  { %v5927_v14 = vadd.f32 %v9816_v30, %v5926_v6 }
0x1ed2   :  { %v5930_v46 = vpack.c.bf16 %v5927_v14, %v5925_v29 }
0x1ed4   :  { %6202 = vmatmul.bf16.gmra.mxu1 %v5930_v46  ;;  %v9817_v46 = vld [vmem:[#allocation7 + $0x77] ss:$0 sm:$0xff] }
0x1f41   :  { %v6198_v4 = vpop.f32.mrf.mxu1 }
0x1f42   :  { %v6208_v34 = vmul.f32 0.17677669, %v6198_v4 }
0x1f44   :  { %v6212_v27 = vadd.f32 %v10956_v50, %v6208_v34 }
0x1f46   :  { %6216 = vmax.xlane.f32.xlu0 %v6212_v27 }
0x1f49   :  { %v6200_v47 = vpop.f32.mrf.mxu1 }
0x1f4a   :  { %v6209_v62 = vmul.f32 0.17677669, %v6200_v47 }
0x1f4c   :  { %v6213_v18 = vadd.f32 %v10959_v59, %v6209_v62 }
0x1f4e   :  { %6218 = vmax.xlane.f32.xlu1 %v6213_v18 }
0x1f51   :  { %v6203_v20 = vpop.f32.mrf.mxu1 }
0x1f52   :  { %v6210_v21 = vmul.f32 0.17677669, %v6203_v20 }
0x1f54   :  { %v6214_v57 = vadd.f32 %v10962_v58, %v6210_v21 }
0x1f56   :  { %6220 = vmax.xlane.f32.xlu2 %v6214_v57 }
0x1f59   :  { %v6205_v24 = vpop.f32.mrf.mxu1 }
0x1f5a   :  { %v6211_v16 = vmul.f32 0.17677669, %v6205_v24 }
0x1f5c   :  { %v6215_v25 = vadd.f32 %v10965_v36, %v6211_v16 }
0x1f5e   :  { %6222 = vmax.xlane.f32.xlu0 %v6215_v25 }
0x1fb9   :  { %v6217_v48 = vpop.xlane.xlu0 %6216 }
0x1fba   :  { %v6224_v11 = vsub.f32 %v6212_v27, %v6217_v48 }
0x1fbc   :  { %v6228_v42 = vmul.f32 1.442695, %v6224_v11 }
0x1fbe   :  { %9974 = vpow2.f32 %v6228_v42 }
0x1fc1   :  { %v6219_v50 = vpop.xlane.xlu1 %6218 }
0x1fc2   :  { %v6225_v43 = vsub.f32 %v6213_v18, %v6219_v50 }
0x1fc4   :  { %v6230_v23 = vmul.f32 1.442695, %v6225_v43  ;;  %v9975_v56 = vpop.eup %9974 }
0x1fc6   :  { %9976 = vpow2.f32 %v6230_v23 }
0x1fc9   :  { %v6221_v59 = vpop.xlane.xlu2 %6220 }
0x1fca   :  { %v6226_v55 = vsub.f32 %v6214_v57, %v6221_v59 }
0x1fcc   :  { %v9977_v60 = vpop.eup %9976  ;;  %v6232_v58 = vmul.f32 1.442695, %v6226_v55 }
0x1fcd   :  { %v6236_v61 = vpack.c.bf16 %v9977_v60, %v9975_v56 }
0x1fce   :  { %9978 = vpow2.f32 %v6232_v58 }
0x1fcf   :  { %6246 = vmatmul.bf16.vlgmr.msrb.gmra.mxu2 %v6236_v61 }
0x1fd1   :  { %v6223_v1 = vpop.xlane.xlu0 %6222 }
0x1fd2   :  { %v6227_v5 = vsub.f32 %v6215_v25, %v6223_v1  ;;  %v9655_v1 = vld [vmem:[#allocation6 + $0xd40] sm:$0xff] }
0x1fd3   :  { %6644 = vmatpush.bf16.msra.mxu3 %v9655_v1 }
0x1fd4   :  { %v6234_v0 = vmul.f32 1.442695, %v6227_v5  ;;  %v9979_v36 = vpop.eup %9978  ;;  %v9639_v5 = vld [vmem:[#allocation6 + $0xcc0] sm:$0xff] }
0x1fd5   :  { %6537 = vmatpush.bf16.msra.mxu2 %v9639_v5 }
0x1fd6   :  { %9980 = vpow2.f32 %v6234_v0  ;;  %v9654_v0 = vld [vmem:[#allocation6 + $0xd38] sm:$0xff] }
0x1fd7   :  { %6645 = vmatpush.bf16.msra.mxu3 %v9654_v0 }
0x1fdc   :  { %v9981_v3 = vpop.eup %9980 }
0x1fdd   :  { %v6237_v9 = vpack.c.bf16 %v9981_v3, %v9979_v36 }
0x1fdf   :  { %6251 = vmatmul.bf16.gmra.mxu2 %v6237_v9  ;;  %v9637_v9 = vld [vmem:[#allocation6 + $0xcb0] sm:$0xff] }
0x2052   :  { %v6247_v19 = vpop.f32.mrf.mxu2 }
0x2053   :  { %9982 = vrcp.f32 %v6247_v19  ;;  %v9652_v19 = vld [vmem:[#allocation6 + $0xd28] sm:$0xff] }
0x2059   :  { %v9983_v32 = vpop.eup %9982 }
0x205a   :  { %v6249_v15 = vpop.f32.mrf.mxu2  ;;  %v6261_v37 = vmul.f32 %v9983_v32, %v9975_v56  ;;  %v9634_v32 = vld [vmem:[#allocation6 + $0xc98] sm:$0xff] }
0x205b   :  { %9984 = vrcp.f32 %v6249_v15  ;;  %v9635_v15 = vld [vmem:[#allocation6 + $0xca0] sm:$0xff] }
0x2061   :  { %v9985_v35 = vpop.eup %9984 }
0x2062   :  { %v6262_v7 = vmul.f32 %v9985_v35, %v9977_v60  ;;  %v6252_v33 = vpop.f32.mrf.mxu2 }
0x2063   :  { %9986 = vrcp.f32 %v6252_v33 }
0x2064   :  { %v6265_v44 = vpack.c.bf16 %v6262_v7, %v6261_v37  ;;  %v9649_v37 = vld [vmem:[#allocation6 + $0xd10] sm:$0xff] }
0x2065   :  { %v9633_v7 = vld [vmem:[#allocation6 + $0xc90] sm:$0xff] }
0x2066   :  { %6275 = vmatmul.bf16.vlgmr.msrb.gmra.mxu3 %v6265_v44  ;;  %v9648_v44 = vld [vmem:[#allocation6 + $0xd08] sm:$0xff] }
0x2069   :  { %v9987_v52 = vpop.eup %9986 }
0x206a   :  { %v6254_v54 = vpop.f32.mrf.mxu2  ;;  %v6263_v13 = vmul.f32 %v9987_v52, %v9979_v36  ;;  %v9638_v36 = vld [vmem:[#allocation6 + $0xcb8] sm:$0xff]  ;;  %v9671_v52 = vld [vmem:[#allocation6 + $0xdc0] sm:$0xff] }
0x206b   :  { %9988 = vrcp.f32 %v6254_v54  ;;  %6538 = vmatpush.bf16.msra.mxu2 %v9638_v36 }
0x206f   :  { %6539 = vmatpush.bf16.msra.mxu2 %v9637_v9  ;;  %v9664_v9 = vld [vmem:[#allocation6 + $0xd88] sm:$0xff] }
0x2071   :  { %v9989_v12 = vpop.eup %9988 }
0x2072   :  { %v6264_v17 = vmul.f32 %v9989_v12, %v9981_v3  ;;  %v9653_v3 = vld [vmem:[#allocation6 + $0xd30] sm:$0xff] }
0x2073   :  { %6646 = vmatpush.bf16.msra.mxu3 %v9653_v3  ;;  %6540 = vmatpush.bf16.msra.mxu2 %v9636_v31 }
0x2074   :  { %v6266_v30 = vpack.c.bf16 %v6264_v17, %v6263_v13 }
0x2076   :  { %6280 = vmatmul.bf16.gmra.mxu3 %v6266_v30  ;;  %v9670_v30 = vld [vmem:[#allocation6 + $0xdb8] sm:$0xff] }
0x2077   :  { %6647 = vmatpush.bf16.msra.mxu3 %v9652_v19  ;;  %6541 = vmatpush.bf16.msra.mxu2 %v9635_v15 }
0x207b   :  { %6648 = vmatpush.bf16.msra.mxu3 %v9651_v38  ;;  %6542 = vmatpush.bf16.msra.mxu2 %v9634_v32 }
0x207f   :  { %6649 = vmatpush.bf16.msra.mxu3 %v9650_v51  ;;  %6543 = vmatpush.bf16.msra.mxu2 %v9633_v7 }
0x2083   :  { %6650 = vmatpush.bf16.msra.mxu3 %v9649_v37  ;;  %6544 = vmatpush.bf16.msra.mxu2 %v9632_v22 }
0x2087   :  { %6651 = vmatpush.bf16.msra.mxu3 %v9648_v44  ;;  %6885 = vmatpush.bf16.msrb.mxu2 %v9671_v52  ;;  %v9661_v52 = vld [vmem:[#allocation6 + $0xd70] sm:$0xff] }
0x208b   :  { %6886 = vmatpush.bf16.msrb.mxu2 %v9670_v30  ;;  %v9659_v30 = vld [vmem:[#allocation6 + $0xd60] sm:$0xff] }
0x208f   :  { %6887 = vmatpush.bf16.msrb.mxu2 %v9669_v8  ;;  %v9658_v8 = vld [vmem:[#allocation6 + $0xd58] sm:$0xff] }
0x20e9   :  { %v6276_v63 = vpop.f32.mrf.mxu3 }
0x20f1   :  { %v6278_v53 = vpop.f32.mrf.mxu3 }
0x20f2   :  { %v6302_v10 = vpack.c.bf16 %v6278_v53, %v6276_v63 }
0x20f4   :  { %6362 = vmatmul.bf16.vlgmr.msra.gmra.mxu0 %v6302_v10 }
0x20f9   :  { %v6281_v6 = vpop.f32.mrf.mxu3 }
0x2101   :  { %v6283_v29 = vpop.f32.mrf.mxu3 }
0x2102   :  { %v6303_v14 = vpack.c.bf16 %v6283_v29, %v6281_v6 }
0x2104   :  { %6367 = vmatmul.bf16.gmra.mxu0 %v6303_v14 }
0x2171   :  { %v6363_v4 = vpop.f32.mrf.mxu0 }
0x2172   :  { %v6364_v34 = vadd.f32 %v9817_v46, %v6363_v4 }
0x2174   :  { %v6373_v27 = vadd.f32 %v6364_v34, %v11057_v41 }
0x2176   :  { %6377 = vadd.xlane.f32.xlu1 %v6373_v27 }
0x2179   :  { %v6365_v47 = vpop.f32.mrf.mxu0 }
0x217a   :  { %v6366_v62 = vadd.f32 %v9817_v46, %v6365_v47  ;;  %v9667_v47 = vld [vmem:[#allocation6 + $0xda0] sm:$0xff] }
0x217c   :  { %v6374_v18 = vadd.f32 %v6366_v62, %v11059_v49 }
0x217e   :  { %6379 = vadd.xlane.f32.xlu2 %v6374_v18 }
0x2181   :  { %v6368_v20 = vpop.f32.mrf.mxu0 }
0x2182   :  { %v6369_v21 = vadd.f32 %v9817_v46, %v6368_v20 }
0x2184   :  { %v6375_v57 = vadd.f32 %v6369_v21, %v11066_v45 }
0x2186   :  { %6381 = vadd.xlane.f32.xlu0 %v6375_v57 }
0x2189   :  { %v6370_v24 = vpop.f32.mrf.mxu0 }
0x218a   :  { %v6371_v16 = vadd.f32 %v9817_v46, %v6370_v24  ;;  %v9668_v46 = vld [vmem:[#allocation6 + $0xda8] sm:$0xff] }
0x218b   :  { %6888 = vmatpush.bf16.msrb.mxu2 %v9668_v46  ;;  %v9679_v46 = vld [vmem:[#allocation6 + $0xe00] sm:$0xff] }
0x218c   :  { %v6376_v25 = vadd.f32 %v6371_v16, %v11068_v26  ;;  %v9818_v16 = vld [vmem:[#allocation7 + $0x7f] ss:$0 sm:$0xff]  ;;  %6974 = vmatpush.bf16.msrb.mxu3 %v9679_v46 }
0x218e   :  { %6383 = vadd.xlane.f32.xlu1 %v6376_v25 }
0x218f   :  { %6889 = vmatpush.bf16.msrb.mxu2 %v9667_v47  ;;  %v9677_v47 = vld [vmem:[#allocation6 + $0xdf0] sm:$0xff] }
0x21e9   :  { %v6378_v48 = vpop.xlane.xlu1 %6377 }
0x21ea   :  { %v6385_v11 = vmul.f32 %v6378_v48, %v10334_v39 }
0x21ec   :  { %v11081_v41 = vsub.f32 %v6373_v27, %v6385_v11  ;;  %v9666_v11 = vld [vmem:[#allocation6 + $0xd98] sm:$0xff] }
0x21ed   :  { %6890 = vmatpush.bf16.msrb.mxu2 %v9666_v11  ;;  %v9674_v11 = vld [vmem:[#allocation6 + $0xdd8] sm:$0xff] }
0x21ee   :  { %v6393_v42 = vmul.f32 %v11081_v41, %v11081_v41 }
0x21f0   :  { %6397 = vadd.xlane.f32.xlu2 %v6393_v42 }
0x21f1   :  { %v6380_v49 = vpop.xlane.xlu2 %6379 }
0x21f2   :  { %v6386_v50 = vmul.f32 %v6380_v49, %v10334_v39 }
0x21f4   :  { %v11086_v43 = vsub.f32 %v6374_v18, %v6386_v50 }
0x21f6   :  { %v6394_v45 = vmul.f32 %v11086_v43, %v11086_v43 }
0x21f8   :  { %6399 = vadd.xlane.f32.xlu0 %v6394_v45 }
0x21f9   :  { %v6382_v26 = vpop.xlane.xlu0 %6381 }
0x21fa   :  { %v6387_v23 = vmul.f32 %v6382_v26, %v10334_v39  ;;  %v9819_v26 = vld [vmem:[#allocation7 + $0x80] ss:$0 sm:$0xff] }
0x21fc   :  { %v11091_v59 = vsub.f32 %v6375_v57, %v6387_v23 }
0x21fe   :  { %v6395_v56 = vmul.f32 %v11091_v59, %v11091_v59 }
0x2200   :  { %6401 = vadd.xlane.f32.xlu1 %v6395_v56 }
0x2201   :  { %v6384_v60 = vpop.xlane.xlu1 %6383 }
0x2202   :  { %v6388_v61 = vmul.f32 %v6384_v60, %v10334_v39  ;;  %v9665_v60 = vld [vmem:[#allocation6 + $0xd90] sm:$0xff] }
0x2203   :  { %6891 = vmatpush.bf16.msrb.mxu2 %v9665_v60  ;;  %v9673_v60 = vld [vmem:[#allocation6 + $0xdd0] sm:$0xff] }
0x2204   :  { %v11096_v55 = vsub.f32 %v6376_v25, %v6388_v61 }
0x2206   :  { %v6396_v58 = vmul.f32 %v11096_v55, %v11096_v55 }
0x2207   :  { %6892 = vmatpush.bf16.msrb.mxu2 %v9664_v9  ;;  %v9680_v9 = vld [vmem:[#allocation6 + $0xe08] sm:$0xff] }
0x2208   :  { %6403 = vadd.xlane.f32.xlu2 %v6396_v58 }
0x2263   :  { %v6398_v28 = vpop.xlane.xlu2 %6397 }
0x2264   :  { %v6405_v35 = vmul.f32 %v6398_v28, %v10334_v39 }
0x2266   :  { %v6409_v33 = vadd.f32 1e-05, %v6405_v35 }
0x2268   :  { %9990 = vrsqrt.f32 %v6409_v33  ;;  %vm6419_vm5 = vweird.f32 %v6409_v33 }
0x226b   :  { %v6400_v40 = vpop.xlane.xlu0 %6399 }
0x226c   :  { %v6406_v54 = vmul.f32 %v6400_v40, %v10334_v39  ;;  %v9647_v40 = vld [vmem:[#allocation6 + $0xd00] sm:$0xff] }
0x226d   :  { %6800 = vmatpush.bf16.msrb.mxu1 %v9647_v40 }
0x226e   :  { %v9991_v12 = vpop.eup %9990  ;;  %v6410_v13 = vadd.f32 1e-05, %v6406_v54  ;;  %v9662_v54 = vld [vmem:[#allocation6 + $0xd78] sm:$0xff] }
0x226f   :  { %v6414_v17 = vmul.f32 %v9991_v12, %v6409_v33  ;;  %vm6420_vm4 = vweird.f32 %v9991_v12 }
0x2270   :  { %9992 = vrsqrt.f32 %v6410_v13  ;;  %vm6421_vm6 = vmor %vm6419_vm5, %vm6420_vm4  ;;  %vm6429_vm8 = vweird.f32 %v6410_v13 }
0x2271   :  { %v6415_v2 = vmul.f32 %v9991_v12, %v6414_v17  ;;  %v9644_v17 = vld [vmem:[#allocation6 + $0xce8] sm:$0xff] }
0x2273   :  { %v6416_v63 = vmul.f32 0.5, %v6415_v2  ;;  %v6402_v53 = vpop.xlane.xlu1 %6401  ;;  %v9643_v2 = vld [vmem:[#allocation6 + $0xce0] sm:$0xff] }
0x2274   :  { %v6407_v10 = vmul.f32 %v6402_v53, %v10334_v39  ;;  %v9657_v53 = vld [vmem:[#allocation6 + $0xd50] sm:$0xff] }
0x2275   :  { %v6417_v6 = vsub.f32 1.5, %v6416_v63  ;;  %v9642_v63 = vld [vmem:[#allocation6 + $0xcd8] sm:$0xff] }
0x2276   :  { %v9993_v29 = vpop.eup %9992  ;;  %v6411_v14 = vadd.f32 1e-05, %v6407_v10  ;;  %v9641_v10 = vld [vmem:[#allocation6 + $0xcd0] sm:$0xff] }
0x2277   :  { %v6418_v4 = vmul.f32 %v9991_v12, %v6417_v6  ;;  %v6424_v34 = vmul.f32 %v9993_v29, %v6410_v13  ;;  %vm6430_vm7 = vweird.f32 %v9993_v29  ;;  %v9660_v13 = vld [vmem:[#allocation6 + $0xd68] sm:$0xff] }
0x2278   :  { %9994 = vrsqrt.f32 %v6411_v14  ;;  %vm6431_vm9 = vmor %vm6429_vm8, %vm6430_vm7  ;;  %vm6439_vm11 = vweird.f32 %v6411_v14  ;;  %v9656_v6 = vld [vmem:[#allocation6 + $0xd48] sm:$0xff] }
0x2279   :  { %v6425_v27 = vmul.f32 %v9993_v29, %v6424_v34  ;;  %v6422_v62 = vsel %vm6421_vm6, %v9991_v12, %v6418_v4  ;;  %v9645_v12 = vld [vmem:[#allocation6 + $0xcf0] sm:$0xff]  ;;  %v9686_v4 = vld [vmem:[#allocation6 + $0xe38] sm:$0xff] }
0x227a   :  { %v6453_v25 = vmul.f32 %v6422_v62, %v11081_v41  ;;  %v9678_v34 = vld [vmem:[#allocation6 + $0xdf8] sm:$0xff]  ;;  %v9684_v62 = vld [vmem:[#allocation6 + $0xe28] sm:$0xff] }
0x227b   :  { %v6426_v18 = vmul.f32 0.5, %v6425_v27  ;;  %v6404_v20 = vpop.xlane.xlu2 %6403  ;;  %v9685_v27 = vld [vmem:[#allocation6 + $0xe30] sm:$0xff]  ;;  %6975 = vmatpush.bf16.msrb.mxu3 %v9678_v34 }
0x227c   :  { %v6408_v21 = vmul.f32 %v6404_v20, %v10334_v39  ;;  %v6459_v23 = vmul.f32 %v9818_v16, %v6453_v25  ;;  %v9683_v20 = vld [vmem:[#allocation6 + $0xe20] sm:$0xff] }
0x227d   :  { %v6427_v57 = vsub.f32 1.5, %v6426_v18  ;;  %v9676_v18 = vld [vmem:[#allocation6 + $0xde8] sm:$0xff]  ;;  %v9821_v25 = vld [vmem:[#allocation7 + $0x79] ss:$0 sm:$0xff] }
0x227e   :  { %v9995_v24 = vpop.eup %9994  ;;  %v6412_v48 = vadd.f32 1e-05, %v6408_v21  ;;  %v11106_v5 = vadd.f32 %v9819_v26, %v6459_v23 }
0x227f   :  { %v6428_v42 = vmul.f32 %v9993_v29, %v6427_v57  ;;  %v6434_v49 = vmul.f32 %v9995_v24, %v6411_v14  ;;  %vm6440_vm10 = vweird.f32 %v9995_v24  ;;  %v9687_v14 = vld [vmem:[#allocation6 + $0xe40] sm:$0xff]  ;;  %6976 = vmatpush.bf16.msrb.mxu3 %v9677_v47  ;;  %v9694_v47 = vld [vmem:[#allocation6 + $0xe78] sm:$0xff] }
0x2280   :  { %9996 = vrsqrt.f32 %v6412_v48  ;;  %vm6441_vm12 = vmor %vm6439_vm11, %vm6440_vm10  ;;  %vm6449_vm14 = vweird.f32 %v6412_v48 }
0x2281   :  { %v6432_v50 = vsel %vm6431_vm9, %v9993_v29, %v6428_v42  ;;  %v6435_v45 = vmul.f32 %v9995_v24, %v6434_v49  ;;  %v9640_v29 = vld [vmem:[#allocation6 + $0xcc8] sm:$0xff] }
0x2282   :  { %v6454_v56 = vmul.f32 %v6432_v50, %v11086_v43  ;;  %v9681_v50 = vld [vmem:[#allocation6 + $0xe10] sm:$0xff] }
0x2283   :  { %v6436_v61 = vmul.f32 0.5, %v6435_v45  ;;  %6977 = vmatpush.bf16.msrb.mxu3 %v9676_v18  ;;  %v9692_v18 = vld [vmem:[#allocation6 + $0xe68] sm:$0xff] }
0x2284   :  { %v6460_v58 = vmul.f32 %v9818_v16, %v6454_v56 }
0x2285   :  { %v6437_v1 = vsub.f32 1.5, %v6436_v61 }
0x2286   :  { %v9997_v41 = vpop.eup %9996  ;;  %v11108_v0 = vadd.f32 %v9819_v26, %v6460_v58 }
0x2287   :  { %v6438_v36 = vmul.f32 %v9995_v24, %v6437_v1  ;;  %v6444_v3 = vmul.f32 %v9997_v41, %v6412_v48  ;;  %vm6450_vm13 = vweird.f32 %v9997_v41  ;;  %v9682_v48 = vld [vmem:[#allocation6 + $0xe18] sm:$0xff] }
0x2288   :  { %v11112_v19 = vpack.c.bf16 %v11108_v0, %v11106_v5  ;;  %vm6451_vm15 = vmor %vm6449_vm14, %vm6450_vm13 }
0x2289   :  { %v6445_v43 = vmul.f32 %v9997_v41, %v6444_v3  ;;  %v6442_v31 = vsel %vm6441_vm12, %v9995_v24, %v6438_v36  ;;  %v9675_v24 = vld [vmem:[#allocation6 + $0xde0] sm:$0xff] }
0x228a   :  { %6545 = vmatmul.bf16.vlgmr.msra.gmra.mxu2 %v11112_v19  ;;  %6652 = vmatmul.bf16.vlgmr.msra.gmra.mxu3 %v11112_v19  ;;  %v6455_v51 = vmul.f32 %v6442_v31, %v11091_v59  ;;  %v9663_v59 = vld [vmem:[#allocation6 + $0xd80] sm:$0xff] }
0x228b   :  { %v6446_v38 = vmul.f32 0.5, %v6445_v43  ;;  %6733 = vmatpush.bf16.msrb.mxu0 %v9663_v59  ;;  %6978 = vmatpush.bf16.msrb.mxu3 %v9675_v24  ;;  %v9672_v43 = vld [vmem:[#allocation6 + $0xdc8] sm:$0xff] }
0x228c   :  { %v6461_v37 = vmul.f32 %v9818_v16, %v6455_v51 }
0x228d   :  { %v6447_v15 = vsub.f32 1.5, %v6446_v38 }
0x228e   :  { %v11118_v33 = vadd.f32 %v9819_v26, %v6461_v37 }
0x228f   :  { %v6448_v32 = vmul.f32 %v9997_v41, %v6447_v15  ;;  %6734 = vmatpush.bf16.msrb.mxu0 %v9662_v54  ;;  %6979 = vmatpush.bf16.msrb.mxu3 %v9674_v11  ;;  %v9823_v11 = vld [vmem:[#allocation7 + $0x7b] ss:$0 sm:$0xff] }
0x2291   :  { %v6452_v28 = vsel %vm6451_vm15, %v9997_v41, %v6448_v32 }
0x2292   :  { %v6456_v35 = vmul.f32 %v6452_v28, %v11096_v55  ;;  %v9646_v55 = vld [vmem:[#allocation6 + $0xcf8] sm:$0xff] }
0x2293   :  { %6801 = vmatpush.bf16.msrb.mxu1 %v9646_v55  ;;  %6735 = vmatpush.bf16.msrb.mxu0 %v9661_v52 }
0x2294   :  { %v6462_v7 = vmul.f32 %v9818_v16, %v6456_v35  ;;  %v9820_v16 = vld [vmem:[#allocation7 + $0x78] ss:$0 sm:$0xff]  ;;  %6980 = vmatpush.bf16.msrb.mxu3 %v9673_v60 }
0x2296   :  { %v11120_v44 = vadd.f32 %v9819_v26, %v6462_v7 }
0x2297   :  { %6802 = vmatpush.bf16.msrb.mxu1 %v9645_v12  ;;  %6736 = vmatpush.bf16.msrb.mxu0 %v9660_v13  ;;  %v9822_v13 = vld [vmem:[#allocation7 + $0x7a] ss:$0 sm:$0xff] }
0x2298   :  { %v11124_v22 = vpack.c.bf16 %v11120_v44, %v11118_v33  ;;  %6981 = vmatpush.bf16.msrb.mxu3 %v9672_v43 }
0x229a   :  { %6550 = vmatmul.bf16.gmra.mxu2 %v11124_v22  ;;  %6657 = vmatmul.bf16.gmra.mxu3 %v11124_v22 }
0x229b   :  { %6803 = vmatpush.bf16.msrb.mxu1 %v9644_v17  ;;  %6737 = vmatpush.bf16.msrb.mxu0 %v9659_v30 }
0x229f   :  { %6804 = vmatpush.bf16.msrb.mxu1 %v9643_v2  ;;  %6738 = vmatpush.bf16.msrb.mxu0 %v9658_v8 }
0x22a3   :  { %6805 = vmatpush.bf16.msrb.mxu1 %v9642_v63  ;;  %6739 = vmatpush.bf16.msrb.mxu0 %v9657_v53 }
0x22a7   :  { %6806 = vmatpush.bf16.msrb.mxu1 %v9641_v10  ;;  %6740 = vmatpush.bf16.msrb.mxu0 %v9656_v6 }
0x22aa   :  { %6893 = vmatmul.bf16.vlgmr.msrb.gmra.mxu2 %v11112_v19 }
0x22ab   :  { %6807 = vmatpush.bf16.msrb.mxu1 %v9640_v29  ;;  %7063 = vmatpush.bf16.msra.mxu0 %v9687_v14 }
0x22af   :  { %7064 = vmatpush.bf16.msra.mxu0 %v9686_v4 }
0x22b3   :  { %7065 = vmatpush.bf16.msra.mxu0 %v9685_v27  ;;  %v9695_v27 = vld [vmem:[#allocation6 + $0xe80] sm:$0xff] }
0x22b4   :  { %7152 = vmatpush.bf16.msra.mxu1 %v9695_v27 }
0x22b7   :  { %7066 = vmatpush.bf16.msra.mxu0 %v9684_v62  ;;  %v9693_v62 = vld [vmem:[#allocation6 + $0xe70] sm:$0xff] }
0x22b8   :  { %7153 = vmatpush.bf16.msra.mxu1 %v9694_v47 }
0x22ba   :  { %6898 = vmatmul.bf16.gmra.mxu2 %v11124_v22 }
0x22bb   :  { %7067 = vmatpush.bf16.msra.mxu0 %v9683_v20  ;;  %v9691_v20 = vld [vmem:[#allocation6 + $0xe60] sm:$0xff] }
0x22bc   :  { %7154 = vmatpush.bf16.msra.mxu1 %v9693_v62 }
0x22bf   :  { %7068 = vmatpush.bf16.msra.mxu0 %v9682_v48 }
0x22c0   :  { %7155 = vmatpush.bf16.msra.mxu1 %v9692_v18 }
0x22c3   :  { %7069 = vmatpush.bf16.msra.mxu0 %v9681_v50 }
0x22c4   :  { %7156 = vmatpush.bf16.msra.mxu1 %v9691_v20 }
0x22c7   :  { %7070 = vmatpush.bf16.msra.mxu0 %v9680_v9 }
0x230d   :  { %v6546_v21 = vpop.f32.mrf.mxu2  ;;  %v6653_v57 = vpop.f32.mrf.mxu3 }
0x230e   :  { %v6547_v42 = vadd.f32 %v9820_v16, %v6546_v21  ;;  %v6654_v49 = vadd.f32 %v9821_v25, %v6653_v57  ;;  %v9690_v21 = vld [vmem:[#allocation6 + $0xe58] sm:$0xff]  ;;  %v9689_v57 = vld [vmem:[#allocation6 + $0xe50] sm:$0xff] }
0x230f   :  { %7157 = vmatpush.bf16.msra.mxu1 %v9690_v21 }
0x2310   :  { %v6556_v61 = vmax.f32 %v6547_v42, 0.0  ;;  %v6663_v58 = vmax.f32 %v6654_v49, 0.0 }
0x2313   :  { %7158 = vmatpush.bf16.msra.mxu1 %v9689_v57 }
0x2315   :  { %v6548_v45 = vpop.f32.mrf.mxu2  ;;  %v6655_v26 = vpop.f32.mrf.mxu3 }
0x2316   :  { %v6549_v23 = vadd.f32 %v9820_v16, %v6548_v45  ;;  %v6656_v56 = vadd.f32 %v9821_v25, %v6655_v26 }
0x2318   :  { %v6557_v1 = vmax.f32 %v6549_v23, 0.0  ;;  %v6664_v41 = vmax.f32 %v6656_v56, 0.0 }
0x231a   :  { %v6576_v36 = vpack.c.bf16 %v6557_v1, %v6556_v61  ;;  %v6683_v3 = vpack.c.bf16 %v6664_v41, %v6663_v58 }
0x231c   :  { %6741 = vmatmul.bf16.vlgmr.msrb.gmra.mxu0 %v6683_v3  ;;  %6808 = vmatmul.bf16.vlgmr.msrb.gmra.mxu1 %v6576_v36 }
0x231d   :  { %v6551_v31 = vpop.f32.mrf.mxu2  ;;  %v6658_v38 = vpop.f32.mrf.mxu3 }
0x231e   :  { %v6552_v15 = vadd.f32 %v9820_v16, %v6551_v31  ;;  %v6659_v51 = vadd.f32 %v9821_v25, %v6658_v38 }
0x2320   :  { %v6558_v7 = vmax.f32 %v6552_v15, 0.0  ;;  %v6665_v59 = vmax.f32 %v6659_v51, 0.0 }
0x2325   :  { %v6553_v32 = vpop.f32.mrf.mxu2  ;;  %v6660_v28 = vpop.f32.mrf.mxu3 }
0x2326   :  { %v6554_v35 = vadd.f32 %v9820_v16, %v6553_v32  ;;  %v6661_v37 = vadd.f32 %v9821_v25, %v6660_v28  ;;  %v9688_v16 = vld [vmem:[#allocation6 + $0xe48] sm:$0xff] }
0x2327   :  { %7159 = vmatpush.bf16.msra.mxu1 %v9688_v16  ;;  %v9824_v32 = vld [vmem:[#allocation7 + $0x7c] ss:$0 sm:$0xff] }
0x2328   :  { %v6559_v40 = vmax.f32 %v6554_v35, 0.0  ;;  %v6666_v54 = vmax.f32 %v6661_v37, 0.0 }
0x232a   :  { %v6577_v55 = vpack.c.bf16 %v6559_v40, %v6558_v7  ;;  %v6684_v52 = vpack.c.bf16 %v6666_v54, %v6665_v59 }
0x232c   :  { %6746 = vmatmul.bf16.gmra.mxu0 %v6684_v52  ;;  %6813 = vmatmul.bf16.gmra.mxu1 %v6577_v55 }
0x232d   :  { %v6894_v12 = vpop.f32.mrf.mxu2 }
0x232e   :  { %v6895_v17 = vadd.f32 %v9822_v13, %v6894_v12 }
0x2330   :  { %v6904_v8 = vmax.f32 %v6895_v17, 0.0 }
0x2335   :  { %v6896_v30 = vpop.f32.mrf.mxu2 }
0x2336   :  { %v6897_v2 = vadd.f32 %v9822_v13, %v6896_v30 }
0x2338   :  { %v6905_v63 = vmax.f32 %v6897_v2, 0.0 }
0x233a   :  { %v6924_v53 = vpack.c.bf16 %v6905_v63, %v6904_v8 }
0x233c   :  { %6982 = vmatmul.bf16.vlgmr.msrb.gmra.mxu3 %v6924_v53  ;;  %7071 = vmatmul.bf16.vlgmr.msra.gmra.mxu0 %v11112_v19 }
0x233d   :  { %v6899_v10 = vpop.f32.mrf.mxu2 }
0x233e   :  { %v6900_v6 = vadd.f32 %v9822_v13, %v6899_v10 }
0x2340   :  { %v6906_v46 = vmax.f32 %v6900_v6, 0.0 }
0x2345   :  { %v6901_v29 = vpop.f32.mrf.mxu2 }
0x2346   :  { %v6902_v14 = vadd.f32 %v9822_v13, %v6901_v29 }
0x2348   :  { %v6907_v4 = vmax.f32 %v6902_v14, 0.0 }
0x234a   :  { %v6925_v34 = vpack.c.bf16 %v6907_v4, %v6906_v46 }
0x234c   :  { %6987 = vmatmul.bf16.gmra.mxu3 %v6925_v34  ;;  %7076 = vmatmul.bf16.gmra.mxu0 %v11124_v22 }
0x2399   :  { %v6742_v19 = vpop.f32.mrf.mxu0  ;;  %v6809_v3 = vpop.f32.mrf.mxu1 }
0x239a   :  { %v6810_v15 = vadd.f32 %v6809_v3, %v6742_v19 }
0x23a1   :  { %v6744_v24 = vpop.f32.mrf.mxu0  ;;  %v6811_v9 = vpop.f32.mrf.mxu1 }
0x23a2   :  { %v6812_v59 = vadd.f32 %v6811_v9, %v6744_v24 }
0x23a9   :  { %v6747_v25 = vpop.f32.mrf.mxu0  ;;  %v6814_v43 = vpop.f32.mrf.mxu1 }
0x23aa   :  { %v6815_v17 = vadd.f32 %v6814_v43, %v6747_v25 }
0x23b1   :  { %v6749_v22 = vpop.f32.mrf.mxu0  ;;  %v6816_v38 = vpop.f32.mrf.mxu1 }
0x23b2   :  { %v6817_v6 = vadd.f32 %v6816_v38, %v6749_v22 }
0x23b9   :  { %v7072_v48 = vpop.f32.mrf.mxu0 }
0x23ba   :  { %v7073_v42 = vadd.f32 %v9823_v11, %v7072_v48 }
0x23bc   :  { %v7082_v45 = vmax.f32 %v7073_v42, 0.0  ;;  %v9702_v42 = vld [vmem:[#allocation6 + $0xeb8] sm:$0xff] }
0x23bf   :  { %v6983_v31 = vpop.f32.mrf.mxu3 }
0x23c0   :  { %v6993_v51 = vadd.f32 %v6983_v31, %v6810_v15 }
0x23c1   :  { %v7074_v49 = vpop.f32.mrf.mxu0 }
0x23c2   :  { %v7075_v50 = vadd.f32 %v9823_v11, %v7074_v49  ;;  %v9701_v49 = vld [vmem:[#allocation6 + $0xeb0] sm:$0xff] }
0x23c4   :  { %v7083_v26 = vmax.f32 %v7075_v50, 0.0  ;;  %v9700_v50 = vld [vmem:[#allocation6 + $0xea8] sm:$0xff] }
0x23c6   :  { %v7102_v23 = vpack.c.bf16 %v7083_v26, %v7082_v45  ;;  %v9699_v45 = vld [vmem:[#allocation6 + $0xea0] sm:$0xff]  ;;  %v9698_v26 = vld [vmem:[#allocation6 + $0xe98] sm:$0xff] }
0x23c7   :  { %v6985_v28 = vpop.f32.mrf.mxu3 }
0x23c8   :  { %7160 = vmatmul.bf16.vlgmr.msra.gmra.mxu1 %v7102_v23  ;;  %v6994_v54 = vadd.f32 %v6985_v28, %v6812_v59 }
0x23c9   :  { %v7077_v56 = vpop.f32.mrf.mxu0 }
0x23ca   :  { %v7078_v60 = vadd.f32 %v9823_v11, %v7077_v56 }
0x23cc   :  { %v7084_v1 = vmax.f32 %v7078_v60, 0.0  ;;  %v9697_v60 = vld [vmem:[#allocation6 + $0xe90] sm:$0xff] }
0x23cf   :  { %v6988_v12 = vpop.f32.mrf.mxu3 }
0x23d0   :  { %v6995_v2 = vadd.f32 %v6988_v12, %v6815_v17 }
0x23d1   :  { %v7079_v61 = vpop.f32.mrf.mxu0 }
0x23d2   :  { %v7080_v58 = vadd.f32 %v9823_v11, %v7079_v61  ;;  %v9703_v11 = vld [vmem:[#allocation6 + $0xec0] sm:$0xff] }
0x23d3   :  { %7345 = vmatpush.bf16.msra.mxu2 %v9703_v11  ;;  %9744 = vmatpush.bf16.msra.mxu3 %v9703_v11 }
0x23d4   :  { %v7085_v41 = vmax.f32 %v7080_v58, 0.0  ;;  %v9696_v58 = vld [vmem:[#allocation6 + $0xe88] sm:$0xff] }
0x23d6   :  { %v7103_v36 = vpack.c.bf16 %v7085_v41, %v7084_v1 }
0x23d7   :  { %v6990_v10 = vpop.f32.mrf.mxu3  ;;  %7346 = vmatpush.bf16.msra.mxu2 %v9702_v42  ;;  %9745 = vmatpush.bf16.msra.mxu3 %v9702_v42 }
0x23d8   :  { %7165 = vmatmul.bf16.gmra.mxu1 %v7103_v36  ;;  %v6996_v14 = vadd.f32 %v6990_v10, %v6817_v6  ;;  %v9826_v10 = vld [vmem:[#allocation7 + $0x82] ss:$0 sm:$0xff] }
0x23db   :  { %7347 = vmatpush.bf16.msra.mxu2 %v9701_v49  ;;  %9746 = vmatpush.bf16.msra.mxu3 %v9701_v49  ;;  %v9827_v49 = vld [vmem:[#allocation7 + $0x42] ss:$0 sm:$0xff] }
0x23df   :  { %7348 = vmatpush.bf16.msra.mxu2 %v9700_v50  ;;  %9747 = vmatpush.bf16.msra.mxu3 %v9700_v50 }
0x23e3   :  { %7349 = vmatpush.bf16.msra.mxu2 %v9699_v45  ;;  %9748 = vmatpush.bf16.msra.mxu3 %v9699_v45 }
0x23e7   :  { %7350 = vmatpush.bf16.msra.mxu2 %v9698_v26  ;;  %9749 = vmatpush.bf16.msra.mxu3 %v9698_v26 }
0x23eb   :  { %7351 = vmatpush.bf16.msra.mxu2 %v9697_v60  ;;  %9750 = vmatpush.bf16.msra.mxu3 %v9697_v60 }
0x23ef   :  { %7352 = vmatpush.bf16.msra.mxu2 %v9696_v58  ;;  %9751 = vmatpush.bf16.msra.mxu3 %v9696_v58 }
0x2445   :  { %v7161_v35 = vpop.f32.mrf.mxu1 }
0x2446   :  { %v7171_v37 = vadd.f32 %v7161_v35, %v6993_v51 }
0x2448   :  { %v7177_v7 = vadd.f32 %v9824_v32, %v7171_v37 }
0x244a   :  { %v7181_v40 = vadd.f32 %v7177_v7, %v11106_v5 }
0x244c   :  { %7185 = vadd.xlane.f32.xlu0 %v7181_v40 }
0x244d   :  { %v7163_v55 = vpop.f32.mrf.mxu1 }
0x244e   :  { %v7172_v52 = vadd.f32 %v7163_v55, %v6994_v54 }
0x2450   :  { %v7178_v13 = vadd.f32 %v9824_v32, %v7172_v52 }
0x2452   :  { %v7182_v30 = vadd.f32 %v7178_v13, %v11108_v0  ;;  %v9825_v13 = vld [vmem:[#allocation7 + $0x81] ss:$0 sm:$0xff] }
0x2454   :  { %7187 = vadd.xlane.f32.xlu1 %v7182_v30 }
0x2455   :  { %v7166_v8 = vpop.f32.mrf.mxu1 }
0x2456   :  { %v7173_v63 = vadd.f32 %v7166_v8, %v6995_v2 }
0x2458   :  { %v7179_v53 = vadd.f32 %v9824_v32, %v7173_v63 }
0x245a   :  { %v7183_v29 = vadd.f32 %v7179_v53, %v11118_v33 }
0x245c   :  { %7189 = vadd.xlane.f32.xlu2 %v7183_v29 }
0x245d   :  { %v7168_v5 = vpop.f32.mrf.mxu1 }
0x245e   :  { %v7174_v46 = vadd.f32 %v7168_v5, %v6996_v14 }
0x2460   :  { %v7180_v4 = vadd.f32 %v9824_v32, %v7174_v46 }
0x2462   :  { %v7184_v34 = vadd.f32 %v7180_v4, %v11120_v44 }
0x2464   :  { %7191 = vadd.xlane.f32.xlu0 %v7184_v34 }
0x24bf   :  { %v7186_v27 = vpop.xlane.xlu0 %7185 }
0x24c0   :  { %v7193_v0 = vmul.f32 %v7186_v27, %v10334_v39 }
0x24c2   :  { %v11137_v47 = vsub.f32 %v7181_v40, %v7193_v0 }
0x24c4   :  { %v7201_v62 = vmul.f32 %v11137_v47, %v11137_v47 }
0x24c6   :  { %7205 = vadd.xlane.f32.xlu1 %v7201_v62 }
0x24c7   :  { %v7188_v18 = vpop.xlane.xlu1 %7187 }
0x24c8   :  { %v7194_v33 = vmul.f32 %v7188_v18, %v10334_v39 }
0x24ca   :  { %v11142_v20 = vsub.f32 %v7182_v30, %v7194_v33 }
0x24cc   :  { %v7202_v19 = vmul.f32 %v11142_v20, %v11142_v20 }
0x24ce   :  { %7207 = vadd.xlane.f32.xlu2 %v7202_v19 }
0x24cf   :  { %v7190_v44 = vpop.xlane.xlu2 %7189 }
0x24d0   :  { %v7195_v21 = vmul.f32 %v7190_v44, %v10334_v39 }
0x24d2   :  { %v11147_v57 = vsub.f32 %v7183_v29, %v7195_v21 }
0x24d4   :  { %v7203_v24 = vmul.f32 %v11147_v57, %v11147_v57 }
0x24d6   :  { %7209 = vadd.xlane.f32.xlu0 %v7203_v24 }
0x24d7   :  { %v7192_v16 = vpop.xlane.xlu0 %7191 }
0x24d8   :  { %v7196_v25 = vmul.f32 %v7192_v16, %v10334_v39 }
0x24da   :  { %v11152_v22 = vsub.f32 %v7184_v34, %v7196_v25 }
0x24dc   :  { %v7204_v48 = vmul.f32 %v11152_v22, %v11152_v22 }
0x24de   :  { %7211 = vadd.xlane.f32.xlu1 %v7204_v48 }
0x2539   :  { %v7206_v23 = vpop.xlane.xlu1 %7205 }
0x253a   :  { %v7213_v56 = vmul.f32 %v7206_v23, %v10334_v39 }
0x253c   :  { %v7217_v61 = vadd.f32 1e-05, %v7213_v56 }
0x253e   :  { %9998 = vrsqrt.f32 %v7217_v61  ;;  %vm7227_vm1 = vweird.f32 %v7217_v61 }
0x2541   :  { %v7208_v1 = vpop.xlane.xlu2 %7207 }
0x2542   :  { %v7214_v41 = vmul.f32 %v7208_v1, %v10334_v39 }
0x2544   :  { %v9999_v36 = vpop.eup %9998  ;;  %v7218_v3 = vadd.f32 1e-05, %v7214_v41 }
0x2545   :  { %v7222_v9 = vmul.f32 %v9999_v36, %v7217_v61  ;;  %vm7228_vm0 = vweird.f32 %v9999_v36 }
0x2546   :  { %10000 = vrsqrt.f32 %v7218_v3  ;;  %vm7229_vm2 = vmor %vm7227_vm1, %vm7228_vm0  ;;  %vm7237_vm4 = vweird.f32 %v7218_v3 }
0x2547   :  { %v7223_v43 = vmul.f32 %v9999_v36, %v7222_v9 }
0x2549   :  { %v7224_v31 = vmul.f32 0.5, %v7223_v43  ;;  %v7210_v38 = vpop.xlane.xlu0 %7209 }
0x254a   :  { %v7215_v15 = vmul.f32 %v7210_v38, %v10334_v39 }
0x254b   :  { %v7225_v51 = vsub.f32 1.5, %v7224_v31 }
0x254c   :  { %v10001_v32 = vpop.eup %10000  ;;  %v7219_v28 = vadd.f32 1e-05, %v7215_v15 }
0x254d   :  { %v7226_v35 = vmul.f32 %v9999_v36, %v7225_v51  ;;  %v7232_v37 = vmul.f32 %v10001_v32, %v7218_v3  ;;  %vm7238_vm3 = vweird.f32 %v10001_v32 }
0x254e   :  { %10002 = vrsqrt.f32 %v7219_v28  ;;  %vm7239_vm5 = vmor %vm7237_vm4, %vm7238_vm3  ;;  %vm7247_vm7 = vweird.f32 %v7219_v28 }
0x254f   :  { %v7233_v7 = vmul.f32 %v10001_v32, %v7232_v37  ;;  %v7230_v59 = vsel %vm7229_vm2, %v9999_v36, %v7226_v35 }
0x2550   :  { %v7261_v17 = vmul.f32 %v7230_v59, %v11137_v47 }
0x2551   :  { %v7234_v40 = vmul.f32 0.5, %v7233_v7  ;;  %v7212_v54 = vpop.xlane.xlu1 %7211 }
0x2552   :  { %v7216_v55 = vmul.f32 %v7212_v54, %v10334_v39  ;;  %v7267_v6 = vmul.f32 %v9825_v13, %v7261_v17 }
0x2553   :  { %v7235_v52 = vsub.f32 1.5, %v7234_v40 }
0x2554   :  { %v10003_v12 = vpop.eup %10002  ;;  %v7220_v30 = vadd.f32 1e-05, %v7216_v55  ;;  %v7273_v4 = vadd.f32 %v9826_v10, %v7267_v6 }
0x2555   :  { %v7236_v2 = vmul.f32 %v10001_v32, %v7235_v52  ;;  %v7242_v8 = vmul.f32 %v10003_v12, %v7219_v28  ;;  %vm7248_vm6 = vweird.f32 %v10003_v12 }
0x2556   :  { %10004 = vrsqrt.f32 %v7220_v30  ;;  %vm7249_vm8 = vmor %vm7247_vm7, %vm7248_vm6  ;;  %vm7257_vm10 = vweird.f32 %v7220_v30 }
0x2557   :  { %v7240_v63 = vsel %vm7239_vm5, %v10001_v32, %v7236_v2  ;;  %v7243_v53 = vmul.f32 %v10003_v12, %v7242_v8 }
0x2558   :  { %v7262_v29 = vmul.f32 %v7240_v63, %v11142_v20 }
0x2559   :  { %v7244_v14 = vmul.f32 0.5, %v7243_v53 }
0x255a   :  { %v7268_v39 = vmul.f32 %v9825_v13, %v7262_v29 }
0x255b   :  { %v7245_v5 = vsub.f32 1.5, %v7244_v14 }
0x255c   :  { %v10005_v46 = vpop.eup %10004  ;;  %v7274_v34 = vadd.f32 %v9826_v10, %v7268_v39 }
0x255d   :  { %v7246_v27 = vmul.f32 %v10003_v12, %v7245_v5  ;;  %v7252_v0 = vmul.f32 %v10005_v46, %v7220_v30  ;;  %vm7258_vm9 = vweird.f32 %v10005_v46 }
0x255e   :  { %v7293_v47 = vpack.c.bf16 %v7274_v34, %v7273_v4  ;;  %vm7259_vm11 = vmor %vm7257_vm10, %vm7258_vm9 }
0x255f   :  { %v7253_v62 = vmul.f32 %v10005_v46, %v7252_v0  ;;  %v7250_v18 = vsel %vm7249_vm8, %v10003_v12, %v7246_v27 }
0x2560   :  { %7353 = vmatmul.bf16.vlgmr.msra.gmra.mxu2 %v7293_v47  ;;  %v7263_v20 = vmul.f32 %v7250_v18, %v11147_v57 }
0x2561   :  { %v7254_v33 = vmul.f32 0.5, %v7253_v62 }
0x2562   :  { %v7269_v24 = vmul.f32 %v9825_v13, %v7263_v20 }
0x2563   :  { %v7255_v19 = vsub.f32 1.5, %v7254_v33 }
0x2564   :  { %v7275_v48 = vadd.f32 %v9826_v10, %v7269_v24 }
0x2565   :  { %v7256_v44 = vmul.f32 %v10005_v46, %v7255_v19 }
0x2567   :  { %v7260_v21 = vsel %vm7259_vm11, %v10005_v46, %v7256_v44 }
0x2568   :  { %v7264_v16 = vmul.f32 %v7260_v21, %v11152_v22 }
0x256a   :  { %v7270_v25 = vmul.f32 %v9825_v13, %v7264_v16 }
0x256c   :  { %v7276_v11 = vadd.f32 %v9826_v10, %v7270_v25 }
0x256e   :  { %v7294_v42 = vpack.c.bf16 %v7276_v11, %v7275_v48 }
0x2570   :  { %7358 = vmatmul.bf16.vlgmr.msra.gmra.mxu3 %v7294_v42 }
0x25e3   :  { %v7354_v50 = vpop.f32.mrf.mxu2 }
0x25e4   :  { %v7355_v45 = vadd.f32 %v9827_v49, %v7354_v50 }
0x25e6   :  { %7364 = vst [vmem:[%s11180_s4] sm:$0xff] %v7355_v45 }
0x25eb   :  { %v7356_v57 = vpop.f32.mrf.mxu2 }
0x25ec   :  { %v7357_v26 = vadd.f32 %v9827_v49, %v7356_v57 }
0x25ee   :  { %7365 = vst [vmem:[%s11180_s4 + $0x8] sm:$0xff] %v7357_v26 }
0x25f3   :  { %v7359_v23 = vpop.f32.mrf.mxu3 }
0x25f4   :  { %v7360_v22 = vadd.f32 %v9827_v49, %v7359_v23 }
0x25f6   :  { %7366 = vst [vmem:[%s11180_s4 + $0x10] sm:$0xff] %v7360_v22 }
0x25fb   :  { %v7361_v56 = vpop.f32.mrf.mxu3 }
0x25fc   :  { %v7362_v60 = vadd.f32 %v9827_v49, %v7361_v56 }
0x25fe   :  { %7367 = vst [vmem:[%s11180_s4 + $0x18] sm:$0xff] %v7362_v60 }
0x25ff   :  { %7372 = vsyncpa [#allocation3], 1 }
0x2600   :  { %7373 = vsyncpa [#allocation5], 1 }
0x2601   :  { %7374 = vsyncpa [#allocation8], 1 }

</bundles_post_ra>
